<compile_context>
chip_gen: v7x
topology: tpu7x:2x2x1
jax: 0.10.0
libtpu: 0.0.40
codegen_flags: <defaults>
</compile_context>

<pallas_src>
import jax
import jax.numpy as jnp
from jax.experimental import pallas as pl
from jax.experimental.pallas import tpu as pltpu

LEAKY_SLOPE = 0.01  # nn.LeakyReLU() default negative_slope


# ----------------------------------------------------------------------------
# Fused kernel: one batch element per grid step, everything stays in VMEM/vregs
# ----------------------------------------------------------------------------
def _spatial_attention_kernel(x_ref, rx_ref, w1_ref, b1_ref, w2_ref, b2_ref,
                              o_ref):
    # x_ref : (1, Cx, H, W)   features
    # rx_ref: (1, Crx, H, W)  reference features
    # w1_ref: (Cin, 9*Cin)    conv1 weights, tap-major im2col layout
    # b1_ref: (Cin, 1)
    # w2_ref: (Cout, 9*Cin)   conv2 weights
    # b2_ref: (Cout, 1)
    # o_ref : (1, Cout, H*W)  gated output (lane-dense last dim)
    Cx = x_ref.shape[1]
    H = x_ref.shape[2]
    W = x_ref.shape[3]
    HW = H * W

    def reflect_pad(a):
        # PyTorch padding_mode='reflect', pad=1: index -1 -> 1, H -> H-2.
        a = jnp.concatenate([a[:, 1:2, :], a, a[:, H - 2:H - 1, :]], axis=1)
        a = jnp.concatenate([a[:, :, 1:2], a, a[:, :, W - 2:W - 1]], axis=2)
        return a

    def conv3x3(a, w_mat, b_col):
        # a: (C, H, W) -> (Co, H*W); all 9 taps folded into one K=9*C matmul.
        C = a.shape[0]
        ap = reflect_pad(a)                                   # (C, H+2, W+2)
        cols = [ap[:, dy:dy + H, dx:dx + W].reshape(C, HW)
                for dy in range(3) for dx in range(3)]
        col = jnp.concatenate(cols, axis=0)                   # (9*C, H*W)
        y = jnp.dot(w_mat, col, preferred_element_type=jnp.float32)
        return y + b_col

    x = x_ref[0].astype(jnp.float32)                          # (Cx, H, W)
    rx = rx_ref[0].astype(jnp.float32)                        # (Crx, H, W)
    xrx = jnp.concatenate([x, rx], axis=0)                    # (Cin, H, W)

    h = conv3x3(xrx, w1_ref[...], b1_ref[...])                # (Cin, HW)
    h = jnp.maximum(h, LEAKY_SLOPE * h)                       # LeakyReLU
    h = h.reshape(h.shape[0], H, W)

    a2 = conv3x3(h, w2_ref[...], b2_ref[...])                 # (Cout, HW)
    f = 1.0 / (1.0 + jnp.exp(-a2))                            # sigmoid (EUP)

    af = x.reshape(Cx, HW) * f                                # gate features
    o_ref[0] = af.astype(o_ref.dtype)


# ----------------------------------------------------------------------------
# Wrapper
# ----------------------------------------------------------------------------
def spatial_attention_block(x, rx, params):
    """Fused SpattialAttentionBlock forward.

    x, rx: (N, C, H, W) NCHW (same as the PyTorch module).
    params: (w1, b1, w2, b2) with conv weights in PyTorch OIHW layout.
    Returns af = x * sigmoid(conv2(leaky(conv1(cat(x, rx))))), shape (N, C, H, W).
    """
    N, Cx, H, W = x.shape
    Crx = rx.shape[1]
    Cin = Cx + Crx
    w1, b1, w2, b2 = params
    Cout = w2.shape[0]
    assert w1.shape == (Cin, Cin, 3, 3) and w2.shape == (Cout, Cin, 3, 3)
    assert Cout == Cx, "attention map channels must match x (af = x * f)"
    assert (H * W) % 128 == 0, "H*W must be a multiple of 128 (lane-dense)"
    # TODO(synk): spatially tile (H strips + 1-row halo) if H*W*Cin ever
    # outgrows the VMEM budget (only needed far beyond these toy sizes).

    # Fold the 3x3 taps into the contraction dim (tap-major, channel-minor) so
    # each conv is a single K = 9*Cin matmul inside the kernel.
    w1m = w1.transpose(0, 2, 3, 1).reshape(Cin, 9 * Cin)
    w2m = w2.transpose(0, 2, 3, 1).reshape(Cout, 9 * Cin)
    b1c = b1.reshape(Cin, 1)
    b2c = b2.reshape(Cout, 1)

    out_flat = pl.pallas_call(
        _spatial_attention_kernel,
        out_shape=jax.ShapeDtypeStruct((N, Cout, H * W), x.dtype),
        grid_spec=pltpu.PrefetchScalarGridSpec(
            num_scalar_prefetch=0,
            grid=(N,),
            in_specs=[
                pl.BlockSpec((1, Cx, H, W), lambda n: (n, 0, 0, 0)),
                pl.BlockSpec((1, Crx, H, W), lambda n: (n, 0, 0, 0)),
                pl.BlockSpec((Cin, 9 * Cin), lambda n: (0, 0)),
                pl.BlockSpec((Cin, 1), lambda n: (0, 0)),
                pl.BlockSpec((Cout, 9 * Cin), lambda n: (0, 0)),
                pl.BlockSpec((Cout, 1), lambda n: (0, 0)),
            ],
            out_specs=pl.BlockSpec((1, Cout, H * W), lambda n: (n, 0, 0)),
        ),
        compiler_params=pltpu.CompilerParams(
            dimension_semantics=("parallel",)),  # batch across TCs on v7x
    )(x, rx, w1m, b1c, w2m, b2c)
    return out_flat.reshape(N, Cout, H, W)


# ----------------------------------------------------------------------------
# Parameter init (PyTorch layouts: OIHW conv weights)
# ----------------------------------------------------------------------------
def init_spatial_attention_params(key, in_channels, out_channels):
    k1, k2, k3, k4 = jax.random.split(key, 4)
    w1 = 0.1 * jax.random.normal(k1, (in_channels, in_channels, 3, 3),
                                 jnp.float32)
    b1 = 0.1 * jax.random.normal(k2, (in_channels,), jnp.float32)
    w2 = 0.1 * jax.random.normal(k3, (out_channels, in_channels, 3, 3),
                                 jnp.float32)
    b2 = 0.1 * jax.random.normal(k4, (out_channels,), jnp.float32)
    return (w1, b1, w2, b2)


# ----------------------------------------------------------------------------
# Pure-JAX reference (for correctness check)
# ----------------------------------------------------------------------------
def _ref_conv3x3_reflect(x, w, b):
    xp = jnp.pad(x, ((0, 0), (0, 0), (1, 1), (1, 1)), mode="reflect")
    y = jax.lax.conv_general_dilated(
        xp, w, window_strides=(1, 1), padding="VALID",
        dimension_numbers=("NCHW", "OIHW", "NCHW"))
    return y + b.reshape(1, -1, 1, 1)


def spatial_attention_block_ref(x, rx, params):
    w1, b1, w2, b2 = params
    xrx = jnp.concatenate([x, rx], axis=1)
    h = _ref_conv3x3_reflect(xrx, w1, b1)
    h = jnp.where(h > 0, h, LEAKY_SLOPE * h)
    f = jax.nn.sigmoid(_ref_conv3x3_reflect(h, w2, b2))
    return x * f


if __name__ == "__main__":
    key = jax.random.PRNGKey(0)
    N, C, H, W = 2, 4, 16, 16        # x and rx each have C channels
    in_channels = 2 * C              # conv1 sees cat(x, rx)
    out_channels = C                 # attention map gates x elementwise

    key, kx, krx = jax.random.split(key, 3)
    x = jax.random.normal(kx, (N, C, H, W), jnp.float32)
    rx = jax.random.normal(krx, (N, C, H, W), jnp.float32)
    params = init_spatial_attention_params(key, in_channels, out_channels)

    out = jax.block_until_ready(spatial_attention_block(x, rx, params))
    ref = jax.block_until_ready(spatial_attention_block_ref(x, rx, params))

    assert out.shape == (N, C, H, W)
    assert jnp.allclose(out, ref, atol=1e-4, rtol=1e-4), (
        float(jnp.max(jnp.abs(out - ref))))
    print("KERNEL_OK")
</pallas_src>

<mosaic_0001>
module attributes {stable_mosaic.version = 11 : i64} {
  func.func @_spatial_attention_kernel(%arg0: i32, %arg1: memref<1x4x16x16xf32, #tpu.memory_space<vmem>>, %arg2: memref<1x4x16x16xf32, #tpu.memory_space<vmem>>, %arg3: memref<8x72xf32, #tpu.memory_space<vmem>>, %arg4: memref<8x1xf32, #tpu.memory_space<vmem>>, %arg5: memref<4x72xf32, #tpu.memory_space<vmem>>, %arg6: memref<4x1xf32, #tpu.memory_space<vmem>>, %arg7: memref<1x4x256xf32, #tpu.memory_space<vmem>>) attributes {dimension_semantics = [#tpu.dimension_semantics<parallel>], iteration_bounds = array<i64: 2>, scalar_prefetch = 0 : i64, scratch_operands = 0 : i64, tpu.core_type = #tpu.core_type<tc>, window_params = [{transform_indices = @transform_0, window_bounds = array<i64: 1, 4, 16, 16>}, {transform_indices = @transform_1, window_bounds = array<i64: 1, 4, 16, 16>}, {pipeline_mode = #tpu.pipeline_mode<synchronous>, transform_indices = @transform_2, window_bounds = array<i64: 8, 72>}, {pipeline_mode = #tpu.pipeline_mode<synchronous>, transform_indices = @transform_3, window_bounds = array<i64: 8, 1>}, {pipeline_mode = #tpu.pipeline_mode<synchronous>, transform_indices = @transform_4, window_bounds = array<i64: 4, 72>}, {pipeline_mode = #tpu.pipeline_mode<synchronous>, transform_indices = @transform_5, window_bounds = array<i64: 4, 1>}, {transform_indices = @transform_6, window_bounds = array<i64: 1, 4, 256>}]} {
    %c0 = arith.constant 0 : index
    %c0_0 = arith.constant 0 : index
    %c0_1 = arith.constant 0 : index
    %c0_2 = arith.constant 0 : index
    %0 = vector.load %arg1[%c0, %c0_0, %c0_1, %c0_2] : memref<1x4x16x16xf32, #tpu.memory_space<vmem>>, vector<1x4x16x16xf32>
    %1 = vector.shape_cast %0 : vector<1x4x16x16xf32> to vector<4x16x16xf32>
    %c0_3 = arith.constant 0 : index
    %c0_4 = arith.constant 0 : index
    %c0_5 = arith.constant 0 : index
    %c0_6 = arith.constant 0 : index
    %2 = vector.load %arg2[%c0_3, %c0_4, %c0_5, %c0_6] : memref<1x4x16x16xf32, #tpu.memory_space<vmem>>, vector<1x4x16x16xf32>
    %3 = vector.shape_cast %2 : vector<1x4x16x16xf32> to vector<4x16x16xf32>
    %4 = tpu.concatenate %1, %3 in 0 : vector<4x16x16xf32>, vector<4x16x16xf32> -> vector<8x16x16xf32>
    %c0_7 = arith.constant 0 : index
    %c0_8 = arith.constant 0 : index
    %5 = vector.load %arg3[%c0_7, %c0_8] : memref<8x72xf32, #tpu.memory_space<vmem>>, vector<8x72xf32>
    %c0_9 = arith.constant 0 : index
    %c0_10 = arith.constant 0 : index
    %6 = vector.load %arg4[%c0_9, %c0_10] : memref<8x1xf32, #tpu.memory_space<vmem>>, vector<8x1xf32>
    %7 = vector.extract_strided_slice %4 {offsets = [0, 1, 0], sizes = [8, 1, 16], strides = [1, 1, 1]} : vector<8x16x16xf32> to vector<8x1x16xf32>
    %8 = vector.extract_strided_slice %4 {offsets = [0, 14, 0], sizes = [8, 1, 16], strides = [1, 1, 1]} : vector<8x16x16xf32> to vector<8x1x16xf32>
    %9 = tpu.concatenate %7, %4, %8 in 1 : vector<8x1x16xf32>, vector<8x16x16xf32>, vector<8x1x16xf32> -> vector<8x18x16xf32>
    %10 = vector.extract_strided_slice %9 {offsets = [0, 0, 1], sizes = [8, 18, 1], strides = [1, 1, 1]} : vector<8x18x16xf32> to vector<8x18x1xf32>
    %11 = vector.extract_strided_slice %9 {offsets = [0, 0, 14], sizes = [8, 18, 1], strides = [1, 1, 1]} : vector<8x18x16xf32> to vector<8x18x1xf32>
    %12 = tpu.concatenate %10, %9, %11 in 2 : vector<8x18x1xf32>, vector<8x18x16xf32>, vector<8x18x1xf32> -> vector<8x18x18xf32>
    %13 = vector.extract_strided_slice %12 {offsets = [0, 0, 0], sizes = [8, 16, 16], strides = [1, 1, 1]} : vector<8x18x18xf32> to vector<8x16x16xf32>
    %14 = vector.shape_cast %13 : vector<8x16x16xf32> to vector<8x256xf32>
    %15 = vector.extract_strided_slice %12 {offsets = [0, 0, 1], sizes = [8, 16, 16], strides = [1, 1, 1]} : vector<8x18x18xf32> to vector<8x16x16xf32>
    %16 = vector.shape_cast %15 : vector<8x16x16xf32> to vector<8x256xf32>
    %17 = vector.extract_strided_slice %12 {offsets = [0, 0, 2], sizes = [8, 16, 16], strides = [1, 1, 1]} : vector<8x18x18xf32> to vector<8x16x16xf32>
    %18 = vector.shape_cast %17 : vector<8x16x16xf32> to vector<8x256xf32>
    %19 = vector.extract_strided_slice %12 {offsets = [0, 1, 0], sizes = [8, 16, 16], strides = [1, 1, 1]} : vector<8x18x18xf32> to vector<8x16x16xf32>
    %20 = vector.shape_cast %19 : vector<8x16x16xf32> to vector<8x256xf32>
    %21 = vector.extract_strided_slice %12 {offsets = [0, 1, 1], sizes = [8, 16, 16], strides = [1, 1, 1]} : vector<8x18x18xf32> to vector<8x16x16xf32>
    %22 = vector.shape_cast %21 : vector<8x16x16xf32> to vector<8x256xf32>
    %23 = vector.extract_strided_slice %12 {offsets = [0, 1, 2], sizes = [8, 16, 16], strides = [1, 1, 1]} : vector<8x18x18xf32> to vector<8x16x16xf32>
    %24 = vector.shape_cast %23 : vector<8x16x16xf32> to vector<8x256xf32>
    %25 = vector.extract_strided_slice %12 {offsets = [0, 2, 0], sizes = [8, 16, 16], strides = [1, 1, 1]} : vector<8x18x18xf32> to vector<8x16x16xf32>
    %26 = vector.shape_cast %25 : vector<8x16x16xf32> to vector<8x256xf32>
    %27 = vector.extract_strided_slice %12 {offsets = [0, 2, 1], sizes = [8, 16, 16], strides = [1, 1, 1]} : vector<8x18x18xf32> to vector<8x16x16xf32>
    %28 = vector.shape_cast %27 : vector<8x16x16xf32> to vector<8x256xf32>
    %29 = vector.extract_strided_slice %12 {offsets = [0, 2, 2], sizes = [8, 16, 16], strides = [1, 1, 1]} : vector<8x18x18xf32> to vector<8x16x16xf32>
    %30 = vector.shape_cast %29 : vector<8x16x16xf32> to vector<8x256xf32>
    %31 = tpu.concatenate %14, %16, %18, %20, %22, %24, %26, %28, %30 in 0 : vector<8x256xf32>, vector<8x256xf32>, vector<8x256xf32>, vector<8x256xf32>, vector<8x256xf32>, vector<8x256xf32>, vector<8x256xf32>, vector<8x256xf32>, vector<8x256xf32> -> vector<72x256xf32>
    %cst = arith.constant dense<0.000000e+00> : vector<8x256xf32>
    %32 = tpu.matmul %5, %31, %cst {dimension_numbers = #tpu.dot_dimension_numbers<[1], [0], [0], [1], [0, 0, 1, 1], [], []>} : vector<8x72xf32>, vector<72x256xf32>, vector<8x256xf32> -> vector<8x256xf32>
    %33 = vector.broadcast %6 : vector<8x1xf32> to vector<8x256xf32>
    %34 = arith.addf %32, %33 : vector<8x256xf32>
    %cst_11 = arith.constant 0.00999999977 : f32
    %35 = vector.broadcast %cst_11 : f32 to vector<8x256xf32>
    %36 = arith.mulf %35, %34 : vector<8x256xf32>
    %37 = arith.maximumf %34, %36 : vector<8x256xf32>
    %38 = vector.shape_cast %37 : vector<8x256xf32> to vector<8x16x16xf32>
    %c0_12 = arith.constant 0 : index
    %c0_13 = arith.constant 0 : index
    %39 = vector.load %arg5[%c0_12, %c0_13] : memref<4x72xf32, #tpu.memory_space<vmem>>, vector<4x72xf32>
    %c0_14 = arith.constant 0 : index
    %c0_15 = arith.constant 0 : index
    %40 = vector.load %arg6[%c0_14, %c0_15] : memref<4x1xf32, #tpu.memory_space<vmem>>, vector<4x1xf32>
    %41 = vector.extract_strided_slice %38 {offsets = [0, 1, 0], sizes = [8, 1, 16], strides = [1, 1, 1]} : vector<8x16x16xf32> to vector<8x1x16xf32>
    %42 = vector.extract_strided_slice %38 {offsets = [0, 14, 0], sizes = [8, 1, 16], strides = [1, 1, 1]} : vector<8x16x16xf32> to vector<8x1x16xf32>
    %43 = tpu.concatenate %41, %38, %42 in 1 : vector<8x1x16xf32>, vector<8x16x16xf32>, vector<8x1x16xf32> -> vector<8x18x16xf32>
    %44 = vector.extract_strided_slice %43 {offsets = [0, 0, 1], sizes = [8, 18, 1], strides = [1, 1, 1]} : vector<8x18x16xf32> to vector<8x18x1xf32>
    %45 = vector.extract_strided_slice %43 {offsets = [0, 0, 14], sizes = [8, 18, 1], strides = [1, 1, 1]} : vector<8x18x16xf32> to vector<8x18x1xf32>
    %46 = tpu.concatenate %44, %43, %45 in 2 : vector<8x18x1xf32>, vector<8x18x16xf32>, vector<8x18x1xf32> -> vector<8x18x18xf32>
    %47 = vector.extract_strided_slice %46 {offsets = [0, 0, 0], sizes = [8, 16, 16], strides = [1, 1, 1]} : vector<8x18x18xf32> to vector<8x16x16xf32>
    %48 = vector.shape_cast %47 : vector<8x16x16xf32> to vector<8x256xf32>
    %49 = vector.extract_strided_slice %46 {offsets = [0, 0, 1], sizes = [8, 16, 16], strides = [1, 1, 1]} : vector<8x18x18xf32> to vector<8x16x16xf32>
    %50 = vector.shape_cast %49 : vector<8x16x16xf32> to vector<8x256xf32>
    %51 = vector.extract_strided_slice %46 {offsets = [0, 0, 2], sizes = [8, 16, 16], strides = [1, 1, 1]} : vector<8x18x18xf32> to vector<8x16x16xf32>
    %52 = vector.shape_cast %51 : vector<8x16x16xf32> to vector<8x256xf32>
    %53 = vector.extract_strided_slice %46 {offsets = [0, 1, 0], sizes = [8, 16, 16], strides = [1, 1, 1]} : vector<8x18x18xf32> to vector<8x16x16xf32>
    %54 = vector.shape_cast %53 : vector<8x16x16xf32> to vector<8x256xf32>
    %55 = vector.extract_strided_slice %46 {offsets = [0, 1, 1], sizes = [8, 16, 16], strides = [1, 1, 1]} : vector<8x18x18xf32> to vector<8x16x16xf32>
    %56 = vector.shape_cast %55 : vector<8x16x16xf32> to vector<8x256xf32>
    %57 = vector.extract_strided_slice %46 {offsets = [0, 1, 2], sizes = [8, 16, 16], strides = [1, 1, 1]} : vector<8x18x18xf32> to vector<8x16x16xf32>
    %58 = vector.shape_cast %57 : vector<8x16x16xf32> to vector<8x256xf32>
    %59 = vector.extract_strided_slice %46 {offsets = [0, 2, 0], sizes = [8, 16, 16], strides = [1, 1, 1]} : vector<8x18x18xf32> to vector<8x16x16xf32>
    %60 = vector.shape_cast %59 : vector<8x16x16xf32> to vector<8x256xf32>
    %61 = vector.extract_strided_slice %46 {offsets = [0, 2, 1], sizes = [8, 16, 16], strides = [1, 1, 1]} : vector<8x18x18xf32> to vector<8x16x16xf32>
    %62 = vector.shape_cast %61 : vector<8x16x16xf32> to vector<8x256xf32>
    %63 = vector.extract_strided_slice %46 {offsets = [0, 2, 2], sizes = [8, 16, 16], strides = [1, 1, 1]} : vector<8x18x18xf32> to vector<8x16x16xf32>
    %64 = vector.shape_cast %63 : vector<8x16x16xf32> to vector<8x256xf32>
    %65 = tpu.concatenate %48, %50, %52, %54, %56, %58, %60, %62, %64 in 0 : vector<8x256xf32>, vector<8x256xf32>, vector<8x256xf32>, vector<8x256xf32>, vector<8x256xf32>, vector<8x256xf32>, vector<8x256xf32>, vector<8x256xf32>, vector<8x256xf32> -> vector<72x256xf32>
    %cst_16 = arith.constant dense<0.000000e+00> : vector<4x256xf32>
    %66 = tpu.matmul %39, %65, %cst_16 {dimension_numbers = #tpu.dot_dimension_numbers<[1], [0], [0], [1], [0, 0, 1, 1], [], []>} : vector<4x72xf32>, vector<72x256xf32>, vector<4x256xf32> -> vector<4x256xf32>
    %67 = vector.broadcast %40 : vector<4x1xf32> to vector<4x256xf32>
    %68 = arith.addf %66, %67 : vector<4x256xf32>
    %cst_17 = arith.constant 0.000000e+00 : f32
    %69 = vector.broadcast %cst_17 : f32 to vector<4x256xf32>
    %70 = arith.subf %69, %68 : vector<4x256xf32>
    %71 = math.exp %70 : vector<4x256xf32>
    %cst_18 = arith.constant 1.000000e+00 : f32
    %72 = vector.broadcast %cst_18 : f32 to vector<4x256xf32>
    %73 = arith.addf %72, %71 : vector<4x256xf32>
    %cst_19 = arith.constant 1.000000e+00 : f32
    %74 = vector.broadcast %cst_19 : f32 to vector<4x256xf32>
    %75 = arith.divf %74, %73 : vector<4x256xf32>
    %76 = vector.shape_cast %1 : vector<4x16x16xf32> to vector<4x256xf32>
    %77 = arith.mulf %76, %75 : vector<4x256xf32>
    %c0_20 = arith.constant 0 : index
    %c0_21 = arith.constant 0 : index
    %c0_22 = arith.constant 0 : index
    %78 = vector.load %arg7[%c0_20, %c0_21, %c0_22] : memref<1x4x256xf32, #tpu.memory_space<vmem>>, vector<1x4x256xf32>
    %79 = vector.shape_cast %78 : vector<1x4x256xf32> to vector<4x256xf32>
    %80 = vector.shape_cast %77 : vector<4x256xf32> to vector<1x4x256xf32>
    tpu.vector_store %arg7[%c0_20, %c0_21, %c0_22], %80 {strides = array<i32>} : memref<1x4x256xf32, #tpu.memory_space<vmem>>, vector<1x4x256xf32>,
    return
  }
  func.func @transform_0(%arg0: i32) -> (i32, i32, i32, i32) {
    %c0_i32 = arith.constant 0 : i32
    %c0_i32_0 = arith.constant 0 : i32
    %c0_i32_1 = arith.constant 0 : i32
    %c0_i32_2 = arith.constant 0 : i32
    return %arg0, %c0_i32, %c0_i32_0, %c0_i32_1 : i32, i32, i32, i32
  }
  func.func @transform_1(%arg0: i32) -> (i32, i32, i32, i32) {
    %c0_i32 = arith.constant 0 : i32
    %c0_i32_0 = arith.constant 0 : i32
    %c0_i32_1 = arith.constant 0 : i32
    %c0_i32_2 = arith.constant 0 : i32
    return %arg0, %c0_i32, %c0_i32_0, %c0_i32_1 : i32, i32, i32, i32
  }
  func.func @transform_2(%arg0: i32) -> (i32, i32) {
    %c0_i32 = arith.constant 0 : i32
    %c0_i32_0 = arith.constant 0 : i32
    %c0_i32_1 = arith.constant 0 : i32
    return %c0_i32, %c0_i32_0 : i32, i32
  }
  func.func @transform_3(%arg0: i32) -> (i32, i32) {
    %c0_i32 = arith.constant 0 : i32
    %c0_i32_0 = arith.constant 0 : i32
    %c0_i32_1 = arith.constant 0 : i32
    return %c0_i32, %c0_i32_0 : i32, i32
  }
  func.func @transform_4(%arg0: i32) -> (i32, i32) {
    %c0_i32 = arith.constant 0 : i32
    %c0_i32_0 = arith.constant 0 : i32
    %c0_i32_1 = arith.constant 0 : i32
    return %c0_i32, %c0_i32_0 : i32, i32
  }
  func.func @transform_5(%arg0: i32) -> (i32, i32) {
    %c0_i32 = arith.constant 0 : i32
    %c0_i32_0 = arith.constant 0 : i32
    %c0_i32_1 = arith.constant 0 : i32
    return %c0_i32, %c0_i32_0 : i32, i32
  }
  func.func @transform_6(%arg0: i32) -> (i32, i32, i32) {
    %c0_i32 = arith.constant 0 : i32
    %c0_i32_0 = arith.constant 0 : i32
    %c0_i32_1 = arith.constant 0 : i32
    return %arg0, %c0_i32, %c0_i32_0 : i32, i32, i32
  }
}

</mosaic_0001>

<bundles_post_ra>
// kernel: tpu_custom_call.1
= control target key start
LH: loop header
LB: loop body
LE: loop exit
PB: predicated region body
PF: predicated region fallthrough
CT: control target
= control target key end

     0   :  { %s15184_s0 = inlined_call_operand.hbm [shape: f32[2,4,16,16], index: 0, kind: input, shape index: {}]   ;;  %s15185_s1 = inlined_call_operand.hbm [shape: f32[2,4,16,16], index: 1, kind: input, shape index: {}]   ;;  %s15186_s2 = inlined_call_operand.vmem [shape: f32[8,72], index: 2, kind: input, shape index: {}]   ;;  %s15187_s3 = inlined_call_operand.vmem [shape: f32[8,1], index: 3, kind: input, shape index: {}]   ;;  %s15188_s4 = inlined_call_operand.vmem [shape: f32[4,72], index: 4, kind: input, shape index: {}]   ;;  %s15189_s5 = inlined_call_operand.vmem [shape: f32[4,1], index: 5, kind: input, shape index: {}]   ;;  %s15190_s6 = inlined_call_operand.hbm [shape: f32[2,4,256], index: 6, kind: output, shape index: {}]  }
   0x1   :  { %15433 = sst [smem:[#allocation81_spill]] %s15184_s0 }
   0x2   :  { %11 = vsyncpa [#allocation3], 0 }
   0x3   :  { %13 = vsyncpa [#allocation3 + $0x1], 0 }
   0x4   :  { %14 = vsyncpa [#allocation6], 0 }
   0x5   :  { %16 = vsyncpa [#allocation6 + $0x1], 0 }
   0x6   :  { %17 = vsyncpa [#allocation4], 0 }
   0x7   :  { %19 = vsyncpa [#allocation4 + $0x1], 0  ;;  %s9813_s21 = smov 0   ;;  %s9815_s22 = smov 0  }
   0x8   :  { %s9817_s23 = smov 0   ;;  %s9819_s24 = smov 0  }
   0x9 LB: > { %s9834_s25 = sadd.s32 4294967295, %s9756_s24   ;;  %s8926_s26 = sadd.s32 4294967294, %s9756_s24   ;;  %s9756_s24 = sphi %s9819_s24, %s15913_s24   ;;  %s9752_s23 = sphi %s9817_s23, %s15912_s23   ;;  %s9748_s22 = sphi %s9815_s22, %s15911_s22   ;;  %s9744_s21 = sphi %s9813_s21, %s15910_s21  }
   0xa   : > { %s9838_s27 = sadd.s32 1, %s9756_s24   ;;  %s32_s28 = sadd.s32 1, %s9752_s23 }
   0xb   : > { %s29_s29 = ssub.s32 %s9756_s24, %s9838_s27  ;;  %p39_p0 = scmp.ne.s32.totalorder %s9752_s23, %s9748_s22 }
   0xc   : > { %p30_p1 = scmp.eq.s32.totalorder %s29_s29, 0  ;;  %p40_p2 = scmp.eq.s32.totalorder %s9756_s24, 0 }
   0xd   : > { %p45_p3 = scmp.ne.s32.totalorder %s9748_s22, %s9744_s21  ;;  %p46_p4 = scmp.eq.s32.totalorder %s9834_s25, 0 }
   0xe   : > { %s9850_s30 = scalar_select %p30_p1, %s9752_s23, %s32_s28  }
   0xf   : > { %p9852_p5 = por %p40_p2, %p39_p0  ;;  %p9856_p6 = por %p46_p4, %p45_p3 }
  0x10   : > { %p179_p7 = scmp.eq.s32.totalorder %s9834_s25, 1  ;;  %p185_p8 = scmp.eq.s32.totalorder %s8926_s26, 1 }
  0x11   : > { %s15435_s8 = scalar_select %p9856_p6, 1, 0 }
  0x12   : > { %p8998_p10 = scmp.lt.s32.totalorder %s9756_s24, 2  ;;  %p9863_p11 = por %p179_p7, %p39_p0 }
  0x13   : > { %p9867_p12 = por %p185_p8, %p45_p3  ;;  %s9872_s11 = sand.u32 1, %s9752_s23  }
  0x14   : > { %s15436_s9 = scalar_select %p9863_p11, 1, 0 }
  0x15   : > { %s15437_s10 = scalar_select %p9867_p12, 1, 0 }
  0x16   : > { %s8946_s12 = sshll.u32 %s9756_s24, 10  ;;  %s8929_s13 = sshll.u32 %s9872_s11, 6 }
  0x17   : > { %s15438_s0 = sld [smem:[#allocation81_spill]]  ;;  %s221_s17 = scalar_lea.vmem [#allocation2], %s8929_s13 }
  0x18   : > { %s228_s18 = sshll.u32 %s221_s17, 4  ;;  %p9887_p13 = pnand %p8998_p10, %p9852_p5  ;;  %s9891_s18 = int_to_ptr.vmem [resolvable:$true] %s228_s18 }
  0x19   : > { %s218_s20 = scalar_lea.sflag [#allocation3], %s9872_s11 }
  0x1a   : > { %p9628_p1 = pneg %p9887_p13 }
  0x1d   : > { %s9881_s16 = scalar_lea.hbm %s15438_s0, %s8946_s12  ;;  %s9631_s7 = scalar_lea.hbm %s15438_s0, 2048 }
  0x1e   : > { %s9626_s26 = scalar_lea.hbm %s9881_s16, 1024  ;;  %p9632_p4 = scmp.lt.u32.totalorder %s9881_s16, %s15438_s0 }
  0x1f   : > { %p9627_p0 = scmp.ne.s32.totalorder %s9881_s16, %s9626_s26  ;;  %p9633_p5 = scmp.lt.u32.totalorder %s9631_s7, %s9626_s26 }
  0x20   : > { %p9635_p8 = scmp.lt.u32.totalorder %s9626_s26, %s9881_s16 }
  0x21   : > { %p9629_p2 = pnand %p9628_p1, %p9627_p0  ;;  %p9634_p7 = por %p9633_p5, %p9632_p4 }
  0x23   : > { %p9630_p3 = pneg %p9629_p2  ;;  %p9636_p10 = por %p9635_p8, %p9634_p7 }
  0x25   : > { %p9637_p9 = pnand %p9636_p10, %p9630_p3 }
  0x27   : > { %9640 = shalt.err (!%p9637_p9)
}
  0x28   : > { %s9641_s17 = scalar_lea.vmem %s9891_s18, 1024  ;;  %s9758_s28 = smov [#allocation2]  }
  0x29   : > { %p9642_p0 = scmp.ne.s32.totalorder %s9891_s18, %s9641_s17  ;;  %s9646_s29 = sshll.u32 %s9758_s28, 4  ;;  %s9647_s29 = int_to_ptr.vmem [resolvable:$false] %s9646_s29 }
  0x2a   : > { %s9648_s14 = scalar_lea.vmem %s9647_s29, 2048  ;;  %p9649_p11 = scmp.lt.s32.totalorder %s9891_s18, %s9647_s29 }
  0x2b   : > { %p9644_p2 = pnand %p9642_p0, %p9628_p1  ;;  %p9650_p4 = scmp.lt.s32.totalorder %s9648_s14, %s9641_s17 }
  0x2d   : > { %p9645_p12 = pneg %p9644_p2  ;;  %p9651_p5 = por %p9650_p4, %p9649_p11 }
  0x2f   : > { %p9652_p7 = pnand %p9651_p5, %p9645_p12 }
  0x31   : > { %9655 = shalt.err (!%p9652_p7)
}
  0x32   : > { %s15192_s26 = smov 128   ;;  %s9760_s7 = smov 8  }
  0x33   : > { %8990 = dma.hbm_to_vmem [thread:$0]  (!%p9887_p13), %s9881_s16, 1024, %s9891_s18, %s218_s20, %s15192_s26, %s15192_s26, %s9760_s7  }
  0x34   : > { %p8935_p9 = scmp.ge.s32.totalorder %s9756_s24, 1  ;;  %p257_p11 = scmp.lt.s32.totalorder %s9756_s24, 3 }
  0x35   : > { %s9935_s29 = scalar_lea.hbm %s15185_s1, %s8946_s12  ;;  %s242_s14 = scalar_lea.vmem [#allocation5], %s8929_s13 }
  0x36   : > { %p9926_p12 = pnand %p8935_p9, %p257_p11  ;;  %s249_s0 = sshll.u32 %s242_s14, 4  ;;  %s9939_s0 = int_to_ptr.vmem [resolvable:$true] %s249_s0 }
  0x37   : > { %s239_s16 = scalar_lea.sflag [#allocation6], %s9872_s11  ;;  %s9656_s18 = scalar_lea.hbm %s9935_s29, 1024 }
  0x38   : > { %p9657_p3 = scmp.ne.s32.totalorder %s9935_s29, %s9656_s18  ;;  %s9661_s12 = scalar_lea.hbm %s15185_s1, 2048 }
  0x39   : > { %p9662_p0 = scmp.lt.u32.totalorder %s9935_s29, %s15185_s1  ;;  %p9663_p2 = scmp.lt.u32.totalorder %s9661_s12, %s9656_s18 }
  0x3a   : > { %p9659_p8 = pnand %p9657_p3, %p9628_p1  ;;  %p9665_p5 = scmp.lt.u32.totalorder %s9656_s18, %s9935_s29 }
  0x3b   : > { %p9664_p4 = por %p9663_p2, %p9662_p0 }
  0x3c   : > { %p9660_p10 = pneg %p9659_p8 }
  0x3d   : > { %p9666_p7 = por %p9665_p5, %p9664_p4 }
  0x3f   : > { %p9667_p9 = pnand %p9666_p7, %p9660_p10 }
  0x41   : > { %9670 = shalt.err (!%p9667_p9)
}
  0x42   : > { %s9671_s13 = scalar_lea.vmem %s9939_s0, 1024  ;;  %s9761_s14 = smov [#allocation5]  }
  0x43   : > { %p9672_p11 = scmp.ne.s32.totalorder %s9939_s0, %s9671_s13  ;;  %s9676_s20 = sshll.u32 %s9761_s14, 4  ;;  %s9677_s20 = int_to_ptr.vmem [resolvable:$false] %s9676_s20 }
  0x44   : > { %s9678_s26 = scalar_lea.vmem %s9677_s20, 2048  ;;  %p9679_p6 = scmp.lt.s32.totalorder %s9939_s0, %s9677_s20 }
  0x45   : > { %p9674_p3 = pnand %p9672_p11, %p9628_p1  ;;  %p9680_p0 = scmp.lt.s32.totalorder %s9678_s26, %s9671_s13 }
  0x47   : > { %p9675_p8 = pneg %p9674_p3  ;;  %p9681_p2 = por %p9680_p0, %p9679_p6 }
  0x49   : > { %p9682_p4 = pnand %p9681_p2, %p9675_p8 }
  0x4b   : > { %9685 = shalt.err (!%p9682_p4)
}
  0x4c   : > { %s15441_s18 = smov 128   ;;  %261 = sbr.rel (%p9926_p12) target bundleno = 2269 (0x8dd), region = 44 }
  0x4d   : > { %8993 = dma.hbm_to_vmem [thread:$0]  (!%p9887_p13), %s9935_s29, 1024, %s9939_s0, %s239_s16, %s15441_s18, %s15441_s18, %s9760_s7  }
  0x53   : > { %s9973_s17 = sand.u32 1, %s9748_s22   ;;  %p15442_p6 = scmp.ne.s32.totalorder %s15435_s8, 0 }
  0x54   : > { %s8936_s12 = sshll.u32 %s9973_s17, 6  ;;  %s264_s28 = scalar_lea.sflag [#allocation3], %s9973_s17 }
  0x55   : > { %s9977_s19 = scalar_lea.vmem [#allocation2], %s8936_s12 }
  0x56   : > { %9731 = dma.done.wait (%p15442_p6), %s264_s28, 1024  }
  0x57   : > { %9733 = vsyncadd (%p15442_p6), %s264_s28, 4294966272  ;;  %s273_s0 = scalar_lea.sflag [#allocation6], %s9973_s17  ;;  %s9984_s11 = scalar_lea.vmem [#allocation5], %s8936_s12 }
  0x58   : > { %9735 = dma.done.wait (%p15442_p6), %s273_s0, 1024  }
  0x59   : > { %9737 = vsyncadd (%p15442_p6), %s273_s0, 4294966272  ;;  %v311_v0 = vld [vmem:[%s9977_s19 + $0x8] sm:$0xff]  ;;  %vm360_vm0 = vcmask 1040384   ;;  %v310_v1 = vld [vmem:[%s9977_s19] sm:$0xff]  ;;  %s9762_s8 = smov 127   ;;  %s9763_s7 = smov 1  }
  0x5a   : > { %v312_v2 = vld [vmem:[%s9977_s19 + $0x10] sm:$0xff]  ;;  %v362_v3 = vrot.slane %v311_v0, 7  ;;  %v401_v4 = vrot.slane %v311_v0, 5  ;;  %v336_v5 = vrot.slane %v310_v1, 1  ;;  %v361_v6 = vrot.slane %v310_v1, 7  ;;  %v313_v9 = vld [vmem:[%s9977_s19 + $0x18] sm:$0xff] }
  0x5b   : > { %v337_v7 = vrot.slane %v312_v2, 1  ;;  %v364_v8 = vrot.slane %v312_v2, 7  ;;  %v365_v14 = vrot.slane %v313_v9, 7  ;;  %v402_v15 = vrot.slane %v313_v9, 5  ;;  %v314_v16 = vld [vmem:[%s9977_s19 + $0x20] sm:$0xff]  ;;  %v315_v17 = vld [vmem:[%s9977_s19 + $0x28] sm:$0xff] }
  0x5c   : > { %v9995_v10 = vsel %vm360_vm0, %v362_v3, %v401_v4  ;;  %v9998_v11 = vsel %vm360_vm0, %v336_v5, %v361_v6  ;;  %v10008_v13 = vsel %vm360_vm0, %v361_v6, %v362_v3  ;;  %v367_v18 = vrot.slane %v314_v16, 7  ;;  %v316_v23 = vld [vmem:[%s9977_s19 + $0x30] sm:$0xff]  ;;  %v317_v29 = vld [vmem:[%s9977_s19 + $0x38] sm:$0xff]  ;;  %v318_v34 = vld [vmem:[%s9984_s11] sm:$0xff]  ;;  %s9764_s15 = smov 3   ;;  %s9767_s29 = smov 32  }
  0x5d   : > { %453 = vrot.lane.b32.xlu1 %v9995_v10, %s9762_s8  ;;  %449 = vrot.lane.b32.xlu0 %v9998_v11, %s9762_s8  ;;  %v10005_v12 = vsel %vm360_vm0, %v337_v7, %v364_v8  ;;  %v10017_v19 = vsel %vm360_vm0, %v365_v14, %v402_v15  ;;  %v10020_v20 = vsel %vm360_vm0, %v364_v8, %v365_v14  ;;  %v368_v21 = vrot.slane %v315_v17, 7  ;;  %v319_v35 = vld [vmem:[%s9984_s11 + $0x8] sm:$0xff]  ;;  %v320_v41 = vld [vmem:[%s9984_s11 + $0x10] sm:$0xff]  ;;  %s9768_s16 = smov 16   ;;  %s9769_s13 = smov 64  }
  0x5e   : > { %v338_v22 = vrot.slane %v314_v16, 1  ;;  %v339_v24 = vrot.slane %v316_v23, 1  ;;  %v370_v27 = vrot.slane %v316_v23, 7  ;;  %v403_v28 = vrot.slane %v315_v17, 5  ;;  %v321_v47 = vld [vmem:[%s9984_s11 + $0x18] sm:$0xff]  ;;  %v322_v52 = vld [vmem:[%s9984_s11 + $0x20] sm:$0xff] }
  0x5f   : > { %v10028_v25 = vsel %vm360_vm0, %v367_v18, %v368_v21  ;;  %v371_v32 = vrot.slane %v317_v29, 7  ;;  %v404_v33 = vrot.slane %v317_v29, 5  ;;  %v373_v36 = vrot.slane %v318_v34, 7  ;;  %v323_v53 = vld [vmem:[%s9984_s11 + $0x28] sm:$0xff]  ;;  %v324_v59 = vld [vmem:[%s9984_s11 + $0x30] sm:$0xff]  ;;  %v325_v1 = vld [vmem:[%s9984_s11 + $0x38] sm:$0xff] }
  0x60   : > { %v10031_v26 = vsel %vm360_vm0, %v338_v22, %v367_v18  ;;  %v10039_v30 = vsel %vm360_vm0, %v339_v24, %v370_v27  ;;  %v10042_v31 = vsel %vm360_vm0, %v368_v21, %v403_v28  ;;  %v374_v39 = vrot.slane %v319_v35, 7  ;;  %s9770_s14 = smov 48   ;;  %s9771_s20 = smov 96  }
  0x61   : > { %455 = vrot.lane.b32.xlu1 %v10005_v12, %s9762_s8  ;;  %451 = vrot.lane.b32.xlu0 %v10008_v13, %s9762_s8  ;;  %v10051_v37 = vsel %vm360_vm0, %v371_v32, %v404_v33  ;;  %v10054_v38 = vsel %vm360_vm0, %v370_v27, %v371_v32  ;;  %v340_v40 = vrot.slane %v318_v34, 1  ;;  %v341_v42 = vrot.slane %v320_v41, 1  ;;  %s9772_s26 = smov 80   ;;  %s9773_s18 = smov 112  }
  0x62   : > { %v10062_v43 = vsel %vm360_vm0, %v373_v36, %v374_v39  ;;  %v376_v45 = vrot.slane %v320_v41, 7  ;;  %v405_v46 = vrot.slane %v319_v35, 5  ;;  %v377_v50 = vrot.slane %v321_v47, 7  ;;  %s9774_s12 = smov 126   ;;  %p15907_p1 = scmp.ne.s32.totalorder %s15436_s9, 0 }
  0x63   : > { %v10065_v44 = vsel %vm360_vm0, %v340_v40, %v373_v36  ;;  %v406_v51 = vrot.slane %v321_v47, 5  ;;  %v379_v54 = vrot.slane %v322_v52, 7  ;;  %v380_v55 = vrot.slane %v323_v53, 7 }
  0x64   : > { %v10073_v48 = vsel %vm360_vm0, %v341_v42, %v376_v45  ;;  %v10076_v49 = vsel %vm360_vm0, %v374_v39, %v405_v46  ;;  %v10088_v57 = vsel %vm360_vm0, %v376_v45, %v377_v50  ;;  %v342_v58 = vrot.slane %v322_v52, 1 }
  0x65   : > { %459 = vrot.lane.b32.xlu1 %v10017_v19, %s9762_s8  ;;  %457 = vrot.lane.b32.xlu0 %v10020_v20, %s9762_s8  ;;  %v10085_v56 = vsel %vm360_vm0, %v377_v50, %v406_v51  ;;  %v10096_v60 = vsel %vm360_vm0, %v379_v54, %v380_v55  ;;  %v343_v62 = vrot.slane %v324_v59, 1  ;;  %v382_v63 = vrot.slane %v324_v59, 7 }
  0x66   : > { %v10099_v61 = vsel %vm360_vm0, %v342_v58, %v379_v54  ;;  %v407_v0 = vrot.slane %v323_v53, 5  ;;  %v383_v4 = vrot.slane %v325_v1, 7  ;;  %v408_v5 = vrot.slane %v325_v1, 5 }
  0x67   : > { %v10107_v2 = vsel %vm360_vm0, %v343_v62, %v382_v63  ;;  %v720_v62 = vlaneseq  ;;  %vm665_vm1 = vcmask 7168   ;;  %vm690_vm2 = vcmask 138240  }
  0x68   : > { %v10110_v3 = vsel %vm360_vm0, %v380_v55, %v407_v0  ;;  %v10117_v6 = vsel %vm360_vm0, %v383_v4, %v408_v5  ;;  %v10120_v7 = vsel %vm360_vm0, %v382_v63, %v383_v4  ;;  %v9766_v63 = vmov 1934713408  }
  0x69   : > { %463 = vrot.lane.b32.xlu1 %v10028_v25, %s9762_s8  ;;  %461 = vrot.lane.b32.xlu0 %v10031_v26, %s9762_s8  ;;  %v782_v0 = vunpack.c.l.s4 %v9766_v63  ;;  %v721_v4 = vshrl.u32 %v720_v62, 7  ;;  %vm1868_vm3 = vcmask 1046528   ;;  %vm3047_vm4 = vcmask 1045504  }
  0x6a   : > { %vm1043_vm5 = vcmask 130048   ;;  %vm1045_vm6 = vcmask 261120   ;;  %vm1047_vm7 = vcmask 392192   ;;  %vm1049_vm8 = vcmask 523264  }
  0x6b   : > { %v783_v5 = vunpack.c.0.s8 %v782_v0  ;;  %vm1051_vm9 = vcmask 654336   ;;  %vm1053_vm10 = vcmask 785408   ;;  %vm1055_vm11 = vcmask 916480  }
  0x6c   : > { %vm4231_vm12 = vcmask 588800  }
  0x6d   : > { %467 = vrot.lane.b32.xlu1 %v10039_v30, %s9762_s8  ;;  %465 = vrot.lane.b32.xlu0 %v10042_v31, %s9762_s8 }
  0x71   : > { %471 = vrot.lane.b32.xlu1 %v10051_v37, %s9762_s8  ;;  %469 = vrot.lane.b32.xlu0 %v10054_v38, %s9762_s8 }
  0x75   : > { %475 = vrot.lane.b32.xlu1 %v10062_v43, %s9762_s8  ;;  %473 = vrot.lane.b32.xlu0 %v10065_v44, %s9762_s8 }
  0x79   : > { %479 = vrot.lane.b32.xlu1 %v10073_v48, %s9762_s8  ;;  %477 = vrot.lane.b32.xlu0 %v10076_v49, %s9762_s8 }
  0x7d   : > { %483 = vrot.lane.b32.xlu1 %v10085_v56, %s9762_s8  ;;  %481 = vrot.lane.b32.xlu0 %v10088_v57, %s9762_s8 }
  0x81   : > { %487 = vrot.lane.b32.xlu1 %v10096_v60, %s9762_s8  ;;  %485 = vrot.lane.b32.xlu0 %v10099_v61, %s9762_s8 }
  0x85   : > { %491 = vrot.lane.b32.xlu1 %v10107_v2, %s9762_s8  ;;  %489 = vrot.lane.b32.xlu0 %v10110_v3, %s9762_s8 }
  0x89   : > { %495 = vrot.lane.b32.xlu1 %v10117_v6, %s9762_s8  ;;  %493 = vrot.lane.b32.xlu0 %v10120_v7, %s9762_s8 }
  0x8d   : > { %523 = vrot.lane.b32.xlu1 %v10008_v13, %s9763_s7  ;;  %521 = vrot.lane.b32.xlu0 %v9998_v11, %s9763_s7 }
  0x91   : > { %527 = vrot.lane.b32.xlu1 %v10005_v12, %s9763_s7  ;;  %525 = vrot.lane.b32.xlu0 %v9995_v10, %s9763_s7 }
  0x95   : > { %531 = vrot.lane.b32.xlu1 %v10017_v19, %s9763_s7  ;;  %529 = vrot.lane.b32.xlu0 %v10020_v20, %s9763_s7 }
  0x99   : > { %535 = vrot.lane.b32.xlu1 %v10028_v25, %s9763_s7  ;;  %533 = vrot.lane.b32.xlu0 %v10031_v26, %s9763_s7 }
  0x9d   : > { %539 = vrot.lane.b32.xlu1 %v10039_v30, %s9763_s7  ;;  %537 = vrot.lane.b32.xlu0 %v10042_v31, %s9763_s7 }
  0xa1   : > { %543 = vrot.lane.b32.xlu1 %v10051_v37, %s9763_s7  ;;  %541 = vrot.lane.b32.xlu0 %v10054_v38, %s9763_s7 }
  0xa5   : > { %547 = vrot.lane.b32.xlu1 %v10062_v43, %s9763_s7  ;;  %545 = vrot.lane.b32.xlu0 %v10065_v44, %s9763_s7 }
  0xa9   : > { %551 = vrot.lane.b32.xlu1 %v10073_v48, %s9763_s7  ;;  %549 = vrot.lane.b32.xlu0 %v10076_v49, %s9763_s7 }
  0xad   : > { %555 = vrot.lane.b32.xlu1 %v10085_v56, %s9763_s7  ;;  %553 = vrot.lane.b32.xlu0 %v10088_v57, %s9763_s7 }
  0xb1   : > { %559 = vrot.lane.b32.xlu1 %v10096_v60, %s9763_s7  ;;  %557 = vrot.lane.b32.xlu0 %v10099_v61, %s9763_s7 }
  0xb5   : > { %563 = vrot.lane.b32.xlu1 %v10107_v2, %s9763_s7  ;;  %561 = vrot.lane.b32.xlu0 %v10110_v3, %s9763_s7 }
  0xb9   : > { %567 = vrot.lane.b32.xlu1 %v10117_v6, %s9763_s7  ;;  %565 = vrot.lane.b32.xlu0 %v10120_v7, %s9763_s7 }
  0xbd   : > { %595 = vrot.lane.b32.xlu1 %v10008_v13, %s9764_s15  ;;  %593 = vrot.lane.b32.xlu0 %v9998_v11, %s9764_s15 }
  0xc1   : > { %599 = vrot.lane.b32.xlu1 %v10005_v12, %s9764_s15  ;;  %597 = vrot.lane.b32.xlu0 %v9995_v10, %s9764_s15 }
  0xc5   : > { %603 = vrot.lane.b32.xlu1 %v10017_v19, %s9764_s15  ;;  %601 = vrot.lane.b32.xlu0 %v10020_v20, %s9764_s15 }
  0xc9   : > { %607 = vrot.lane.b32.xlu1 %v10028_v25, %s9764_s15  ;;  %605 = vrot.lane.b32.xlu0 %v10031_v26, %s9764_s15 }
  0xcd   : > { %611 = vrot.lane.b32.xlu1 %v10039_v30, %s9764_s15  ;;  %609 = vrot.lane.b32.xlu0 %v10042_v31, %s9764_s15 }
  0xcf   : > { %v10194_v8 = vpop.permute.xlu1 %453  ;;  %v10196_v9 = vpop.permute.xlu0 %449 }
  0xd1   : > { %615 = vrot.lane.b32.xlu1 %v10051_v37, %s9764_s15  ;;  %613 = vrot.lane.b32.xlu0 %v10054_v38, %s9764_s15 }
  0xd3   : > { %v10202_v10 = vpop.permute.xlu1 %455  ;;  %v10204_v11 = vpop.permute.xlu0 %451 }
  0xd5   : > { %619 = vrot.lane.b32.xlu1 %v10062_v43, %s9764_s15  ;;  %617 = vrot.lane.b32.xlu0 %v10065_v44, %s9764_s15 }
  0xd7   : > { %v10210_v12 = vpop.permute.xlu1 %459  ;;  %v10212_v13 = vpop.permute.xlu0 %457 }
  0xd9   : > { %623 = vrot.lane.b32.xlu1 %v10073_v48, %s9764_s15  ;;  %621 = vrot.lane.b32.xlu0 %v10076_v49, %s9764_s15 }
  0xdb   : > { %v10218_v14 = vpop.permute.xlu1 %463  ;;  %v10220_v15 = vpop.permute.xlu0 %461 }
  0xdd   : > { %627 = vrot.lane.b32.xlu1 %v10085_v56, %s9764_s15  ;;  %625 = vrot.lane.b32.xlu0 %v10088_v57, %s9764_s15 }
  0xdf   : > { %v10226_v16 = vpop.permute.xlu1 %467  ;;  %v10228_v17 = vpop.permute.xlu0 %465 }
  0xe1   : > { %631 = vrot.lane.b32.xlu1 %v10096_v60, %s9764_s15  ;;  %629 = vrot.lane.b32.xlu0 %v10099_v61, %s9764_s15  ;;  %v9765_v60 = vmov 1983009808  }
  0xe2   : > { %v718_v61 = vunpack.c.l.s4 %v9765_v60 }
  0xe3   : > { %v10234_v18 = vpop.permute.xlu1 %471  ;;  %v10236_v19 = vpop.permute.xlu0 %469 }
  0xe5   : > { %635 = vrot.lane.b32.xlu1 %v10107_v2, %s9764_s15  ;;  %633 = vrot.lane.b32.xlu0 %v10110_v3, %s9764_s15  ;;  %v719_v3 = vunpack.c.0.s8 %v718_v61 }
  0xe7   : > { %v10242_v20 = vpop.permute.xlu1 %475  ;;  %v10244_v21 = vpop.permute.xlu0 %473 }
  0xe9   : > { %639 = vrot.lane.b32.xlu1 %v10117_v6, %s9764_s15  ;;  %637 = vrot.lane.b32.xlu0 %v10120_v7, %s9764_s15 }
  0xeb   : > { %v10250_v22 = vpop.permute.xlu1 %479  ;;  %v10252_v23 = vpop.permute.xlu0 %477 }
  0xef   : > { %v10254_v24 = vpop.permute.xlu1 %483  ;;  %v10256_v25 = vpop.permute.xlu0 %481 }
  0xf3   : > { %v10258_v26 = vpop.permute.xlu1 %487  ;;  %v10260_v27 = vpop.permute.xlu0 %485 }
  0xf7   : > { %v10262_v28 = vpop.permute.xlu1 %491  ;;  %v10264_v29 = vpop.permute.xlu0 %489 }
  0xfb   : > { %v10266_v30 = vpop.permute.xlu1 %495  ;;  %v10268_v31 = vpop.permute.xlu0 %493 }
  0xfc   : > { %15443 = vst [vmem:[#allocation11_spill] sm:$0xff] %v10266_v30  ;;  %15444 = vst [vmem:[#allocation12_spill] sm:$0xff] %v10268_v31  ;;  %v10276_v30 = vsub.s32 %v783_v5, %v721_v4 }
  0xff   : > { %v524_v32 = vpop.permute.xlu1 %523  ;;  %v522_v33 = vpop.permute.xlu0 %521 }
 0x100   : > { %v667_v31 = vsel %vm665_vm1, %v10204_v11, %v524_v32  ;;  %v666_v60 = vsel %vm665_vm1, %v10196_v9, %v522_v33 }
 0x103   : > { %v528_v34 = vpop.permute.xlu1 %527  ;;  %v526_v35 = vpop.permute.xlu0 %525 }
 0x104   : > { %v669_v63 = vsel %vm665_vm1, %v10202_v10, %v528_v34  ;;  %v668_v61 = vsel %vm665_vm1, %v10194_v8, %v526_v35  ;;  %v15447_v35 = vld [vmem:[#allocation11_spill] sm:$0xff] }
 0x107   : > { %v532_v36 = vpop.permute.xlu1 %531  ;;  %v530_v37 = vpop.permute.xlu0 %529 }
 0x108   : > { %v671_v62 = vsel %vm665_vm1, %v10210_v12, %v532_v36  ;;  %v670_v11 = vsel %vm665_vm1, %v10212_v13, %v530_v37 }
 0x10b   : > { %v536_v38 = vpop.permute.xlu1 %535  ;;  %v534_v39 = vpop.permute.xlu0 %533 }
 0x10c   : > { %v673_v32 = vsel %vm665_vm1, %v10218_v14, %v536_v38  ;;  %v672_v0 = vsel %vm665_vm1, %v10220_v15, %v534_v39 }
 0x10f   : > { %v540_v40 = vpop.permute.xlu1 %539  ;;  %v538_v41 = vpop.permute.xlu0 %537 }
 0x110   : > { %v675_v9 = vsel %vm665_vm1, %v10226_v16, %v540_v40  ;;  %v674_v8 = vsel %vm665_vm1, %v10228_v17, %v538_v41 }
 0x113   : > { %v544_v42 = vpop.permute.xlu1 %543  ;;  %v542_v43 = vpop.permute.xlu0 %541 }
 0x114   : > { %v677_v12 = vsel %vm665_vm1, %v10234_v18, %v544_v42  ;;  %v676_v13 = vsel %vm665_vm1, %v10236_v19, %v542_v43 }
 0x117   : > { %v548_v44 = vpop.permute.xlu1 %547  ;;  %v546_v45 = vpop.permute.xlu0 %545 }
 0x118   : > { %v679_v14 = vsel %vm665_vm1, %v10242_v20, %v548_v44  ;;  %v678_v15 = vsel %vm665_vm1, %v10244_v21, %v546_v45 }
 0x11b   : > { %v552_v46 = vpop.permute.xlu1 %551  ;;  %v550_v47 = vpop.permute.xlu0 %549 }
 0x11c   : > { %v10306_v16 = vsel %vm665_vm1, %v10250_v22, %v552_v46  ;;  %v10310_v34 = vsel %vm665_vm1, %v10252_v23, %v550_v47  ;;  %v15449_v46 = vld [vmem:[#allocation12_spill] sm:$0xff] }
 0x11f   : > { %v556_v48 = vpop.permute.xlu1 %555  ;;  %v554_v49 = vpop.permute.xlu0 %553 }
 0x120   : > { %v10314_v17 = vsel %vm665_vm1, %v10254_v24, %v556_v48  ;;  %v10318_v18 = vsel %vm665_vm1, %v10256_v25, %v554_v49 }
 0x123   : > { %v560_v50 = vpop.permute.xlu1 %559  ;;  %v558_v51 = vpop.permute.xlu0 %557 }
 0x124   : > { %v10322_v19 = vsel %vm665_vm1, %v10258_v26, %v560_v50  ;;  %v10326_v20 = vsel %vm665_vm1, %v10260_v27, %v558_v51 }
 0x127   : > { %v564_v52 = vpop.permute.xlu1 %563  ;;  %v562_v53 = vpop.permute.xlu0 %561 }
 0x128   : > { %v10333_v22 = vsel %vm665_vm1, %v10262_v28, %v564_v52  ;;  %v10337_v23 = vsel %vm665_vm1, %v10264_v29, %v562_v53 }
 0x12b   : > { %v568_v54 = vpop.permute.xlu1 %567  ;;  %v10270_v55 = vpop.permute.xlu0 %565 }
 0x12c   : > { %15445 = vst [vmem:[#allocation13_spill] sm:$0xff] %v10270_v55  ;;  %v10274_v55 = vsub.s32 %v719_v3, %v721_v4 }
 0x12e   : > { %15446 = vst [vmem:[#allocation14_spill] sm:$0xff] %v10274_v55 }
 0x12f   : > { %v596_v56 = vpop.permute.xlu1 %595  ;;  %v594_v57 = vpop.permute.xlu0 %593 }
 0x130   : > { %v10329_v21 = vsel %vm690_vm2, %v667_v31, %v596_v56  ;;  %v10340_v24 = vsel %vm690_vm2, %v666_v60, %v594_v57  ;;  %v10347_v31 = vsel %vm665_vm1, %v15447_v35, %v568_v54 }
 0x131   : > { %v1870_v37 = vrot.slane %v10329_v21, 1  ;;  %v1869_v41 = vrot.slane %v10340_v24, 1 }
 0x133   : > { %v600_v58 = vpop.permute.xlu1 %599  ;;  %v598_v59 = vpop.permute.xlu0 %597  ;;  %v15448_v45 = vld [vmem:[#allocation13_spill] sm:$0xff]  ;;  %v10399_v3 = vsel %vm1868_vm3, %v1869_v41, %v1870_v37 }
 0x134   : > { %v10343_v25 = vsel %vm690_vm2, %v668_v61, %v598_v59  ;;  %v10360_v38 = vsel %vm690_vm2, %v669_v63, %v600_v58  ;;  %v10379_v47 = vsel %vm665_vm1, %v15449_v46, %v15448_v45  ;;  %15450 = vst [vmem:[#allocation11_spill] sm:$0xff] %v10399_v3 }
 0x135   : > { %v1872_v42 = vrot.slane %v10343_v25, 1  ;;  %v1874_v53 = vrot.slane %v10360_v38, 1 }
 0x137   : > { %v604_v1 = vpop.permute.xlu1 %603  ;;  %v602_v2 = vpop.permute.xlu0 %601  ;;  %v10402_v4 = vsel %vm1868_vm3, %v1870_v37, %v1872_v42 }
 0x138   : > { %v10350_v36 = vsel %vm690_vm2, %v671_v62, %v604_v1  ;;  %v10353_v28 = vsel %vm690_vm2, %v670_v11, %v602_v2  ;;  %15451 = vst [vmem:[#allocation13_spill] sm:$0xff] %v10402_v4 }
 0x139   : > { %v1877_v48 = vrot.slane %v10350_v36, 1  ;;  %v1875_v49 = vrot.slane %v10353_v28, 1 }
 0x13b   : > { %v608_v6 = vpop.permute.xlu1 %607  ;;  %v606_v7 = vpop.permute.xlu0 %605  ;;  %v10412_v60 = vsel %vm1868_vm3, %v1875_v49, %v1877_v48 }
 0x13c   : > { %v10363_v39 = vsel %vm690_vm2, %v672_v0, %v606_v7  ;;  %v10371_v43 = vsel %vm690_vm2, %v673_v32, %v608_v6  ;;  %v10409_v7 = vsel %vm1868_vm3, %v1874_v53, %v1875_v49  ;;  %15453 = vst [vmem:[#allocation15_spill] sm:$0xff] %v10412_v60 }
 0x13d   : > { %v715_v54 = vcombine.low %v10340_v24, %v10363_v39  ;;  %v851_v58 = vcombine.low %v10329_v21, %v10371_v43  ;;  %v852_v59 = vcombine.high %v10329_v21, %v10371_v43  ;;  %v1880_v1 = vrot.slane %v10371_v43, 1  ;;  %15452 = vst [vmem:[#allocation12_spill] sm:$0xff] %v10409_v7 }
 0x13e   : > { %v716_v5 = vcombine.high %v10340_v24, %v10363_v39  ;;  %v1879_v63 = vrot.slane %v10363_v39, 1 }
 0x13f   : > { %v612_v10 = vpop.permute.xlu1 %611  ;;  %v610_v33 = vpop.permute.xlu0 %609  ;;  %v723_v0 = vrot.slane %v715_v54, %v10274_v55 }
 0x140   : > { %v10356_v29 = vsel %vm690_vm2, %v674_v8, %v610_v33  ;;  %v10366_v40 = vsel %vm690_vm2, %v675_v9, %v612_v10  ;;  %v859_v8 = vrot.slane %v851_v58, %v10274_v55  ;;  %v10438_v41 = vsel %vm1868_vm3, %v1879_v63, %v1880_v1 }
 0x141   : > { %v1882_v50 = vrot.slane %v10356_v29, 1  ;;  %v731_v56 = vcombine.low %v10360_v38, %v10366_v40  ;;  %v732_v57 = vcombine.high %v10360_v38, %v10366_v40  ;;  %15456 = vst [vmem:[#allocation18_spill] sm:$0xff] %v10438_v41 }
 0x143   : > { %v616_v26 = vpop.permute.xlu1 %615  ;;  %v614_v27 = vpop.permute.xlu0 %613  ;;  %v10416_v61 = vsel %vm1868_vm3, %v1880_v1, %v1882_v50  ;;  %v739_v9 = vrot.slane %v731_v56, %v10274_v55  ;;  %v746_v10 = vrot.slane %v732_v57, %v10274_v55  ;;  %v1925_v1 = vcombine.low %v10399_v3, %v10438_v41 }
 0x144   : > { %v10374_v44 = vsel %vm690_vm2, %v676_v13, %v614_v27  ;;  %15454 = vst [vmem:[#allocation16_spill] sm:$0xff] %v10416_v61  ;;  %v10419_v32 = vsel %vm690_vm2, %v677_v12, %v616_v26  ;;  %v866_v27 = vrot.slane %v852_v59, %v10274_v55  ;;  %v2061_v35 = vcombine.low %v10402_v4, %v10416_v61 }
 0x145   : > { %v867_v2 = vcombine.low %v10353_v28, %v10374_v44  ;;  %v868_v6 = vcombine.high %v10353_v28, %v10374_v44  ;;  %v730_v26 = vrot.slane %v716_v5, %v10274_v55  ;;  %v1887_v42 = vrot.slane %v10419_v32, 1 }
 0x146   : > { %v1885_v45 = vrot.slane %v10374_v44, 1  ;;  %v780_v50 = vcombine.high %v723_v0, %v739_v9  ;;  %v10450_v57 = vrot.slane %v2061_v35, %v10274_v55 }
 0x147   : > { %v620_v51 = vpop.permute.xlu1 %619  ;;  %v618_v52 = vpop.permute.xlu0 %617  ;;  %v875_v13 = vrot.slane %v867_v2, %v10274_v55  ;;  %v882_v37 = vrot.slane %v868_v6, %v10274_v55  ;;  %v796_v59 = vcombine.high %v730_v26, %v746_v10 }
 0x148   : > { %v10425_v33 = vsel %vm690_vm2, %v679_v14, %v620_v51  ;;  %v10433_v12 = vsel %vm690_vm2, %v678_v15, %v618_v52  ;;  %v1884_v14 = vrot.slane %v10366_v40, 1  ;;  %v779_v15 = vcombine.low %v723_v0, %v739_v9 }
 0x149   : > { %15455 = vst [vmem:[#allocation17_spill] sm:$0xff] %v10433_v12  ;;  %v1890_v49 = vrot.slane %v10425_v33, 1  ;;  %v795_v51 = vcombine.low %v730_v26, %v746_v10  ;;  %v1889_v52 = vrot.slane %v10433_v12, 1  ;;  %v916_v54 = vcombine.high %v859_v8, %v875_v13 }
 0x14a   : > { %v915_v56 = vcombine.low %v859_v8, %v875_v13  ;;  %v931_v58 = vcombine.low %v866_v27, %v882_v37  ;;  %v10455_v2 = vsel %vm1868_vm3, %v1884_v14, %v1885_v45  ;;  %v10458_v5 = vsel %vm1868_vm3, %v1885_v45, %v1887_v42 }
 0x14b   : > { %v624_v62 = vpop.permute.xlu1 %623  ;;  %v622_v11 = vpop.permute.xlu0 %621  ;;  %15457 = vst [vmem:[#allocation19_spill] sm:$0xff] %v10455_v2  ;;  %15458 = vst [vmem:[#allocation20_spill] sm:$0xff] %v10458_v5  ;;  %v10466_v9 = vrot.slane %v780_v50, %v10276_v30  ;;  %v10469_v10 = vrot.slane %v779_v15, %v10276_v30  ;;  %v10472_v8 = vrot.slane %v795_v51, %v10276_v30 }
 0x14c   : > { %v10447_v53 = vsel %vm690_vm2, %v10310_v34, %v622_v11  ;;  %v10462_v34 = vsel %vm690_vm2, %v10306_v16, %v624_v62  ;;  %v932_v11 = vcombine.high %v866_v27, %v882_v37  ;;  %v10475_v13 = vsel %vm1868_vm3, %v1889_v52, %v1890_v49 }
 0x14d   : > { %v1892_v0 = vrot.slane %v10447_v53, 1  ;;  %15459 = vst [vmem:[#allocation21_spill] sm:$0xff] %v10469_v10  ;;  %v10482_v62 = vrot.slane %v916_v54, %v10276_v30  ;;  %v10485_v27 = vrot.slane %v915_v56, %v10276_v30  ;;  %v10489_v26 = vrot.slane %v931_v58, %v10276_v30 }
 0x14e   : > { %v10492_v37 = vrot.slane %v796_v59, %v10276_v30  ;;  %v1941_v14 = vcombine.low %v10409_v7, %v10455_v2  ;;  %v10501_v50 = vrot.slane %v932_v11, %v10276_v30  ;;  %v10504_v15 = vrot.slane %v1925_v1, %v10274_v55 }
 0x14f   : > { %v628_v46 = vpop.permute.xlu1 %627  ;;  %v626_v48 = vpop.permute.xlu0 %625  ;;  %v2077_v51 = vcombine.low %v10412_v60, %v10458_v5  ;;  %v10509_v52 = vsel %vm1868_vm3, %v1890_v49, %v1892_v0 }
 0x150   : > { %15461 = vst [vmem:[#allocation23_spill] sm:$0xff] %v10509_v52  ;;  %v10523_v58 = vsel %vm690_vm2, %v10314_v17, %v628_v46  ;;  %v10527_v59 = vsel %vm690_vm2, %v10318_v18, %v626_v48  ;;  %v10539_v17 = vrot.slane %v1941_v14, %v10274_v55 }
 0x151   : > { %v10546_v11 = vrot.slane %v2077_v51, %v10274_v55  ;;  %v1897_v60 = vrot.slane %v10523_v58, 1  ;;  %v1895_v5 = vrot.slane %v10527_v59, 1 }
 0x153   : > { %v632_v6 = vpop.permute.xlu1 %631  ;;  %v630_v63 = vpop.permute.xlu0 %629 }
 0x154   : > { %v10479_v16 = vsel %vm690_vm2, %v10326_v20, %v630_v63  ;;  %v10498_v20 = vsel %vm690_vm2, %v10322_v19, %v632_v6 }
 0x155   : > { %15460 = vst [vmem:[#allocation22_spill] sm:$0xff] %v10479_v16  ;;  %v747_v54 = vcombine.low %v10433_v12, %v10479_v16  ;;  %v884_v18 = vcombine.high %v10425_v33, %v10498_v20  ;;  %v1900_v46 = vrot.slane %v10498_v20, 1  ;;  %v1899_v0 = vrot.slane %v10479_v16, 1 }
 0x157   : > { %v636_v42 = vpop.permute.xlu1 %635  ;;  %v634_v45 = vpop.permute.xlu0 %633  ;;  %v755_v14 = vrot.slane %v747_v54, %v10274_v55  ;;  %v10573_v4 = vsel %vm1868_vm3, %v1899_v0, %v1900_v46 }
 0x158   : > { %v10515_v19 = vsel %vm690_vm2, %v10333_v22, %v636_v42  ;;  %v10519_v56 = vsel %vm690_vm2, %v10337_v23, %v634_v45  ;;  %v883_v22 = vcombine.low %v10425_v33, %v10498_v20  ;;  %v748_v23 = vcombine.high %v10433_v12, %v10479_v16 }
 0x159   : > { %v763_v49 = vcombine.low %v10462_v34, %v10515_v19  ;;  %v764_v1 = vcombine.high %v10462_v34, %v10515_v19  ;;  %v1902_v6 = vrot.slane %v10519_v56, 1  ;;  %v898_v16 = vrot.slane %v884_v18, %v10274_v55 }
 0x15a   : > { %v762_v54 = vrot.slane %v748_v23, %v10274_v55 }
 0x15b   : > { %v638_v48 = vpop.permute.xlu0 %637  ;;  %v771_v63 = vrot.slane %v763_v49, %v10274_v55  ;;  %v640_v42 = vpop.permute.xlu1 %639  ;;  %v778_v35 = vrot.slane %v764_v1, %v10274_v55  ;;  %v10562_v7 = vsel %vm1868_vm3, %v1900_v46, %v1902_v6 }
 0x15c   : > { %v10551_v45 = vsel %vm690_vm2, %v10379_v47, %v638_v48  ;;  %15462 = vst [vmem:[#allocation24_spill] sm:$0xff] %v10562_v7  ;;  %v891_v47 = vrot.slane %v883_v22, %v10274_v55  ;;  %v10568_v1 = vsel %vm690_vm2, %v10347_v31, %v640_v42  ;;  %v1904_v22 = vrot.slane %v10515_v19, 1 }
 0x15d   : > { %v899_v49 = vcombine.low %v10527_v59, %v10551_v45  ;;  %v900_v51 = vcombine.high %v10527_v59, %v10551_v45  ;;  %v812_v2 = vcombine.high %v755_v14, %v771_v63  ;;  %v811_v3 = vcombine.low %v755_v14, %v771_v63 }
 0x15e   : > { %v827_v61 = vcombine.low %v762_v54, %v778_v35  ;;  %v2093_v63 = vcombine.low %v10509_v52, %v10562_v7  ;;  %v1907_v42 = vrot.slane %v10568_v1, 1  ;;  %v1905_v46 = vrot.slane %v10551_v45, 1 }
 0x15f   : > { %v907_v48 = vrot.slane %v899_v49, %v10274_v55  ;;  %v914_v41 = vrot.slane %v900_v51, %v10274_v55  ;;  %v826_v6 = vrot.slane %v812_v2, %v10276_v30  ;;  %v10579_v12 = vrot.slane %v811_v3, %v10276_v30 }
 0x160   : > { %v828_v49 = vcombine.high %v762_v54, %v778_v35  ;;  %v835_v51 = vrot.slane %v827_v61, %v10276_v30  ;;  %v10602_v35 = vsel %vm1868_vm3, %v1904_v22, %v1905_v46  ;;  %v10605_v54 = vsel %vm1868_vm3, %v1905_v46, %v1907_v42 }
 0x161   : > { %v948_v23 = vcombine.high %v891_v47, %v907_v48  ;;  %15463 = vst [vmem:[#allocation25_spill] sm:$0xff] %v10579_v12  ;;  %v947_v31 = vcombine.low %v891_v47, %v907_v48  ;;  %v963_v0 = vcombine.low %v898_v16, %v914_v41  ;;  %v845_v3 = vcombine.low %v10466_v9, %v826_v6 }
 0x162   : > { %v964_v48 = vcombine.high %v898_v16, %v914_v41  ;;  %v844_v7 = vcombine.high %v10469_v10, %v10579_v12  ;;  %v1957_v12 = vcombine.low %v10475_v13, %v10573_v4  ;;  %v15464_v10 = vrot.slane %v10462_v34, 1 }
 0x163   : > { %v962_v2 = vrot.slane %v948_v23, %v10276_v30  ;;  %v10589_v14 = vrot.slane %v947_v31, %v10276_v30  ;;  %v971_v47 = vrot.slane %v963_v0, %v10276_v30  ;;  %v10618_v22 = vsel %vm1868_vm3, %v1895_v5, %v1897_v60 }
 0x164   : > { %v978_v18 = vrot.slane %v964_v48, %v10276_v30  ;;  %v10615_v31 = vsel %vm1868_vm3, %v15464_v10, %v1895_v5  ;;  %v847_v42 = vcombine.low %v10472_v8, %v835_v51  ;;  %v846_v46 = vcombine.high %v10466_v9, %v826_v6 }
 0x165   : > { %v981_v52 = vcombine.low %v10482_v62, %v962_v2  ;;  %v980_v23 = vcombine.high %v10485_v27, %v10589_v14  ;;  %v983_v61 = vcombine.low %v10489_v26, %v971_v47  ;;  %v982_v41 = vcombine.high %v10482_v62, %v962_v2 }
 0x166   : > { %v1973_v62 = vcombine.low %v10615_v31, %v10602_v35  ;;  %v2109_v10 = vcombine.low %v10618_v22, %v10605_v54  ;;  %v10630_v60 = vrot.slane %v2093_v63, %v10274_v55  ;;  %v984_v9 = vcombine.high %v10489_v26, %v971_v47 }
 0x167   : > { %v9054_v16 = vpack.i.bf16 %v981_v52, %v845_v3  ;;  %v9049_v0 = vpack.i.bf16 %v980_v23, %v844_v7  ;;  %v842_v7 = vrot.slane %v828_v49, %v10276_v30  ;;  %v9064_v5 = vpack.i.bf16 %v983_v61, %v847_v42 }
 0x168   : > { %v9059_v52 = vpack.i.bf16 %v982_v41, %v846_v46  ;;  %v985_v6 = vcombine.low %v10501_v50, %v978_v18  ;;  %v10635_v2 = vrot.slane %v1957_v12, %v10274_v55  ;;  %v10638_v49 = vrot.slane %v1973_v62, %v10274_v55 }
 0x169   : > { %9055 = vrot.lane.b32.xlu1 %v9054_v16, %s9767_s29  ;;  %9050 = vrot.lane.b32.xlu0 %v9049_v0, %s9768_s16  ;;  %v10641_v3 = vrot.slane %v2109_v10, %v10274_v55  ;;  %v848_v48 = vcombine.high %v10472_v8, %v835_v51  ;;  %v1989_v63 = vcombine.low %v10504_v15, %v10539_v17  ;;  %v3066_v10 = vrot.slane %v10419_v32, 2 }
 0x16a   : > { %v2125_v23 = vcombine.low %v10450_v57, %v10546_v11  ;;  %v849_v12 = vcombine.low %v10492_v37, %v842_v7  ;;  %v2021_v26 = vcombine.low %v10635_v2, %v10638_v49  ;;  %v986_v61 = vcombine.high %v10501_v50, %v978_v18 }
 0x16b   : > { %v2157_v8 = vcombine.low %v10630_v60, %v10641_v3  ;;  %v9069_v51 = vpack.i.bf16 %v984_v9, %v848_v48  ;;  %v10663_v0 = vrot.slane %v1989_v63, %v10276_v30  ;;  %v850_v42 = vcombine.high %v10492_v37, %v842_v7 }
 0x16c   : > { %v9074_v47 = vpack.i.bf16 %v985_v6, %v849_v12  ;;  %v10657_v41 = vrot.slane %v2021_v26, %v10276_v30  ;;  %v10669_v46 = vrot.slane %v2125_v23, %v10276_v30  ;;  %v3086_v37 = vrot.slane %v10568_v1, 2 }
 0x16d   : > { %9065 = vrot.lane.b32.xlu1 %v9064_v5, %s9769_s13  ;;  %9060 = vrot.lane.b32.xlu0 %v9059_v52, %s9770_s14  ;;  %v10660_v16 = vrot.slane %v2157_v8, %v10276_v30  ;;  %15467 = vst [vmem:[#allocation28_spill] sm:$0xff] %v10663_v0  ;;  %v9079_v18 = vpack.i.bf16 %v986_v61, %v850_v42  ;;  %v3076_v5 = vrot.slane %v10523_v58, 2  ;;  %v3064_v7 = vrot.slane %v10374_v44, 2 }
 0x16e   : > { %15465 = vst [vmem:[#allocation26_spill] sm:$0xff] %v10657_v41  ;;  %15468 = vst [vmem:[#allocation29_spill] sm:$0xff] %v10669_v46  ;;  %v3074_v52 = vrot.slane %v10527_v59, 2  ;;  %v3084_v9 = vrot.slane %v10551_v45, 2  ;;  %v3056_v6 = vrot.slane %v10350_v36, 2  ;;  %v3061_v32 = vrot.slane %v10356_v29, 2 }
 0x16f   : > { %15466 = vst [vmem:[#allocation27_spill] sm:$0xff] %v10660_v16  ;;  %v3054_v58 = vrot.slane %v10353_v28, 2  ;;  %v3051_v48 = vrot.slane %v10343_v25, 2  ;;  %v3071_v63 = vrot.slane %v10447_v53, 2  ;;  %v3059_v1 = vrot.slane %v10371_v43, 2 }
 0x170   : > { %v3081_v23 = vrot.slane %v10519_v56, 2  ;;  %v10696_v36 = vsel %vm3047_vm4, %v3064_v7, %v3066_v10  ;;  %v10699_v29 = vsel %vm3047_vm4, %v3074_v52, %v3076_v5  ;;  %v10702_v25 = vsel %vm3047_vm4, %v3084_v9, %v3086_v37 }
 0x171   : > { %9075 = vrot.lane.b32.xlu1 %v9074_v47, %s9771_s20  ;;  %9070 = vrot.lane.b32.xlu0 %v9069_v51, %s9772_s26  ;;  %15469 = vst [vmem:[#allocation30_spill] sm:$0xff] %v10696_v36  ;;  %15470 = vst [vmem:[#allocation31_spill] sm:$0xff] %v10699_v29  ;;  %v3049_v53 = vrot.slane %v10329_v21, 2  ;;  %v3288_v12 = vcombine.low %v10699_v29, %v10702_v25  ;;  %v10708_v26 = vsel %vm3047_vm4, %v3054_v58, %v3056_v6 }
 0x172   : > { %15471 = vst [vmem:[#allocation32_spill] sm:$0xff] %v10702_v25  ;;  %v10711_v8 = vsel %vm3047_vm4, %v3059_v1, %v3061_v32  ;;  %v3069_v56 = vrot.slane %v10425_v33, 2  ;;  %v3079_v51 = vrot.slane %v10498_v20, 2  ;;  %v3256_v47 = vcombine.low %v10708_v26, %v10696_v36 }
 0x173   : > { %15472 = vst [vmem:[#allocation33_spill] sm:$0xff] %v10711_v8  ;;  %v10722_v61 = vsel %vm3047_vm4, %v3049_v53, %v3051_v48  ;;  %v3058_v10 = vrot.slane %v10363_v39, 2  ;;  %v10734_v37 = vrot.slane %v3288_v12, %v10274_v55  ;;  %v3063_v32 = vrot.slane %v10366_v40, 2 }
 0x174   : > { %15473 = vst [vmem:[#allocation34_spill] sm:$0xff] %v10722_v61  ;;  %v10725_v42 = vsel %vm3047_vm4, %v3069_v56, %v3071_v63  ;;  %v3240_v5 = vcombine.low %v10722_v61, %v10711_v8  ;;  %v3053_v48 = vrot.slane %v10360_v38, 2  ;;  %v3083_v63 = vrot.slane %v10515_v19, 2 }
 0x175   : > { %1080 = vrot.lane.b32.xlu1 %v10340_v24, %s9762_s8  ;;  %9080 = vrot.lane.b32.xlu0 %v9079_v18, %s9773_s18  ;;  %15474 = vst [vmem:[#allocation35_spill] sm:$0xff] %v10725_v42  ;;  %v10728_v18 = vsel %vm3047_vm4, %v3079_v51, %v3081_v23  ;;  %15476 = vst [vmem:[#allocation37_spill] sm:$0xff] %v10734_v37  ;;  %v10746_v23 = vrot.slane %v3256_v47, %v10274_v55  ;;  %v3048_v62 = vrot.slane %v10340_v24, 2 }
 0x176   : > { %15475 = vst [vmem:[#allocation36_spill] sm:$0xff] %v10728_v18  ;;  %v3272_v6 = vcombine.low %v10725_v42, %v10728_v18  ;;  %v10752_v50 = vsel %vm3047_vm4, %v3063_v32, %v3064_v7  ;;  %v10756_v18 = vsel %vm3047_vm4, %v3053_v48, %v3054_v58  ;;  %v3073_v42 = vrot.slane %v10462_v34, 2  ;;  %v15484_v7 = vld [vmem:[#allocation17_spill] sm:$0xff] }
 0x177   : > { %15477 = vst [vmem:[#allocation38_spill] sm:$0xff] %v10746_v23  ;;  %15479 = vst [vmem:[#allocation40_spill] sm:$0xff] %v10752_v50  ;;  %v10760_v25 = vsel %vm3047_vm4, %v3083_v63, %v3084_v9  ;;  %v10763_v8 = vrot.slane %v3240_v5, %v10274_v55  ;;  %v3068_v32 = vrot.slane %v15484_v7, 2  ;;  %v3120_v58 = vcombine.low %v10756_v18, %v10752_v50  ;;  %v15487_v5 = vld [vmem:[#allocation22_spill] sm:$0xff] }
 0x178   : > { %v10749_v12 = vrot.slane %v3272_v6, %v10274_v55  ;;  %15480 = vst [vmem:[#allocation41_spill] sm:$0xff] %v10756_v18  ;;  %15481 = vst [vmem:[#allocation42_spill] sm:$0xff] %v10760_v25  ;;  %v10768_v6 = vsel %vm3047_vm4, %v3058_v10, %v3059_v1  ;;  %v10774_v48 = vsel %vm3047_vm4, %v3073_v42, %v3074_v52  ;;  %v3078_v63 = vrot.slane %v15487_v5, 2 }
 0x179   : > { %1084 = vrot.lane.b32.xlu1 %v10360_v38, %s9762_s8  ;;  %1082 = vrot.lane.b32.xlu0 %v10329_v21, %s9762_s8  ;;  %15482 = vst [vmem:[#allocation43_spill] sm:$0xff] %v10763_v8  ;;  %15483 = vst [vmem:[#allocation44_spill] sm:$0xff] %v10768_v6  ;;  %v3304_v9 = vcombine.low %v10763_v8, %v10746_v23  ;;  %v10783_v1 = vsel %vm3047_vm4, %v3048_v62, %v3049_v53 }
 0x17a   : > { %15478 = vst [vmem:[#allocation39_spill] sm:$0xff] %v10749_v12  ;;  %v3336_v47 = vcombine.low %v10749_v12, %v10734_v37  ;;  %15485 = vst [vmem:[#allocation17_spill] sm:$0xff] %v10774_v48  ;;  %v3152_v10 = vcombine.low %v10774_v48, %v10760_v25  ;;  %v3104_v52 = vcombine.low %v10783_v1, %v10768_v6  ;;  %v15507_v48 = vld [vmem:[#allocation18_spill] sm:$0xff] }
 0x17b   : > { %15486 = vst [vmem:[#allocation45_spill] sm:$0xff] %v10783_v1  ;;  %v10791_v42 = vsel %vm3047_vm4, %v3068_v32, %v3069_v56  ;;  %v10794_v12 = vsel %vm3047_vm4, %v3078_v63, %v3079_v51  ;;  %v10800_v62 = vrot.slane %v3120_v58, %v10274_v55  ;;  %v10812_v56 = vrot.slane %v3304_v9, %v10276_v30 }
 0x17c   : > { %15488 = vst [vmem:[#allocation22_spill] sm:$0xff] %v10791_v42  ;;  %15489 = vst [vmem:[#allocation46_spill] sm:$0xff] %v10794_v12  ;;  %v10797_v37 = vrot.slane %v3336_v47, %v10276_v30  ;;  %v10803_v53 = vrot.slane %v3152_v10, %v10274_v55  ;;  %v3136_v8 = vcombine.low %v10791_v42, %v10794_v12 }
 0x17d   : > { %1088 = vrot.lane.b32.xlu1 %v10363_v39, %s9762_s8  ;;  %1086 = vrot.lane.b32.xlu0 %v10353_v28, %s9762_s8  ;;  %15491 = vst [vmem:[#allocation48_spill] sm:$0xff] %v10800_v62  ;;  %15493 = vst [vmem:[#allocation50_spill] sm:$0xff] %v10812_v56  ;;  %v10815_v51 = vrot.slane %v3104_v52, %v10274_v55  ;;  %v1958_v50 = vcombine.high %v10475_v13, %v10573_v4 }
 0x17e   : > { %15490 = vst [vmem:[#allocation47_spill] sm:$0xff] %v10797_v37  ;;  %15492 = vst [vmem:[#allocation49_spill] sm:$0xff] %v10803_v53  ;;  %v10818_v47 = vrot.slane %v3136_v8, %v10274_v55 }
 0x17f   : > { %15494 = vst [vmem:[#allocation51_spill] sm:$0xff] %v10815_v51  ;;  %v3168_v58 = vcombine.low %v10815_v51, %v10800_v62 }
 0x180   : > { %15495 = vst [vmem:[#allocation52_spill] sm:$0xff] %v10818_v47  ;;  %v3200_v10 = vcombine.low %v10818_v47, %v10803_v53 }
 0x181   : > { %1092 = vrot.lane.b32.xlu1 %v10366_v40, %s9762_s8  ;;  %1090 = vrot.lane.b32.xlu0 %v10371_v43, %s9762_s8  ;;  %v10834_v8 = vrot.slane %v3168_v58, %v10276_v30 }
 0x182   : > { %v10831_v9 = vrot.slane %v3200_v10, %v10276_v30 }
 0x183   : > { %15497 = vst [vmem:[#allocation54_spill] sm:$0xff] %v10834_v8 }
 0x184   : > { %15496 = vst [vmem:[#allocation53_spill] sm:$0xff] %v10831_v9 }
 0x185   : > { %1096 = vrot.lane.b32.xlu1 %v15484_v7, %s9762_s8  ;;  %1094 = vrot.lane.b32.xlu0 %v10374_v44, %s9762_s8 }
 0x189   : > { %1100 = vrot.lane.b32.xlu1 %v10462_v34, %s9762_s8  ;;  %1098 = vrot.lane.b32.xlu0 %v10425_v33, %s9762_s8 }
 0x18d   : > { %1104 = vrot.lane.b32.xlu1 %v15487_v5, %s9762_s8  ;;  %1102 = vrot.lane.b32.xlu0 %v10527_v59, %s9762_s8 }
 0x191   : > { %1108 = vrot.lane.b32.xlu1 %v10515_v19, %s9762_s8  ;;  %1106 = vrot.lane.b32.xlu0 %v10498_v20, %s9762_s8 }
 0x195   : > { %1472 = vrot.lane.b32.xlu1 %v10329_v21, %s9774_s12  ;;  %1110 = vrot.lane.b32.xlu0 %v10551_v45, %s9762_s8  ;;  %v2022_v21 = vcombine.high %v10635_v2, %v10638_v49 }
 0x199   : > { %1476 = vrot.lane.b32.xlu1 %v10353_v28, %s9774_s12  ;;  %1470 = vrot.lane.b32.xlu0 %v10340_v24, %s9774_s12  ;;  %v2158_v24 = vcombine.high %v10630_v60, %v10641_v3  ;;  %v1990_v28 = vcombine.high %v10504_v15, %v10539_v17 }
 0x19d   : > { %1480 = vrot.lane.b32.xlu1 %v10371_v43, %s9774_s12  ;;  %1474 = vrot.lane.b32.xlu0 %v10360_v38, %s9774_s12  ;;  %v2126_v38 = vcombine.high %v10450_v57, %v10546_v11  ;;  %v2190_v43 = vcombine.high %v10669_v46, %v10660_v16 }
 0x19f   : > { %v2140_v57 = vrot.slane %v2126_v38, %v10276_v30 }
 0x1a1   : > { %1484 = vrot.lane.b32.xlu1 %v10374_v44, %s9774_s12  ;;  %1478 = vrot.lane.b32.xlu0 %v10363_v39, %s9774_s12  ;;  %v2036_v39 = vrot.slane %v2022_v21, %v10276_v30  ;;  %v2172_v44 = vrot.slane %v2158_v24, %v10276_v30 }
 0x1a3   : > { %v2192_v15 = vcombine.high %v2140_v57, %v2172_v44  ;;  %v2191_v17 = vcombine.low %v2140_v57, %v2172_v44 }
 0x1a5   : > { %1488 = vrot.lane.b32.xlu1 %v10425_v33, %s9774_s12  ;;  %1482 = vrot.lane.b32.xlu0 %v10366_v40, %s9774_s12  ;;  %v2054_v40 = vcombine.high %v10663_v0, %v10657_v41  ;;  %v2004_v33 = vrot.slane %v1990_v28, %v10276_v30 }
 0x1a9   : > { %1492 = vrot.lane.b32.xlu1 %v10527_v59, %s9774_s12  ;;  %1486 = vrot.lane.b32.xlu0 %v15484_v7, %s9774_s12  ;;  %v2055_v59 = vcombine.low %v2004_v33, %v2036_v39 }
 0x1ab   : > { %v9089_v60 = vpack.i.bf16 %v2191_v17, %v2055_v59 }
 0x1ad   : > { %1496 = vrot.lane.b32.xlu1 %v10498_v20, %s9774_s12  ;;  %1490 = vrot.lane.b32.xlu0 %v10462_v34, %s9774_s12  ;;  %v2056_v34 = vcombine.high %v2004_v33, %v2036_v39  ;;  %v9084_v20 = vpack.i.bf16 %v2190_v43, %v2054_v40 }
 0x1af   : > { %v9094_v11 = vpack.i.bf16 %v2192_v15, %v2056_v34 }
 0x1b1   : > { %1500 = vrot.lane.b32.xlu1 %v10551_v45, %s9774_s12  ;;  %1494 = vrot.lane.b32.xlu0 %v15487_v5, %s9774_s12 }
 0x1b5   : > { %9085 = vrot.lane.b32.xlu1 %v9084_v20, %s9768_s16  ;;  %1498 = vrot.lane.b32.xlu0 %v10515_v19, %s9774_s12 }
 0x1b9   : > { %9095 = vrot.lane.b32.xlu1 %v9094_v11, %s9770_s14  ;;  %9090 = vrot.lane.b32.xlu0 %v9089_v60, %s9767_s29 }
 0x1db   : > { %v10895_v45 = vpop.permute.xlu1 %9055  ;;  %v10897_v2 = vpop.permute.xlu0 %9050 }
 0x1df   : > { %v10899_v49 = vpop.permute.xlu1 %9065  ;;  %v10901_v3 = vpop.permute.xlu0 %9060 }
 0x1e0   : > { %15498 = vst [vmem:[#allocation55_spill] sm:$0xff] %v10899_v49 }
 0x1e3   : > { %v10903_v7 = vpop.permute.xlu1 %9075  ;;  %v10905_v5 = vpop.permute.xlu0 %9070 }
 0x1e4   : > { %15499 = vst [vmem:[#allocation56_spill] sm:$0xff] %v10903_v7  ;;  %15500 = vst [vmem:[#allocation57_spill] sm:$0xff] %v10905_v5 }
 0x1e7   : > { %v1081_v52 = vpop.permute.xlu1 %1080  ;;  %v10907_v19 = vpop.permute.xlu0 %9080 }
 0x1e8   : > { %15501 = vst [vmem:[#allocation58_spill] sm:$0xff] %v10907_v19 }
 0x1eb   : > { %v1085_v58 = vpop.permute.xlu1 %1084  ;;  %v1083_v10 = vpop.permute.xlu0 %1082 }
 0x1ef   : > { %v1089_v21 = vpop.permute.xlu1 %1088  ;;  %v1087_v24 = vpop.permute.xlu0 %1086 }
 0x1f0   : > { %v1128_v57 = vcombine.low %v1081_v52, %v1089_v21  ;;  %v1129_v15 = vcombine.high %v1081_v52, %v1089_v21 }
 0x1f2   : > { %v1136_v32 = vrot.slane %v1128_v57, %v10274_v55  ;;  %v10912_v51 = vrot.slane %v1129_v15, %v10274_v55 }
 0x1f3   : > { %v1093_v28 = vpop.permute.xlu1 %1092  ;;  %v1091_v38 = vpop.permute.xlu0 %1090 }
 0x1f4   : > { %v1144_v33 = vcombine.low %v1085_v58, %v1093_v28  ;;  %v1145_v59 = vcombine.high %v1085_v58, %v1093_v28  ;;  %v1264_v63 = vcombine.low %v1083_v10, %v1091_v38  ;;  %v1265_v8 = vcombine.high %v1083_v10, %v1091_v38 }
 0x1f6   : > { %v1152_v17 = vrot.slane %v1144_v33, %v10274_v55  ;;  %v10915_v62 = vrot.slane %v1145_v59, %v10274_v55  ;;  %v1272_v10 = vrot.slane %v1264_v63, %v10274_v55 }
 0x1f7   : > { %v1097_v39 = vpop.permute.xlu1 %1096  ;;  %v1095_v40 = vpop.permute.xlu0 %1094 }
 0x1f8   : > { %v1280_v11 = vcombine.low %v1087_v24, %v1095_v40  ;;  %v1281_v53 = vcombine.high %v1087_v24, %v1095_v40  ;;  %v1192_v52 = vcombine.low %v1136_v32, %v1152_v17  ;;  %v1279_v24 = vrot.slane %v1265_v8, %v10274_v55 }
 0x1fa   : > { %v1288_v58 = vrot.slane %v1280_v11, %v10274_v55  ;;  %v1295_v57 = vrot.slane %v1281_v53, %v10274_v55 }
 0x1fb   : > { %v1101_v43 = vpop.permute.xlu1 %1100  ;;  %v1099_v44 = vpop.permute.xlu0 %1098 }
 0x1fc   : > { %v1328_v63 = vcombine.low %v1272_v10, %v1288_v58  ;;  %v1329_v23 = vcombine.high %v1272_v10, %v1288_v58 }
 0x1fe   : > { %v1343_v41 = vrot.slane %v1329_v23, %v10276_v30 }
 0x1ff   : > { %v1105_v34 = vpop.permute.xlu1 %1104  ;;  %v1103_v20 = vpop.permute.xlu0 %1102 }
 0x200   : > { %v1160_v60 = vcombine.low %v1097_v39, %v1105_v34  ;;  %v1161_v21 = vcombine.high %v1097_v39, %v1105_v34  ;;  %v1193_v39 = vcombine.high %v1136_v32, %v1152_v17  ;;  %v10927_v34 = vrot.slane %v1192_v52, %v10276_v30 }
 0x202   : > { %v1168_v28 = vrot.slane %v1160_v60, %v10274_v55  ;;  %v1175_v8 = vrot.slane %v1161_v21, %v10274_v55 }
 0x203   : > { %v1109_v9 = vpop.permute.xlu1 %1108  ;;  %v1107_v47 = vpop.permute.xlu0 %1106 }
 0x204   : > { %v1176_v56 = vcombine.low %v1101_v43, %v1109_v9  ;;  %v1177_v37 = vcombine.high %v1101_v43, %v1109_v9  ;;  %v1296_v38 = vcombine.low %v1099_v44, %v1107_v47  ;;  %v1297_v9 = vcombine.high %v1099_v44, %v1107_v47 }
 0x206   : > { %v1184_v33 = vrot.slane %v1176_v56, %v10274_v55  ;;  %v1191_v15 = vrot.slane %v1177_v37, %v10274_v55  ;;  %v1304_v44 = vrot.slane %v1296_v38, %v10274_v55  ;;  %v1311_v53 = vrot.slane %v1297_v9, %v10274_v55 }
 0x207   : > { %v10922_v40 = vpop.permute.xlu1 %1472  ;;  %v1111_v43 = vpop.permute.xlu0 %1110 }
 0x208   : > { %v1224_v59 = vcombine.low %v1168_v28, %v1184_v33  ;;  %v1225_v11 = vcombine.high %v1168_v28, %v1184_v33  ;;  %v1312_v56 = vcombine.low %v1103_v20, %v1111_v43  ;;  %v1313_v60 = vcombine.high %v1103_v20, %v1111_v43 }
 0x209   : > { %v1344_v20 = vcombine.low %v1279_v24, %v1295_v57  ;;  %v1240_v28 = vcombine.low %v1175_v8, %v1191_v15  ;;  %v1208_v33 = vcombine.low %v10912_v51, %v10915_v62  ;;  %v1207_v43 = vrot.slane %v1193_v39, %v10276_v30 }
 0x20a   : > { %v10931_v47 = vrot.slane %v1224_v59, %v10276_v30  ;;  %v1320_v37 = vrot.slane %v1312_v56, %v10274_v55  ;;  %v1327_v32 = vrot.slane %v1313_v60, %v10274_v55  ;;  %v1239_v58 = vrot.slane %v1225_v11, %v10276_v30 }
 0x20b   : > { %v10937_v17 = vpop.permute.xlu1 %1476  ;;  %v10939_v52 = vpop.permute.xlu0 %1470  ;;  %v10948_v59 = vrot.slane %v1328_v63, %v10276_v30  ;;  %v1345_v56 = vcombine.high %v1279_v24, %v1295_v57  ;;  %v1352_v39 = vrot.slane %v1344_v20, %v10276_v30  ;;  %v1248_v63 = vrot.slane %v1240_v28, %v10276_v30 }
 0x20c   : > { %15502 = vst [vmem:[#allocation59_spill] sm:$0xff] %v10931_v47  ;;  %v1360_v10 = vcombine.low %v1304_v44, %v1320_v37  ;;  %v1361_v38 = vcombine.high %v1304_v44, %v1320_v37  ;;  %v1376_v9 = vcombine.low %v1311_v53, %v1327_v32  ;;  %v1377_v60 = vcombine.high %v1311_v53, %v1327_v32 }
 0x20d   : > { %15503 = vst [vmem:[#allocation60_spill] sm:$0xff] %v10948_v59  ;;  %v1241_v37 = vcombine.high %v1175_v8, %v1191_v15  ;;  %v1258_v24 = vcombine.low %v1207_v43, %v1239_v58  ;;  %v1257_v53 = vcombine.high %v10927_v34, %v10931_v47  ;;  %v1359_v12 = vrot.slane %v1345_v56, %v10276_v30 }
 0x20e   : > { %v10952_v11 = vrot.slane %v1360_v10, %v10276_v30  ;;  %v1375_v21 = vrot.slane %v1361_v38, %v10276_v30  ;;  %v1384_v0 = vrot.slane %v1376_v9, %v10276_v30  ;;  %v1209_v10 = vcombine.high %v10912_v51, %v10915_v62 }
 0x20f   : > { %v10956_v16 = vpop.permute.xlu1 %1480  ;;  %v10958_v44 = vpop.permute.xlu0 %1474  ;;  %v1216_v38 = vrot.slane %v1208_v33, %v10276_v30  ;;  %v1391_v15 = vrot.slane %v1377_v60, %v10276_v30  ;;  %v1255_v42 = vrot.slane %v1241_v37, %v10276_v30  ;;  %v1259_v51 = vcombine.high %v1207_v43, %v1239_v58  ;;  %v15505_v37 = vld [vmem:[#allocation16_spill] sm:$0xff] }
 0x210   : > { %15504 = vst [vmem:[#allocation61_spill] sm:$0xff] %v10952_v11  ;;  %v1394_v57 = vcombine.low %v1343_v41, %v1375_v21  ;;  %v1393_v32 = vcombine.high %v10948_v59, %v10952_v11  ;;  %v1396_v23 = vcombine.low %v1352_v39, %v1384_v0  ;;  %v1395_v46 = vcombine.high %v1343_v41, %v1375_v21 }
 0x211   : > { %v1260_v62 = vcombine.low %v1216_v38, %v1248_v63  ;;  %v1223_v33 = vrot.slane %v1209_v10, %v10276_v30  ;;  %v1397_v41 = vcombine.high %v1352_v39, %v1384_v0  ;;  %v1261_v56 = vcombine.high %v1216_v38, %v1248_v63  ;;  %v15510_v0 = vld [vmem:[#allocation12_spill] sm:$0xff] }
 0x212   : > { %v9104_v28 = vpack.i.bf16 %v1394_v57, %v1258_v24  ;;  %v9099_v9 = vpack.i.bf16 %v1393_v32, %v1257_v53  ;;  %v9109_v57 = vpack.i.bf16 %v1395_v46, %v1259_v51  ;;  %v1398_v53 = vcombine.low %v1359_v12, %v1391_v15  ;;  %v15506_v32 = vld [vmem:[#allocation13_spill] sm:$0xff]  ;;  %v15511_v38 = vld [vmem:[#allocation24_spill] sm:$0xff] }
 0x213   : > { %v10972_v8 = vpop.permute.xlu1 %1484  ;;  %v10974_v20 = vpop.permute.xlu0 %1478  ;;  %v9114_v24 = vpack.i.bf16 %v1396_v23, %v1260_v62  ;;  %v1262_v21 = vcombine.low %v1223_v33, %v1255_v42  ;;  %v1399_v6 = vcombine.high %v1359_v12, %v1391_v15  ;;  %v15508_v23 = vld [vmem:[#allocation11_spill] sm:$0xff]  ;;  %v1974_v63 = vcombine.high %v10615_v31, %v10602_v35  ;;  %v15513_v15 = vld [vmem:[#allocation20_spill] sm:$0xff] }
 0x214   : > { %9105 = vrot.lane.b32.xlu0 %v9104_v28, %s9767_s29  ;;  %9100 = vrot.lane.b32.xlu1 %v9099_v9, %s9768_s16  ;;  %v2062_v28 = vcombine.high %v15506_v32, %v15505_v37  ;;  %v9119_v9 = vpack.i.bf16 %v1397_v41, %v1261_v56  ;;  %v1926_v46 = vcombine.high %v15508_v23, %v15507_v48  ;;  %v15509_v62 = vld [vmem:[#allocation19_spill] sm:$0xff] }
 0x215   : > { %v9124_v10 = vpack.i.bf16 %v1398_v53, %v1262_v21  ;;  %v1942_v39 = vcombine.high %v15510_v0, %v15509_v62  ;;  %v1670_v51 = vcombine.low %v10937_v17, %v10972_v8  ;;  %v1263_v12 = vcombine.high %v1223_v33, %v1255_v42  ;;  %v15514_v53 = vld [vmem:[#allocation15_spill] sm:$0xff] }
 0x216   : > { %v2078_v41 = vcombine.high %v15514_v53, %v15513_v15  ;;  %v11006_v21 = vrot.slane %v2062_v28, %v10274_v55  ;;  %v1654_v56 = vcombine.low %v10922_v40, %v10956_v16  ;;  %v11013_v19 = vrot.slane %v1926_v46, %v10274_v55 }
 0x217   : > { %v10981_v60 = vpop.permute.xlu1 %1488  ;;  %v10983_v25 = vpop.permute.xlu0 %1482  ;;  %v9129_v18 = vpack.i.bf16 %v1399_v6, %v1263_v12  ;;  %v11016_v42 = vrot.slane %v1942_v39, %v10274_v55  ;;  %v2110_v33 = vcombine.high %v10618_v22, %v10605_v54  ;;  %v1655_v28 = vcombine.high %v10922_v40, %v10956_v16 }
 0x218   : > { %9115 = vrot.lane.b32.xlu0 %v9114_v24, %s9769_s13  ;;  %9110 = vrot.lane.b32.xlu1 %v9109_v57, %s9770_s14  ;;  %v15512_v24 = vld [vmem:[#allocation23_spill] sm:$0xff]  ;;  %v1678_v29 = vrot.slane %v1670_v51, %v10274_v55  ;;  %v11026_v7 = vrot.slane %v1974_v63, %v10274_v55  ;;  %v1534_v46 = vcombine.low %v10958_v44, %v10983_v25 }
 0x219   : > { %v2094_v57 = vcombine.high %v15512_v24, %v15511_v38  ;;  %v11036_v16 = vrot.slane %v2078_v41, %v10274_v55  ;;  %v1662_v40 = vrot.slane %v1654_v56, %v10274_v55  ;;  %v1535_v12 = vcombine.high %v10958_v44, %v10983_v25 }
 0x21a   : > { %v11049_v41 = vrot.slane %v2110_v33, %v10274_v55  ;;  %v11052_v56 = vrot.slane %v1655_v28, %v10274_v55 }
 0x21b   : > { %v1493_v58 = vpop.permute.xlu1 %1492  ;;  %v10989_v43 = vpop.permute.xlu0 %1486  ;;  %v11029_v6 = vrot.slane %v2094_v57, %v10274_v55  ;;  %v11044_v57 = vrot.slane %v1958_v50, %v10274_v55  ;;  %v1542_v50 = vrot.slane %v1534_v46, %v10274_v55  ;;  %v1549_v49 = vrot.slane %v1535_v12, %v10274_v55 }
 0x21c   : > { %9125 = vrot.lane.b32.xlu0 %v9124_v10, %s9771_s20  ;;  %9120 = vrot.lane.b32.xlu1 %v9119_v9, %s9772_s26  ;;  %v1671_v9 = vcombine.high %v10937_v17, %v10972_v8  ;;  %v1518_v17 = vcombine.low %v10939_v52, %v10974_v20  ;;  %v1519_v8 = vcombine.high %v10939_v52, %v10974_v20 }
 0x21d   : > { %v1718_v52 = vcombine.low %v1662_v40, %v1678_v29 }
 0x21e   : > { %v11055_v36 = vrot.slane %v1671_v9, %v10274_v55  ;;  %v1533_v33 = vrot.slane %v1519_v8, %v10274_v55 }
 0x21f   : > { %v1497_v1 = vpop.permute.xlu1 %1496  ;;  %v1491_v10 = vpop.permute.xlu0 %1490 }
 0x220   : > { %v1686_v39 = vcombine.low %v10981_v60, %v1497_v1  ;;  %9130 = vrot.lane.b32.xlu1 %v9129_v18, %s9773_s18  ;;  %v1687_v5 = vcombine.high %v10981_v60, %v1497_v1  ;;  %v1719_v1 = vcombine.high %v1662_v40, %v1678_v29  ;;  %v11070_v60 = vrot.slane %v1718_v52, %v10276_v30 }
 0x221   : > { %v1598_v40 = vcombine.low %v1533_v33, %v1549_v49 }
 0x222   : > { %v1694_v25 = vrot.slane %v1686_v39, %v10274_v55  ;;  %v1701_v8 = vrot.slane %v1687_v5, %v10274_v55  ;;  %v1734_v5 = vcombine.low %v11052_v56, %v11055_v36 }
 0x223   : > { %v1501_v51 = vpop.permute.xlu1 %1500  ;;  %v1495_v63 = vpop.permute.xlu0 %1494 }
 0x224   : > { %v1702_v18 = vcombine.low %v1493_v58, %v1501_v51  ;;  %v1703_v61 = vcombine.high %v1493_v58, %v1501_v51  ;;  %v1526_v58 = vrot.slane %v1518_v17, %v10274_v55  ;;  %v1550_v28 = vcombine.low %v10989_v43, %v1495_v63 }
 0x225   : > { %v1551_v9 = vcombine.high %v10989_v43, %v1495_v63 }
 0x226   : > { %v1710_v44 = vrot.slane %v1702_v18, %v10274_v55  ;;  %v1717_v20 = vrot.slane %v1703_v61, %v10274_v55  ;;  %v1582_v17 = vcombine.low %v1526_v58, %v1542_v50  ;;  %v1583_v59 = vcombine.high %v1526_v58, %v1542_v50 }
 0x227   : > { %v1499_v51 = vpop.permute.xlu0 %1498  ;;  %v1558_v43 = vrot.slane %v1550_v28, %v10274_v55  ;;  %v1565_v63 = vrot.slane %v1551_v9, %v10274_v55  ;;  %v1733_v58 = vrot.slane %v1719_v1, %v10276_v30  ;;  %v1599_v9 = vcombine.high %v1533_v33, %v1549_v49 }
 0x228   : > { %v1750_v46 = vcombine.low %v1694_v25, %v1710_v44  ;;  %v1751_v11 = vcombine.high %v1694_v25, %v1710_v44  ;;  %v1566_v39 = vcombine.low %v1491_v10, %v1499_v51  ;;  %v1567_v18 = vcombine.high %v1491_v10, %v1499_v51 }
 0x229   : > { %v1766_v52 = vcombine.low %v1701_v8, %v1717_v20  ;;  %v11087_v28 = vrot.slane %v1582_v17, %v10276_v30  ;;  %v1606_v10 = vrot.slane %v1598_v40, %v10276_v30  ;;  %v2005_v17 = vcombine.low %v11013_v19, %v11016_v42 }
 0x22a   : > { %v11074_v47 = vrot.slane %v1750_v46, %v10276_v30  ;;  %v1574_v61 = vrot.slane %v1566_v39, %v10274_v55  ;;  %v1581_v29 = vrot.slane %v1567_v18, %v10274_v55  ;;  %v1765_v12 = vrot.slane %v1751_v11, %v10276_v30 }
 0x22b   : > { %v1597_v46 = vrot.slane %v1583_v59, %v10276_v30  ;;  %v2141_v55 = vcombine.low %v11006_v21, %v11036_v16 }
 0x22c   : > { %v1614_v50 = vcombine.low %v1558_v43, %v1574_v61  ;;  %v1615_v25 = vcombine.high %v1558_v43, %v1574_v61  ;;  %v1630_v44 = vcombine.low %v1565_v63, %v1581_v29  ;;  %v1631_v51 = vcombine.high %v1565_v63, %v1581_v29 }
 0x22d   : > { %v1767_v43 = vcombine.high %v1701_v8, %v1717_v20  ;;  %v1774_v61 = vrot.slane %v1766_v52, %v10276_v30  ;;  %v1784_v1 = vcombine.low %v1733_v58, %v1765_v12  ;;  %v1783_v33 = vcombine.high %v11070_v60, %v11074_v47 }
 0x22e   : > { %v11091_v11 = vrot.slane %v1614_v50, %v10276_v30  ;;  %v1629_v39 = vrot.slane %v1615_v25, %v10276_v30  ;;  %v1638_v18 = vrot.slane %v1630_v44, %v10276_v30  ;;  %v1735_v63 = vcombine.high %v11052_v56, %v11055_v36 }
 0x22f   : > { %v1742_v29 = vrot.slane %v1734_v5, %v10276_v30  ;;  %v1645_v20 = vrot.slane %v1631_v51, %v10276_v30  ;;  %v2173_v8 = vcombine.low %v11029_v6, %v11049_v41  ;;  %v1613_v44 = vrot.slane %v1599_v9, %v10276_v30 }
 0x230   : > { %v1648_v49 = vcombine.low %v1597_v46, %v1629_v39  ;;  %v1647_v59 = vcombine.high %v11087_v28, %v11091_v11  ;;  %v1650_v50 = vcombine.low %v1606_v10, %v1638_v18  ;;  %v1649_v25 = vcombine.high %v1597_v46, %v1629_v39 }
 0x231   : > { %v2038_v36 = vcombine.high %v11044_v57, %v11026_v7  ;;  %v1781_v56 = vrot.slane %v1767_v43, %v10276_v30  ;;  %v1786_v5 = vcombine.low %v1742_v29, %v1774_v61  ;;  %v1785_v51 = vcombine.high %v1733_v58, %v1765_v12 }
 0x232   : > { %v9139_v40 = vpack.i.bf16 %v1784_v1, %v1648_v49  ;;  %v9134_v52 = vpack.i.bf16 %v1783_v33, %v1647_v59  ;;  %v1749_v46 = vrot.slane %v1735_v63, %v10276_v30  ;;  %v15515_v9 = vcombine.low %v11044_v57, %v11026_v7 }
 0x233   : > { %v2181_v1 = vrot.slane %v2173_v8, %v10276_v30  ;;  %v2174_v49 = vcombine.high %v11029_v6, %v11049_v41  ;;  %v9149_v59 = vpack.i.bf16 %v1786_v5, %v1650_v50  ;;  %v9144_v43 = vpack.i.bf16 %v1785_v51, %v1649_v25 }
 0x234   : > { %9140 = vrot.lane.b32.xlu1 %v9139_v40, %s9767_s29  ;;  %9135 = vrot.lane.b32.xlu0 %v9134_v52, %s9768_s16  ;;  %v2045_v39 = vrot.slane %v15515_v9, %v10276_v30  ;;  %v1652_v33 = vcombine.low %v1613_v44, %v1645_v20  ;;  %v1651_v40 = vcombine.high %v1606_v10, %v1638_v18 }
 0x235   : > { %v2013_v52 = vrot.slane %v2005_v17, %v10276_v30  ;;  %v2149_v12 = vrot.slane %v2141_v55, %v10276_v30  ;;  %v2006_v58 = vcombine.high %v11013_v19, %v11016_v42  ;;  %v1788_v7 = vcombine.low %v1749_v46, %v1781_v56 }
 0x236   : > { %v1787_v57 = vcombine.high %v1742_v29, %v1774_v61  ;;  %v2142_v6 = vcombine.high %v11006_v21, %v11036_v16  ;;  %v2052_v10 = vrot.slane %v2038_v36, %v10276_v30  ;;  %v1653_v8 = vcombine.high %v1613_v44, %v1645_v20 }
 0x237   : > { %v2058_v41 = vcombine.high %v2013_v52, %v2045_v39  ;;  %v2194_v63 = vcombine.high %v2149_v12, %v2181_v1  ;;  %v9159_v18 = vpack.i.bf16 %v1788_v7, %v1652_v33  ;;  %v2188_v55 = vrot.slane %v2174_v49, %v10276_v30  ;;  %v15520_v49 = vld [vmem:[#allocation59_spill] sm:$0xff]  ;;  %v15523_v33 = vld [vmem:[#allocation61_spill] sm:$0xff] }
 0x238   : > { %9150 = vrot.lane.b32.xlu1 %v9149_v59, %s9769_s13  ;;  %9145 = vrot.lane.b32.xlu0 %v9144_v43, %s9770_s14  ;;  %v9154_v17 = vpack.i.bf16 %v1787_v57, %v1651_v40  ;;  %v2020_v19 = vrot.slane %v2006_v58, %v10276_v30  ;;  %v1789_v42 = vcombine.high %v1749_v46, %v1781_v56  ;;  %v15525_v58 = vld [vmem:[#allocation55_spill] sm:$0xff] }
 0x239   : > { %v2156_v61 = vrot.slane %v2142_v6, %v10276_v30  ;;  %v2057_v21 = vcombine.low %v2013_v52, %v2045_v39  ;;  %v9174_v16 = vpack.i.bf16 %v2194_v63, %v2058_v41  ;;  %v2193_v36 = vcombine.low %v2149_v12, %v2181_v1 }
 0x23a   : > { %v2060_v29 = vcombine.high %v2020_v19, %v2052_v10  ;;  %v9164_v50 = vpack.i.bf16 %v1789_v42, %v1653_v8  ;;  %v2059_v5 = vcombine.low %v2020_v19, %v2052_v10  ;;  %v15521_v59 = vcombine.low %v10927_v34, %v15520_v49  ;;  %v15526_v34 = vld [vmem:[#allocation57_spill] sm:$0xff]  ;;  %v15527_v8 = vld [vmem:[#allocation30_spill] sm:$0xff] }
 0x23b   : > { %v2196_v25 = vcombine.high %v2156_v61, %v2188_v55  ;;  %v9169_v44 = vpack.i.bf16 %v2193_v36, %v2057_v21  ;;  %v2195_v51 = vcombine.low %v2156_v61, %v2188_v55  ;;  %v9068_v7 = vunpack.i.h.bf16 %v15525_v58  ;;  %v15528_v55 = vld [vmem:[#allocation34_spill] sm:$0xff] }
 0x23c   : > { %9160 = vrot.lane.b32.xlu1 %v9159_v18, %s9771_s20  ;;  %9155 = vrot.lane.b32.xlu0 %v9154_v17, %s9772_s26  ;;  %v9067_v57 = vunpack.i.l.bf16 %v15525_v58  ;;  %v9073_v18 = vunpack.i.h.bf16 %v15526_v34  ;;  %v9072_v17 = vunpack.i.l.bf16 %v15526_v34  ;;  %v15535_v58 = vld [vmem:[#allocation41_spill] sm:$0xff]  ;;  %v15542_v34 = vld [vmem:[#allocation22_spill] sm:$0xff] }
 0x23d   : > { %v9184_v20 = vpack.i.bf16 %v2196_v25, %v2060_v29  ;;  %v9179_v56 = vpack.i.bf16 %v2195_v51, %v2059_v5  ;;  %v15529_v25 = vld [vmem:[#allocation56_spill] sm:$0xff] }
 0x23e   : > { %v9078_v36 = vunpack.i.h.bf16 %v15529_v25 }
 0x240   : > { %9175 = vrot.lane.b32.xlu1 %v9174_v16, %s9772_s26  ;;  %9165 = vrot.lane.b32.xlu0 %v9164_v50, %s9773_s18 }
 0x244   : > { %9185 = vrot.lane.b32.xlu1 %v9184_v20, %s9773_s18  ;;  %9170 = vrot.lane.b32.xlu0 %v9169_v44, %s9769_s13  ;;  %v9077_v20 = vunpack.i.l.bf16 %v15529_v25 }
 0x248   : > { %2269 = vrot.lane.b32.xlu1 %v15506_v32, %s9762_s8  ;;  %9180 = vrot.lane.b32.xlu0 %v9179_v56, %s9771_s20 }
 0x24c   : > { %2273 = vrot.lane.b32.xlu1 %v15514_v53, %s9762_s8  ;;  %2267 = vrot.lane.b32.xlu0 %v15508_v23, %s9762_s8 }
 0x250   : > { %2277 = vrot.lane.b32.xlu1 %v15505_v37, %s9762_s8  ;;  %2271 = vrot.lane.b32.xlu0 %v15510_v0, %s9762_s8 }
 0x254   : > { %2281 = vrot.lane.b32.xlu1 %v15513_v15, %s9762_s8  ;;  %2275 = vrot.lane.b32.xlu0 %v15507_v48, %s9762_s8 }
 0x258   : > { %2285 = vrot.lane.b32.xlu1 %v15512_v24, %s9762_s8  ;;  %2279 = vrot.lane.b32.xlu0 %v15509_v62, %s9762_s8 }
 0x25c   : > { %2289 = vrot.lane.b32.xlu1 %v10618_v22, %s9762_s8  ;;  %2283 = vrot.lane.b32.xlu0 %v10475_v13, %s9762_s8 }
 0x260   : > { %2297 = vrot.lane.b32.xlu1 %v10605_v54, %s9762_s8  ;;  %2287 = vrot.lane.b32.xlu0 %v10615_v31, %s9762_s8 }
 0x264   : > { %2663 = vrot.lane.b32.xlu1 %v15514_v53, %s9774_s12  ;;  %2293 = vrot.lane.b32.xlu0 %v15511_v38, %s9762_s8 }
 0x268   : > { %2671 = vrot.lane.b32.xlu1 %v15513_v15, %s9774_s12  ;;  %2659 = vrot.lane.b32.xlu0 %v15506_v32, %s9774_s12  ;;  %v9053_v32 = vunpack.i.h.bf16 %v10897_v2 }
 0x26c   : > { %2679 = vrot.lane.b32.xlu1 %v10618_v22, %s9774_s12  ;;  %2667 = vrot.lane.b32.xlu0 %v15505_v37, %s9774_s12  ;;  %v11196_v22 = vpop.permute.xlu1 %9085  ;;  %v11208_v37 = vpop.permute.xlu0 %9090 }
 0x270   : > { %2687 = vrot.lane.b32.xlu1 %v10605_v54, %s9774_s12  ;;  %2675 = vrot.lane.b32.xlu0 %v15512_v24, %s9774_s12  ;;  %v11206_v54 = vpop.permute.xlu1 %9095  ;;  %v15517_v24 = vld [vmem:[#allocation25_spill] sm:$0xff] }
 0x274   : > { %2295 = vrot.lane.b32.xlu1 %v10602_v35, %s9762_s8  ;;  %2683 = vrot.lane.b32.xlu0 %v15511_v38, %s9774_s12  ;;  %v15516_v38 = vld [vmem:[#allocation21_spill] sm:$0xff] }
 0x275   : > { %v15518_v15 = vcombine.low %v15516_v38, %v15517_v24 }
 0x278   : > { %2661 = vrot.lane.b32.xlu1 %v15510_v0, %s9774_s12  ;;  %2291 = vrot.lane.b32.xlu0 %v10573_v4, %s9762_s8  ;;  %v9052_v0 = vunpack.i.l.bf16 %v10897_v2  ;;  %v15519_v2 = vcombine.low %v10485_v27, %v10589_v14 }
 0x27a   : > { %v1044_v53 = vsel %vm1043_vm5, %v15518_v15, %v9052_v0  ;;  %v15530_v0 = vld [vmem:[#allocation31_spill] sm:$0xff] }
 0x27c   : > { %2669 = vrot.lane.b32.xlu1 %v15509_v62, %s9774_s12  ;;  %2657 = vrot.lane.b32.xlu0 %v15508_v23, %s9774_s12  ;;  %v9057_v23 = vunpack.i.l.bf16 %v10895_v45 }
 0x27e   : > { %v1046_v27 = vsel %vm1045_vm6, %v1044_v53, %v9057_v23  ;;  %v15532_v53 = vld [vmem:[#allocation58_spill] sm:$0xff] }
 0x280   : > { %2677 = vrot.lane.b32.xlu1 %v10615_v31, %s9774_s12  ;;  %2665 = vrot.lane.b32.xlu0 %v15507_v48, %s9774_s12  ;;  %v9058_v31 = vunpack.i.h.bf16 %v10895_v45  ;;  %v9062_v45 = vunpack.i.l.bf16 %v10901_v3 }
 0x282   : > { %v1048_v63 = vsel %vm1047_vm7, %v1046_v27, %v9062_v45  ;;  %v15534_v27 = vld [vmem:[#allocation35_spill] sm:$0xff] }
 0x283   : > { %v1050_v51 = vsel %vm1049_vm8, %v1048_v63, %v9067_v57  ;;  %v15537_v57 = vld [vmem:[#allocation40_spill] sm:$0xff] }
 0x284   : > { %2685 = vrot.lane.b32.xlu1 %v10602_v35, %s9774_s12  ;;  %2673 = vrot.lane.b32.xlu0 %v10475_v13, %s9774_s12  ;;  %v1057_v35 = vsel %vm1043_vm5, %v15519_v2, %v9053_v32  ;;  %v9063_v13 = vunpack.i.h.bf16 %v10901_v3  ;;  %v15522_v3 = vld [vmem:[#allocation60_spill] sm:$0xff]  ;;  %v9083_v2 = vunpack.i.h.bf16 %v15532_v53 }
 0x285   : > { %v1058_v14 = vsel %vm1045_vm6, %v1057_v35, %v9058_v31  ;;  %v15524_v40 = vcombine.low %v15522_v3, %v15523_v33  ;;  %v15531_v31 = vld [vmem:[#allocation33_spill] sm:$0xff]  ;;  %v9082_v35 = vunpack.i.l.bf16 %v15532_v53  ;;  %v15540_v63 = vld [vmem:[#allocation44_spill] sm:$0xff] }
 0x286   : > { %v9101_v48 = vpop.permute.xlu1 %9100  ;;  %v9106_v62 = vpop.permute.xlu0 %9105  ;;  %v1059_v10 = vsel %vm1047_vm7, %v1058_v14, %v9063_v13  ;;  %v15549_v53 = vld [vmem:[#allocation28_spill] sm:$0xff] }
 0x287   : > { %v9103_v46 = vunpack.i.h.bf16 %v9101_v48  ;;  %v9102_v9 = vunpack.i.l.bf16 %v9101_v48  ;;  %v9108_v39 = vunpack.i.h.bf16 %v9106_v62  ;;  %v9107_v1 = vunpack.i.l.bf16 %v9106_v62 }
 0x288   : > { %3452 = vrot.lane.b32.xlu1 %v10708_v26, %s9762_s8  ;;  %2681 = vrot.lane.b32.xlu0 %v10573_v4, %s9774_s12  ;;  %v1060_v5 = vsel %vm1049_vm8, %v1059_v10, %v9068_v7  ;;  %v1052_v48 = vsel %vm1051_vm9, %v1050_v51, %v9072_v17  ;;  %v15536_v7 = vld [vmem:[#allocation36_spill] sm:$0xff]  ;;  %v15541_v10 = vld [vmem:[#allocation42_spill] sm:$0xff] }
 0x289   : > { %v1456_v43 = vsel %vm1043_vm5, %v15521_v59, %v9102_v9  ;;  %v1463_v52 = vsel %vm1043_vm5, %v15524_v40, %v9103_v46  ;;  %v1061_v23 = vsel %vm1051_vm9, %v1060_v5, %v9073_v18  ;;  %v1054_v59 = vsel %vm1053_vm10, %v1052_v48, %v9077_v20 }
 0x28a   : > { %v9111_v12 = vpop.permute.xlu1 %9110  ;;  %v9116_v4 = vpop.permute.xlu0 %9115  ;;  %v1464_v19 = vsel %vm1045_vm6, %v1463_v52, %v9108_v39  ;;  %v1457_v42 = vsel %vm1045_vm6, %v1456_v43, %v9107_v1  ;;  %v15533_v1 = vld [vmem:[#allocation32_spill] sm:$0xff]  ;;  %v1062_v14 = vsel %vm1053_vm10, %v1061_v23, %v9078_v36  ;;  %v1056_v40 = vsel %vm1055_vm11, %v1054_v59, %v9082_v35 }
 0x28b   : > { %v9113_v6 = vunpack.i.h.bf16 %v9111_v12  ;;  %v9112_v41 = vunpack.i.l.bf16 %v9111_v12  ;;  %v9118_v61 = vunpack.i.h.bf16 %v9116_v4  ;;  %v9117_v29 = vunpack.i.l.bf16 %v9116_v4 }
 0x28c   : > { %3460 = vrot.lane.b32.xlu1 %v15527_v8, %s9762_s8  ;;  %3448 = vrot.lane.b32.xlu0 %v15528_v55, %s9762_s8  ;;  %v1063_v3 = vsel %vm1055_vm11, %v1062_v14, %v9083_v2  ;;  %v9093_v20 = vunpack.i.h.bf16 %v11208_v37  ;;  %v15550_v2 = vld [vmem:[#allocation26_spill] sm:$0xff] }
 0x28d   : > { %v1458_v21 = vsel %vm1047_vm7, %v1457_v42, %v9112_v41  ;;  %v1465_v16 = vsel %vm1047_vm7, %v1464_v19, %v9113_v6  ;;  %v15538_v6 = vld [vmem:[#allocation45_spill] sm:$0xff]  ;;  %v15543_v19 = vld [vmem:[#allocation46_spill] sm:$0xff]  ;;  %v15551_v35 = vcombine.low %v15549_v53, %v15550_v2 }
 0x28e   : > { %v9126_v50 = vpop.permute.xlu0 %9125  ;;  %v9121_v44 = vpop.permute.xlu1 %9120  ;;  %v1459_v62 = vsel %vm1049_vm8, %v1458_v21, %v9117_v29  ;;  %v1466_v15 = vsel %vm1049_vm8, %v1465_v16, %v9118_v61  ;;  %v15539_v41 = vld [vmem:[#allocation17_spill] sm:$0xff]  ;;  %v9088_v16 = vunpack.i.h.bf16 %v11196_v22 }
 0x28f   : > { %v9123_v56 = vunpack.i.h.bf16 %v9121_v44  ;;  %v9122_v32 = vunpack.i.l.bf16 %v9121_v44  ;;  %v9128_v38 = vunpack.i.h.bf16 %v9126_v50  ;;  %v9127_v24 = vunpack.i.l.bf16 %v9126_v50 }
 0x290   : > { %3468 = vrot.lane.b32.xlu1 %v15530_v0, %s9762_s8  ;;  %3456 = vrot.lane.b32.xlu0 %v15531_v31, %s9762_s8  ;;  %v9087_v50 = vunpack.i.l.bf16 %v11196_v22  ;;  %v9092_v44 = vunpack.i.l.bf16 %v11208_v37 }
 0x291   : > { %v1467_v46 = vsel %vm1051_vm9, %v1466_v15, %v9123_v56  ;;  %v1460_v9 = vsel %vm1051_vm9, %v1459_v62, %v9122_v32  ;;  %v15544_v56 = vcombine.low %v11070_v60, %v11074_v47  ;;  %v15545_v32 = vcombine.low %v11087_v28, %v11091_v11  ;;  %v15546_v62 = vld [vmem:[#allocation29_spill] sm:$0xff] }
 0x292   : > { %v9131_v13 = vpop.permute.xlu1 %9130  ;;  %v1468_v49 = vsel %vm1053_vm10, %v1467_v46, %v9128_v38  ;;  %v1461_v43 = vsel %vm1053_vm10, %v1460_v9, %v9127_v24  ;;  %v15547_v38 = vld [vmem:[#allocation27_spill] sm:$0xff]  ;;  %v2253_v46 = vsel %vm1043_vm5, %v15551_v35, %v9087_v50  ;;  %v9098_v9 = vunpack.i.h.bf16 %v11206_v54 }
 0x293   : > { %v9133_v45 = vunpack.i.h.bf16 %v9131_v13  ;;  %v9132_v39 = vunpack.i.l.bf16 %v9131_v13  ;;  %v15548_v24 = vcombine.low %v15546_v62, %v15547_v38  ;;  %v9097_v28 = vunpack.i.l.bf16 %v11206_v54 }
 0x294   : > { %3476 = vrot.lane.b32.xlu1 %v15533_v1, %s9762_s8  ;;  %3464 = vrot.lane.b32.xlu0 %v15534_v27, %s9762_s8  ;;  %v2254_v13 = vsel %vm1045_vm6, %v2253_v46, %v9092_v44 }
 0x295   : > { %v1469_v33 = vsel %vm1055_vm11, %v1468_v49, %v9133_v45  ;;  %v1462_v52 = vsel %vm1055_vm11, %v1461_v43, %v9132_v39  ;;  %v2260_v15 = vsel %vm1043_vm5, %v15548_v24, %v9088_v16 }
 0x296   : > { %v8949_v12 = vpack.c.bf16 %v1469_v33, %v1063_v3  ;;  %v8951_v4 = vpack.c.bf16 %v1462_v52, %v1056_v40  ;;  %v2261_v11 = vsel %vm1045_vm6, %v2260_v15, %v9093_v20 }
 0x298   : > { %3450 = vrot.lane.b32.xlu1 %v15535_v58, %s9762_s8  ;;  %3472 = vrot.lane.b32.xlu0 %v15536_v7, %s9762_s8 }
 0x299   : > { %8950 = vmatprep.subr.bf16.mxu0 %v8949_v12 }
 0x29a   : > { %8952 = vmatpush1.bf16.msra.mxu0 %v8951_v4  ;;  %v2255_v4 = vsel %vm1047_vm7, %v2254_v13, %v9097_v28 }
 0x29c   : > { %3458 = vrot.lane.b32.xlu1 %v15537_v57, %s9762_s8  ;;  %3446 = vrot.lane.b32.xlu0 %v15538_v6, %s9762_s8 }
 0x2a0   : > { %3466 = vrot.lane.b32.xlu1 %v15539_v41, %s9762_s8  ;;  %3454 = vrot.lane.b32.xlu0 %v15540_v63, %s9762_s8 }
 0x2a4   : > { %3474 = vrot.lane.b32.xlu1 %v15541_v10, %s9762_s8  ;;  %3462 = vrot.lane.b32.xlu0 %v15542_v34, %s9762_s8 }
 0x2a6   : > { %v9141_v18 = vpop.permute.xlu1 %9140  ;;  %v9136_v17 = vpop.permute.xlu0 %9135 }
 0x2a7   : > { %v9138_v29 = vunpack.i.h.bf16 %v9136_v17  ;;  %v9137_v21 = vunpack.i.l.bf16 %v9136_v17  ;;  %v9143_v5 = vunpack.i.h.bf16 %v9141_v18  ;;  %v9142_v51 = vunpack.i.l.bf16 %v9141_v18 }
 0x2a8   : > { %3842 = vrot.lane.b32.xlu1 %v10708_v26, %s9774_s12  ;;  %3470 = vrot.lane.b32.xlu0 %v15543_v19, %s9762_s8  ;;  %v2262_v18 = vsel %vm1047_vm7, %v2261_v11, %v9098_v9 }
 0x2a9   : > { %v1853_v22 = vsel %vm1043_vm5, %v15544_v56, %v9138_v29  ;;  %v1846_v23 = vsel %vm1043_vm5, %v15545_v32, %v9137_v21 }
 0x2aa   : > { %v9151_v42 = vpop.permute.xlu1 %9150  ;;  %v9146_v61 = vpop.permute.xlu0 %9145  ;;  %v1847_v14 = vsel %vm1045_vm6, %v1846_v23, %v9142_v51  ;;  %v1854_v49 = vsel %vm1045_vm6, %v1853_v22, %v9143_v5 }
 0x2ab   : > { %v9148_v48 = vunpack.i.h.bf16 %v9146_v61  ;;  %v9147_v37 = vunpack.i.l.bf16 %v9146_v61  ;;  %v9153_v45 = vunpack.i.h.bf16 %v9151_v42  ;;  %v9152_v39 = vunpack.i.l.bf16 %v9151_v42 }
 0x2ac   : > { %3850 = vrot.lane.b32.xlu1 %v15527_v8, %s9774_s12  ;;  %3838 = vrot.lane.b32.xlu0 %v15528_v55, %s9774_s12 }
 0x2ad   : > { %v1848_v59 = vsel %vm1047_vm7, %v1847_v14, %v9147_v37  ;;  %v1855_v54 = vsel %vm1047_vm7, %v1854_v49, %v9148_v48 }
 0x2ae   : > { %v11310_v25 = vpop.permute.xlu1 %9160  ;;  %v9156_v36 = vpop.permute.xlu0 %9155  ;;  %v1849_v61 = vsel %vm1049_vm8, %v1848_v59, %v9152_v39  ;;  %v1856_v29 = vsel %vm1049_vm8, %v1855_v54, %v9153_v45 }
 0x2af   : > { %v9158_v43 = vunpack.i.h.bf16 %v9156_v36  ;;  %v9157_v3 = vunpack.i.l.bf16 %v9156_v36  ;;  %v9163_v17 = vunpack.i.h.bf16 %v11310_v25  ;;  %v9162_v42 = vunpack.i.l.bf16 %v11310_v25 }
 0x2b0   : > { %3858 = vrot.lane.b32.xlu1 %v15530_v0, %s9774_s12  ;;  %3846 = vrot.lane.b32.xlu0 %v15531_v31, %s9774_s12 }
 0x2b1   : > { %v1850_v21 = vsel %vm1051_vm9, %v1849_v61, %v9157_v3  ;;  %v1857_v16 = vsel %vm1051_vm9, %v1856_v29, %v9158_v43 }
 0x2b2   : > { %v9176_v47 = vpop.permute.xlu1 %9175  ;;  %v9166_v60 = vpop.permute.xlu0 %9165  ;;  %v1858_v38 = vsel %vm1053_vm10, %v1857_v16, %v9163_v17  ;;  %v1851_v15 = vsel %vm1053_vm10, %v1850_v21, %v9162_v42 }
 0x2b3   : > { %v9178_v20 = vunpack.i.h.bf16 %v9176_v47  ;;  %v9177_v25 = vunpack.i.l.bf16 %v9176_v47  ;;  %v9168_v44 = vunpack.i.h.bf16 %v9166_v60  ;;  %v9167_v5 = vunpack.i.l.bf16 %v9166_v60 }
 0x2b4   : > { %3866 = vrot.lane.b32.xlu1 %v15533_v1, %s9774_s12  ;;  %3854 = vrot.lane.b32.xlu0 %v15534_v27, %s9774_s12 }
 0x2b5   : > { %v1859_v46 = vsel %vm1055_vm11, %v1858_v38, %v9168_v44  ;;  %v1852_v60 = vsel %vm1055_vm11, %v1851_v15, %v9167_v5 }
 0x2b6   : > { %v9186_v33 = vpop.permute.xlu1 %9185  ;;  %v9171_v40 = vpop.permute.xlu0 %9170 }
 0x2b7   : > { %v9173_v52 = vunpack.i.h.bf16 %v9171_v40  ;;  %v9172_v12 = vunpack.i.l.bf16 %v9171_v40  ;;  %v9188_v23 = vunpack.i.h.bf16 %v9186_v33  ;;  %v9187_v48 = vunpack.i.l.bf16 %v9186_v33 }
 0x2b8   : > { %3840 = vrot.lane.b32.xlu1 %v15535_v58, %s9774_s12  ;;  %3862 = vrot.lane.b32.xlu0 %v15536_v7, %s9774_s12 }
 0x2b9   : > { %v2256_v50 = vsel %vm1049_vm8, %v2255_v4, %v9172_v12  ;;  %v2263_v36 = vsel %vm1049_vm8, %v2262_v18, %v9173_v52  ;;  %v15552_v12 = vld [vmem:[#allocation14_spill] sm:$0xff] }
 0x2ba   : > { %v11360_v51 = vpop.permute.xlu1 %2269  ;;  %v9181_v56 = vpop.permute.xlu0 %9180  ;;  %v2264_v37 = vsel %vm1051_vm9, %v2263_v36, %v9178_v20  ;;  %v2257_v62 = vsel %vm1051_vm9, %v2256_v50, %v9177_v25 }
 0x2bb   : > { %v9183_v22 = vunpack.i.h.bf16 %v9181_v56  ;;  %v9182_v32 = vunpack.i.l.bf16 %v9181_v56 }
 0x2bc   : > { %3848 = vrot.lane.b32.xlu1 %v15537_v57, %s9774_s12  ;;  %3836 = vrot.lane.b32.xlu0 %v15538_v6, %s9774_s12 }
 0x2bd   : > { %v2265_v24 = vsel %vm1053_vm10, %v2264_v37, %v9183_v22  ;;  %v2258_v53 = vsel %vm1053_vm10, %v2257_v62, %v9182_v32 }
 0x2be   : > { %v2274_v2 = vpop.permute.xlu1 %2273  ;;  %v11372_v35 = vpop.permute.xlu0 %2267  ;;  %v2266_v47 = vsel %vm1055_vm11, %v2265_v24, %v9188_v23  ;;  %v2259_v9 = vsel %vm1055_vm11, %v2258_v53, %v9187_v48 }
 0x2bf   : > { %v8953_v28 = vpack.c.bf16 %v2266_v47, %v1859_v46  ;;  %v8955_v11 = vpack.c.bf16 %v2259_v9, %v1852_v60 }
 0x2c0   : > { %3856 = vrot.lane.b32.xlu1 %v15539_v41, %s9774_s12  ;;  %3844 = vrot.lane.b32.xlu0 %v15540_v63, %s9774_s12 }
 0x2c1   : > { %8954 = vmatprep.subr.bf16.mxu0 %v8953_v28 }
 0x2c2   : > { %v2278_v13 = vpop.permute.xlu1 %2277  ;;  %v11382_v45 = vpop.permute.xlu0 %2271  ;;  %8956 = vmatpush1.bf16.msra.mxu0 %v8955_v11 }
 0x2c3   : > { %v2451_v52 = vcombine.low %v11360_v51, %v2278_v13  ;;  %v2452_v38 = vcombine.high %v11360_v51, %v2278_v13 }
 0x2c4   : > { %3864 = vrot.lane.b32.xlu1 %v15541_v10, %s9774_s12  ;;  %3852 = vrot.lane.b32.xlu0 %v15542_v34, %s9774_s12 }
 0x2c5   : > { %v11411_v61 = vrot.slane %v2451_v52, %v15552_v12  ;;  %v11441_v11 = vrot.slane %v2452_v38, %v15552_v12 }
 0x2c6   : > { %v2282_v39 = vpop.permute.xlu1 %2281  ;;  %v11388_v14 = vpop.permute.xlu0 %2275 }
 0x2c7   : > { %v2467_v3 = vcombine.low %v2274_v2, %v2282_v39  ;;  %v2468_v24 = vcombine.high %v2274_v2, %v2282_v39  ;;  %v2315_v53 = vcombine.low %v11372_v35, %v11388_v14 }
 0x2c8   : > { %3860 = vrot.lane.b32.xlu0 %v15543_v19, %s9774_s12 }
 0x2c9   : > { %v11404_v4 = vrot.slane %v2467_v3, %v15552_v12  ;;  %v11444_v51 = vrot.slane %v2468_v24, %v15552_v12  ;;  %v11450_v3 = vrot.slane %v2315_v53, %v15552_v12 }
 0x2ca   : > { %v2286_v49 = vpop.permute.xlu1 %2285  ;;  %v11392_v59 = vpop.permute.xlu0 %2279 }
 0x2cb   : > { %v2515_v21 = vcombine.low %v11411_v61, %v11404_v4  ;;  %v2331_v48 = vcombine.low %v11382_v45, %v11392_v59  ;;  %v2516_v39 = vcombine.high %v11411_v61, %v11404_v4 }
 0x2cd   : > { %v11420_v44 = vrot.slane %v2515_v21, %v10276_v30  ;;  %v11436_v60 = vrot.slane %v2331_v48, %v15552_v12 }
 0x2ce   : > { %v11394_v54 = vpop.permute.xlu1 %2289  ;;  %v11396_v43 = vpop.permute.xlu0 %2283 }
 0x2cf   : > { %15553 = vst [vmem:[#allocation16_spill] sm:$0xff] %v11420_v44  ;;  %v2379_v48 = vcombine.low %v11450_v3, %v11436_v60 }
 0x2d2   : > { %v11398_v33 = vpop.permute.xlu1 %2297  ;;  %v11400_v40 = vpop.permute.xlu0 %2287 }
 0x2d3   : > { %v2499_v18 = vcombine.low %v11394_v54, %v11398_v33 }
 0x2d5   : > { %v2507_v16 = vrot.slane %v2499_v18, %v15552_v12 }
 0x2d6   : > { %v11408_v17 = vpop.permute.xlu1 %2663  ;;  %v2294_v42 = vpop.permute.xlu0 %2293 }
 0x2d7   : > { %v2483_v29 = vcombine.low %v2286_v49, %v2294_v42  ;;  %v2484_v52 = vcombine.high %v2286_v49, %v2294_v42  ;;  %v2500_v49 = vcombine.high %v11394_v54, %v11398_v33 }
 0x2d9   : > { %v2491_v50 = vrot.slane %v2483_v29, %v15552_v12 }
 0x2da   : > { %v11417_v36 = vpop.permute.xlu1 %2671  ;;  %v2660_v20 = vpop.permute.xlu0 %2659 }
 0x2db   : > { %v2547_v25 = vcombine.low %v2491_v50, %v2507_v16  ;;  %v2857_v15 = vcombine.low %v11408_v17, %v11417_v36  ;;  %v2548_v29 = vcombine.high %v2491_v50, %v2507_v16  ;;  %v2858_v53 = vcombine.high %v11408_v17, %v11417_v36 }
 0x2dd   : > { %v11423_v5 = vrot.slane %v2547_v25, %v10276_v30  ;;  %v2865_v2 = vrot.slane %v2857_v15, %v15552_v12 }
 0x2de   : > { %v2680_v56 = vpop.permute.xlu1 %2679  ;;  %v2668_v22 = vpop.permute.xlu0 %2667 }
 0x2df   : > { %15554 = vst [vmem:[#allocation13_spill] sm:$0xff] %v11423_v5  ;;  %v2841_v23 = vcombine.low %v2660_v20, %v2668_v22  ;;  %v2842_v38 = vcombine.high %v2660_v20, %v2668_v22  ;;  %v2562_v22 = vrot.slane %v2548_v29, %v10276_v30 }
 0x2e1   : > { %v2849_v46 = vrot.slane %v2841_v23, %v15552_v12 }
 0x2e2   : > { %v2688_v37 = vpop.permute.xlu1 %2687  ;;  %v2676_v62 = vpop.permute.xlu0 %2675 }
 0x2e3   : > { %v2889_v47 = vcombine.low %v2680_v56, %v2688_v37  ;;  %v2905_v21 = vcombine.low %v2849_v46, %v2865_v2  ;;  %v2890_v24 = vcombine.high %v2680_v56, %v2688_v37  ;;  %v2906_v42 = vcombine.high %v2849_v46, %v2865_v2 }
 0x2e4   : > { %v11480_v46 = vrot.slane %v2842_v38, %v15552_v12 }
 0x2e5   : > { %v2897_v25 = vrot.slane %v2889_v47, %v15552_v12  ;;  %v11473_v37 = vrot.slane %v2905_v21, %v10276_v30  ;;  %v11483_v17 = vrot.slane %v2890_v24, %v15552_v12  ;;  %v11499_v21 = vrot.slane %v2500_v49, %v15552_v12 }
 0x2e6   : > { %v11438_v9 = vpop.permute.xlu1 %2295  ;;  %v2684_v28 = vpop.permute.xlu0 %2683  ;;  %v2530_v24 = vrot.slane %v2516_v39, %v10276_v30  ;;  %v2531_v39 = vcombine.low %v11441_v11, %v11444_v51 }
 0x2e7   : > { %v2873_v13 = vcombine.low %v2676_v62, %v2684_v28  ;;  %v2874_v18 = vcombine.high %v2676_v62, %v2684_v28  ;;  %v2363_v15 = vcombine.low %v11400_v40, %v11438_v9  ;;  %v11463_v62 = vrot.slane %v2484_v52, %v15552_v12  ;;  %15555 = vst [vmem:[#allocation18_spill] sm:$0xff] %v11473_v37 }
 0x2e9   : > { %v2881_v23 = vrot.slane %v2873_v13, %v15552_v12  ;;  %v11468_v20 = vrot.slane %v2874_v18, %v15552_v12  ;;  %v11486_v36 = vrot.slane %v2363_v15, %v15552_v12  ;;  %v2920_v13 = vrot.slane %v2906_v42, %v10276_v30 }
 0x2ea   : > { %v11458_v4 = vpop.permute.xlu1 %2661  ;;  %v2292_v61 = vpop.permute.xlu0 %2291  ;;  %v2580_v18 = vcombine.high %v11420_v44, %v11423_v5  ;;  %v2316_v15 = vcombine.high %v11372_v35, %v11388_v14  ;;  %v2563_v49 = vcombine.low %v11463_v62, %v11499_v21  ;;  %v2332_v35 = vcombine.high %v11382_v45, %v11392_v59 }
 0x2eb   : > { %v2937_v16 = vcombine.low %v2881_v23, %v2897_v25  ;;  %v2938_v50 = vcombine.high %v2881_v23, %v2897_v25  ;;  %v2347_v56 = vcombine.low %v11396_v43, %v2292_v61  ;;  %v11502_v25 = vrot.slane %v2858_v53, %v15552_v12 }
 0x2ec   : > { %v2953_v23 = vcombine.low %v11468_v20, %v11483_v17  ;;  %v2348_v14 = vcombine.high %v11396_v43, %v2292_v61  ;;  %v2364_v44 = vcombine.high %v11400_v40, %v11438_v9  ;;  %v2571_v34 = vrot.slane %v2563_v49, %v10276_v30 }
 0x2ed   : > { %v11476_v54 = vrot.slane %v2937_v16, %v10276_v30  ;;  %v2952_v33 = vrot.slane %v2938_v50, %v10276_v30  ;;  %v11489_v47 = vrot.slane %v2347_v56, %v15552_v12  ;;  %v11512_v50 = vrot.slane %v2379_v48, %v10276_v30 }
 0x2ee   : > { %v2670_v28 = vpop.permute.xlu1 %2669  ;;  %v2658_v2 = vpop.permute.xlu0 %2657  ;;  %v2921_v53 = vcombine.low %v11480_v46, %v11502_v25  ;;  %v2581_v48 = vcombine.low %v2530_v24, %v2562_v22  ;;  %v11543_v40 = vrot.slane %v2348_v14, %v15552_v12  ;;  %v2582_v9 = vcombine.high %v2530_v24, %v2562_v22 }
 0x2ef   : > { %15556 = vst [vmem:[#allocation11_spill] sm:$0xff] %v11476_v54  ;;  %v2970_v29 = vcombine.high %v11473_v37, %v11476_v54  ;;  %v2411_v38 = vcombine.low %v11489_v47, %v11486_v36  ;;  %v2971_v16 = vcombine.low %v2920_v13, %v2952_v33  ;;  %v2972_v37 = vcombine.high %v2920_v13, %v2952_v33 }
 0x2f0   : > { %v2929_v45 = vrot.slane %v2921_v53, %v10276_v30  ;;  %v2721_v59 = vcombine.low %v11458_v4, %v2670_v28  ;;  %v2722_v43 = vcombine.high %v11458_v4, %v2670_v28  ;;  %v2539_v33 = vrot.slane %v2531_v39, %v10276_v30 }
 0x2f1   : > { %v9189_v42 = vpack.i.bf16 %v2970_v29, %v2580_v18  ;;  %v11519_v56 = vrot.slane %v2411_v38, %v10276_v30  ;;  %v2961_v18 = vrot.slane %v2953_v23, %v10276_v30  ;;  %v9199_v54 = vpack.i.bf16 %v2971_v16, %v2581_v48 }
 0x2f2   : > { %v2678_v32 = vpop.permute.xlu1 %2677  ;;  %v2666_v52 = vpop.permute.xlu0 %2665  ;;  %v9209_v49 = vpack.i.bf16 %v2972_v37, %v2582_v9  ;;  %v2729_v53 = vrot.slane %v2721_v59, %v15552_v12  ;;  %v2583_v24 = vcombine.low %v2539_v33, %v2571_v34 }
 0x2f3   : > { %9190 = vrot.lane.b32.xlu0 %v9189_v42, %s9768_s16  ;;  %v2705_v38 = vcombine.low %v2658_v2, %v2666_v52  ;;  %v2706_v5 = vcombine.high %v2658_v2, %v2666_v52  ;;  %v11537_v42 = vrot.slane %v2316_v15, %v15552_v12  ;;  %v11540_v2 = vrot.slane %v2332_v35, %v15552_v12 }
 0x2f4   : > { %v2973_v28 = vcombine.low %v2929_v45, %v2961_v18  ;;  %v11552_v52 = vrot.slane %v2364_v44, %v15552_v12  ;;  %v11556_v35 = vrot.slane %v2722_v43, %v15552_v12 }
 0x2f5   : > { %v2713_v13 = vrot.slane %v2705_v38, %v15552_v12  ;;  %v11549_v4 = vrot.slane %v2706_v5, %v15552_v12  ;;  %v2395_v5 = vcombine.low %v11537_v42, %v11540_v2  ;;  %v2974_v38 = vcombine.high %v2929_v45, %v2961_v18 }
 0x2f6   : > { %v2686_v61 = vpop.permute.xlu1 %2685  ;;  %v2674_v23 = vpop.permute.xlu0 %2673  ;;  %v2427_v39 = vcombine.low %v11543_v40, %v11552_v52  ;;  %v9219_v48 = vpack.i.bf16 %v2973_v28, %v2583_v24 }
 0x2f7   : > { %9200 = vrot.lane.b32.xlu0 %v9199_v54, %s9767_s29  ;;  %v2753_v15 = vcombine.low %v2678_v32, %v2686_v61  ;;  %v2754_v16 = vcombine.high %v2678_v32, %v2686_v61  ;;  %v2769_v32 = vcombine.low %v2713_v13, %v2729_v53  ;;  %v2785_v37 = vcombine.low %v11549_v4, %v11556_v35 }
 0x2f8   : > { %v2770_v24 = vcombine.high %v2713_v13, %v2729_v53 }
 0x2f9   : > { %v2761_v59 = vrot.slane %v2753_v15, %v15552_v12  ;;  %v11569_v43 = vrot.slane %v2754_v16, %v15552_v12  ;;  %v11586_v15 = vrot.slane %v2395_v5, %v10276_v30  ;;  %v2412_v16 = vcombine.high %v11489_v47, %v11486_v36 }
 0x2fa   : > { %v11558_v22 = vpop.permute.xlu1 %3452  ;;  %v2682_v54 = vpop.permute.xlu0 %2681  ;;  %v2380_v5 = vcombine.high %v11450_v3, %v11436_v60  ;;  %v2784_v60 = vrot.slane %v2770_v24, %v10276_v30  ;;  %v2444_v3 = vcombine.high %v11512_v50, %v11519_v56 }
 0x2fb   : > { %v2737_v44 = vcombine.low %v2674_v23, %v2682_v54  ;;  %v2738_v14 = vcombine.high %v2674_v23, %v2682_v54  ;;  %9210 = vrot.lane.b32.xlu0 %v9209_v49, %s9770_s14  ;;  %v2584_v49 = vcombine.high %v2539_v33, %v2571_v34  ;;  %v11580_v54 = vrot.slane %v2427_v39, %v10276_v30 }
 0x2fc   : > { %v11591_v34 = vrot.slane %v2769_v32, %v10276_v30  ;;  %v11594_v33 = vrot.slane %v2785_v37, %v10276_v30  ;;  %v2426_v37 = vrot.slane %v2412_v16, %v10276_v30 }
 0x2fd   : > { %v2745_v61 = vrot.slane %v2737_v44, %v15552_v12  ;;  %v11573_v9 = vrot.slane %v2738_v14, %v15552_v12  ;;  %v9229_v44 = vpack.i.bf16 %v2974_v38, %v2584_v49  ;;  %v2448_v53 = vcombine.high %v11586_v15, %v11580_v54 }
 0x2fe   : > { %v11575_v29 = vpop.permute.xlu1 %3460  ;;  %v11577_v23 = vpop.permute.xlu0 %3448  ;;  %15557 = vst [vmem:[#allocation19_spill] sm:$0xff] %v11591_v34 }
 0x2ff   : > { %v2801_v28 = vcombine.low %v2745_v61, %v2761_v59  ;;  %v2802_v18 = vcombine.high %v2745_v61, %v2761_v59  ;;  %v2817_v45 = vcombine.low %v11573_v9, %v11569_v43  ;;  %9220 = vrot.lane.b32.xlu0 %v9219_v48, %s9769_s13  ;;  %v3257_v59 = vcombine.high %v10708_v26, %v15527_v8 }
 0x300   : > { %v3646_v13 = vcombine.low %v11558_v22, %v11575_v29  ;;  %v3241_v26 = vcombine.high %v15528_v55, %v15531_v31  ;;  %v3273_v8 = vcombine.high %v15534_v27, %v15536_v7  ;;  %v3121_v7 = vcombine.high %v15535_v58, %v15537_v57  ;;  %v15561_v57 = vld [vmem:[#allocation37_spill] sm:$0xff] }
 0x301   : > { %v11597_v39 = vrot.slane %v2801_v28, %v10276_v30  ;;  %v11600_v14 = vrot.slane %v2817_v45, %v10276_v30  ;;  %v2816_v48 = vrot.slane %v2802_v18, %v10276_v30  ;;  %v3289_v28 = vcombine.high %v15530_v0, %v15533_v1 }
 0x302   : > { %v11605_v36 = vpop.permute.xlu1 %3468  ;;  %v11607_v47 = vpop.permute.xlu0 %3456  ;;  %v2394_v18 = vrot.slane %v2380_v5, %v10276_v30 }
 0x303   : > { %15558 = vst [vmem:[#allocation12_spill] sm:$0xff] %v11597_v39  ;;  %9230 = vrot.lane.b32.xlu0 %v9229_v44, %s9772_s26  ;;  %v2838_v32 = vcombine.high %v11594_v33, %v11600_v14  ;;  %v2834_v38 = vcombine.high %v11591_v34, %v11597_v39  ;;  %v3630_v61 = vcombine.low %v11577_v23, %v11607_v47 }
 0x304   : > { %v2835_v44 = vcombine.low %v2784_v60, %v2816_v48  ;;  %v2445_v0 = vcombine.low %v2394_v18, %v2426_v37  ;;  %v2836_v27 = vcombine.high %v2784_v60, %v2816_v48  ;;  %v2446_v58 = vcombine.high %v2394_v18, %v2426_v37  ;;  %v15562_v48 = vld [vmem:[#allocation39_spill] sm:$0xff] }
 0x305   : > { %v9239_v49 = vpack.i.bf16 %v2838_v32, %v2448_v53  ;;  %v9194_v24 = vpack.i.bf16 %v2834_v38, %v2444_v3  ;;  %v11642_v1 = vrot.slane %v3630_v61, %v15552_v12  ;;  %v11647_v53 = vrot.slane %v3257_v59, %v15552_v12 }
 0x306   : > { %v11629_v45 = vpop.permute.xlu1 %3476  ;;  %v11631_v16 = vpop.permute.xlu0 %3464  ;;  %v11650_v32 = vrot.slane %v3289_v28, %v15552_v12  ;;  %v9204_v31 = vpack.i.bf16 %v2835_v44, %v2445_v0  ;;  %v3105_v38 = vcombine.high %v15538_v6, %v15540_v63  ;;  %v3654_v61 = vrot.slane %v3646_v13, %v15552_v12  ;;  %v15559_v28 = vld [vmem:[#allocation38_spill] sm:$0xff] }
 0x307   : > { %9240 = vrot.lane.b32.xlu0 %v9239_v49, %s9772_s26  ;;  %9195 = vrot.lane.b32.xlu1 %v9194_v24, %s9768_s16  ;;  %v3678_v5 = vcombine.low %v11605_v36, %v11629_v45  ;;  %v11664_v49 = vrot.slane %v3241_v26, %v15552_v12  ;;  %v15560_v24 = vld [vmem:[#allocation43_spill] sm:$0xff]  ;;  %v11669_v44 = vrot.slane %v3273_v8, %v15552_v12 }
 0x308   : > { %v3305_v39 = vcombine.high %v15560_v24, %v15559_v28  ;;  %v3337_v6 = vcombine.high %v15562_v48, %v15561_v57  ;;  %v3694_v63 = vcombine.low %v11642_v1, %v3654_v61  ;;  %v2954_v0 = vcombine.high %v11468_v20, %v11483_v17  ;;  %v15563_v57 = vld [vmem:[#allocation48_spill] sm:$0xff]  ;;  %v15564_v20 = vld [vmem:[#allocation51_spill] sm:$0xff] }
 0x309   : > { %v3686_v13 = vrot.slane %v3678_v5, %v15552_v12  ;;  %v9214_v37 = vpack.i.bf16 %v2836_v27, %v2446_v58  ;;  %v2837_v18 = vcombine.low %v11594_v33, %v11600_v14  ;;  %v11690_v5 = vrot.slane %v3121_v7, %v15552_v12 }
 0x30a   : > { %v11652_v3 = vpop.permute.xlu1 %3450  ;;  %v11654_v55 = vpop.permute.xlu0 %3472  ;;  %v3169_v17 = vcombine.high %v15564_v20, %v15563_v57  ;;  %v2564_v48 = vcombine.high %v11463_v62, %v11499_v21  ;;  %v2922_v27 = vcombine.high %v11480_v46, %v11502_v25  ;;  %v2447_v33 = vcombine.low %v11586_v15, %v11580_v54  ;;  %v15571_v57 = vld [vmem:[#allocation52_spill] sm:$0xff] }
 0x30b   : > { %v3662_v59 = vcombine.low %v11631_v16, %v11654_v55  ;;  %9205 = vrot.lane.b32.xlu1 %v9204_v31, %s9767_s29  ;;  %v3153_v14 = vcombine.high %v15539_v41, %v15541_v10  ;;  %v11707_v7 = vrot.slane %v3694_v63, %v10276_v30  ;;  %v11713_v58 = vrot.slane %v3337_v6, %v10276_v30  ;;  %v15567_v10 = vld [vmem:[#allocation22_spill] sm:$0xff]  ;;  %v15568_v6 = vld [vmem:[#allocation47_spill] sm:$0xff] }
 0x30c   : > { %v2532_v62 = vcombine.high %v11441_v11, %v11444_v51  ;;  %v11718_v46 = vrot.slane %v2954_v0, %v10276_v30  ;;  %v9224_v41 = vpack.i.bf16 %v2837_v18, %v2447_v33  ;;  %v3137_v15 = vcombine.high %v15567_v10, %v15543_v19  ;;  %v15570_v18 = vld [vmem:[#allocation49_spill] sm:$0xff] }
 0x30d   : > { %v3670_v60 = vrot.slane %v3662_v59, %v15552_v12  ;;  %v11693_v59 = vrot.slane %v3105_v38, %v15552_v12  ;;  %15565 = vst [vmem:[#allocation24_spill] sm:$0xff] %v11707_v7  ;;  %v2578_v51 = vrot.slane %v2564_v48, %v10276_v30  ;;  %v11737_v0 = vrot.slane %v3305_v39, %v10276_v30 }
 0x30e   : > { %v11681_v8 = vpop.permute.xlu1 %3458  ;;  %v11683_v28 = vpop.permute.xlu0 %3446  ;;  %v11740_v19 = vrot.slane %v3153_v14, %v15552_v12  ;;  %v3201_v20 = vcombine.high %v15571_v57, %v15570_v18  ;;  %v11756_v18 = vrot.slane %v3137_v15, %v15552_v12  ;;  %v11769_v63 = vrot.slane %v3169_v17, %v10276_v30 }
 0x30f   : > { %v3726_v24 = vcombine.low %v3670_v60, %v3686_v13  ;;  %9215 = vrot.lane.b32.xlu1 %v9214_v37, %s9770_s14  ;;  %v3727_v21 = vcombine.high %v3670_v60, %v3686_v13  ;;  %v15569_v37 = vld [vmem:[#allocation50_spill] sm:$0xff]  ;;  %v2936_v13 = vrot.slane %v2922_v27, %v10276_v30  ;;  %v3695_v60 = vcombine.high %v11642_v1, %v3654_v61 }
 0x310   : > { %v2546_v1 = vrot.slane %v2532_v62, %v10276_v30  ;;  %v11776_v31 = vrot.slane %v3201_v20, %v10276_v30  ;;  %v2396_v34 = vcombine.high %v11537_v42, %v11540_v2  ;;  %v3511_v42 = vcombine.high %v11652_v3, %v11681_v8 }
 0x311   : > { %v11710_v38 = vrot.slane %v3726_v24, %v10276_v30  ;;  %v3369_v24 = vcombine.high %v15569_v37, %v15568_v6  ;;  %v11750_v61 = vrot.slane %v3727_v21, %v10276_v30  ;;  %v2975_v14 = vcombine.low %v2936_v13, %v11718_v46 }
 0x312   : > { %v11720_v25 = vpop.permute.xlu1 %3466  ;;  %v11722_v54 = vpop.permute.xlu0 %3454  ;;  %v11763_v62 = vrot.slane %v3695_v60, %v10276_v30  ;;  %v2585_v21 = vcombine.low %v2546_v1, %v2578_v51  ;;  %v2428_v60 = vcombine.high %v11543_v40, %v11552_v52  ;;  %v2976_v20 = vcombine.high %v2936_v13, %v11718_v46 }
 0x313   : > { %15566 = vst [vmem:[#allocation23_spill] sm:$0xff] %v11710_v38  ;;  %v3759_v11 = vcombine.high %v11707_v7, %v11710_v38  ;;  %9225 = vrot.lane.b32.xlu1 %v9224_v41, %s9769_s13  ;;  %v3494_v33 = vcombine.low %v11683_v28, %v11722_v54  ;;  %v15572_v38 = vld [vmem:[#allocation53_spill] sm:$0xff]  ;;  %v15573_v7 = vld [vmem:[#allocation54_spill] sm:$0xff]  ;;  %v3495_v40 = vcombine.high %v11683_v28, %v11722_v54 }
 0x314   : > { %v9244_v57 = vpack.i.bf16 %v2975_v14, %v2585_v21  ;;  %v3760_v17 = vcombine.low %v11763_v62, %v11750_v61  ;;  %v3233_v15 = vcombine.high %v15573_v7, %v15572_v38  ;;  %v2586_v14 = vcombine.high %v2546_v1, %v2578_v51 }
 0x315   : > { %v9234_v10 = vpack.i.bf16 %v3759_v11, %v3369_v24  ;;  %v3510_v24 = vcombine.low %v11652_v3, %v11681_v8  ;;  %v3370_v11 = vcombine.low %v11737_v0, %v11713_v58  ;;  %v3502_v41 = vrot.slane %v3494_v33, %v15552_v12 }
 0x316   : > { %v3475_v39 = vpop.permute.xlu1 %3474  ;;  %v3463_v27 = vpop.permute.xlu0 %3462  ;;  %v2818_v21 = vcombine.high %v11573_v9, %v11569_v43  ;;  %v11799_v46 = vrot.slane %v2428_v60, %v10276_v30  ;;  %v2786_v43 = vcombine.high %v11549_v4, %v11556_v35  ;;  %v3663_v51 = vcombine.high %v11631_v16, %v11654_v55 }
 0x317   : > { %9235 = vrot.lane.b32.xlu1 %v9234_v10, %s9768_s16  ;;  %v3542_v26 = vcombine.low %v11720_v25, %v3475_v39  ;;  %v3518_v33 = vrot.slane %v3510_v24, %v15552_v12  ;;  %v3543_v52 = vcombine.high %v11720_v25, %v3475_v39  ;;  %v9254_v54 = vpack.i.bf16 %v3760_v17, %v3370_v11 }
 0x318   : > { %v11815_v13 = vrot.slane %v3495_v40, %v15552_v12  ;;  %v3679_v4 = vcombine.high %v11605_v36, %v11629_v45  ;;  %v11833_v55 = vrot.slane %v3511_v42, %v15552_v12  ;;  %v3761_v36 = vcombine.high %v11763_v62, %v11750_v61 }
 0x319   : > { %v3558_v38 = vcombine.low %v3502_v41, %v3518_v33  ;;  %v3550_v24 = vrot.slane %v3542_v26, %v15552_v12  ;;  %v3559_v3 = vcombine.high %v3502_v41, %v3518_v33  ;;  %v11818_v8 = vrot.slane %v3543_v52, %v15552_v12 }
 0x31a   : > { %v11780_v10 = vpop.permute.xlu1 %3842  ;;  %v3471_v48 = vpop.permute.xlu0 %3470  ;;  %v11845_v45 = vrot.slane %v2786_v43, %v10276_v30  ;;  %v3647_v60 = vcombine.high %v11558_v22, %v11575_v29  ;;  %v11856_v17 = vrot.slane %v3663_v51, %v15552_v12  ;;  %v3574_v62 = vcombine.low %v11815_v13, %v11833_v55 }
 0x31b   : > { %v3526_v6 = vcombine.low %v3463_v27, %v3471_v48  ;;  %v3527_v37 = vcombine.high %v3463_v27, %v3471_v48  ;;  %9245 = vrot.lane.b32.xlu1 %v9244_v57, %s9771_s20  ;;  %v11827_v35 = vrot.slane %v3558_v38, %v10276_v30  ;;  %v3631_v38 = vcombine.high %v11577_v23, %v11607_v47 }
 0x31c   : > { %v3573_v61 = vrot.slane %v3559_v3, %v10276_v30  ;;  %v2410_v23 = vrot.slane %v2396_v34, %v10276_v30  ;;  %v15574_v29 = vcombine.low %v11693_v59, %v11690_v5  ;;  %v15575_v34 = vcombine.high %v11737_v0, %v11713_v58 }
 0x31d   : > { %v3534_v48 = vrot.slane %v3526_v6, %v15552_v12  ;;  %v11804_v2 = vrot.slane %v3527_v37, %v15552_v12  ;;  %v9264_v6 = vpack.i.bf16 %v2976_v20, %v2586_v14  ;;  %v11822_v37 = vrot.slane %v2818_v21, %v10276_v30 }
 0x31e   : > { %v11806_v28 = vpop.permute.xlu1 %3850  ;;  %v11808_v25 = vpop.permute.xlu0 %3838  ;;  %v11869_v22 = vrot.slane %v15574_v29, %v10276_v30  ;;  %v11872_v20 = vrot.slane %v3679_v4, %v15552_v12  ;;  %v2449_v42 = vcombine.low %v2410_v23, %v11799_v46  ;;  %v3582_v0 = vrot.slane %v3574_v62, %v10276_v30 }
 0x31f   : > { %v3590_v9 = vcombine.low %v3534_v48, %v3550_v24  ;;  %v3591_v26 = vcombine.high %v3534_v48, %v3550_v24  ;;  %9255 = vrot.lane.b32.xlu1 %v9254_v54, %s9767_s29  ;;  %v3606_v39 = vcombine.low %v11804_v2, %v11818_v8  ;;  %v2839_v33 = vcombine.low %v11845_v45, %v11822_v37 }
 0x320   : > { %v11883_v24 = vrot.slane %v3631_v38, %v15552_v12  ;;  %v15576_v54 = vcombine.low %v11756_v18, %v11740_v19  ;;  %v3742_v58 = vcombine.low %v11856_v17, %v11872_v20 }
 0x321   : > { %v11830_v16 = vrot.slane %v3590_v9, %v10276_v30  ;;  %v3605_v1 = vrot.slane %v3591_v26, %v10276_v30  ;;  %v3614_v40 = vrot.slane %v3606_v39, %v10276_v30  ;;  %v11894_v9 = vrot.slane %v3647_v60, %v15552_v12 }
 0x322   : > { %v11838_v27 = vpop.permute.xlu1 %3858  ;;  %v11840_v41 = vpop.permute.xlu0 %3846  ;;  %v3224_v43 = vrot.slane %v15576_v54, %v10276_v30  ;;  %v3235_v26 = vcombine.high %v11769_v63, %v11776_v31  ;;  %v9259_v3 = vpack.i.bf16 %v2839_v33, %v2449_v42  ;;  %v3217_v39 = vcombine.high %v11756_v18, %v11740_v19 }
 0x323   : > { %v3622_v11 = vcombine.low %v11827_v35, %v11830_v16  ;;  %v3623_v57 = vcombine.high %v11827_v35, %v11830_v16  ;;  %9265 = vrot.lane.b32.xlu1 %v9264_v6, %s9773_s18  ;;  %v3625_v21 = vcombine.high %v3573_v61, %v3605_v1  ;;  %v4020_v48 = vcombine.low %v11808_v25, %v11840_v41  ;;  %v15592_v35 = vld [vmem:[#allocation50_spill] sm:$0xff]  ;;  %v15593_v16 = vld [vmem:[#allocation47_spill] sm:$0xff] }
 0x324   : > { %v4036_v6 = vcombine.low %v11780_v10, %v11806_v28  ;;  %v3624_v4 = vcombine.low %v3573_v61, %v3605_v1  ;;  %v3626_v62 = vcombine.low %v3582_v0, %v3614_v40  ;;  %v3234_v19 = vcombine.low %v11769_v63, %v11776_v31 }
 0x325   : > { %v9249_v47 = vpack.i.bf16 %v3623_v57, %v3233_v15  ;;  %v9274_v15 = vpack.i.bf16 %v3761_v36, %v15575_v34  ;;  %v3607_v36 = vcombine.high %v11804_v2, %v11818_v8  ;;  %v9284_v60 = vpack.i.bf16 %v3625_v21, %v3235_v26 }
 0x326   : > { %v11875_v52 = vpop.permute.xlu1 %3866  ;;  %v11877_v14 = vpop.permute.xlu0 %3854  ;;  %v11917_v29 = vrot.slane %v4020_v48, %v15552_v12  ;;  %v3750_v18 = vrot.slane %v3742_v58, %v10276_v30  ;;  %v3575_v2 = vcombine.high %v11815_v13, %v11833_v55  ;;  %v3236_v8 = vcombine.low %v11869_v22, %v3224_v43 }
 0x327   : > { %9250 = vrot.lane.b32.xlu0 %v9249_v47, %s9768_s16  ;;  %9275 = vrot.lane.b32.xlu1 %v9274_v15, %s9770_s14  ;;  %v4068_v51 = vcombine.low %v11838_v27, %v11875_v52  ;;  %v3710_v47 = vcombine.low %v11883_v24, %v11894_v9  ;;  %v2840_v61 = vcombine.high %v11845_v45, %v11822_v37 }
 0x328   : > { %v11932_v33 = vrot.slane %v4036_v6, %v15552_v12  ;;  %v9269_v63 = vpack.i.bf16 %v3624_v4, %v3234_v19  ;;  %v11941_v15 = vrot.slane %v3607_v36, %v10276_v30  ;;  %v9294_v21 = vpack.i.bf16 %v3626_v62, %v3236_v8 }
 0x329   : > { %v11935_v34 = vrot.slane %v4068_v51, %v15552_v12  ;;  %v3627_v48 = vcombine.high %v3582_v0, %v3614_v40  ;;  %v15577_v37 = vcombine.low %v11669_v44, %v11650_v32  ;;  %v3718_v42 = vrot.slane %v3710_v47, %v10276_v30 }
 0x32a   : > { %v11910_v38 = vpop.permute.xlu1 %3840  ;;  %v11912_v57 = vpop.permute.xlu0 %3862  ;;  %v4084_v54 = vcombine.low %v11917_v29, %v11932_v33  ;;  %v2450_v26 = vcombine.high %v2410_v23, %v11799_v46  ;;  %v3743_v40 = vcombine.high %v11856_v17, %v11872_v20  ;;  %v11961_v0 = vrot.slane %v3575_v2, %v10276_v30 }
 0x32b   : > { %v4052_v1 = vcombine.low %v11877_v14, %v11912_v57  ;;  %9260 = vrot.lane.b32.xlu0 %v9259_v3, %s9771_s20  ;;  %9285 = vrot.lane.b32.xlu1 %v9284_v60, %s9770_s14  ;;  %v3360_v45 = vrot.slane %v15577_v37, %v10276_v30  ;;  %v3237_v6 = vcombine.high %v11869_v22, %v3224_v43 }
 0x32c   : > { %v11966_v51 = vrot.slane %v3217_v39, %v10276_v30  ;;  %v9279_v3 = vpack.i.bf16 %v2840_v61, %v2450_v26  ;;  %v15578_v4 = vcombine.low %v11664_v49, %v11647_v53  ;;  %v3762_v46 = vcombine.low %v3718_v42, %v3750_v18 }
 0x32d   : > { %v11938_v31 = vrot.slane %v4052_v1, %v15552_v12  ;;  %v9304_v60 = vpack.i.bf16 %v3627_v48, %v3237_v6  ;;  %v15579_v22 = vcombine.high %v11693_v59, %v11690_v5  ;;  %v3628_v39 = vcombine.low %v11961_v0, %v11941_v15 }
 0x32e   : > { %v11943_v13 = vpop.permute.xlu1 %3848  ;;  %v11945_v55 = vpop.permute.xlu0 %3836  ;;  %v3328_v36 = vrot.slane %v15578_v4, %v10276_v30  ;;  %v3353_v62 = vcombine.high %v11669_v44, %v11650_v32  ;;  %v3711_v47 = vcombine.high %v11883_v24, %v11894_v9  ;;  %v11993_v19 = vrot.slane %v4084_v54, %v10276_v30 }
 0x32f   : > { %v4116_v58 = vcombine.low %v11938_v31, %v11935_v34  ;;  %9270 = vrot.lane.b32.xlu0 %v9269_v63, %s9767_s29  ;;  %9295 = vrot.lane.b32.xlu1 %v9294_v21, %s9769_s13  ;;  %v11983_v43 = vrot.slane %v15579_v22, %v10276_v30  ;;  %v3321_v5 = vcombine.high %v11664_v49, %v11647_v53 }
 0x330   : > { %v3372_v1 = vcombine.low %v3328_v36, %v3360_v45  ;;  %v3757_v59 = vrot.slane %v3743_v40, %v10276_v30  ;;  %v3763_v24 = vcombine.high %v3718_v42, %v3750_v18  ;;  %v3725_v53 = vrot.slane %v3711_v47, %v10276_v30 }
 0x331   : > { %v11973_v23 = vrot.slane %v4116_v58, %v10276_v30  ;;  %v3238_v2 = vcombine.low %v11983_v43, %v11966_v51  ;;  %v3900_v49 = vcombine.low %v11910_v38, %v11943_v13  ;;  %v3373_v21 = vcombine.high %v3328_v36, %v3360_v45 }
 0x332   : > { %v11975_v17 = vpop.permute.xlu1 %3856  ;;  %v11977_v20 = vpop.permute.xlu0 %3844  ;;  %v9289_v44 = vpack.i.bf16 %v3762_v46, %v3372_v1  ;;  %v3367_v48 = vrot.slane %v3353_v62, %v10276_v30  ;;  %v3335_v18 = vrot.slane %v3321_v5, %v10276_v30  ;;  %v3764_v58 = vcombine.low %v3725_v53, %v3757_v59 }
 0x333   : > { %9280 = vrot.lane.b32.xlu0 %v9279_v3, %s9773_s18  ;;  %9305 = vrot.lane.b32.xlu1 %v9304_v60, %s9772_s26  ;;  %v3884_v32 = vcombine.low %v11945_v55, %v11977_v20  ;;  %v4148_v9 = vcombine.low %v11993_v19, %v11973_v23  ;;  %v9314_v63 = vpack.i.bf16 %v3628_v39, %v3238_v2 }
 0x334   : > { %v9299_v54 = vpack.i.bf16 %v3763_v24, %v3373_v21  ;;  %v4149_v40 = vcombine.high %v11993_v19, %v11973_v23  ;;  %v3908_v6 = vrot.slane %v3900_v49, %v15552_v12  ;;  %v3374_v45 = vcombine.low %v3335_v18, %v3367_v48 }
 0x335   : > { %v3892_v37 = vrot.slane %v3884_v32, %v15552_v12  ;;  %v3765_v4 = vcombine.high %v3725_v53, %v3757_v59  ;;  %v3375_v36 = vcombine.high %v3335_v18, %v3367_v48  ;;  %v4053_v2 = vcombine.high %v11877_v14, %v11912_v57 }
 0x336   : > { %v3865_v8 = vpop.permute.xlu1 %3864  ;;  %v3853_v61 = vpop.permute.xlu0 %3852  ;;  %v9309_v39 = vpack.i.bf16 %v3764_v58, %v3374_v45  ;;  %v4117_v59 = vcombine.high %v11938_v31, %v11935_v34  ;;  %v3885_v32 = vcombine.high %v11945_v55, %v11977_v20  ;;  %v4021_v14 = vcombine.high %v11808_v25, %v11840_v41 }
 0x337   : > { %9290 = vrot.lane.b32.xlu0 %v9289_v44, %s9769_s13  ;;  %9315 = vrot.lane.b32.xlu1 %v9314_v63, %s9771_s20  ;;  %v3932_v42 = vcombine.low %v11975_v17, %v3865_v8  ;;  %v3948_v46 = vcombine.low %v3892_v37, %v3908_v6  ;;  %v9319_v5 = vpack.i.bf16 %v3765_v4, %v3375_v36 }
 0x338   : > { %v3629_v44 = vcombine.high %v11961_v0, %v11941_v15  ;;  %v3949_v24 = vcombine.high %v3892_v37, %v3908_v6  ;;  %v4085_v57 = vcombine.high %v11917_v29, %v11932_v33  ;;  %v4069_v34 = vcombine.high %v11838_v27, %v11875_v52 }
 0x339   : > { %v3940_v60 = vrot.slane %v3932_v42, %v15552_v12  ;;  %v12032_v63 = vrot.slane %v3948_v46, %v10276_v30  ;;  %v3239_v31 = vcombine.high %v11983_v43, %v11966_v51  ;;  %v3901_v15 = vcombine.high %v11910_v38, %v11943_v13 }
 0x33a   : > { %v3861_v26 = vpop.permute.xlu0 %3860  ;;  %v4037_v41 = vcombine.high %v11780_v10, %v11806_v28  ;;  %v4067_v27 = vrot.slane %v4053_v2, %v15552_v12  ;;  %v3899_v38 = vrot.slane %v3885_v32, %v15552_v12  ;;  %v3963_v13 = vrot.slane %v3949_v24, %v10276_v30 }
 0x33b   : > { %v3916_v3 = vcombine.low %v3853_v61, %v3861_v26  ;;  %9300 = vrot.lane.b32.xlu0 %v9299_v54, %s9772_s26  ;;  %4185 = vrot.lane.b32.xlu1 %v4149_v40, %s9768_s16  ;;  %v3917_v62 = vcombine.high %v3853_v61, %v3861_v26  ;;  %v3933_v61 = vcombine.high %v11975_v17, %v3865_v8  ;;  %v9776_v2 = vmov 0  }
 0x33c   : > { %v9324_v52 = vpack.i.bf16 %v3629_v44, %v3239_v31  ;;  %v4131_v51 = vrot.slane %v4117_v59, %v10276_v30  ;;  %v4035_v17 = vrot.slane %v4021_v14, %v15552_v12  ;;  %v4099_v10 = vrot.slane %v4085_v57, %v10276_v30  ;;  %9329 = vset.pattern.permute.xlu0 %v9776_v2  ;;  %v327_v14 = vld [vmem:[%s15187_s3] sm:$0xff] }
 0x33d   : > { %v3924_v22 = vrot.slane %v3916_v3, %v15552_v12  ;;  %v3931_v55 = vrot.slane %v3917_v62, %v15552_v12  ;;  %v3947_v33 = vrot.slane %v3933_v61, %v15552_v12  ;;  %v4083_v28 = vrot.slane %v4069_v34, %v15552_v12 }
 0x33e   : > { %v3915_v20 = vrot.slane %v3901_v15, %v15552_v12  ;;  %v4051_v49 = vrot.slane %v4037_v41, %v15552_v12  ;;  %v4150_v18 = vcombine.low %v4099_v10, %v4131_v51  ;;  %v4151_v58 = vcombine.high %v4099_v10, %v4131_v51 }
 0x33f   : > { %v3980_v47 = vcombine.low %v3924_v22, %v3940_v60  ;;  %v3981_v1 = vcombine.high %v3924_v22, %v3940_v60  ;;  %9310 = vrot.lane.b32.xlu0 %v9309_v39, %s9771_s20  ;;  %v3996_v43 = vcombine.low %v3931_v55, %v3947_v33  ;;  %v4132_v21 = vcombine.low %v4067_v27, %v4083_v28 }
 0x340   : > { %v3964_v48 = vcombine.low %v3899_v38, %v3915_v20  ;;  %v4100_v37 = vcombine.low %v4035_v17, %v4051_v49  ;;  %v3997_v6 = vcombine.high %v3931_v55, %v3947_v33  ;;  %v4133_v4 = vcombine.high %v4067_v27, %v4083_v28 }
 0x341   : > { %v12035_v53 = vrot.slane %v3980_v47, %v10276_v30  ;;  %v3995_v25 = vrot.slane %v3981_v1, %v10276_v30  ;;  %v4004_v54 = vrot.slane %v3996_v43, %v10276_v30  ;;  %v4140_v40 = vrot.slane %v4132_v21, %v10276_v30  ;;  %v15581_v21 = vld [vmem:[#allocation11_spill] sm:$0xff] }
 0x342   : > { %v3972_v26 = vrot.slane %v3964_v48, %v10276_v30  ;;  %v4108_v45 = vrot.slane %v4100_v37, %v10276_v30  ;;  %v3965_v36 = vcombine.high %v3899_v38, %v3915_v20  ;;  %v4101_v60 = vcombine.high %v4035_v17, %v4051_v49  ;;  %v15580_v49 = vld [vmem:[#allocation18_spill] sm:$0xff]  ;;  %v15583_v37 = vld [vmem:[#allocation16_spill] sm:$0xff] }
 0x343   : > { %9320 = vrot.lane.b32.xlu0 %v9319_v5, %s9773_s18  ;;  %v4013_v0 = vcombine.high %v12032_v63, %v12035_v53  ;;  %v4012_v29 = vcombine.low %v12032_v63, %v12035_v53  ;;  %v4014_v8 = vcombine.low %v3963_v13, %v3995_v25  ;;  %v4015_v42 = vcombine.high %v3963_v13, %v3995_v25 }
 0x344   : > { %v4016_v3 = vcombine.low %v3972_v26, %v4004_v54  ;;  %v4152_v46 = vcombine.low %v4108_v45, %v4140_v40  ;;  %v4017_v22 = vcombine.high %v3972_v26, %v4004_v54  ;;  %v4011_v39 = vrot.slane %v3997_v6, %v10276_v30 }
 0x345   : > { %4157 = vrot.lane.b32.xlu1 %v4013_v0, %s9768_s16  ;;  %v4153_v62 = vcombine.high %v4108_v45, %v4140_v40  ;;  %v3979_v47 = vrot.slane %v3965_v36, %v10276_v30  ;;  %v4147_v1 = vrot.slane %v4133_v4, %v10276_v30  ;;  %v15288_v5 = vmov 0.0  }
 0x346   : > { %4299 = vmatprep.mubr.f32.mxu0 %v15288_v5  ;;  %8586 = vmatprep.mubr.f32.mxu1 %v15288_v5  ;;  %v4115_v32 = vrot.slane %v4101_v60, %v10276_v30  ;;  %v15582_v48 = vcombine.low %v15580_v49, %v15581_v21  ;;  %v15587_v49 = vld [vmem:[#allocation19_spill] sm:$0xff]  ;;  %v15588_v21 = vld [vmem:[#allocation12_spill] sm:$0xff] }
 0x347   : > { %9325 = vrot.lane.b32.xlu0 %v9324_v52, %s9773_s18  ;;  %v4018_v59 = vcombine.low %v3979_v47, %v4011_v39  ;;  %v4019_v24 = vcombine.high %v3979_v47, %v4011_v39 }
 0x348   : > { %v4154_v44 = vcombine.low %v4115_v32, %v4147_v1  ;;  %v4155_v61 = vcombine.high %v4115_v32, %v4147_v1 }
 0x349   : > { %4161 = vrot.lane.b32.xlu1 %v4014_v8, %s9767_s29 }
 0x34b   : > { %4189 = vrot.lane.b32.xlu0 %v4150_v18, %s9767_s29 }
 0x34d   : > { %4165 = vrot.lane.b32.xlu1 %v4015_v42, %s9770_s14  ;;  %v15584_v42 = vld [vmem:[#allocation13_spill] sm:$0xff] }
 0x34e   : > { %v15585_v54 = vcombine.low %v15583_v37, %v15584_v42 }
 0x34f   : > { %4193 = vrot.lane.b32.xlu0 %v4151_v58, %s9770_s14 }
 0x351   : > { %4169 = vrot.lane.b32.xlu1 %v4016_v3, %s9769_s13 }
 0x353   : > { %4197 = vrot.lane.b32.xlu0 %v4152_v46, %s9769_s13 }
 0x355   : > { %4173 = vrot.lane.b32.xlu1 %v4017_v22, %s9772_s26 }
 0x357   : > { %4201 = vrot.lane.b32.xlu0 %v4153_v62, %s9772_s26 }
 0x359   : > { %4177 = vrot.lane.b32.xlu1 %v4018_v59, %s9771_s20 }
 0x35b   : > { %4205 = vrot.lane.b32.xlu0 %v4154_v44, %s9771_s20 }
 0x35d   : > { %4181 = vrot.lane.b32.xlu1 %v4019_v24, %s9773_s18 }
 0x35f   : > { %4209 = vrot.lane.b32.xlu0 %v4155_v61, %s9773_s18 }
 0x363   : > { %4228 = vperm.xlu0 %9329, %v327_v14  }
 0x365   : > { %v9191_v57 = vpop.permute.xlu0 %9190 }
 0x366   : > { %v9193_v38 = vunpack.i.h.bf16 %v9191_v57  ;;  %v9192_v33 = vunpack.i.l.bf16 %v9191_v57 }
 0x368   : > { %v3040_v18 = vsel %vm1043_vm5, %v15582_v48, %v9193_v38  ;;  %v2650_v58 = vsel %vm1043_vm5, %v15585_v54, %v9192_v33  ;;  %v15589_v48 = vcombine.low %v15587_v49, %v15588_v21 }
 0x369   : > { %v9201_v31 = vpop.permute.xlu0 %9200 }
 0x36a   : > { %v9203_v51 = vunpack.i.h.bf16 %v9201_v31  ;;  %v9202_v17 = vunpack.i.l.bf16 %v9201_v31 }
 0x36c   : > { %v2651_v6 = vsel %vm1045_vm6, %v2650_v58, %v9202_v17  ;;  %v3041_v3 = vsel %vm1045_vm6, %v3040_v18, %v9203_v51 }
 0x36d   : > { %v9211_v0 = vpop.permute.xlu0 %9210 }
 0x36e   : > { %v9213_v10 = vunpack.i.h.bf16 %v9211_v0  ;;  %v9212_v28 = vunpack.i.l.bf16 %v9211_v0 }
 0x370   : > { %v2652_v36 = vsel %vm1047_vm7, %v2651_v6, %v9212_v28  ;;  %v3042_v46 = vsel %vm1047_vm7, %v3041_v3, %v9213_v10 }
 0x371   : > { %v9221_v41 = vpop.permute.xlu0 %9220 }
 0x372   : > { %v9223_v20 = vunpack.i.h.bf16 %v9221_v41  ;;  %v9222_v43 = vunpack.i.l.bf16 %v9221_v41 }
 0x374   : > { %v2653_v22 = vsel %vm1049_vm8, %v2652_v36, %v9222_v43  ;;  %v3043_v39 = vsel %vm1049_vm8, %v3042_v46, %v9223_v20  ;;  %v15586_v20 = vcombine.low %v11512_v50, %v11519_v56 }
 0x375   : > { %v9231_v13 = vpop.permute.xlu0 %9230 }
 0x376   : > { %v9233_v26 = vunpack.i.h.bf16 %v9231_v13  ;;  %v9232_v40 = vunpack.i.l.bf16 %v9231_v13 }
 0x378   : > { %v2654_v47 = vsel %vm1051_vm9, %v2653_v22, %v9232_v40  ;;  %v3044_v1 = vsel %vm1051_vm9, %v3043_v39, %v9233_v26 }
 0x379   : > { %v9196_v34 = vpop.permute.xlu1 %9195  ;;  %v9241_v60 = vpop.permute.xlu0 %9240 }
 0x37a   : > { %v9198_v0 = vunpack.i.h.bf16 %v9196_v34  ;;  %v9197_v41 = vunpack.i.l.bf16 %v9196_v34  ;;  %v9243_v26 = vunpack.i.h.bf16 %v9241_v60  ;;  %v9242_v40 = vunpack.i.l.bf16 %v9241_v60 }
 0x37c   : > { %v2643_v43 = vsel %vm1043_vm5, %v15586_v20, %v9197_v41  ;;  %v3033_v18 = vsel %vm1043_vm5, %v15589_v48, %v9198_v0  ;;  %v15590_v0 = vld [vmem:[#allocation53_spill] sm:$0xff] }
 0x37d   : > { %v9206_v15 = vpop.permute.xlu1 %9205  ;;  %v15591_v41 = vcombine.low %v15573_v7, %v15590_v0  ;;  %v15595_v7 = vld [vmem:[#allocation24_spill] sm:$0xff] }
 0x37e   : > { %v9207_v38 = vunpack.i.l.bf16 %v9206_v15 }
 0x380   : > { %v2644_v34 = vsel %vm1045_vm6, %v2643_v43, %v9207_v38  ;;  %v15596_v43 = vld [vmem:[#allocation23_spill] sm:$0xff] }
 0x381   : > { %v9216_v55 = vpop.permute.xlu1 %9215  ;;  %v15597_v49 = vcombine.low %v15595_v7, %v15596_v43 }
 0x382   : > { %v9218_v13 = vunpack.i.h.bf16 %v9216_v55  ;;  %v9217_v51 = vunpack.i.l.bf16 %v9216_v55 }
 0x384   : > { %v2645_v55 = vsel %vm1047_vm7, %v2644_v34, %v9217_v51 }
 0x385   : > { %v9226_v25 = vpop.permute.xlu1 %9225 }
 0x386   : > { %v9228_v10 = vunpack.i.h.bf16 %v9226_v25  ;;  %v9227_v28 = vunpack.i.l.bf16 %v9226_v25 }
 0x388   : > { %v2646_v54 = vsel %vm1049_vm8, %v2645_v55, %v9227_v28 }
 0x389   : > { %v12093_v27 = vpop.permute.xlu1 %9235 }
 0x38d   : > { %v9246_v52 = vpop.permute.xlu1 %9245 }
 0x38e   : > { %v9248_v45 = vunpack.i.h.bf16 %v9246_v52  ;;  %v9247_v4 = vunpack.i.l.bf16 %v9246_v52  ;;  %v9208_v52 = vunpack.i.h.bf16 %v9206_v15 }
 0x390   : > { %v2655_v32 = vsel %vm1053_vm10, %v2654_v47, %v9247_v4  ;;  %v3045_v44 = vsel %vm1053_vm10, %v3044_v1, %v9248_v45  ;;  %v3034_v15 = vsel %vm1045_vm6, %v3033_v18, %v9208_v52  ;;  %v2647_v4 = vsel %vm1051_vm9, %v2646_v54, %v9242_v40 }
 0x391   : > { %v12095_v8 = vpop.permute.xlu1 %9255  ;;  %v3035_v42 = vsel %vm1047_vm7, %v3034_v15, %v9218_v13 }
 0x392   : > { %v3036_v50 = vsel %vm1049_vm8, %v3035_v42, %v9228_v10  ;;  %v9258_v51 = vunpack.i.h.bf16 %v12095_v8 }
 0x393   : > { %v3037_v36 = vsel %vm1051_vm9, %v3036_v50, %v9243_v26 }
 0x395   : > { %v9266_v62 = vpop.permute.xlu1 %9265 }
 0x396   : > { %v9268_v2 = vunpack.i.h.bf16 %v9266_v62  ;;  %v9267_v59 = vunpack.i.l.bf16 %v9266_v62 }
 0x398   : > { %v2656_v61 = vsel %vm1055_vm11, %v2655_v32, %v9267_v59  ;;  %v3046_v14 = vsel %vm1055_vm11, %v3045_v44, %v9268_v2 }
 0x399   : > { %v9251_v24 = vpop.permute.xlu0 %9250  ;;  %v12117_v57 = vpop.permute.xlu1 %9275  ;;  %v8957_v31 = vpack.c.bf16 %v3046_v14, %v2656_v61  ;;  %v9238_v61 = vunpack.i.h.bf16 %v12093_v27  ;;  %v9237_v14 = vunpack.i.l.bf16 %v12093_v27  ;;  %v9257_v27 = vunpack.i.l.bf16 %v12095_v8 }
 0x39a   : > { %v9253_v1 = vunpack.i.h.bf16 %v9251_v24  ;;  %v9252_v2 = vunpack.i.l.bf16 %v9251_v24  ;;  %v9278_v48 = vunpack.i.h.bf16 %v12117_v57  ;;  %v9277_v18 = vunpack.i.l.bf16 %v12117_v57 }
 0x39b   : > { %8958 = vmatprep.subr.bf16.mxu0 %v8957_v31  ;;  %v3829_v21 = vsel %vm1043_vm5, %v15597_v49, %v9238_v61 }
 0x39c   : > { %v3822_v31 = vsel %vm1043_vm5, %v3622_v11, %v9253_v1  ;;  %v3432_v52 = vsel %vm1043_vm5, %v15591_v41, %v9252_v2  ;;  %v15594_v11 = vcombine.low %v15592_v35, %v15593_v16 }
 0x39d   : > { %v9261_v33 = vpop.permute.xlu0 %9260  ;;  %v9286_v17 = vpop.permute.xlu1 %9285 }
 0x39e   : > { %v9263_v56 = vunpack.i.h.bf16 %v9261_v33  ;;  %v9262_v58 = vunpack.i.l.bf16 %v9261_v33  ;;  %v9288_v10 = vunpack.i.h.bf16 %v9286_v17  ;;  %v9287_v28 = vunpack.i.l.bf16 %v9286_v17 }
 0x39f   : > { %v3439_v20 = vsel %vm1043_vm5, %v15594_v11, %v9237_v14 }
 0x3a0   : > { %v2648_v22 = vsel %vm1053_vm10, %v2647_v4, %v9262_v58  ;;  %v3038_v39 = vsel %vm1053_vm10, %v3037_v36, %v9263_v56  ;;  %v3440_v56 = vsel %vm1045_vm6, %v3439_v20, %v9257_v27  ;;  %v3830_v58 = vsel %vm1045_vm6, %v3829_v21, %v9258_v51 }
 0x3a1   : > { %v9271_v37 = vpop.permute.xlu0 %9270  ;;  %v9296_v25 = vpop.permute.xlu1 %9295  ;;  %v3441_v57 = vsel %vm1047_vm7, %v3440_v56, %v9277_v18  ;;  %v326_v56 = vld [vmem:[%s15186_s2] sm:$0xff] }
 0x3a2   : > { %v9273_v32 = vunpack.i.h.bf16 %v9271_v37  ;;  %v9272_v44 = vunpack.i.l.bf16 %v9271_v37  ;;  %v9298_v55 = vunpack.i.h.bf16 %v9296_v25  ;;  %v9297_v42 = vunpack.i.l.bf16 %v9296_v25 }
 0x3a4   : > { %v3433_v33 = vsel %vm1045_vm6, %v3432_v52, %v9272_v44  ;;  %v3823_v13 = vsel %vm1045_vm6, %v3822_v31, %v9273_v32 }
 0x3a5   : > { %v9281_v6 = vpop.permute.xlu0 %9280  ;;  %v12135_v46 = vpop.permute.xlu1 %9305  ;;  %v3434_v34 = vsel %vm1047_vm7, %v3433_v33, %v9287_v28  ;;  %v3824_v8 = vsel %vm1047_vm7, %v3823_v13, %v9288_v10 }
 0x3a6   : > { %v9283_v3 = vunpack.i.h.bf16 %v9281_v6  ;;  %v9282_v45 = vunpack.i.l.bf16 %v9281_v6  ;;  %v3825_v4 = vsel %vm1049_vm8, %v3824_v8, %v9298_v55  ;;  %v9308_v36 = vunpack.i.h.bf16 %v12135_v46 }
 0x3a7   : > { %v9307_v25 = vunpack.i.l.bf16 %v12135_v46 }
 0x3a8   : > { %v2649_v62 = vsel %vm1055_vm11, %v2648_v22, %v9282_v45  ;;  %v3039_v47 = vsel %vm1055_vm11, %v3038_v39, %v9283_v3  ;;  %v3831_v3 = vsel %vm1047_vm7, %v3830_v58, %v9278_v48  ;;  %v3435_v45 = vsel %vm1049_vm8, %v3434_v34, %v9297_v42 }
 0x3a9   : > { %v9291_v60 = vpop.permute.xlu0 %9290  ;;  %v8959_v59 = vpack.c.bf16 %v3039_v47, %v2649_v62  ;;  %v9316_v24 = vpop.permute.xlu1 %9315  ;;  %v3436_v52 = vsel %vm1051_vm9, %v3435_v45, %v9307_v25 }
 0x3aa   : > { %v9293_v15 = vunpack.i.h.bf16 %v9291_v60  ;;  %v9292_v17 = vunpack.i.l.bf16 %v9291_v60  ;;  %v9317_v32 = vunpack.i.l.bf16 %v9316_v24 }
 0x3ab   : > { %8960 = vmatpush1.bf16.msra.mxu0 %v8959_v59  ;;  %v9318_v59 = vunpack.i.h.bf16 %v9316_v24 }
 0x3ac   : > { %v3832_v22 = vsel %vm1049_vm8, %v3831_v3, %v9293_v15  ;;  %v3442_v39 = vsel %vm1049_vm8, %v3441_v57, %v9292_v17  ;;  %v3437_v24 = vsel %vm1053_vm10, %v3436_v52, %v9317_v32 }
 0x3ad   : > { %v9301_v38 = vpop.permute.xlu0 %9300  ;;  %v4186_v26 = vpop.permute.xlu1 %4185 }
 0x3ae   : > { %v9303_v54 = vunpack.i.h.bf16 %v9301_v38  ;;  %v9302_v50 = vunpack.i.l.bf16 %v9301_v38  ;;  %v3826_v38 = vsel %vm1051_vm9, %v3825_v4, %v9308_v36  ;;  %v4219_v18 = vsel %vm1043_vm5, %v4148_v9, %v4186_v26 }
 0x3af   : > { %v3827_v27 = vsel %vm1053_vm10, %v3826_v38, %v9318_v59 }
 0x3b0   : > { %v3443_v47 = vsel %vm1051_vm9, %v3442_v39, %v9302_v50  ;;  %v3833_v1 = vsel %vm1051_vm9, %v3832_v22, %v9303_v54 }
 0x3b1   : > { %v9311_v37 = vpop.permute.xlu0 %9310 }
 0x3b2   : > { %v9313_v40 = vunpack.i.h.bf16 %v9311_v37  ;;  %v9312_v6 = vunpack.i.l.bf16 %v9311_v37 }
 0x3b4   : > { %v3444_v61 = vsel %vm1053_vm10, %v3443_v47, %v9312_v6  ;;  %v3834_v14 = vsel %vm1053_vm10, %v3833_v1, %v9313_v40 }
 0x3b5   : > { %v9321_v62 = vpop.permute.xlu0 %9320 }
 0x3b6   : > { %v9323_v2 = vunpack.i.h.bf16 %v9321_v62  ;;  %v9322_v60 = vunpack.i.l.bf16 %v9321_v62 }
 0x3b7   : > { %v4158_v44 = vpop.permute.xlu1 %4157 }
 0x3b8   : > { %v3445_v46 = vsel %vm1055_vm11, %v3444_v61, %v9322_v60  ;;  %v3835_v31 = vsel %vm1055_vm11, %v3834_v14, %v9323_v2  ;;  %v4212_v34 = vsel %vm1043_vm5, %v4012_v29, %v4158_v44 }
 0x3b9   : > { %v9326_v0 = vpop.permute.xlu0 %9325  ;;  %v8961_v41 = vpack.c.bf16 %v3835_v31, %v3445_v46 }
 0x3ba   : > { %v9328_v33 = vunpack.i.h.bf16 %v9326_v0  ;;  %v9327_v13 = vunpack.i.l.bf16 %v9326_v0 }
 0x3bb   : > { %v4162_v51 = vpop.permute.xlu1 %4161  ;;  %8962 = vmatprep.subr.bf16.mxu0 %v8961_v41 }
 0x3bc   : > { %v3438_v10 = vsel %vm1055_vm11, %v3437_v24, %v9327_v13  ;;  %v3828_v28 = vsel %vm1055_vm11, %v3827_v27, %v9328_v33  ;;  %v4213_v17 = vsel %vm1045_vm6, %v4212_v34, %v4162_v51 }
 0x3bd   : > { %v4190_v35 = vpop.permute.xlu0 %4189  ;;  %v8963_v16 = vpack.c.bf16 %v3828_v28, %v3438_v10 }
 0x3be   : > { %v4220_v8 = vsel %vm1045_vm6, %v4219_v18, %v4190_v35 }
 0x3bf   : > { %v4166_v11 = vpop.permute.xlu1 %4165  ;;  %8964 = vmatpush1.bf16.msra.mxu0 %v8963_v16 }
 0x3c0   : > { %v4214_v55 = vsel %vm1047_vm7, %v4213_v17, %v4166_v11 }
 0x3c1   : > { %v4194_v20 = vpop.permute.xlu0 %4193 }
 0x3c2   : > { %v4221_v37 = vsel %vm1047_vm7, %v4220_v8, %v4194_v20 }
 0x3c3   : > { %v4170_v7 = vpop.permute.xlu1 %4169 }
 0x3c4   : > { %v4215_v23 = vsel %vm1049_vm8, %v4214_v55, %v4170_v7 }
 0x3c5   : > { %v4198_v43 = vpop.permute.xlu0 %4197 }
 0x3c6   : > { %v4222_v42 = vsel %vm1049_vm8, %v4221_v37, %v4198_v43 }
 0x3c7   : > { %v4174_v49 = vpop.permute.xlu1 %4173 }
 0x3c8   : > { %v4216_v63 = vsel %vm1051_vm9, %v4215_v23, %v4174_v49 }
 0x3c9   : > { %v4202_v21 = vpop.permute.xlu0 %4201 }
 0x3ca   : > { %v4223_v19 = vsel %vm1051_vm9, %v4222_v42, %v4202_v21 }
 0x3cb   : > { %v4178_v48 = vpop.permute.xlu1 %4177 }
 0x3cc   : > { %v4217_v54 = vsel %vm1053_vm10, %v4216_v63, %v4178_v48 }
 0x3cd   : > { %v4206_v15 = vpop.permute.xlu0 %4205 }
 0x3ce   : > { %v4224_v53 = vsel %vm1053_vm10, %v4223_v19, %v4206_v15 }
 0x3cf   : > { %v4182_v9 = vpop.permute.xlu1 %4181 }
 0x3d0   : > { %v4218_v58 = vsel %vm1055_vm11, %v4217_v54, %v4182_v9 }
 0x3d1   : > { %v4210_v29 = vpop.permute.xlu0 %4209 }
 0x3d2   : > { %v4225_v50 = vsel %vm1055_vm11, %v4224_v53, %v4210_v29 }
 0x3d3   : > { %4251 = vmatprep.subr.mxu0 %v4225_v50 }
 0x3d4   : > { %4252 = vmatpush1.msra.mxu0 %v4218_v58 }
 0x3d5   : > { %8939 = vmatmul.mubr.msk.f32.vlgmr.msra.gmra.mrb[0].mxu0 %vm4231_vm12, %v326_v56 }
 0x3e2   : > { %v4229_v26 = vpop.permute.xlu0 %4228 }
 0x4a8   : > { %v4301_v40 = vpop.f32.mrb[0].mxu0 }
 0x4a9   : > { %v4302_v6 = vadd.f32 %v4301_v40, %v4229_v26  ;;  %v4303_v57 = vpop.f32.mrb[1].mxu0 }
 0x4aa   : > { %v4304_v4 = vadd.f32 %v4303_v57, %v4229_v26 }
 0x4ab   : > { %v4306_v3 = vmul.f32 0.01, %v4302_v6 }
 0x4ac   : > { %v4307_v36 = vmul.f32 0.01, %v4304_v4 }
 0x4ad   : > { %v4308_v45 = vmax.f32 %v4302_v6, %v4306_v3 }
 0x4ae   : > { %v12219_v25 = vmax.f32 %v4304_v4, %v4307_v36 }
 0x4af   : > { %4317 = vrot.lane.b32.xlu0 %v4308_v45, %s9772_s26  ;;  %4311 = vrot.lane.b32.xlu1 %v4308_v45, %s9773_s18 }
 0x4b3   : > { %4323 = vrot.lane.b32.xlu0 %v4308_v45, %s9770_s14  ;;  %4314 = vrot.lane.b32.xlu1 %v4308_v45, %s9771_s20 }
 0x4b7   : > { %4329 = vrot.lane.b32.xlu0 %v4308_v45, %s9768_s16  ;;  %4320 = vrot.lane.b32.xlu1 %v4308_v45, %s9769_s13 }
 0x4bb   : > { %4336 = vrot.lane.b32.xlu0 %v12219_v25, %s9771_s20  ;;  %4326 = vrot.lane.b32.xlu1 %v4308_v45, %s9767_s29 }
 0x4bf   : > { %4342 = vrot.lane.b32.xlu0 %v12219_v25, %s9769_s13  ;;  %4333 = vrot.lane.b32.xlu1 %v12219_v25, %s9773_s18 }
 0x4c3   : > { %4348 = vrot.lane.b32.xlu0 %v12219_v25, %s9767_s29  ;;  %4339 = vrot.lane.b32.xlu1 %v12219_v25, %s9772_s26 }
 0x4c7   : > { %4345 = vrot.lane.b32.xlu1 %v12219_v25, %s9770_s14 }
 0x4cb   : > { %4351 = vrot.lane.b32.xlu1 %v12219_v25, %s9768_s16 }
 0x521   : > { %v4318_v22 = vpop.permute.xlu0 %4317  ;;  %v4312_v39 = vpop.permute.xlu1 %4311 }
 0x522   : > { %v4370_v59 = vcombine.low %v4312_v39, %v4318_v22  ;;  %v4371_v52 = vcombine.high %v4312_v39, %v4318_v22 }
 0x524   : > { %v4378_v41 = vrot.slane %v4370_v59, %v15552_v12  ;;  %v4385_v16 = vrot.slane %v4371_v52, %v15552_v12 }
 0x525   : > { %v4324_v62 = vpop.permute.xlu0 %4323  ;;  %v4315_v47 = vpop.permute.xlu1 %4314 }
 0x526   : > { %v4354_v1 = vcombine.low %v4308_v45, %v4315_v47  ;;  %v4355_v14 = vcombine.high %v4308_v45, %v4315_v47 }
 0x528   : > { %v4362_v44 = vrot.slane %v4354_v1, %v15552_v12  ;;  %v4369_v27 = vrot.slane %v4355_v14, %v15552_v12 }
 0x529   : > { %v4330_v2 = vpop.permute.xlu0 %4329  ;;  %v4321_v60 = vpop.permute.xlu1 %4320 }
 0x52a   : > { %v4402_v32 = vcombine.low %v4324_v62, %v4330_v2  ;;  %v4403_v46 = vcombine.high %v4324_v62, %v4330_v2  ;;  %v4418_v51 = vcombine.low %v4362_v44, %v4378_v41  ;;  %v4419_v24 = vcombine.high %v4362_v44, %v4378_v41 }
 0x52b   : > { %v4434_v21 = vcombine.low %v4369_v27, %v4385_v16  ;;  %v4435_v15 = vcombine.high %v4369_v27, %v4385_v16 }
 0x52c   : > { %v4410_v38 = vrot.slane %v4402_v32, %v15552_v12  ;;  %v4417_v10 = vrot.slane %v4403_v46, %v15552_v12  ;;  %v4426_v43 = vrot.slane %v4418_v51, %v10276_v30  ;;  %v4433_v49 = vrot.slane %v4419_v24, %v10276_v30 }
 0x52d   : > { %v4327_v61 = vpop.permute.xlu1 %4326  ;;  %v4442_v9 = vrot.slane %v4434_v21, %v10276_v30  ;;  %v4449_v56 = vrot.slane %v4435_v15, %v10276_v30  ;;  %v4337_v14 = vpop.permute.xlu0 %4336 }
 0x52e   : > { %v4386_v31 = vcombine.low %v4321_v60, %v4327_v61  ;;  %v4387_v0 = vcombine.high %v4321_v60, %v4327_v61  ;;  %v4490_v24 = vcombine.low %v12219_v25, %v4337_v14 }
 0x530   : > { %v4394_v33 = vrot.slane %v4386_v31, %v15552_v12  ;;  %v4401_v13 = vrot.slane %v4387_v0, %v15552_v12 }
 0x531   : > { %v12278_v6 = vpop.permute.xlu1 %4333  ;;  %v4343_v41 = vpop.permute.xlu0 %4342 }
 0x532   : > { %v4450_v28 = vcombine.low %v4394_v33, %v4410_v38  ;;  %v4451_v35 = vcombine.high %v4394_v33, %v4410_v38  ;;  %v4466_v7 = vcombine.low %v4401_v13, %v4417_v10  ;;  %v4467_v48 = vcombine.high %v4401_v13, %v4417_v10 }
 0x534   : > { %v4458_v11 = vrot.slane %v4450_v28, %v10276_v30  ;;  %v4465_v20 = vrot.slane %v4451_v35, %v10276_v30  ;;  %v4474_v17 = vrot.slane %v4466_v7, %v10276_v30  ;;  %v4481_v63 = vrot.slane %v4467_v48, %v10276_v30 }
 0x535   : > { %v4340_v59 = vpop.permute.xlu1 %4339  ;;  %v4349_v38 = vpop.permute.xlu0 %4348  ;;  %v4498_v35 = vrot.slane %v4490_v24, %v15552_v12 }
 0x536   : > { %v12248_v18 = vcombine.high %v4426_v43, %v4458_v11  ;;  %v12250_v34 = vcombine.low %v4426_v43, %v4458_v11  ;;  %v12252_v8 = vcombine.high %v4433_v49, %v4465_v20  ;;  %v12255_v37 = vcombine.low %v4433_v49, %v4465_v20 }
 0x537   : > { %v12276_v40 = vcombine.high %v4442_v9, %v4474_v17  ;;  %v12280_v57 = vcombine.low %v4442_v9, %v4474_v17  ;;  %v12287_v36 = vcombine.high %v4449_v56, %v4481_v63  ;;  %v12295_v47 = vcombine.low %v4449_v56, %v4481_v63 }
 0x538   : > { %v4637_v55 = vrot.slane %v12248_v18, 1  ;;  %v4663_v42 = vrot.slane %v12248_v18, 7  ;;  %v4636_v23 = vrot.slane %v12250_v34, 1  ;;  %v4660_v19 = vrot.slane %v12250_v34, 7 }
 0x539   : > { %v4639_v54 = vrot.slane %v12252_v8, 1  ;;  %v4669_v50 = vrot.slane %v12252_v8, 7  ;;  %v4638_v58 = vrot.slane %v12255_v37, 1  ;;  %v4666_v26 = vrot.slane %v12255_v37, 7  ;;  %v4346_v0 = vpop.permute.xlu1 %4345 }
 0x53a   : > { %v4717_v53 = vsel %vm360_vm0, %v4637_v55, %v4663_v42  ;;  %v4716_v29 = vsel %vm360_vm0, %v4636_v23, %v4660_v19  ;;  %v4641_v45 = vrot.slane %v12276_v40, 1  ;;  %v4675_v4 = vrot.slane %v12276_v40, 7 }
 0x53b   : > { %4754 = vrot.lane.b32.xlu1 %v4717_v53, %s9762_s8  ;;  %4748 = vrot.lane.b32.xlu0 %v4716_v29, %s9762_s8  ;;  %v4719_v3 = vsel %vm360_vm0, %v4639_v54, %v4669_v50  ;;  %v4718_v22 = vsel %vm360_vm0, %v4638_v58, %v4666_v26  ;;  %v4640_v39 = vrot.slane %v12280_v57, 1  ;;  %v4672_v62 = vrot.slane %v12280_v57, 7 }
 0x53c   : > { %v4721_v1 = vsel %vm360_vm0, %v4641_v45, %v4675_v4  ;;  %v4643_v2 = vrot.slane %v12287_v36, 1  ;;  %v4681_v60 = vrot.slane %v12287_v36, 7  ;;  %v4642_v44 = vrot.slane %v12295_v47, 1 }
 0x53d   : > { %v4720_v32 = vsel %vm360_vm0, %v4640_v39, %v4672_v62  ;;  %v4678_v61 = vrot.slane %v12295_v47, 7  ;;  %v4352_v52 = vpop.permute.xlu1 %4351  ;;  %v4522_v13 = vcombine.low %v4343_v41, %v4349_v38  ;;  %v4506_v51 = vcombine.low %v12278_v6, %v4340_v59 }
 0x53e   : > { %v4723_v46 = vsel %vm360_vm0, %v4643_v2, %v4681_v60  ;;  %v4538_v33 = vcombine.low %v4346_v0, %v4352_v52  ;;  %v4539_v43 = vcombine.high %v4346_v0, %v4352_v52  ;;  %v4523_v48 = vcombine.high %v4343_v41, %v4349_v38 }
 0x53f   : > { %4766 = vrot.lane.b32.xlu1 %v4719_v3, %s9762_s8  ;;  %4760 = vrot.lane.b32.xlu0 %v4718_v22, %s9762_s8  ;;  %v4722_v31 = vsel %vm360_vm0, %v4642_v44, %v4678_v61  ;;  %v4530_v10 = vrot.slane %v4522_v13, %v15552_v12  ;;  %v4514_v28 = vrot.slane %v4506_v51, %v15552_v12 }
 0x540   : > { %v4546_v27 = vrot.slane %v4538_v33, %v15552_v12  ;;  %v4507_v15 = vcombine.high %v12278_v6, %v4340_v59  ;;  %v4491_v55 = vcombine.high %v12219_v25, %v4337_v14  ;;  %v4553_v23 = vrot.slane %v4539_v43, %v15552_v12 }
 0x541   : > { %v4554_v11 = vcombine.low %v4498_v35, %v4514_v28  ;;  %v4555_v17 = vcombine.high %v4498_v35, %v4514_v28 }
 0x542   : > { %v4586_v16 = vcombine.low %v4530_v10, %v4546_v27  ;;  %v4587_v49 = vcombine.high %v4530_v10, %v4546_v27  ;;  %v4521_v56 = vrot.slane %v4507_v15, %v15552_v12  ;;  %v4505_v6 = vrot.slane %v4491_v55, %v15552_v12 }
 0x543   : > { %4778 = vrot.lane.b32.xlu1 %v4721_v1, %s9762_s8  ;;  %4772 = vrot.lane.b32.xlu0 %v4720_v32, %s9762_s8  ;;  %v4562_v7 = vrot.slane %v4554_v11, %v10276_v30  ;;  %v4569_v58 = vrot.slane %v4555_v17, %v10276_v30 }
 0x544   : > { %v4594_v20 = vrot.slane %v4586_v16, %v10276_v30  ;;  %v4601_v9 = vrot.slane %v4587_v49, %v10276_v30  ;;  %v4570_v2 = vcombine.low %v4505_v6, %v4521_v56  ;;  %v4571_v38 = vcombine.high %v4505_v6, %v4521_v56 }
 0x546   : > { %v4618_v21 = vcombine.low %v4562_v7, %v4594_v20  ;;  %v4620_v39 = vcombine.low %v4569_v58, %v4601_v9  ;;  %v4585_v27 = vrot.slane %v4571_v38, %v10276_v30 }
 0x547   : > { %4790 = vrot.lane.b32.xlu1 %v4723_v46, %s9762_s8  ;;  %4784 = vrot.lane.b32.xlu0 %v4722_v31, %s9762_s8 }
 0x548   : > { %v4661_v63 = vrot.slane %v4618_v21, 7  ;;  %v4700_v54 = vrot.slane %v4618_v21, 5  ;;  %v4702_v14 = vrot.slane %v4620_v39, 5 }
 0x54b   : > { %4826 = vrot.lane.b32.xlu1 %v4717_v53, %s9763_s7  ;;  %4820 = vrot.lane.b32.xlu0 %v4716_v29, %s9763_s7 }
 0x54f   : > { %4838 = vrot.lane.b32.xlu1 %v4719_v3, %s9763_s7  ;;  %4832 = vrot.lane.b32.xlu0 %v4718_v22, %s9763_s7 }
 0x553   : > { %4850 = vrot.lane.b32.xlu1 %v4721_v1, %s9763_s7  ;;  %4844 = vrot.lane.b32.xlu0 %v4720_v32, %s9763_s7 }
 0x557   : > { %4862 = vrot.lane.b32.xlu1 %v4723_v46, %s9763_s7  ;;  %4856 = vrot.lane.b32.xlu0 %v4722_v31, %s9763_s7 }
 0x55b   : > { %4898 = vrot.lane.b32.xlu1 %v4717_v53, %s9764_s15  ;;  %4892 = vrot.lane.b32.xlu0 %v4716_v29, %s9764_s15  ;;  %v4619_v53 = vcombine.high %v4562_v7, %v4594_v20  ;;  %v4537_v29 = vrot.slane %v4523_v48, %v15552_v12 }
 0x55d   : > { %v4602_v25 = vcombine.low %v4537_v29, %v4553_v23  ;;  %v4664_v45 = vrot.slane %v4619_v53, 7 }
 0x55f   : > { %4910 = vrot.lane.b32.xlu1 %v4719_v3, %s9764_s15  ;;  %4904 = vrot.lane.b32.xlu0 %v4718_v22, %s9764_s15  ;;  %v12353_v3 = vsel %vm360_vm0, %v4660_v19, %v4661_v63  ;;  %v4701_v22 = vrot.slane %v4619_v53, 5  ;;  %v4610_v59 = vrot.slane %v4602_v25, %v10276_v30  ;;  %v4667_v19 = vrot.slane %v4620_v39, 7 }
 0x560   : > { %v12369_v44 = vsel %vm360_vm0, %v4663_v42, %v4664_v45 }
 0x561   : > { %v12364_v34 = vsel %vm360_vm0, %v4664_v45, %v4701_v22  ;;  %v12379_v0 = vsel %vm360_vm0, %v4666_v26, %v4667_v19  ;;  %v4726_v42 = vsel %vm360_vm0, %v4667_v19, %v4702_v14 }
 0x563   : > { %4922 = vrot.lane.b32.xlu1 %v4721_v1, %s9764_s15  ;;  %4916 = vrot.lane.b32.xlu0 %v4720_v32, %s9764_s15  ;;  %v12356_v1 = vsel %vm360_vm0, %v4661_v63, %v4700_v54  ;;  %v4621_v32 = vcombine.high %v4569_v58, %v4601_v9 }
 0x565   : > { %v4670_v41 = vrot.slane %v4621_v32, 7  ;;  %v4703_v18 = vrot.slane %v4621_v32, 5 }
 0x567   : > { %4934 = vrot.lane.b32.xlu1 %v4723_v46, %s9764_s15  ;;  %4928 = vrot.lane.b32.xlu0 %v4722_v31, %s9764_s15  ;;  %v4578_v46 = vrot.slane %v4570_v2, %v10276_v30  ;;  %v4603_v31 = vcombine.high %v4537_v29, %v4553_v23  ;;  %v4727_v13 = vsel %vm360_vm0, %v4670_v41, %v4703_v18 }
 0x568   : > { %v4671_v26 = vsel %vm360_vm0, %v4669_v50, %v4670_v41 }
 0x569   : > { %v4622_v52 = vcombine.low %v4578_v46, %v4610_v59  ;;  %v4617_v33 = vrot.slane %v4603_v31, %v10276_v30  ;;  %v4623_v37 = vcombine.high %v4578_v46, %v4610_v59 }
 0x56b   : > { %4750 = vrot.lane.b32.xlu1 %v12353_v3, %s9762_s8  ;;  %4752 = vrot.lane.b32.xlu0 %v12356_v1, %s9762_s8  ;;  %v4673_v51 = vrot.slane %v4622_v52, 7  ;;  %v4704_v24 = vrot.slane %v4622_v52, 5  ;;  %v4676_v28 = vrot.slane %v4623_v37, 7  ;;  %v4705_v35 = vrot.slane %v4623_v37, 5 }
 0x56c   : > { %v4624_v16 = vcombine.low %v4585_v27, %v4617_v33  ;;  %v4625_v20 = vcombine.high %v4585_v27, %v4617_v33 }
 0x56d   : > { %v4674_v10 = vsel %vm360_vm0, %v4672_v62, %v4673_v51  ;;  %v4728_v11 = vsel %vm360_vm0, %v4673_v51, %v4704_v24  ;;  %v4729_v8 = vsel %vm360_vm0, %v4676_v28, %v4705_v35  ;;  %v4677_v7 = vsel %vm360_vm0, %v4675_v4, %v4676_v28 }
 0x56e   : > { %v4679_v50 = vrot.slane %v4624_v16, 7  ;;  %v4706_v57 = vrot.slane %v4624_v16, 5  ;;  %v4682_v43 = vrot.slane %v4625_v20, 7  ;;  %v4707_v49 = vrot.slane %v4625_v20, 5 }
 0x56f   : > { %4758 = vrot.lane.b32.xlu1 %v12364_v34, %s9762_s8  ;;  %4756 = vrot.lane.b32.xlu0 %v12369_v44, %s9762_s8 }
 0x570   : > { %v4680_v62 = vsel %vm360_vm0, %v4678_v61, %v4679_v50  ;;  %v4730_v21 = vsel %vm360_vm0, %v4679_v50, %v4706_v57  ;;  %v4731_v40 = vsel %vm360_vm0, %v4682_v43, %v4707_v49  ;;  %v4683_v4 = vsel %vm360_vm0, %v4681_v60, %v4682_v43 }
 0x573   : > { %4762 = vrot.lane.b32.xlu1 %v12379_v0, %s9762_s8  ;;  %4764 = vrot.lane.b32.xlu0 %v4726_v42, %s9762_s8 }
 0x577   : > { %4770 = vrot.lane.b32.xlu1 %v4727_v13, %s9762_s8  ;;  %4768 = vrot.lane.b32.xlu0 %v4671_v26, %s9762_s8 }
 0x57b   : > { %4774 = vrot.lane.b32.xlu1 %v4674_v10, %s9762_s8  ;;  %4776 = vrot.lane.b32.xlu0 %v4728_v11, %s9762_s8 }
 0x57f   : > { %4782 = vrot.lane.b32.xlu1 %v4729_v8, %s9762_s8  ;;  %4780 = vrot.lane.b32.xlu0 %v4677_v7, %s9762_s8 }
 0x583   : > { %4786 = vrot.lane.b32.xlu1 %v4680_v62, %s9762_s8  ;;  %4788 = vrot.lane.b32.xlu0 %v4730_v21, %s9762_s8 }
 0x587   : > { %4794 = vrot.lane.b32.xlu1 %v4731_v40, %s9762_s8  ;;  %4792 = vrot.lane.b32.xlu0 %v4683_v4, %s9762_s8 }
 0x58b   : > { %4822 = vrot.lane.b32.xlu1 %v12353_v3, %s9763_s7  ;;  %4824 = vrot.lane.b32.xlu0 %v12356_v1, %s9763_s7 }
 0x58f   : > { %4830 = vrot.lane.b32.xlu1 %v12364_v34, %s9763_s7  ;;  %4828 = vrot.lane.b32.xlu0 %v12369_v44, %s9763_s7 }
 0x593   : > { %4834 = vrot.lane.b32.xlu1 %v12379_v0, %s9763_s7  ;;  %4836 = vrot.lane.b32.xlu0 %v4726_v42, %s9763_s7 }
 0x597   : > { %4842 = vrot.lane.b32.xlu1 %v4727_v13, %s9763_s7  ;;  %4840 = vrot.lane.b32.xlu0 %v4671_v26, %s9763_s7 }
 0x59b   : > { %4846 = vrot.lane.b32.xlu1 %v4674_v10, %s9763_s7  ;;  %4848 = vrot.lane.b32.xlu0 %v4728_v11, %s9763_s7 }
 0x59f   : > { %4854 = vrot.lane.b32.xlu1 %v4729_v8, %s9763_s7  ;;  %4852 = vrot.lane.b32.xlu0 %v4677_v7, %s9763_s7 }
 0x5a3   : > { %4858 = vrot.lane.b32.xlu1 %v4680_v62, %s9763_s7  ;;  %4860 = vrot.lane.b32.xlu0 %v4730_v21, %s9763_s7 }
 0x5a7   : > { %4866 = vrot.lane.b32.xlu1 %v4731_v40, %s9763_s7  ;;  %4864 = vrot.lane.b32.xlu0 %v4683_v4, %s9763_s7 }
 0x5ab   : > { %4894 = vrot.lane.b32.xlu1 %v12353_v3, %s9764_s15  ;;  %4896 = vrot.lane.b32.xlu0 %v12356_v1, %s9764_s15 }
 0x5ad   : > { %v4755_v36 = vpop.permute.xlu1 %4754  ;;  %v4749_v47 = vpop.permute.xlu0 %4748 }
 0x5af   : > { %4902 = vrot.lane.b32.xlu1 %v12364_v34, %s9764_s15  ;;  %4900 = vrot.lane.b32.xlu0 %v12369_v44, %s9764_s15 }
 0x5b1   : > { %v4767_v60 = vpop.permute.xlu1 %4766  ;;  %v4761_v61 = vpop.permute.xlu0 %4760 }
 0x5b3   : > { %4906 = vrot.lane.b32.xlu1 %v12379_v0, %s9764_s15  ;;  %4908 = vrot.lane.b32.xlu0 %v4726_v42, %s9764_s15 }
 0x5b5   : > { %v4779_v48 = vpop.permute.xlu1 %4778  ;;  %v4773_v15 = vpop.permute.xlu0 %4772 }
 0x5b7   : > { %4914 = vrot.lane.b32.xlu1 %v4727_v13, %s9764_s15  ;;  %4912 = vrot.lane.b32.xlu0 %v4671_v26, %s9764_s15 }
 0x5b9   : > { %v4791_v17 = vpop.permute.xlu1 %4790  ;;  %v4785_v55 = vpop.permute.xlu0 %4784 }
 0x5bb   : > { %4918 = vrot.lane.b32.xlu1 %v4674_v10, %s9764_s15  ;;  %4920 = vrot.lane.b32.xlu0 %v4728_v11, %s9764_s15 }
 0x5bd   : > { %v4827_v23 = vpop.permute.xlu1 %4826  ;;  %v4821_v9 = vpop.permute.xlu0 %4820 }
 0x5be   : > { %v4964_v25 = vsel %vm665_vm1, %v4749_v47, %v4821_v9  ;;  %v4967_v22 = vsel %vm665_vm1, %v4755_v36, %v4827_v23 }
 0x5bf   : > { %4926 = vrot.lane.b32.xlu1 %v4729_v8, %s9764_s15  ;;  %4924 = vrot.lane.b32.xlu0 %v4677_v7, %s9764_s15 }
 0x5c1   : > { %v4839_v63 = vpop.permute.xlu1 %4838  ;;  %v4833_v53 = vpop.permute.xlu0 %4832 }
 0x5c2   : > { %v4973_v39 = vsel %vm665_vm1, %v4767_v60, %v4839_v63  ;;  %v4970_v2 = vsel %vm665_vm1, %v4761_v61, %v4833_v53 }
 0x5c3   : > { %4930 = vrot.lane.b32.xlu1 %v4680_v62, %s9764_s15  ;;  %4932 = vrot.lane.b32.xlu0 %v4730_v21, %s9764_s15 }
 0x5c5   : > { %v4851_v29 = vpop.permute.xlu1 %4850  ;;  %v4845_v54 = vpop.permute.xlu0 %4844 }
 0x5c6   : > { %v4976_v52 = vsel %vm665_vm1, %v4773_v15, %v4845_v54  ;;  %v4979_v26 = vsel %vm665_vm1, %v4779_v48, %v4851_v29 }
 0x5c7   : > { %4938 = vrot.lane.b32.xlu1 %v4731_v40, %s9764_s15  ;;  %4936 = vrot.lane.b32.xlu0 %v4683_v4, %s9764_s15 }
 0x5c9   : > { %v4863_v56 = vpop.permute.xlu1 %4862  ;;  %v4857_v58 = vpop.permute.xlu0 %4856 }
 0x5ca   : > { %v4985_v24 = vsel %vm665_vm1, %v4791_v17, %v4863_v56  ;;  %v4982_v35 = vsel %vm665_vm1, %v4785_v55, %v4857_v58 }
 0x5cd   : > { %v4899_v6 = vpop.permute.xlu1 %4898  ;;  %v4893_v3 = vpop.permute.xlu0 %4892 }
 0x5ce   : > { %v12461_v45 = vsel %vm690_vm2, %v4964_v25, %v4893_v3  ;;  %v12471_v59 = vsel %vm690_vm2, %v4967_v22, %v4899_v6 }
 0x5cf   : > { %5760 = vrot.lane.b32.xlu0 %v12461_v45, %s9774_s12  ;;  %5370 = vrot.lane.b32.xlu1 %v12461_v45, %s9762_s8 }
 0x5d1   : > { %v4911_v1 = vpop.permute.xlu1 %4910  ;;  %v4905_v34 = vpop.permute.xlu0 %4904 }
 0x5d2   : > { %v12474_v19 = vsel %vm690_vm2, %v4973_v39, %v4911_v1  ;;  %v12477_v32 = vsel %vm690_vm2, %v4970_v2, %v4905_v34  ;;  %v7336_v2 = vrot.slane %v12461_v45, 2 }
 0x5d3   : > { %v5028_v44 = vcombine.low %v12471_v59, %v12474_v19  ;;  %v5029_v14 = vcombine.high %v12471_v59, %v12474_v19  ;;  %v5012_v46 = vcombine.low %v12461_v45, %v12477_v32  ;;  %v5013_v31 = vcombine.high %v12461_v45, %v12477_v32  ;;  %5768 = vrot.lane.b32.xlu0 %v12477_v32, %s9774_s12 }
 0x5d4   : > { %5374 = vrot.lane.b32.xlu1 %v12471_v59, %s9762_s8 }
 0x5d5   : > { %v5036_v0 = vrot.slane %v5028_v44, %v15552_v12  ;;  %v5043_v41 = vrot.slane %v5029_v14, %v15552_v12  ;;  %v4923_v18 = vpop.permute.xlu1 %4922  ;;  %v5020_v42 = vrot.slane %v5012_v46, %v15552_v12  ;;  %v5027_v38 = vrot.slane %v5013_v31, %v15552_v12  ;;  %v4917_v33 = vpop.permute.xlu0 %4916 }
 0x5d6   : > { %v12497_v13 = vsel %vm690_vm2, %v4976_v52, %v4917_v33  ;;  %v12507_v16 = vsel %vm690_vm2, %v4979_v26, %v4923_v18 }
 0x5d7   : > { %5776 = vrot.lane.b32.xlu0 %v12497_v13, %s9774_s12  ;;  %v5077_v51 = vcombine.high %v5020_v42, %v5036_v0  ;;  %v5092_v37 = vcombine.low %v5027_v38, %v5043_v41  ;;  %v5093_v10 = vcombine.high %v5027_v38, %v5043_v41  ;;  %v5076_v28 = vcombine.low %v5020_v42, %v5036_v0 }
 0x5d8   : > { %5378 = vrot.lane.b32.xlu1 %v12477_v32, %s9762_s8 }
 0x5d9   : > { %v4935_v27 = vpop.permute.xlu1 %4934  ;;  %v4929_v11 = vpop.permute.xlu0 %4928  ;;  %v12538_v17 = vrot.slane %v5077_v51, %v10276_v30  ;;  %v12541_v55 = vrot.slane %v5092_v37, %v10276_v30  ;;  %v12544_v23 = vrot.slane %v5093_v10, %v10276_v30  ;;  %v12547_v9 = vrot.slane %v5076_v28, %v10276_v30 }
 0x5da   : > { %v12510_v8 = vsel %vm690_vm2, %v4985_v24, %v4935_v27  ;;  %v12513_v50 = vsel %vm690_vm2, %v4982_v35, %v4929_v11 }
 0x5db   : > { %v5060_v20 = vcombine.low %v12507_v16, %v12510_v8  ;;  %v5061_v7 = vcombine.high %v12507_v16, %v12510_v8  ;;  %v5044_v57 = vcombine.low %v12497_v13, %v12513_v50  ;;  %v5045_v62 = vcombine.high %v12497_v13, %v12513_v50  ;;  %5784 = vrot.lane.b32.xlu0 %v12513_v50, %s9774_s12 }
 0x5dc   : > { %5382 = vrot.lane.b32.xlu1 %v12474_v19, %s9762_s8  ;;  %15598 = vst [vmem:[#allocation20_spill] sm:$0xff] %v12547_v9 }
 0x5dd   : > { %v5068_v43 = vrot.slane %v5060_v20, %v15552_v12  ;;  %v5075_v49 = vrot.slane %v5061_v7, %v15552_v12  ;;  %v12529_v21 = vpop.permute.xlu1 %4750  ;;  %v5052_v40 = vrot.slane %v5044_v57, %v15552_v12  ;;  %v5059_v4 = vrot.slane %v5045_v62, %v15552_v12  ;;  %v4753_v36 = vpop.permute.xlu0 %4752 }
 0x5df   : > { %v5109_v47 = vcombine.high %v5052_v40, %v5068_v43  ;;  %v5124_v60 = vcombine.low %v5059_v4, %v5075_v49  ;;  %v5125_v61 = vcombine.high %v5059_v4, %v5075_v49  ;;  %v5108_v48 = vcombine.low %v5052_v40, %v5068_v43 }
 0x5e0   : > { %5386 = vrot.lane.b32.xlu1 %v12497_v13, %s9762_s8 }
 0x5e1   : > { %v12535_v15 = vpop.permute.xlu1 %4758  ;;  %v4757_v63 = vpop.permute.xlu0 %4756  ;;  %v12550_v53 = vrot.slane %v5109_v47, %v10276_v30  ;;  %v12553_v29 = vrot.slane %v5124_v60, %v10276_v30  ;;  %v12556_v54 = vrot.slane %v5125_v61, %v10276_v30  ;;  %v12559_v56 = vrot.slane %v5108_v48, %v10276_v30 }
 0x5e3   : > { %15599 = vst [vmem:[#allocation15_spill] sm:$0xff] %v12559_v56 }
 0x5e4   : > { %5390 = vrot.lane.b32.xlu1 %v12507_v16, %s9762_s8 }
 0x5e5   : > { %v4763_v22 = vpop.permute.xlu1 %4762  ;;  %v4765_v44 = vpop.permute.xlu0 %4764 }
 0x5e8   : > { %5394 = vrot.lane.b32.xlu1 %v12513_v50, %s9762_s8 }
 0x5e9   : > { %v12581_v14 = vpop.permute.xlu1 %4770  ;;  %v12583_v46 = vpop.permute.xlu0 %4768 }
 0x5ec   : > { %5398 = vrot.lane.b32.xlu1 %v12510_v8, %s9762_s8 }
 0x5ed   : > { %v12587_v31 = vpop.permute.xlu1 %4774  ;;  %v12589_v0 = vpop.permute.xlu0 %4776 }
 0x5f0   : > { %5764 = vrot.lane.b32.xlu1 %v12471_v59, %s9774_s12 }
 0x5f1   : > { %v12593_v41 = vpop.permute.xlu1 %4782  ;;  %v12595_v18 = vpop.permute.xlu0 %4780 }
 0x5f4   : > { %5772 = vrot.lane.b32.xlu1 %v12474_v19, %s9774_s12 }
 0x5f5   : > { %v12599_v52 = vpop.permute.xlu1 %4786  ;;  %v12601_v42 = vpop.permute.xlu0 %4788 }
 0x5f8   : > { %5780 = vrot.lane.b32.xlu1 %v12507_v16, %s9774_s12 }
 0x5f9   : > { %v12605_v38 = vpop.permute.xlu1 %4794  ;;  %v12607_v33 = vpop.permute.xlu0 %4792 }
 0x5fc   : > { %5788 = vrot.lane.b32.xlu1 %v12510_v8, %s9774_s12 }
 0x5fd   : > { %v4823_v51 = vpop.permute.xlu1 %4822  ;;  %v4825_v37 = vpop.permute.xlu0 %4824 }
 0x5fe   : > { %v4965_v4 = vsel %vm665_vm1, %v12529_v21, %v4823_v51  ;;  %v4966_v60 = vsel %vm665_vm1, %v4753_v36, %v4825_v37 }
 0x601   : > { %v4831_v26 = vpop.permute.xlu1 %4830  ;;  %v4829_v24 = vpop.permute.xlu0 %4828 }
 0x602   : > { %v4969_v21 = vsel %vm665_vm1, %v12535_v15, %v4831_v26  ;;  %v4968_v37 = vsel %vm665_vm1, %v4757_v63, %v4829_v24 }
 0x605   : > { %v4835_v27 = vpop.permute.xlu1 %4834  ;;  %v4837_v10 = vpop.permute.xlu0 %4836 }
 0x606   : > { %v4972_v63 = vsel %vm665_vm1, %v4765_v44, %v4837_v10 }
 0x609   : > { %v4843_v28 = vpop.permute.xlu1 %4842  ;;  %v4841_v35 = vpop.permute.xlu0 %4840 }
 0x60d   : > { %v12611_v11 = vpop.permute.xlu1 %4846  ;;  %v12613_v20 = vpop.permute.xlu0 %4848 }
 0x611   : > { %v12615_v7 = vpop.permute.xlu1 %4854  ;;  %v12617_v57 = vpop.permute.xlu0 %4852 }
 0x615   : > { %v12619_v62 = vpop.permute.xlu1 %4858  ;;  %v12621_v43 = vpop.permute.xlu0 %4860 }
 0x619   : > { %v12623_v49 = vpop.permute.xlu1 %4866  ;;  %v12625_v40 = vpop.permute.xlu0 %4864 }
 0x61d   : > { %v4895_v47 = vpop.permute.xlu1 %4894  ;;  %v4897_v61 = vpop.permute.xlu0 %4896 }
 0x61e   : > { %v12631_v48 = vsel %vm690_vm2, %v4965_v4, %v4895_v47  ;;  %v4990_v5 = vsel %vm690_vm2, %v4966_v60, %v4897_v61 }
 0x61f   : > { %5372 = vrot.lane.b32.xlu0 %v12631_v48, %s9762_s8  ;;  %v7337_v34 = vrot.slane %v12631_v48, 2  ;;  %v7339_v1 = vrot.slane %v4990_v5, 2 }
 0x621   : > { %v4903_v51 = vpop.permute.xlu1 %4902  ;;  %v12641_v36 = vsel %vm3047_vm4, %v7336_v2, %v7337_v34  ;;  %v4901_v4 = vpop.permute.xlu0 %4900  ;;  %v12646_v60 = vsel %vm3047_vm4, %v7337_v34, %v7339_v1  ;;  %v4971_v2 = vsel %vm665_vm1, %v4763_v22, %v4835_v27  ;;  %v7341_v1 = vrot.slane %v12471_v59, 2 }
 0x622   : > { %15600 = vst [vmem:[#allocation21_spill] sm:$0xff] %v12641_v36  ;;  %v4993_v47 = vsel %vm690_vm2, %v4969_v21, %v4903_v51  ;;  %v12649_v61 = vsel %vm690_vm2, %v4968_v37, %v4901_v4  ;;  %v6161_v34 = vrot.slane %v4990_v5, 1  ;;  %v15290_v51 = vrot.slane %v12631_v48, 1 }
 0x623   : > { %v7344_v3 = vrot.slane %v4993_v47, 2  ;;  %5766 = vrot.lane.b32.xlu1 %v12649_v61, %s9774_s12  ;;  %5376 = vrot.lane.b32.xlu0 %v12649_v61, %s9762_s8  ;;  %v7342_v15 = vrot.slane %v12649_v61, 2 }
 0x624   : > { %v12689_v6 = vsel %vm1868_vm3, %v15290_v51, %v6161_v34  ;;  %v4977_v34 = vsel %vm665_vm1, %v12587_v31, %v12611_v11 }
 0x625   : > { %v4907_v26 = vpop.permute.xlu1 %4906  ;;  %v4909_v24 = vpop.permute.xlu0 %4908  ;;  %v12664_v37 = vsel %vm3047_vm4, %v7342_v15, %v7344_v3  ;;  %v12678_v10 = vsel %vm3047_vm4, %v7341_v1, %v7342_v15  ;;  %v4975_v3 = vsel %vm665_vm1, %v12581_v14, %v4843_v28 }
 0x626   : > { %v12660_v21 = vsel %vm690_vm2, %v4971_v2, %v4907_v26  ;;  %v12667_v4 = vsel %vm690_vm2, %v4972_v63, %v4909_v24  ;;  %15601 = vst [vmem:[#allocation25_spill] sm:$0xff] %v12678_v10  ;;  %v6166_v63 = vrot.slane %v4993_v47, 1  ;;  %v15294_v26 = vrot.slane %v12649_v61, 1 }
 0x627   : > { %v15293_v5 = vrot.slane %v12660_v21, 1  ;;  %v6171_v27 = vrot.slane %v12667_v4, 1  ;;  %5380 = vrot.lane.b32.xlu0 %v12660_v21, %s9762_s8  ;;  %v4974_v24 = vsel %vm665_vm1, %v12583_v46, %v4841_v35  ;;  %v4980_v47 = vsel %vm665_vm1, %v12595_v18, %v12617_v57 }
 0x629   : > { %v4915_v2 = vpop.permute.xlu1 %4914  ;;  %v4913_v39 = vpop.permute.xlu0 %4912  ;;  %v12694_v15 = vsel %vm1868_vm3, %v15293_v5, %v6171_v27 }
 0x62a   : > { %v4999_v25 = vsel %vm690_vm2, %v4975_v3, %v4915_v2  ;;  %v12697_v14 = vsel %vm690_vm2, %v4974_v24, %v4913_v39  ;;  %v6350_v46 = vcombine.low %v12689_v6, %v12694_v15  ;;  %v6351_v39 = vcombine.high %v12689_v6, %v12694_v15 }
 0x62b   : > { %v6176_v28 = vrot.slane %v4999_v25, 1  ;;  %5774 = vrot.lane.b32.xlu1 %v12697_v14, %s9774_s12  ;;  %5384 = vrot.lane.b32.xlu0 %v12697_v14, %s9762_s8  ;;  %v15295_v1 = vrot.slane %v12697_v14, 1  ;;  %v12718_v3 = vsel %vm1868_vm3, %v15294_v26, %v6166_v63  ;;  %v7354_v2 = vrot.slane %v4999_v25, 2 }
 0x62c   : > { %v15296_v44 = vrot.slane %v12697_v14, 2  ;;  %v4978_v25 = vsel %vm665_vm1, %v12589_v0, %v12613_v20  ;;  %v12754_v0 = vrot.slane %v6351_v39, %v15552_v12 }
 0x62d   : > { %v4919_v27 = vpop.permute.xlu1 %4918  ;;  %v4921_v24 = vpop.permute.xlu0 %4920  ;;  %v12726_v22 = vsel %vm1868_vm3, %v15295_v1, %v6176_v28 }
 0x62e   : > { %v12721_v58 = vsel %vm690_vm2, %v4977_v34, %v4919_v27  ;;  %v6366_v31 = vcombine.low %v12718_v3, %v12726_v22  ;;  %v6367_v11 = vcombine.high %v12718_v3, %v12726_v22  ;;  %v12745_v27 = vrot.slane %v6350_v46, %v15552_v12 }
 0x62f   : > { %5388 = vrot.lane.b32.xlu0 %v12721_v58, %s9762_s8  ;;  %v12751_v35 = vsel %vm690_vm2, %v4978_v25, %v4921_v24  ;;  %v12759_v20 = vsel %vm3047_vm4, %v15296_v44, %v7354_v2  ;;  %v4984_v25 = vsel %vm665_vm1, %v12601_v42, %v12621_v43  ;;  %v4986_v42 = vsel %vm665_vm1, %v12607_v33, %v12625_v40 }
 0x630   : > { %v12739_v34 = vrot.slane %v6366_v31, %v15552_v12  ;;  %v12742_v28 = vrot.slane %v6367_v11, %v15552_v12  ;;  %15603 = vst [vmem:[#allocation60_spill] sm:$0xff] %v12745_v27  ;;  %v6181_v2 = vrot.slane %v12751_v35, 1  ;;  %v15291_v11 = vrot.slane %v12721_v58, 1 }
 0x631   : > { %v4927_v63 = vpop.permute.xlu1 %4926  ;;  %v4925_v51 = vpop.permute.xlu0 %4924  ;;  %v4987_v43 = vsel %vm665_vm1, %v12605_v38, %v12623_v49  ;;  %v7359_v44 = vrot.slane %v12751_v35, 2  ;;  %v7351_v35 = vrot.slane %v12474_v19, 2 }
 0x632   : > { %15602 = vst [vmem:[#allocation59_spill] sm:$0xff] %v12739_v34  ;;  %v12762_v31 = vsel %vm690_vm2, %v4980_v47, %v4925_v51  ;;  %v4981_v51 = vsel %vm665_vm1, %v12593_v41, %v12615_v7  ;;  %v4983_v47 = vsel %vm665_vm1, %v12599_v52, %v12619_v62  ;;  %v7347_v52 = vrot.slane %v12660_v21, 2 }
 0x633   : > { %5782 = vrot.lane.b32.xlu1 %v12762_v31, %s9774_s12  ;;  %5392 = vrot.lane.b32.xlu0 %v12762_v31, %s9762_s8  ;;  %v5005_v57 = vsel %vm690_vm2, %v4981_v51, %v4927_v63  ;;  %v6183_v51 = vrot.slane %v12507_v16, 1  ;;  %v6184_v7 = vrot.slane %v12762_v31, 1 }
 0x635   : > { %v4931_v24 = vpop.permute.xlu1 %4930  ;;  %v4933_v18 = vpop.permute.xlu0 %4932  ;;  %v12848_v26 = vsel %vm1868_vm3, %v6183_v51, %v6184_v7 }
 0x636   : > { %v12789_v46 = vsel %vm690_vm2, %v4983_v47, %v4931_v24  ;;  %v12792_v41 = vsel %vm690_vm2, %v4984_v25, %v4933_v18  ;;  %v12811_v18 = vsel %vm1868_vm3, %v15291_v11, %v6181_v2  ;;  %v6186_v47 = vrot.slane %v5005_v57, 1 }
 0x637   : > { %v15292_v62 = vrot.slane %v12789_v46, 1  ;;  %v6191_v39 = vrot.slane %v12792_v41, 1  ;;  %5396 = vrot.lane.b32.xlu0 %v12789_v46, %s9762_s8  ;;  %v6193_v2 = vrot.slane %v12510_v8, 1  ;;  %v7362_v11 = vrot.slane %v12762_v31, 2 }
 0x639   : > { %v4939_v63 = vpop.permute.xlu1 %4938  ;;  %v4937_v24 = vpop.permute.xlu0 %4936  ;;  %v12819_v33 = vsel %vm1868_vm3, %v15292_v62, %v6191_v39 }
 0x63a   : > { %v5011_v25 = vsel %vm690_vm2, %v4987_v43, %v4939_v63  ;;  %v12822_v38 = vsel %vm690_vm2, %v4986_v42, %v4937_v24  ;;  %v6382_v40 = vcombine.low %v12811_v18, %v12819_v33  ;;  %v6383_v42 = vcombine.high %v12811_v18, %v12819_v33 }
 0x63b   : > { %v6196_v49 = vrot.slane %v5011_v25, 1  ;;  %5790 = vrot.lane.b32.xlu1 %v12822_v38, %s9774_s12  ;;  %5400 = vrot.lane.b32.xlu0 %v12822_v38, %s9762_s8  ;;  %v6194_v39 = vrot.slane %v12822_v38, 1  ;;  %v7349_v63 = vrot.slane %v12667_v4, 2  ;;  %v7364_v24 = vrot.slane %v5005_v57, 2 }
 0x63c   : > { %v7374_v62 = vrot.slane %v5011_v25, 2  ;;  %v12842_v43 = vsel %vm1868_vm3, %v6184_v7, %v6186_v47  ;;  %v12855_v57 = vrot.slane %v6382_v40, %v15552_v12  ;;  %v12865_v7 = vrot.slane %v6383_v42, %v15552_v12 }
 0x63d   : > { %v12845_v5 = vsel %vm1868_vm3, %v6194_v39, %v6196_v49  ;;  %v12858_v25 = vsel %vm1868_vm3, %v6193_v2, %v6194_v39  ;;  %v7372_v49 = vrot.slane %v12822_v38, 2  ;;  %v12879_v39 = vsel %vm3047_vm4, %v7362_v11, %v7364_v24 }
 0x63e   : > { %v6398_v1 = vcombine.low %v12842_v43, %v12845_v5  ;;  %v6399_v4 = vcombine.high %v12842_v43, %v12845_v5  ;;  %15604 = vst [vmem:[#allocation61_spill] sm:$0xff] %v12855_v57  ;;  %v12882_v42 = vsel %vm3047_vm4, %v7347_v52, %v7349_v63  ;;  %v15608_v24 = vrot.slane %v12697_v14, 2 }
 0x63f   : > { %6562 = vrot.lane.b32.xlu1 %v12718_v3, %s9762_s8  ;;  %5762 = vrot.lane.b32.xlu0 %v12631_v48, %s9774_s12  ;;  %v12888_v47 = vsel %vm3047_vm4, %v7372_v49, %v7374_v62  ;;  %v7357_v62 = vrot.slane %v12721_v58, 2 }
 0x640   : > { %v12873_v40 = vrot.slane %v6398_v1, %v15552_v12  ;;  %v12876_v2 = vrot.slane %v6399_v4, %v15552_v12  ;;  %v7361_v1 = vrot.slane %v12507_v16, 2  ;;  %v7369_v4 = vrot.slane %v12792_v41, 2 }
 0x641   : > { %v12885_v51 = vpop.permute.xlu1 %5370  ;;  %v12911_v63 = vsel %vm3047_vm4, %v7351_v35, %v15608_v24  ;;  %v7367_v16 = vrot.slane %v12789_v46, 2  ;;  %v7371_v41 = vrot.slane %v12510_v8, 2 }
 0x642   : > { %15605 = vst [vmem:[#allocation55_spill] sm:$0xff] %v12873_v40  ;;  %15606 = vst [vmem:[#allocation57_spill] sm:$0xff] %v12885_v51  ;;  %v12914_v40 = vsel %vm3047_vm4, %v7357_v62, %v7359_v44  ;;  %v12917_v57 = vsel %vm3047_vm4, %v7361_v1, %v7362_v11  ;;  %v7346_v11 = vrot.slane %v12477_v32, 2  ;;  %v6173_v1 = vrot.slane %v12474_v19, 1 }
 0x643   : > { %6570 = vrot.lane.b32.xlu1 %v12726_v22, %s9762_s8  ;;  %5770 = vrot.lane.b32.xlu0 %v12660_v21, %s9774_s12  ;;  %15609 = vst [vmem:[#allocation34_spill] sm:$0xff] %v12911_v63  ;;  %15610 = vst [vmem:[#allocation56_spill] sm:$0xff] %v12914_v40  ;;  %v12928_v24 = vsel %vm3047_vm4, %v7367_v16, %v7369_v4  ;;  %v12931_v44 = vsel %vm3047_vm4, %v7371_v41, %v7372_v49  ;;  %v6163_v4 = vrot.slane %v12471_v59, 1 }
 0x644   : > { %15611 = vst [vmem:[#allocation31_spill] sm:$0xff] %v12917_v57  ;;  %15613 = vst [vmem:[#allocation58_spill] sm:$0xff] %v12928_v24  ;;  %v12940_v8 = vsel %vm3047_vm4, %v7346_v11, %v7347_v52  ;;  %v15617_v49 = vrot.slane %v12697_v14, 1  ;;  %v6168_v40 = vrot.slane %v12477_v32, 1  ;;  %v6188_v24 = vrot.slane %v12513_v50, 1 }
 0x645   : > { %15614 = vst [vmem:[#allocation32_spill] sm:$0xff] %v12931_v44  ;;  %15615 = vst [vmem:[#allocation35_spill] sm:$0xff] %v12940_v8  ;;  %v6158_v57 = vrot.slane %v12461_v45, 1  ;;  %v15618_v19 = vrot.slane %v12649_v61, 1  ;;  %v15619_v52 = vrot.slane %v12660_v21, 1  ;;  %v6178_v32 = vrot.slane %v12497_v13, 1 }
 0x646   : > { %v12906_v36 = vpop.permute.xlu1 %5374  ;;  %v12948_v41 = vsel %vm1868_vm3, %v6173_v1, %v15617_v49  ;;  %v15621_v45 = vrot.slane %v12789_v46, 1  ;;  %v15627_v8 = vcombine.low %v12762_v31, %v12822_v38  ;;  %v7366_v44 = vrot.slane %v12513_v50, 2 }
 0x647   : > { %15607 = vst [vmem:[#allocation30_spill] sm:$0xff] %v12906_v36  ;;  %6578 = vrot.lane.b32.xlu1 %v12842_v43, %s9762_s8  ;;  %5778 = vrot.lane.b32.xlu0 %v12721_v58, %s9774_s12  ;;  %v12960_v59 = vsel %vm1868_vm3, %v6163_v4, %v15618_v19  ;;  %v12965_v11 = vsel %vm1868_vm3, %v6168_v40, %v15619_v52  ;;  %v15623_v4 = vrot.slane %v12631_v48, 1  ;;  %v15625_v40 = vrot.slane %v12721_v58, 1 }
 0x648   : > { %15620 = vst [vmem:[#allocation36_spill] sm:$0xff] %v12965_v11  ;;  %v12971_v1 = vsel %vm1868_vm3, %v6188_v24, %v15621_v45  ;;  %v15626_v24 = vcombine.low %v12649_v61, %v12697_v14  ;;  %v6231_v27 = vcombine.high %v12960_v59, %v12948_v41 }
 0x649   : > { %v12980_v19 = vsel %vm1868_vm3, %v6158_v57, %v15623_v4  ;;  %v12985_v52 = vsel %vm1868_vm3, %v6178_v32, %v15625_v40  ;;  %v15628_v32 = vcombine.high %v12649_v61, %v12697_v14  ;;  %v15630_v61 = vcombine.low %v12631_v48, %v12660_v21 }
 0x64a   : > { %v12925_v36 = vpop.permute.xlu1 %5378  ;;  %15624 = vst [vmem:[#allocation45_spill] sm:$0xff] %v12980_v19  ;;  %v12991_v45 = vrot.slane %v15626_v24, %v15552_v12  ;;  %v6214_v57 = vcombine.low %v12980_v19, %v12965_v11  ;;  %v6246_v4 = vcombine.low %v12985_v52, %v12971_v1  ;;  %v15629_v24 = vcombine.high %v12762_v31, %v12822_v38 }
 0x64b   : > { %15612 = vst [vmem:[#allocation33_spill] sm:$0xff] %v12925_v36  ;;  %5786 = vrot.lane.b32.xlu0 %v12789_v46, %s9774_s12  ;;  %6586 = vrot.lane.b32.xlu1 %v12845_v5, %s9762_s8  ;;  %v5179_v40 = vrot.slane %v15628_v32, %v15552_v12  ;;  %v5156_v14 = vrot.slane %v15630_v61, %v15552_v12 }
 0x64c   : > { %v15631_v31 = vcombine.high %v12631_v48, %v12660_v21  ;;  %v15632_v32 = vcombine.low %v12721_v58, %v12789_v46  ;;  %v15635_v61 = vcombine.low %v12848_v26, %v12858_v25 }
 0x64e   : > { %v12942_v35 = vpop.permute.xlu1 %5382  ;;  %v5163_v38 = vrot.slane %v15631_v31, %v15552_v12  ;;  %v6270_v48 = vrot.slane %v15635_v61, %v15552_v12  ;;  %v13044_v31 = vsel %vm3047_vm4, %v7366_v44, %v7367_v16 }
 0x64f   : > { %15616 = vst [vmem:[#allocation41_spill] sm:$0xff] %v12942_v35  ;;  %6558 = vrot.lane.b32.xlu0 %v12689_v6, %s9762_s8  ;;  %6952 = vrot.lane.b32.xlu1 %v12718_v3, %s9774_s12  ;;  %v6230_v3 = vcombine.low %v12960_v59, %v12948_v41  ;;  %v5211_v35 = vrot.slane %v15629_v24, %v15552_v12  ;;  %15637 = vst [vmem:[#allocation42_spill] sm:$0xff] %v13044_v31 }
 0x650   : > { %v5188_v24 = vrot.slane %v15632_v32, %v15552_v12  ;;  %v6254_v32 = vrot.slane %v6246_v4, %v15552_v12 }
 0x652   : > { %v12975_v49 = vpop.permute.xlu1 %5386 }
 0x653   : > { %15622 = vst [vmem:[#allocation40_spill] sm:$0xff] %v12975_v49  ;;  %v12997_v49 = vrot.slane %v15627_v8, %v15552_v12  ;;  %6566 = vrot.lane.b32.xlu0 %v12694_v15, %s9762_s8  ;;  %6960 = vrot.lane.b32.xlu1 %v12726_v22, %s9774_s12  ;;  %v7356_v8 = vrot.slane %v12497_v13, 2  ;;  %v6238_v22 = vrot.slane %v6230_v3, %v15552_v12 }
 0x654   : > { %v15633_v13 = vcombine.high %v12721_v58, %v12789_v46  ;;  %v6222_v3 = vrot.slane %v6214_v57, %v15552_v12  ;;  %v5213_v58 = vcombine.high %v5156_v14, %v12991_v45  ;;  %v6310_v57 = vcombine.low %v6254_v32, %v6270_v48 }
 0x655   : > { %v13041_v21 = vsel %vm3047_vm4, %v7356_v8, %v7357_v62  ;;  %v5245_v46 = vcombine.high %v5188_v24, %v12997_v49  ;;  %v5229_v8 = vcombine.high %v5163_v38, %v5179_v40 }
 0x656   : > { %v5195_v50 = vrot.slane %v15633_v13, %v15552_v12  ;;  %v13034_v34 = vpop.permute.xlu1 %5390  ;;  %15636 = vst [vmem:[#allocation44_spill] sm:$0xff] %v13041_v21  ;;  %v5228_v13 = vcombine.low %v5163_v38, %v5179_v40  ;;  %v6278_v61 = vcombine.low %v6222_v3, %v6238_v22  ;;  %v5227_v4 = vrot.slane %v5213_v58, %v10276_v30 }
 0x657   : > { %15634 = vst [vmem:[#allocation17_spill] sm:$0xff] %v13034_v34  ;;  %6574 = vrot.lane.b32.xlu0 %v12811_v18, %s9762_s8  ;;  %6968 = vrot.lane.b32.xlu1 %v12842_v43, %s9774_s12  ;;  %v5259_v16 = vrot.slane %v5245_v46, %v10276_v30  ;;  %v13059_v34 = vpop.permute.xlu0 %5760  ;;  %v6215_v43 = vcombine.high %v12980_v19, %v12965_v11 }
 0x658   : > { %v5260_v62 = vcombine.low %v5195_v50, %v5211_v35  ;;  %v5261_v31 = vcombine.high %v5195_v50, %v5211_v35  ;;  %v5236_v40 = vrot.slane %v5228_v13, %v10276_v30  ;;  %v6279_v38 = vcombine.high %v6222_v3, %v6238_v22 }
 0x659   : > { %v6247_v35 = vcombine.high %v12985_v52, %v12971_v1  ;;  %v5278_v50 = vcombine.low %v5227_v4, %v5259_v16  ;;  %v6311_v58 = vcombine.high %v6254_v32, %v6270_v48  ;;  %v15640_v13 = vcombine.low %v12538_v17, %v12550_v53 }
 0x65a   : > { %v13055_v44 = vpop.permute.xlu1 %5394  ;;  %v5268_v21 = vrot.slane %v5260_v62, %v10276_v30  ;;  %v5243_v62 = vrot.slane %v5229_v8, %v10276_v30  ;;  %v13085_v22 = vrot.slane %v6310_v57, %v10276_v30  ;;  %v5212_v48 = vcombine.low %v5156_v14, %v12991_v45 }
 0x65b   : > { %15638 = vst [vmem:[#allocation46_spill] sm:$0xff] %v13055_v44  ;;  %6582 = vrot.lane.b32.xlu0 %v12819_v33, %s9762_s8  ;;  %6976 = vrot.lane.b32.xlu1 %v12845_v5, %s9774_s12  ;;  %v5275_v44 = vrot.slane %v5261_v31, %v10276_v30  ;;  %v13079_v19 = vpack.i.bf16 %v5278_v50, %v15640_v13 }
 0x65c   : > { %v5280_v46 = vcombine.low %v5236_v40, %v5268_v21  ;;  %v13082_v5 = vrot.slane %v6278_v61, %v10276_v30  ;;  %15643 = vst [vmem:[#allocation26_spill] sm:$0xff] %v13085_v22  ;;  %v6245_v3 = vrot.slane %v6231_v27, %v15552_v12  ;;  %v15644_v31 = vcombine.high %v12848_v26, %v12858_v25  ;;  %v13106_v61 = vpop.permute.xlu0 %5768 }
 0x65d   : > { %15641 = vst [vmem:[#allocation27_spill] sm:$0xff] %v13079_v19  ;;  %v15645_v8 = vcombine.low %v12541_v55, %v12553_v29  ;;  %v5282_v13 = vcombine.low %v5243_v62, %v5275_v44  ;;  %v6229_v45 = vrot.slane %v6215_v43, %v15552_v12  ;;  %v5244_v14 = vcombine.low %v5188_v24, %v12997_v49 }
 0x65e   : > { %v13074_v11 = vpop.permute.xlu1 %5398  ;;  %15642 = vst [vmem:[#allocation28_spill] sm:$0xff] %v13082_v5  ;;  %v6277_v32 = vrot.slane %v15644_v31, %v15552_v12  ;;  %v6261_v57 = vrot.slane %v6247_v35, %v15552_v12  ;;  %v13126_v49 = vrot.slane %v6311_v58, %v10276_v30  ;;  %v5279_v24 = vcombine.high %v5227_v4, %v5259_v16 }
 0x65f   : > { %15639 = vst [vmem:[#allocation29_spill] sm:$0xff] %v13074_v11  ;;  %v13096_v50 = vpack.i.bf16 %v5280_v46, %v15645_v8  ;;  %6948 = vrot.lane.b32.xlu0 %v12689_v6, %s9774_s12  ;;  %6560 = vrot.lane.b32.xlu1 %v12960_v59, %s9762_s8  ;;  %v15647_v46 = vcombine.low %v12544_v23, %v12556_v54 }
 0x660   : > { %v13115_v6 = vrot.slane %v5212_v48, %v10276_v30  ;;  %v13118_v8 = vrot.slane %v6279_v38, %v10276_v30  ;;  %v13123_v27 = vrot.slane %v5244_v14, %v10276_v30  ;;  %15652 = vst [vmem:[#allocation48_spill] sm:$0xff] %v13126_v49  ;;  %v5281_v35 = vcombine.high %v5236_v40, %v5268_v21  ;;  %v15674_v14 = vld [vmem:[#allocation55_spill] sm:$0xff]  ;;  %v15690_v49 = vld [vmem:[#allocation30_spill] sm:$0xff] }
 0x661   : > { %15646 = vst [vmem:[#allocation14_spill] sm:$0xff] %v13096_v50  ;;  %v13112_v31 = vpack.i.bf16 %v5282_v13, %v15647_v46  ;;  %v6294_v50 = vcombine.low %v6229_v45, %v6245_v3  ;;  %v6326_v19 = vcombine.low %v6261_v57, %v6277_v32  ;;  %v15653_v58 = vcombine.high %v12538_v17, %v12550_v53  ;;  %v13155_v17 = vpop.permute.xlu0 %5776 }
 0x662   : > { %15649 = vst [vmem:[#allocation43_spill] sm:$0xff] %v13115_v6  ;;  %15650 = vst [vmem:[#allocation37_spill] sm:$0xff] %v13118_v8  ;;  %v13120_v43 = vpop.permute.xlu1 %5764  ;;  %v5277_v38 = vcombine.high %v13115_v6, %v13123_v27  ;;  %v6295_v21 = vcombine.high %v6229_v45, %v6245_v3  ;;  %v6327_v4 = vcombine.high %v6261_v57, %v6277_v32 }
 0x663   : > { %15648 = vst [vmem:[#allocation38_spill] sm:$0xff] %v13112_v31  ;;  %15651 = vst [vmem:[#allocation39_spill] sm:$0xff] %v13123_v27  ;;  %6956 = vrot.lane.b32.xlu0 %v12694_v15, %s9774_s12  ;;  %6568 = vrot.lane.b32.xlu1 %v12948_v41, %s9762_s8  ;;  %v13139_v13 = vpack.i.bf16 %v5279_v24, %v15653_v58  ;;  %v15655_v15 = vcombine.high %v12547_v9, %v12559_v56  ;;  %v15691_v31 = vld [vmem:[#allocation46_spill] sm:$0xff] }
 0x664   : > { %v15657_v46 = vcombine.high %v12541_v55, %v12553_v29  ;;  %v13158_v53 = vrot.slane %v6294_v50, %v10276_v30  ;;  %v13161_v3 = vrot.slane %v6326_v19, %v10276_v30  ;;  %v5283_v32 = vcombine.high %v5243_v62, %v5275_v44 }
 0x665   : > { %15654 = vst [vmem:[#allocation51_spill] sm:$0xff] %v13139_v13  ;;  %v13146_v40 = vpack.i.bf16 %v5277_v38, %v15655_v15  ;;  %v15661_v29 = vcombine.high %v12544_v23, %v12556_v54  ;;  %v13179_v44 = vrot.slane %v6295_v21, %v10276_v30  ;;  %v13192_v62 = vpop.permute.xlu0 %5784  ;;  %v7544_v57 = vcombine.low %v12664_v37, %v12759_v20  ;;  %v15669_v54 = vld [vmem:[#allocation60_spill] sm:$0xff]  ;;  %v15670_v23 = vld [vmem:[#allocation59_spill] sm:$0xff] }
 0x666   : > { %v13141_v16 = vpop.permute.xlu1 %5772  ;;  %v13153_v48 = vpack.i.bf16 %v5281_v35, %v15657_v46  ;;  %15659 = vst [vmem:[#allocation52_spill] sm:$0xff] %v13158_v53  ;;  %15660 = vst [vmem:[#allocation54_spill] sm:$0xff] %v13161_v3  ;;  %v7576_v24 = vcombine.low %v12879_v39, %v12888_v47  ;;  %v5808_v35 = vcombine.low %v13059_v34, %v13106_v61  ;;  %v15681_v13 = vld [vmem:[#allocation32_spill] sm:$0xff] }
 0x667   : > { %15656 = vst [vmem:[#allocation22_spill] sm:$0xff] %v13146_v40  ;;  %6964 = vrot.lane.b32.xlu0 %v12811_v18, %s9774_s12  ;;  %6576 = vrot.lane.b32.xlu1 %v12848_v26, %s9762_s8  ;;  %v13172_v45 = vpack.i.bf16 %v5283_v32, %v15661_v29  ;;  %15663 = vst [vmem:[#allocation11_spill] sm:$0xff] %v13179_v44  ;;  %v13182_v18 = vrot.slane %v6327_v4, %v10276_v30  ;;  %v15682_v44 = vld [vmem:[#allocation31_spill] sm:$0xff] }
 0x668   : > { %15658 = vst [vmem:[#allocation49_spill] sm:$0xff] %v13153_v48  ;;  %v7408_v58 = vcombine.low %v12678_v10, %v12911_v63  ;;  %v15665_v21 = vcombine.high %v12754_v0, %v12742_v28  ;;  %v15667_v15 = vcombine.high %v12865_v7, %v12876_v2  ;;  %v5418_v32 = vcombine.low %v12885_v51, %v12925_v36 }
 0x669   : > { %15662 = vst [vmem:[#allocation18_spill] sm:$0xff] %v13172_v45  ;;  %15664 = vst [vmem:[#allocation16_spill] sm:$0xff] %v13182_v18  ;;  %v15671_v19 = vcombine.low %v15669_v54, %v15670_v23  ;;  %v15677_v18 = vld [vmem:[#allocation45_spill] sm:$0xff]  ;;  %v7440_v40 = vcombine.low %v15682_v44, %v15681_v13 }
 0x66a   : > { %v13174_v50 = vpop.permute.xlu1 %5780  ;;  %v13210_v4 = vrot.slane %v15665_v21, %v10276_v30  ;;  %v13216_v46 = vrot.slane %v15667_v15, %v10276_v30  ;;  %v15673_v21 = vld [vmem:[#allocation61_spill] sm:$0xff]  ;;  %v5840_v15 = vcombine.low %v13155_v17, %v13192_v62 }
 0x66b   : > { %6972 = vrot.lane.b32.xlu0 %v12819_v33, %s9774_s12  ;;  %6584 = vrot.lane.b32.xlu1 %v12858_v25, %s9762_s8  ;;  %v7528_v33 = vcombine.low %v12646_v60, %v12882_v42  ;;  %v13226_v55 = vrot.slane %v15671_v19, %v10276_v30  ;;  %v15675_v56 = vcombine.low %v15673_v21, %v15674_v14  ;;  %v15678_v45 = vld [vmem:[#allocation17_spill] sm:$0xff] }
 0x66c   : > { %15666 = vst [vmem:[#allocation13_spill] sm:$0xff] %v13210_v4  ;;  %15668 = vst [vmem:[#allocation19_spill] sm:$0xff] %v13216_v46  ;;  %v5466_v48 = vcombine.low %v15678_v45, %v13074_v11  ;;  %v15679_v53 = vcombine.high %v15673_v21, %v15674_v14  ;;  %v15683_v19 = vcombine.high %v15669_v54, %v15670_v23  ;;  %v15689_v21 = vld [vmem:[#allocation41_spill] sm:$0xff]  ;;  %v15692_v45 = vld [vmem:[#allocation40_spill] sm:$0xff] }
 0x66d   : > { %15672 = vst [vmem:[#allocation12_spill] sm:$0xff] %v13226_v55  ;;  %v13232_v9 = vrot.slane %v15675_v56, %v10276_v30  ;;  %v5824_v56 = vcombine.low %v13120_v43, %v13141_v16  ;;  %v15685_v4 = vcombine.low %v12754_v0, %v12742_v28  ;;  %v15687_v14 = vcombine.low %v12865_v7, %v12876_v2  ;;  %v15694_v11 = vld [vmem:[#allocation56_spill] sm:$0xff] }
 0x66e   : > { %v13202_v38 = vpop.permute.xlu1 %5788  ;;  %v13262_v46 = vrot.slane %v15683_v19, %v10276_v30  ;;  %v5434_v8 = vcombine.low %v15690_v49, %v15689_v21  ;;  %v5450_v23 = vcombine.low %v15692_v45, %v15691_v31  ;;  %v15693_v19 = vld [vmem:[#allocation58_spill] sm:$0xff]  ;;  %v15695_v0 = vld [vmem:[#allocation36_spill] sm:$0xff]  ;;  %v13307_v7 = vrot.slane %v5808_v35, %v15552_v12  ;;  %v15701_v35 = vld [vmem:[#allocation35_spill] sm:$0xff] }
 0x66f   : > { %v5856_v29 = vcombine.low %v13174_v50, %v13202_v38  ;;  %15676 = vst [vmem:[#allocation53_spill] sm:$0xff] %v13232_v9  ;;  %6556 = vrot.lane.b32.xlu0 %v15677_v18, %s9762_s8  ;;  %6950 = vrot.lane.b32.xlu1 %v12960_v59, %s9774_s12  ;;  %v13254_v59 = vrot.slane %v15679_v53, %v10276_v30  ;;  %v15696_v31 = vld [vmem:[#allocation42_spill] sm:$0xff] }
 0x670   : > { %15684 = vst [vmem:[#allocation47_spill] sm:$0xff] %v13262_v46  ;;  %v13268_v3 = vrot.slane %v15685_v4, %v10276_v30  ;;  %v13274_v53 = vrot.slane %v15687_v14, %v10276_v30  ;;  %v7560_v28 = vcombine.low %v15694_v11, %v15693_v19  ;;  %v13299_v14 = vrot.slane %v5466_v48, %v15552_v12  ;;  %v15702_v46 = vld [vmem:[#allocation21_spill] sm:$0xff] }
 0x671   : > { %15680 = vst [vmem:[#allocation50_spill] sm:$0xff] %v13254_v59  ;;  %v13281_v54 = vrot.slane %v5856_v29, %v15552_v12  ;;  %v13296_v29 = vrot.slane %v5840_v15, %v15552_v12  ;;  %v13302_v45 = vrot.slane %v5824_v56, %v15552_v12  ;;  %v13310_v2 = vrot.slane %v7576_v24, %v15552_v12 }
 0x672   : > { %15686 = vst [vmem:[#allocation24_spill] sm:$0xff] %v13268_v3  ;;  %15688 = vst [vmem:[#allocation23_spill] sm:$0xff] %v13274_v53  ;;  %v13313_v4 = vrot.slane %v7440_v40, %v15552_v12  ;;  %v13318_v48 = vrot.slane %v5434_v8, %v15552_v12  ;;  %v13321_v56 = vrot.slane %v5450_v23, %v15552_v12 }
 0x673   : > { %6564 = vrot.lane.b32.xlu0 %v15695_v0, %s9762_s8  ;;  %6958 = vrot.lane.b32.xlu1 %v12948_v41, %s9774_s12  ;;  %v15697_v41 = vld [vmem:[#allocation44_spill] sm:$0xff]  ;;  %15698 = vst [vmem:[#allocation60_spill] sm:$0xff] %v13310_v2  ;;  %v5904_v59 = vcombine.low %v13296_v29, %v13281_v54  ;;  %v7392_v36 = vcombine.low %v15702_v46, %v15701_v35 }
 0x674   : > { %v7424_v51 = vcombine.low %v15697_v41, %v15696_v31  ;;  %15699 = vst [vmem:[#allocation59_spill] sm:$0xff] %v13313_v4  ;;  %15700 = vst [vmem:[#allocation61_spill] sm:$0xff] %v13321_v56  ;;  %v13332_v40 = vrot.slane %v7544_v57, %v15552_v12  ;;  %v13335_v8 = vrot.slane %v7408_v58, %v15552_v12 }
 0x675   : > { %v13338_v24 = vrot.slane %v7560_v28, %v15552_v12  ;;  %v13341_v23 = vrot.slane %v5418_v32, %v15552_v12  ;;  %v5514_v15 = vcombine.low %v13321_v56, %v13299_v14  ;;  %v5872_v53 = vcombine.low %v13307_v7, %v13302_v45 }
 0x676   : > { %15703 = vst [vmem:[#allocation55_spill] sm:$0xff] %v13332_v40  ;;  %15704 = vst [vmem:[#allocation45_spill] sm:$0xff] %v13335_v8  ;;  %v13351_v57 = vrot.slane %v7528_v33, %v15552_v12  ;;  %v13358_v32 = vrot.slane %v5904_v59, %v10276_v30  ;;  %v13361_v3 = vrot.slane %v7392_v36, %v15552_v12 }
 0x677   : > { %6572 = vrot.lane.b32.xlu0 %v12985_v52, %s9762_s8  ;;  %6966 = vrot.lane.b32.xlu1 %v12848_v26, %s9774_s12  ;;  %15705 = vst [vmem:[#allocation41_spill] sm:$0xff] %v13338_v24  ;;  %v13348_v26 = vrot.slane %v7424_v51, %v15552_v12  ;;  %v7624_v58 = vcombine.low %v13338_v24, %v13310_v2 }
 0x678   : > { %15707 = vst [vmem:[#allocation36_spill] sm:$0xff] %v13351_v57  ;;  %v5482_v28 = vcombine.low %v13341_v23, %v13318_v48  ;;  %15708 = vst [vmem:[#allocation62_spill] sm:$0xff] %v13358_v32  ;;  %v7592_v51 = vcombine.low %v13351_v57, %v13332_v40  ;;  %v13372_v33 = vrot.slane %v5514_v15, %v10276_v30 }
 0x679   : > { %15706 = vst [vmem:[#allocation30_spill] sm:$0xff] %v13348_v26  ;;  %15709 = vst [vmem:[#allocation63_spill] sm:$0xff] %v13361_v3  ;;  %v7488_v56 = vcombine.low %v13348_v26, %v13313_v4  ;;  %v13375_v59 = vrot.slane %v5872_v53, %v10276_v30  ;;  %v7456_v36 = vcombine.low %v13361_v3, %v13335_v8 }
 0x67a   : > { %15710 = vst [vmem:[#allocation64_spill] sm:$0xff] %v13372_v33  ;;  %v13380_v26 = vrot.slane %v7624_v58, %v10276_v30  ;;  %v13383_v4 = vrot.slane %v5482_v28, %v10276_v30  ;;  %v13397_v53 = vrot.slane %v7592_v51, %v10276_v30  ;;  %v5905_v33 = vcombine.high %v13296_v29, %v13281_v54 }
 0x67b   : > { %6580 = vrot.lane.b32.xlu0 %v12971_v1, %s9762_s8  ;;  %6974 = vrot.lane.b32.xlu1 %v12858_v25, %s9774_s12  ;;  %15711 = vst [vmem:[#allocation65_spill] sm:$0xff] %v13375_v59  ;;  %v13386_v25 = vrot.slane %v7488_v56, %v10276_v30  ;;  %v13402_v56 = vrot.slane %v7456_v36, %v10276_v30 }
 0x67c   : > { %15712 = vst [vmem:[#allocation66_spill] sm:$0xff] %v13380_v26  ;;  %15713 = vst [vmem:[#allocation67_spill] sm:$0xff] %v13383_v4  ;;  %v5873_v54 = vcombine.high %v13307_v7, %v13302_v45  ;;  %v15733_v45 = vld [vmem:[#allocation17_spill] sm:$0xff] }
 0x67d   : > { %15714 = vst [vmem:[#allocation68_spill] sm:$0xff] %v13386_v25  ;;  %15715 = vst [vmem:[#allocation69_spill] sm:$0xff] %v13397_v53 }
 0x67e   : > { %15716 = vst [vmem:[#allocation70_spill] sm:$0xff] %v13402_v56 }
 0x67f   : > { %6946 = vrot.lane.b32.xlu0 %v15677_v18, %s9774_s12  ;;  %7740 = vrot.lane.b32.xlu1 %v12664_v37, %s9762_s8 }
 0x683   : > { %6954 = vrot.lane.b32.xlu0 %v15695_v0, %s9774_s12  ;;  %7748 = vrot.lane.b32.xlu1 %v12759_v20, %s9762_s8 }
 0x687   : > { %6962 = vrot.lane.b32.xlu0 %v12985_v52, %s9774_s12  ;;  %7756 = vrot.lane.b32.xlu1 %v12879_v39, %s9762_s8 }
 0x68b   : > { %6970 = vrot.lane.b32.xlu0 %v12971_v1, %s9774_s12  ;;  %7764 = vrot.lane.b32.xlu1 %v12888_v47, %s9762_s8 }
 0x68f   : > { %7736 = vrot.lane.b32.xlu0 %v12646_v60, %s9762_s8  ;;  %7738 = vrot.lane.b32.xlu1 %v12678_v10, %s9762_s8 }
 0x691   : > { %v13428_v0 = vpop.permute.xlu0 %5372 }
 0x693   : > { %7744 = vrot.lane.b32.xlu0 %v12882_v42, %s9762_s8  ;;  %7746 = vrot.lane.b32.xlu1 %v12911_v63, %s9762_s8 }
 0x695   : > { %v13434_v52 = vpop.permute.xlu0 %5376  ;;  %v13452_v36 = vpop.permute.xlu1 %5766 }
 0x697   : > { %7752 = vrot.lane.b32.xlu0 %v15694_v11, %s9762_s8  ;;  %7754 = vrot.lane.b32.xlu1 %v15682_v44, %s9762_s8 }
 0x699   : > { %v13440_v1 = vpop.permute.xlu0 %5380 }
 0x69a   : > { %v5554_v26 = vcombine.low %v13428_v0, %v13440_v1 }
 0x69b   : > { %7760 = vrot.lane.b32.xlu0 %v15693_v19, %s9762_s8  ;;  %7762 = vrot.lane.b32.xlu1 %v15681_v13, %s9762_s8 }
 0x69d   : > { %v13446_v51 = vpop.permute.xlu0 %5384  ;;  %v13460_v15 = vpop.permute.xlu1 %5774 }
 0x69e   : > { %v5570_v25 = vcombine.low %v13434_v52, %v13446_v51 }
 0x69f   : > { %7734 = vrot.lane.b32.xlu0 %v15702_v46, %s9762_s8  ;;  %8130 = vrot.lane.b32.xlu1 %v12664_v37, %s9774_s12 }
 0x6a0   : > { %v13500_v9 = vrot.slane %v5570_v25, %v15552_v12 }
 0x6a1   : > { %v13454_v18 = vpop.permute.xlu0 %5388 }
 0x6a3   : > { %7742 = vrot.lane.b32.xlu0 %v15701_v35, %s9762_s8  ;;  %8138 = vrot.lane.b32.xlu1 %v12759_v20, %s9774_s12 }
 0x6a5   : > { %v13462_v24 = vpop.permute.xlu0 %5392  ;;  %v13468_v28 = vpop.permute.xlu1 %5782 }
 0x6a6   : > { %15717 = vst [vmem:[#allocation71_spill] sm:$0xff] %v13468_v28 }
 0x6a7   : > { %7750 = vrot.lane.b32.xlu0 %v15697_v41, %s9762_s8  ;;  %8146 = vrot.lane.b32.xlu1 %v12879_v39, %s9774_s12 }
 0x6a9   : > { %v13470_v58 = vpop.permute.xlu0 %5396 }
 0x6aa   : > { %v5586_v53 = vcombine.low %v13454_v18, %v13470_v58 }
 0x6ab   : > { %7758 = vrot.lane.b32.xlu0 %v15696_v31, %s9762_s8  ;;  %8154 = vrot.lane.b32.xlu1 %v12888_v47, %s9774_s12 }
 0x6ac   : > { %v13503_v55 = vrot.slane %v5586_v53, %v15552_v12 }
 0x6ad   : > { %v13476_v27 = vpop.permute.xlu0 %5400  ;;  %v13478_v6 = vpop.permute.xlu1 %5790 }
 0x6ae   : > { %v5602_v56 = vcombine.low %v13462_v24, %v13476_v27 }
 0x6af   : > { %8126 = vrot.lane.b32.xlu0 %v12646_v60, %s9774_s12  ;;  %8128 = vrot.lane.b32.xlu1 %v12678_v10, %s9774_s12  ;;  %v13510_v10 = vrot.slane %v5554_v26, %v15552_v12 }
 0x6b0   : > { %v13493_v3 = vrot.slane %v5602_v56, %v15552_v12 }
 0x6b1   : > { %v13495_v8 = vpop.permute.xlu0 %5762  ;;  %v13497_v2 = vpop.permute.xlu1 %6562  ;;  %15719 = vst [vmem:[#allocation73_spill] sm:$0xff] %v13510_v10  ;;  %v5618_v25 = vcombine.low %v13510_v10, %v13500_v9  ;;  %v5992_v10 = vcombine.low %v13468_v28, %v13478_v6  ;;  %v5960_v28 = vcombine.low %v13452_v36, %v13460_v15 }
 0x6b2   : > { %15718 = vst [vmem:[#allocation72_spill] sm:$0xff] %v13495_v8  ;;  %v5650_v56 = vcombine.low %v13503_v55, %v13493_v3 }
 0x6b3   : > { %8134 = vrot.lane.b32.xlu0 %v12882_v42, %s9774_s12  ;;  %8136 = vrot.lane.b32.xlu1 %v12911_v63, %s9774_s12  ;;  %v13532_v4 = vrot.slane %v5618_v25, %v10276_v30  ;;  %v13583_v29 = vrot.slane %v5992_v10, %v15552_v12 }
 0x6b4   : > { %v13525_v53 = vrot.slane %v5650_v56, %v10276_v30 }
 0x6b5   : > { %v13514_v57 = vpop.permute.xlu0 %5770  ;;  %v13516_v40 = vpop.permute.xlu1 %6570  ;;  %15722 = vst [vmem:[#allocation76_spill] sm:$0xff] %v13532_v4  ;;  %15727 = vst [vmem:[#allocation79_spill] sm:$0xff] %v13583_v29 }
 0x6b6   : > { %15720 = vst [vmem:[#allocation74_spill] sm:$0xff] %v13514_v57  ;;  %15721 = vst [vmem:[#allocation75_spill] sm:$0xff] %v13525_v53 }
 0x6b7   : > { %8142 = vrot.lane.b32.xlu0 %v15694_v11, %s9774_s12  ;;  %8144 = vrot.lane.b32.xlu1 %v15682_v44, %s9774_s12  ;;  %v7545_v11 = vcombine.high %v12664_v37, %v12759_v20  ;;  %v15723_v37 = vld [vmem:[#allocation27_spill] sm:$0xff]  ;;  %v5857_v20 = vcombine.high %v13174_v50, %v13202_v38  ;;  %v5435_v50 = vcombine.high %v15690_v49, %v15689_v21  ;;  %v15729_v49 = vld [vmem:[#allocation14_spill] sm:$0xff]  ;;  %v15732_v21 = vld [vmem:[#allocation29_spill] sm:$0xff] }
 0x6b8   : > { %v5467_v7 = vcombine.high %v15733_v45, %v15732_v21  ;;  %v13605_v38 = vrot.slane %v5960_v28, %v15552_v12  ;;  %v5483_v45 = vcombine.high %v13341_v23, %v13318_v48 }
 0x6b9   : > { %v13527_v26 = vpop.permute.xlu0 %5778  ;;  %v13529_v63 = vpop.permute.xlu1 %6578  ;;  %v13599_v10 = vrot.slane %v5857_v20, %v15552_v12  ;;  %v13619_v20 = vrot.slane %v5435_v50, %v15552_v12 }
 0x6bb   : > { %8150 = vrot.lane.b32.xlu0 %v15693_v19, %s9774_s12  ;;  %8152 = vrot.lane.b32.xlu1 %v15681_v13, %s9774_s12  ;;  %v5944_v19 = vcombine.low %v13495_v8, %v13514_v57  ;;  %v13561_v13 = vrot.slane %v7545_v11, %v15552_v12  ;;  %v5825_v11 = vcombine.high %v13120_v43, %v13141_v16  ;;  %v15730_v16 = vld [vmem:[#allocation33_spill] sm:$0xff] }
 0x6bc   : > { %v5809_v43 = vcombine.high %v13059_v34, %v13106_v61  ;;  %v5937_v61 = vcombine.high %v13375_v59, %v13358_v32 }
 0x6bd   : > { %v13540_v44 = vpop.permute.xlu0 %5786  ;;  %v13542_v56 = vpop.permute.xlu1 %6586  ;;  %15724 = vst [vmem:[#allocation27_spill] sm:$0xff] %v13561_v13  ;;  %v13624_v21 = vrot.slane %v5825_v11, %v15552_v12 }
 0x6be   : > { %v5976_v25 = vcombine.low %v13527_v26, %v13540_v44  ;;  %v13636_v50 = vrot.slane %v5809_v43, %v15552_v12  ;;  %v15740_v43 = vcombine.high %v13082_v5, %v13085_v22  ;;  %v15741_v22 = vld [vmem:[#allocation61_spill] sm:$0xff] }
 0x6bf   : > { %8124 = vrot.lane.b32.xlu0 %v15702_v46, %s9774_s12  ;;  %9336 = vrot.lane.b32.xlu1 %v15723_v37, %s9767_s29  ;;  %v5841_v37 = vcombine.high %v13155_v17, %v13192_v62  ;;  %v15731_v17 = vld [vmem:[#allocation57_spill] sm:$0xff] }
 0x6c0   : > { %v13566_v8 = vrot.slane %v5976_v25, %v15552_v12  ;;  %v13586_v25 = vrot.slane %v5944_v19, %v15552_v12  ;;  %v5419_v62 = vcombine.high %v15731_v17, %v15730_v16  ;;  %v13602_v19 = vrot.slane %v5905_v33, %v10276_v30  ;;  %v15735_v33 = vld [vmem:[#allocation46_spill] sm:$0xff]  ;;  %v15736_v17 = vld [vmem:[#allocation40_spill] sm:$0xff]  ;;  %v15744_v5 = vld [vmem:[#allocation37_spill] sm:$0xff] }
 0x6c1   : > { %v13568_v57 = vpop.permute.xlu0 %6558  ;;  %v13570_v46 = vpop.permute.xlu1 %6952  ;;  %v13616_v16 = vrot.slane %v5841_v37, %v15552_v12  ;;  %v5451_v28 = vcombine.high %v15736_v17, %v15735_v33  ;;  %v15737_v37 = vld [vmem:[#allocation38_spill] sm:$0xff]  ;;  %v13642_v33 = vrot.slane %v5467_v7, %v15552_v12 }
 0x6c2   : > { %15725 = vst [vmem:[#allocation77_spill] sm:$0xff] %v13566_v8  ;;  %15726 = vst [vmem:[#allocation78_spill] sm:$0xff] %v13568_v57  ;;  %v6008_v32 = vcombine.low %v13586_v25, %v13605_v38  ;;  %v13639_v11 = vrot.slane %v5419_v62, %v15552_v12  ;;  %v9365_v62 = vpack.i.bf16 %v15740_v43, %v5937_v61 }
 0x6c3   : > { %15728 = vst [vmem:[#allocation80_spill] sm:$0xff] %v13586_v25  ;;  %8132 = vrot.lane.b32.xlu0 %v15701_v35, %s9774_s12  ;;  %9346 = vrot.lane.b32.xlu1 %v15729_v49, %s9769_s13  ;;  %v6040_v49 = vcombine.low %v13566_v8, %v13583_v29  ;;  %v5887_v8 = vrot.slane %v5873_v54, %v10276_v30 }
 0x6c4   : > { %v5920_v48 = vcombine.low %v13616_v16, %v13599_v10  ;;  %v13664_v23 = vrot.slane %v5451_v28, %v15552_v12  ;;  %v13669_v29 = vrot.slane %v5483_v45, %v10276_v30  ;;  %v5515_v61 = vcombine.high %v15741_v22, %v13299_v14 }
 0x6c5   : > { %v13609_v35 = vpop.permute.xlu0 %6566  ;;  %v13611_v34 = vpop.permute.xlu1 %6960  ;;  %v13649_v54 = vrot.slane %v6040_v49, %v10276_v30  ;;  %v5938_v7 = vcombine.low %v5887_v8, %v13602_v19  ;;  %v5888_v49 = vcombine.low %v13636_v50, %v13624_v21  ;;  %v13674_v43 = vrot.slane %v6008_v32, %v10276_v30 }
 0x6c6   : > { %15734 = vst [vmem:[#allocation14_spill] sm:$0xff] %v13609_v35  ;;  %v5530_v28 = vcombine.low %v13664_v23, %v13642_v33  ;;  %v5603_v45 = vcombine.high %v13462_v24, %v13476_v27  ;;  %v5939_v59 = vcombine.high %v5887_v8, %v13602_v19  ;;  %v6788_v22 = vcombine.low %v13529_v63, %v13542_v56 }
 0x6c7   : > { %8140 = vrot.lane.b32.xlu0 %v15697_v41, %s9774_s12  ;;  %9356 = vrot.lane.b32.xlu1 %v15737_v37, %s9771_s20  ;;  %15738 = vst [vmem:[#allocation33_spill] sm:$0xff] %v13649_v54  ;;  %15742 = vst [vmem:[#allocation29_spill] sm:$0xff] %v13674_v43  ;;  %v13682_v41 = vrot.slane %v5920_v48, %v10276_v30  ;;  %v6740_v14 = vcombine.low %v13568_v57, %v13609_v35  ;;  %v15761_v43 = vld [vmem:[#allocation72_spill] sm:$0xff] }
 0x6c8   : > { %v13701_v27 = vrot.slane %v5888_v49, %v10276_v30  ;;  %v5571_v8 = vcombine.high %v13434_v52, %v13446_v51  ;;  %v5587_v24 = vcombine.high %v13454_v18, %v13470_v58  ;;  %v13710_v57 = vrot.slane %v5515_v61, %v10276_v30  ;;  %v15747_v49 = vld [vmem:[#allocation22_spill] sm:$0xff] }
 0x6c9   : > { %v13651_v17 = vpop.permute.xlu0 %6574  ;;  %v13653_v37 = vpop.permute.xlu1 %6968  ;;  %v5555_v58 = vcombine.high %v13428_v0, %v13440_v1  ;;  %v5617_v18 = vrot.slane %v5603_v45, %v15552_v12  ;;  %v5651_v61 = vcombine.high %v13503_v55, %v13493_v3  ;;  %v13730_v25 = vrot.slane %v6788_v22, %v15552_v12  ;;  %v15751_v3 = vld [vmem:[#allocation73_spill] sm:$0xff] }
 0x6ca   : > { %15739 = vst [vmem:[#allocation57_spill] sm:$0xff] %v13651_v17  ;;  %v5940_v51 = vcombine.low %v13701_v27, %v13682_v41  ;;  %v5619_v55 = vcombine.high %v15751_v3, %v13500_v9  ;;  %v5601_v22 = vrot.slane %v5587_v24, %v15552_v12  ;;  %v15753_v9 = vld [vmem:[#allocation52_spill] sm:$0xff]  ;;  %v5683_v35 = vcombine.high %v13532_v4, %v13525_v53  ;;  %v15763_v53 = vld [vmem:[#allocation49_spill] sm:$0xff] }
 0x6cb   : > { %8148 = vrot.lane.b32.xlu0 %v15696_v31, %s9774_s12  ;;  %9366 = vrot.lane.b32.xlu1 %v9365_v62, %s9768_s16  ;;  %v15745_v31 = vld [vmem:[#allocation48_spill] sm:$0xff]  ;;  %s8819_s12 = scalar_lea.sflag [#allocation4], %s9973_s17 }
 0x6cc   : > { %v15746_v13 = vcombine.low %v15744_v5, %v15745_v31  ;;  %v15750_v1 = vcombine.high %v15744_v5, %v15745_v31  ;;  %v15752_v31 = vld [vmem:[#allocation51_spill] sm:$0xff] }
 0x6cd   : > { %v13691_v32 = vpop.permute.xlu0 %6582  ;;  %v13693_v62 = vpop.permute.xlu1 %6976 }
 0x6ce   : > { %15743 = vst [vmem:[#allocation17_spill] sm:$0xff] %v13691_v32  ;;  %v9370_v48 = vpack.i.bf16 %v15746_v13, %v5938_v7  ;;  %v6772_v19 = vcombine.low %v13651_v17, %v13691_v32  ;;  %v6756_v7 = vcombine.low %v13497_v2, %v13516_v40  ;;  %v9375_v45 = vpack.i.bf16 %v15750_v1, %v5939_v59  ;;  %v15757_v1 = vld [vmem:[#allocation67_spill] sm:$0xff] }
 0x6cf   : > { %9331 = vrot.lane.b32.xlu0 %v15747_v49, %s9768_s16  ;;  %v13733_v49 = vrot.slane %v6740_v14, %v15552_v12  ;;  %v5585_v13 = vrot.slane %v5571_v8, %v15552_v12  ;;  %v13749_v14 = vrot.slane %v5530_v28, %v10276_v30  ;;  %v5569_v59 = vrot.slane %v5555_v58, %v15552_v12  ;;  %v15756_v28 = vld [vmem:[#allocation64_spill] sm:$0xff] }
 0x6d0   : > { %9371 = vrot.lane.b32.xlu1 %v9370_v48, %s9767_s29  ;;  %v13723_v52 = vrot.slane %v6772_v19, %v15552_v12  ;;  %v5921_v19 = vcombine.high %v13616_v16, %v13599_v10  ;;  %v13752_v17 = vrot.slane %v6756_v7, %v15552_v12  ;;  %v5666_v10 = vcombine.low %v5601_v22, %v5617_v18  ;;  %v15754_v16 = vld [vmem:[#allocation54_spill] sm:$0xff] }
 0x6d1   : > { %v13735_v48 = vpop.permute.xlu0 %6948  ;;  %v13737_v0 = vpop.permute.xlu1 %6560  ;;  %v15755_v8 = vcombine.low %v15753_v9, %v15754_v16  ;;  %v5547_v3 = vcombine.high %v15757_v1, %v15756_v28  ;;  %v13766_v7 = vrot.slane %v5651_v61, %v10276_v30  ;;  %v5977_v32 = vcombine.high %v13527_v26, %v13540_v44  ;;  %v15759_v26 = vld [vmem:[#allocation71_spill] sm:$0xff]  ;;  %v15760_v1 = vld [vmem:[#allocation74_spill] sm:$0xff] }
 0x6d2   : > { %15748 = vst [vmem:[#allocation46_spill] sm:$0xff] %v13735_v48  ;;  %15749 = vst [vmem:[#allocation40_spill] sm:$0xff] %v13737_v0  ;;  %v6836_v5 = vcombine.low %v13723_v52, %v13730_v25  ;;  %v13784_v61 = vrot.slane %v5619_v55, %v10276_v30  ;;  %v5634_v44 = vcombine.low %v5569_v59, %v5585_v13 }
 0x6d3   : > { %9341 = vrot.lane.b32.xlu0 %v15752_v31, %s9770_s14  ;;  %v9380_v24 = vpack.i.bf16 %v15755_v8, %v5940_v51  ;;  %v6804_v31 = vcombine.low %v13733_v49, %v13752_v17  ;;  %v5889_v51 = vcombine.high %v13636_v50, %v13624_v21  ;;  %v13781_v8 = vrot.slane %v5921_v19, %v10276_v30 }
 0x6d4   : > { %9376 = vrot.lane.b32.xlu1 %v9375_v45, %s9770_s14  ;;  %v5993_v28 = vcombine.high %v15759_v26, %v13478_v6  ;;  %v5945_v54 = vcombine.high %v15761_v43, %v15760_v1  ;;  %v13791_v0 = vrot.slane %v6836_v5, %v10276_v30  ;;  %v5961_v21 = vcombine.high %v13452_v36, %v13460_v15 }
 0x6d5   : > { %v13772_v45 = vpop.permute.xlu0 %6956  ;;  %v13774_v58 = vpop.permute.xlu1 %6568  ;;  %v5667_v50 = vcombine.high %v5601_v22, %v5617_v18  ;;  %v13799_v19 = vrot.slane %v5666_v10, %v10276_v30  ;;  %v5941_v6 = vcombine.high %v13701_v27, %v13682_v41  ;;  %v13804_v43 = vrot.slane %v5977_v32, %v15552_v12 }
 0x6d6   : > { %15758 = vst [vmem:[#allocation38_spill] sm:$0xff] %v13772_v45  ;;  %15762 = vst [vmem:[#allocation61_spill] sm:$0xff] %v13791_v0  ;;  %v13807_v55 = vrot.slane %v6804_v31, %v10276_v30  ;;  %v5685_v15 = vcombine.high %v13784_v61, %v13766_v7  ;;  %v5903_v36 = vrot.slane %v5889_v51, %v10276_v30 }
 0x6d7   : > { %9351 = vrot.lane.b32.xlu0 %v15763_v53, %s9772_s26  ;;  %v5635_v18 = vcombine.high %v5569_v59, %v5585_v13  ;;  %v13817_v22 = vrot.slane %v5634_v44, %v10276_v30  ;;  %v5549_v41 = vcombine.high %v13669_v29, %v13710_v57  ;;  %v13822_v32 = vrot.slane %v5993_v28, %v15552_v12 }
 0x6d8   : > { %9381 = vrot.lane.b32.xlu1 %v9380_v24, %s9769_s13  ;;  %15764 = vst [vmem:[#allocation37_spill] sm:$0xff] %v13807_v55  ;;  %v9400_v24 = vpack.i.bf16 %v5683_v35, %v5547_v3  ;;  %v13825_v27 = vrot.slane %v5945_v54, %v15552_v12  ;;  %v15766_v35 = vld [vmem:[#allocation18_spill] sm:$0xff]  ;;  %v15767_v59 = vcombine.low %v13639_v11, %v13619_v20 }
 0x6d9   : > { %v13809_v5 = vpop.permute.xlu0 %6964  ;;  %v13811_v53 = vpop.permute.xlu1 %6576  ;;  %v13839_v28 = vrot.slane %v5667_v50, %v10276_v30  ;;  %v15768_v54 = vcombine.high %v15753_v9, %v15754_v16  ;;  %v5942_v3 = vcombine.low %v5903_v36, %v13781_v8  ;;  %v5975_v31 = vrot.slane %v5961_v21, %v15552_v12 }
 0x6da   : > { %15765 = vst [vmem:[#allocation48_spill] sm:$0xff] %v13809_v5  ;;  %v13836_v10 = vrot.slane %v15767_v59, %v10276_v30  ;;  %v6057_v51 = vcombine.high %v13804_v43, %v13822_v32  ;;  %v5687_v50 = vcombine.high %v13817_v22, %v13799_v19  ;;  %v15770_v9 = vcombine.high %v13664_v23, %v13642_v33 }
 0x6db   : > { %9361 = vrot.lane.b32.xlu0 %v15766_v35, %s9773_s18  ;;  %v9385_v1 = vpack.i.bf16 %v15768_v54, %v5941_v6  ;;  %v13861_v6 = vrot.slane %v5635_v18, %v10276_v30  ;;  %v7130_v59 = vcombine.low %v13735_v48, %v13772_v45  ;;  %v15771_v33 = vcombine.high %v13639_v11, %v13619_v20  ;;  %v15772_v18 = vld [vmem:[#allocation11_spill] sm:$0xff]  ;;  %v15773_v54 = vld [vmem:[#allocation16_spill] sm:$0xff] }
 0x6dc   : > { %9401 = vrot.lane.b32.xlu1 %v9400_v24, %s9768_s16  ;;  %v9410_v24 = vpack.i.bf16 %v5685_v15, %v5549_v41  ;;  %v13858_v16 = vrot.slane %v15770_v9, %v10276_v30  ;;  %v5551_v35 = vcombine.high %v13836_v10, %v13749_v14  ;;  %v6025_v15 = vcombine.high %v13825_v27, %v5975_v31 }
 0x6dd   : > { %v13848_v44 = vpop.permute.xlu0 %6972  ;;  %v13850_v26 = vpop.permute.xlu1 %6584  ;;  %v7178_v41 = vcombine.low %v13653_v37, %v13693_v62  ;;  %v13878_v23 = vrot.slane %v15771_v33, %v10276_v30  ;;  %v15774_v9 = vcombine.low %v15772_v18, %v15773_v54  ;;  %v5943_v4 = vcombine.high %v5903_v36, %v13781_v8 }
 0x6de   : > { %15769 = vst [vmem:[#allocation22_spill] sm:$0xff] %v13848_v44  ;;  %v7162_v21 = vcombine.low %v13809_v5, %v13848_v44  ;;  %v5689_v5 = vcombine.high %v13861_v6, %v13839_v28  ;;  %v6071_v44 = vrot.slane %v6057_v51, %v10276_v30  ;;  %v9420_v11 = vpack.i.bf16 %v5687_v50, %v5551_v35 }
 0x6df   : > { %9386 = vrot.lane.b32.xlu0 %v9385_v1, %s9772_s26  ;;  %v9390_v13 = vpack.i.bf16 %v15774_v9, %v5942_v3  ;;  %v7146_v1 = vcombine.low %v13570_v46, %v13611_v34  ;;  %v15775_v3 = vcombine.high %v12879_v39, %v12888_v47  ;;  %v15777_v36 = vcombine.high %v12646_v60, %v12882_v42  ;;  %v15781_v60 = vld [vmem:[#allocation80_spill] sm:$0xff] }
 0x6e0   : > { %9411 = vrot.lane.b32.xlu1 %v9410_v24, %s9770_s14  ;;  %v7170_v24 = vrot.slane %v7162_v21, %v15552_v12  ;;  %v5553_v45 = vcombine.high %v13878_v23, %v13858_v16  ;;  %v6039_v50 = vrot.slane %v6025_v15, %v10276_v30  ;;  %v7186_v35 = vrot.slane %v7178_v41, %v15552_v12 }
 0x6e1   : > { %v13890_v48 = vpop.permute.xlu0 %6556  ;;  %v13892_v20 = vpop.permute.xlu1 %6950  ;;  %v13898_v8 = vrot.slane %v15775_v3, %v15552_v12  ;;  %v13904_v51 = vrot.slane %v15777_v36, %v15552_v12  ;;  %v7138_v47 = vrot.slane %v7130_v59, %v15552_v12  ;;  %v6009_v39 = vcombine.high %v15781_v60, %v13605_v38  ;;  %v15802_v60 = vld [vmem:[#allocation53_spill] sm:$0xff] }
 0x6e2   : > { %v6024_v42 = vcombine.low %v13825_v27, %v5975_v31  ;;  %v15782_v3 = vcombine.high %v15772_v18, %v15773_v54  ;;  %v9430_v21 = vpack.i.bf16 %v5689_v5, %v5553_v45  ;;  %v7154_v15 = vrot.slane %v7146_v1, %v15552_v12  ;;  %v15784_v27 = vld [vmem:[#allocation34_spill] sm:$0xff]  ;;  %v15785_v31 = vld [vmem:[#allocation25_spill] sm:$0xff] }
 0x6e3   : > { %15776 = vst [vmem:[#allocation73_spill] sm:$0xff] %v13898_v8  ;;  %15778 = vst [vmem:[#allocation51_spill] sm:$0xff] %v13904_v51  ;;  %9391 = vrot.lane.b32.xlu0 %v9390_v13, %s9771_s20  ;;  %v7226_v33 = vcombine.low %v7170_v24, %v7186_v35  ;;  %v5684_v13 = vcombine.low %v13784_v61, %v13766_v7  ;;  %v5686_v45 = vcombine.low %v13817_v22, %v13799_v19 }
 0x6e4   : > { %9421 = vrot.lane.b32.xlu1 %v9420_v11, %s9772_s26  ;;  %v9395_v36 = vpack.i.bf16 %v15782_v3, %v5943_v4  ;;  %v6078_v11 = vcombine.low %v6039_v50, %v6071_v44  ;;  %v5548_v4 = vcombine.low %v13669_v29, %v13710_v57  ;;  %v7194_v5 = vcombine.low %v7138_v47, %v7154_v15  ;;  %v15790_v3 = vld [vmem:[#allocation79_spill] sm:$0xff] }
 0x6e5   : > { %v13922_v41 = vpop.permute.xlu0 %6564  ;;  %v13924_v59 = vpop.permute.xlu1 %6958  ;;  %v5550_v7 = vcombine.low %v13836_v10, %v13749_v14  ;;  %v5552_v61 = vcombine.low %v13878_v23, %v13858_v16  ;;  %v13943_v18 = vrot.slane %v6009_v39, %v10276_v30  ;;  %v13946_v54 = vrot.slane %v6024_v42, %v10276_v30  ;;  %v15787_v16 = vld [vmem:[#allocation13_spill] sm:$0xff]  ;;  %v15788_v23 = vld [vmem:[#allocation19_spill] sm:$0xff] }
 0x6e6   : > { %v6757_v57 = vcombine.high %v13497_v2, %v13516_v40  ;;  %v6079_v29 = vcombine.high %v6039_v50, %v6071_v44  ;;  %v7227_v19 = vcombine.high %v7170_v24, %v7186_v35  ;;  %v13951_v22 = vrot.slane %v7226_v33, %v10276_v30  ;;  %v15791_v42 = vld [vmem:[#allocation77_spill] sm:$0xff] }
 0x6e7   : > { %9396 = vrot.lane.b32.xlu0 %v9395_v36, %s9773_s18  ;;  %v9405_v10 = vpack.i.bf16 %v5684_v13, %v5548_v4  ;;  %v6041_v36 = vcombine.high %v15791_v42, %v15790_v3  ;;  %v6056_v2 = vcombine.low %v13804_v43, %v13822_v32  ;;  %v6837_v40 = vcombine.high %v13723_v52, %v13730_v25 }
 0x6e8   : > { %9431 = vrot.lane.b32.xlu1 %v9430_v21, %s9773_s18  ;;  %15786 = vst [vmem:[#allocation52_spill] sm:$0xff] %v13951_v22  ;;  %v15789_v21 = vcombine.low %v15787_v16, %v15788_v23  ;;  %v9415_v44 = vpack.i.bf16 %v5686_v45, %v5550_v7  ;;  %v7195_v24 = vcombine.high %v7138_v47, %v7154_v15  ;;  %v15794_v45 = vld [vmem:[#allocation40_spill] sm:$0xff] }
 0x6e9   : > { %v13953_v1 = vpop.permute.xlu0 %6572  ;;  %v13955_v14 = vpop.permute.xlu1 %6966  ;;  %v13967_v33 = vrot.slane %v7194_v5, %v10276_v30  ;;  %v5688_v50 = vcombine.low %v13861_v6, %v13839_v28  ;;  %v6789_v35 = vcombine.high %v13529_v63, %v13542_v56  ;;  %v6805_v43 = vcombine.high %v13733_v49, %v13752_v17 }
 0x6ea   : > { %v9460_v39 = vpack.i.bf16 %v15789_v21, %v6078_v11  ;;  %v6652_v25 = vcombine.low %v13811_v53, %v13850_v26  ;;  %v15793_v52 = vcombine.high %v15787_v16, %v15788_v23  ;;  %v13983_v47 = vrot.slane %v7227_v19, %v10276_v30  ;;  %v15795_v16 = vld [vmem:[#allocation33_spill] sm:$0xff] }
 0x6eb   : > { %15792 = vst [vmem:[#allocation54_spill] sm:$0xff] %v13967_v33  ;;  %9406 = vrot.lane.b32.xlu0 %v9405_v10, %s9767_s29  ;;  %v6604_v15 = vcombine.low %v13890_v48, %v13922_v41  ;;  %v7259_v63 = vcombine.high %v13967_v33, %v13951_v22  ;;  %v6055_v17 = vrot.slane %v6041_v36, %v10276_v30  ;;  %v15796_v23 = vld [vmem:[#allocation29_spill] sm:$0xff] }
 0x6ec   : > { %9461 = vrot.lane.b32.xlu1 %v9460_v39, %s9771_s20  ;;  %v9465_v32 = vpack.i.bf16 %v15793_v52, %v6079_v29  ;;  %v13997_v49 = vrot.slane %v6056_v2, %v10276_v30  ;;  %v6851_v13 = vrot.slane %v6837_v40, %v10276_v30  ;;  %v7209_v4 = vrot.slane %v7195_v24, %v10276_v30  ;;  %v15798_v24 = vld [vmem:[#allocation56_spill] sm:$0xff]  ;;  %v15805_v22 = vld [vmem:[#allocation57_spill] sm:$0xff] }
 0x6ed   : > { %v13987_v28 = vpop.permute.xlu0 %6580  ;;  %v13989_v6 = vpop.permute.xlu1 %6974  ;;  %v6620_v5 = vcombine.low %v15794_v45, %v13774_v58  ;;  %v6869_v7 = vcombine.high %v13807_v55, %v13791_v0  ;;  %v6819_v29 = vrot.slane %v6805_v43, %v10276_v30  ;;  %v9425_v10 = vpack.i.bf16 %v5688_v50, %v5552_v61  ;;  %v15804_v55 = vld [vmem:[#allocation17_spill] sm:$0xff] }
 0x6ee   : > { %v6636_v11 = vcombine.low %v13953_v1, %v13987_v28  ;;  %v6073_v21 = vcombine.high %v15796_v23, %v15795_v16  ;;  %v14016_v39 = vrot.slane %v6652_v25, %v15552_v12  ;;  %v14019_v3 = vrot.slane %v6604_v15, %v15552_v12  ;;  %v15807_v16 = vld [vmem:[#allocation50_spill] sm:$0xff] }
 0x6ef   : > { %9416 = vrot.lane.b32.xlu0 %v9415_v44, %s9769_s13  ;;  %v9470_v2 = vpack.i.bf16 %v7259_v63, %v6869_v7  ;;  %v7260_v40 = vcombine.low %v7209_v4, %v13983_v47  ;;  %v15797_v44 = vld [vmem:[#allocation58_spill] sm:$0xff]  ;;  %v6074_v61 = vcombine.low %v13943_v18, %v6055_v17  ;;  %v6075_v50 = vcombine.high %v13943_v18, %v6055_v17 }
 0x6f0   : > { %9466 = vrot.lane.b32.xlu1 %v9465_v32, %s9773_s18  ;;  %v14011_v19 = vrot.slane %v6636_v11, %v15552_v12  ;;  %v6076_v25 = vcombine.low %v13946_v54, %v13997_v49  ;;  %v14033_v52 = vrot.slane %v6620_v5, %v15552_v12  ;;  %v6870_v15 = vcombine.low %v6819_v29, %v6851_v13  ;;  %v15799_v18 = vld [vmem:[#allocation14_spill] sm:$0xff]  ;;  %v15806_v5 = vld [vmem:[#allocation47_spill] sm:$0xff] }
 0x6f1   : > { %v14021_v42 = vpop.permute.xlu0 %6946  ;;  %v14023_v36 = vpop.permute.xlu1 %7740  ;;  %v14040_v63 = vrot.slane %v6757_v57, %v15552_v12  ;;  %v14043_v11 = vrot.slane %v6789_v35, %v15552_v12  ;;  %v15800_v17 = vld [vmem:[#allocation78_spill] sm:$0xff]  ;;  %v7261_v35 = vcombine.high %v7209_v4, %v13983_v47  ;;  %v6773_v33 = vcombine.high %v15805_v22, %v15804_v55  ;;  %v15811_v55 = vld [vmem:[#allocation24_spill] sm:$0xff]  ;;  %v15812_v22 = vld [vmem:[#allocation23_spill] sm:$0xff] }
 0x6f2   : > { %v6700_v32 = vcombine.low %v14011_v19, %v14016_v39  ;;  %v6668_v56 = vcombine.low %v14019_v3, %v14033_v52  ;;  %v9480_v0 = vpack.i.bf16 %v7260_v40, %v6870_v15  ;;  %v7179_v7 = vcombine.high %v13653_v37, %v13693_v62  ;;  %v15814_v62 = vld [vmem:[#allocation38_spill] sm:$0xff] }
 0x6f3   : > { %9426 = vrot.lane.b32.xlu0 %v9425_v10, %s9771_s20  ;;  %v15808_v23 = vcombine.low %v15806_v5, %v15807_v16  ;;  %v15809_v51 = vcombine.high %v15806_v5, %v15807_v16  ;;  %v6871_v47 = vcombine.high %v6819_v29, %v6851_v13  ;;  %v15813_v4 = vcombine.low %v15811_v55, %v15812_v22  ;;  %v15816_v16 = vld [vmem:[#allocation22_spill] sm:$0xff] }
 0x6f4   : > { %9471 = vrot.lane.b32.xlu1 %v9470_v2, %s9768_s16  ;;  %v15801_v2 = vld [vmem:[#allocation12_spill] sm:$0xff]  ;;  %v6653_v15 = vcombine.high %v13811_v53, %v13850_v26  ;;  %v7043_v26 = vcombine.high %v13955_v14, %v13989_v6 }
 0x6f5   : > { %v6955_v38 = vpop.permute.xlu0 %6954  ;;  %v14051_v10 = vpop.permute.xlu1 %7748  ;;  %v15803_v43 = vcombine.high %v15801_v2, %v15802_v60  ;;  %v9440_v9 = vpack.i.bf16 %v15808_v23, %v6074_v61  ;;  %v9445_v8 = vpack.i.bf16 %v15809_v51, %v6075_v50  ;;  %v14068_v60 = vrot.slane %v6700_v32, %v10276_v30  ;;  %v15817_v51 = vld [vmem:[#allocation48_spill] sm:$0xff] }
 0x6f6   : > { %v9450_v37 = vpack.i.bf16 %v15813_v4, %v6076_v25  ;;  %v6621_v23 = vcombine.high %v15794_v45, %v13774_v58  ;;  %v6077_v61 = vcombine.high %v13946_v54, %v13997_v49  ;;  %v14084_v50 = vrot.slane %v6668_v56, %v10276_v30 }
 0x6f7   : > { %v9435_v57 = vpack.i.bf16 %v15803_v43, %v6073_v21  ;;  %15810 = vst [vmem:[#allocation71_spill] sm:$0xff] %v14068_v60  ;;  %v15815_v21 = vld [vmem:[#allocation46_spill] sm:$0xff]  ;;  %v7163_v43 = vcombine.high %v15817_v51, %v15816_v16  ;;  %v6994_v13 = vcombine.low %v14021_v42, %v6955_v38  ;;  %v9490_v32 = vpack.i.bf16 %v7261_v35, %v6871_v47 }
 0x6f8   : > { %9481 = vrot.lane.b32.xlu1 %v9480_v0, %s9767_s29  ;;  %v7131_v40 = vcombine.high %v15815_v21, %v15814_v62  ;;  %15818 = vst [vmem:[#allocation74_spill] sm:$0xff] %v14084_v50  ;;  %v6637_v0 = vcombine.high %v13953_v1, %v13987_v28  ;;  %v14092_v58 = vrot.slane %v6773_v33, %v15552_v12 }
 0x6f9   : > { %9436 = vrot.lane.b32.xlu0 %v9435_v57, %s9768_s16  ;;  %v6963_v29 = vpop.permute.xlu0 %6962  ;;  %v14089_v25 = vpop.permute.xlu1 %7756  ;;  %v14095_v45 = vrot.slane %v7179_v7, %v15552_v12  ;;  %v6605_v56 = vcombine.high %v13890_v48, %v13922_v41  ;;  %v7010_v1 = vcombine.low %v13892_v20, %v13924_v59  ;;  %v6995_v28 = vcombine.high %v14021_v42, %v6955_v38 }
 0x6fa   : > { %v14109_v7 = vrot.slane %v7131_v40, %v15552_v12  ;;  %v14112_v53 = vrot.slane %v6621_v23, %v15552_v12  ;;  %v7042_v48 = vcombine.low %v13955_v14, %v13989_v6  ;;  %v14119_v41 = vrot.slane %v7163_v43, %v15552_v12 }
 0x6fb   : > { %v14124_v38 = vrot.slane %v6637_v0, %v15552_v12  ;;  %v7002_v42 = vrot.slane %v6994_v13, %v15552_v12  ;;  %v14130_v35 = vrot.slane %v6653_v15, %v15552_v12  ;;  %v6701_v14 = vcombine.high %v14011_v19, %v14016_v39 }
 0x6fc   : > { %9491 = vrot.lane.b32.xlu1 %v9490_v32, %s9770_s14  ;;  %v14135_v4 = vrot.slane %v6605_v56, %v15552_v12  ;;  %v14141_v62 = vrot.slane %v6995_v28, %v15552_v12  ;;  %v7050_v21 = vrot.slane %v7042_v48, %v15552_v12  ;;  %v14146_v40 = vrot.slane %v7043_v26, %v15552_v12 }
 0x6fd   : > { %9441 = vrot.lane.b32.xlu0 %v9440_v9, %s9767_s29  ;;  %v7011_v9 = vcombine.high %v13892_v20, %v13924_v59  ;;  %v6971_v5 = vpop.permute.xlu0 %6970  ;;  %v14127_v57 = vpop.permute.xlu1 %7764  ;;  %v6669_v20 = vcombine.high %v14019_v3, %v14033_v52  ;;  %v7018_v59 = vrot.slane %v7010_v1, %v15552_v12  ;;  %v6716_v3 = vcombine.low %v14124_v38, %v14130_v35 }
 0x6fe   : > { %v7026_v6 = vcombine.low %v6963_v29, %v6971_v5  ;;  %v7027_v47 = vcombine.high %v6963_v29, %v6971_v5  ;;  %v6715_v43 = vrot.slane %v6701_v14, %v10276_v30  ;;  %v15819_v32 = vcombine.high %v15800_v17, %v15799_v18 }
 0x6ff   : > { %v14153_v23 = vrot.slane %v7011_v9, %v15552_v12  ;;  %v7058_v52 = vcombine.low %v7002_v42, %v7018_v59  ;;  %v7059_v16 = vcombine.high %v7002_v42, %v7018_v59  ;;  %v15820_v56 = vcombine.high %v13570_v46, %v13611_v34 }
 0x700   : > { %v7034_v19 = vrot.slane %v7026_v6, %v15552_v12  ;;  %v14150_v39 = vrot.slane %v7027_v47, %v15552_v12  ;;  %v14168_v15 = vrot.slane %v15819_v32, %v15552_v12  ;;  %v7242_v28 = vcombine.low %v14119_v41, %v14095_v45 }
 0x701   : > { %9446 = vrot.lane.b32.xlu0 %v9445_v8, %s9770_s14  ;;  %v14157_v51 = vpop.permute.xlu0 %7736  ;;  %v14159_v8 = vpop.permute.xlu1 %7738  ;;  %v14174_v1 = vrot.slane %v15820_v56, %v15552_v12  ;;  %v7074_v48 = vcombine.low %v14141_v62, %v14153_v23  ;;  %v6683_v26 = vrot.slane %v6669_v20, %v10276_v30  ;;  %v6684_v18 = vcombine.low %v14135_v4, %v14112_v53 }
 0x702   : > { %v7090_v0 = vcombine.low %v7034_v19, %v7050_v21  ;;  %v7091_v13 = vcombine.high %v7034_v19, %v7050_v21  ;;  %v7106_v29 = vcombine.low %v14150_v39, %v14146_v40  ;;  %v14189_v34 = vrot.slane %v7058_v52, %v10276_v30 }
 0x703   : > { %v7073_v9 = vrot.slane %v7059_v16, %v10276_v30  ;;  %v15823_v14 = vcombine.high %v15811_v55, %v15812_v22  ;;  %v6852_v47 = vcombine.low %v14092_v58, %v14043_v11  ;;  %v7210_v20 = vcombine.low %v14109_v7, %v14174_v1 }
 0x704   : > { %v14185_v17 = vrot.slane %v7090_v0, %v10276_v30  ;;  %v7105_v46 = vrot.slane %v7091_v13, %v10276_v30  ;;  %15822 = vst [vmem:[#allocation49_spill] sm:$0xff] %v14189_v34  ;;  %v14193_v42 = vrot.slane %v7106_v29, %v10276_v30  ;;  %v14210_v59 = vrot.slane %v6716_v3, %v10276_v30 }
 0x705   : > { %9451 = vrot.lane.b32.xlu0 %v9450_v37, %s9769_s13  ;;  %v14195_v5 = vpop.permute.xlu0 %7744  ;;  %v14197_v37 = vpop.permute.xlu1 %7746  ;;  %v9455_v6 = vpack.i.bf16 %v15823_v14, %v6077_v61  ;;  %v6735_v21 = vcombine.high %v6683_v26, %v6715_v43  ;;  %v14213_v19 = vrot.slane %v7074_v48, %v10276_v30  ;;  %v6733_v49 = vcombine.high %v14084_v50, %v14068_v60  ;;  %v15826_v14 = vld [vmem:[#allocation31_spill] sm:$0xff] }
 0x706   : > { %15821 = vst [vmem:[#allocation72_spill] sm:$0xff] %v14185_v17  ;;  %v7125_v54 = vcombine.high %v7073_v9, %v7105_v46  ;;  %v7123_v55 = vcombine.high %v14189_v34, %v14185_v17  ;;  %v6820_v22 = vcombine.low %v14168_v15, %v14040_v63  ;;  %v14223_v61 = vrot.slane %v7242_v28, %v10276_v30  ;;  %v15837_v50 = vld [vmem:[#allocation63_spill] sm:$0xff] }
 0x707   : > { %v14226_v3 = vrot.slane %v6684_v18, %v10276_v30  ;;  %v7918_v52 = vcombine.low %v14157_v51, %v14195_v5  ;;  %v7126_v32 = vcombine.low %v14213_v19, %v14193_v42  ;;  %v7124_v56 = vcombine.low %v7073_v9, %v7105_v46  ;;  %v15825_v18 = vld [vmem:[#allocation32_spill] sm:$0xff]  ;;  %v15828_v9 = vld [vmem:[#allocation21_spill] sm:$0xff] }
 0x708   : > { %v9495_v13 = vpack.i.bf16 %v7125_v54, %v6735_v21  ;;  %v9475_v29 = vpack.i.bf16 %v7123_v55, %v6733_v49  ;;  %v15824_v28 = vcombine.high %v15798_v24, %v15797_v44  ;;  %v6860_v33 = vrot.slane %v6852_v47, %v10276_v30  ;;  %v15827_v24 = vld [vmem:[#allocation35_spill] sm:$0xff] }
 0x709   : > { %9456 = vrot.lane.b32.xlu0 %v9455_v6, %s9772_s26  ;;  %v14230_v16 = vpop.permute.xlu0 %7752  ;;  %v14232_v0 = vpop.permute.xlu1 %7754  ;;  %v7441_v6 = vcombine.high %v15826_v14, %v15825_v18  ;;  %v7218_v60 = vrot.slane %v7210_v20, %v10276_v30  ;;  %v7934_v21 = vcombine.low %v14023_v36, %v14051_v10  ;;  %v6736_v46 = vcombine.low %v14226_v3, %v14210_v59  ;;  %v15831_v14 = vld [vmem:[#allocation60_spill] sm:$0xff] }
 0x70a   : > { %v14240_v48 = vrot.slane %v15824_v28, %v15552_v12  ;;  %9496 = vrot.lane.b32.xlu1 %v9495_v13, %s9770_s14  ;;  %v6734_v44 = vcombine.low %v6683_v26, %v6715_v43  ;;  %v7393_v54 = vcombine.high %v15828_v9, %v15827_v24  ;;  %v6828_v49 = vrot.slane %v6820_v22, %v10276_v30  ;;  %v15832_v24 = vld [vmem:[#allocation41_spill] sm:$0xff] }
 0x70b   : > { %v7966_v47 = vcombine.low %v14089_v25, %v14127_v57  ;;  %v7262_v20 = vcombine.low %v7218_v60, %v14223_v61  ;;  %v14259_v55 = vrot.slane %v7918_v52, %v15552_v12  ;;  %v9505_v28 = vpack.i.bf16 %v7126_v32, %v6736_v46  ;;  %v15833_v52 = vld [vmem:[#allocation73_spill] sm:$0xff]  ;;  %v15834_v32 = vld [vmem:[#allocation42_spill] sm:$0xff] }
 0x70c   : > { %v9485_v18 = vpack.i.bf16 %v7124_v56, %v6734_v44  ;;  %v15829_v26 = vcombine.high %v15785_v31, %v15784_v27  ;;  %v7625_v9 = vcombine.high %v15832_v24, %v15831_v14  ;;  %v15835_v56 = vld [vmem:[#allocation44_spill] sm:$0xff]  ;;  %v7942_v44 = vrot.slane %v7934_v21, %v15552_v12 }
 0x70d   : > { %9476 = vrot.lane.b32.xlu0 %v9475_v29, %s9768_s16  ;;  %v14261_v13 = vpop.permute.xlu0 %7760  ;;  %v14263_v29 = vpop.permute.xlu1 %7762  ;;  %v7425_v46 = vcombine.high %v15835_v56, %v15834_v32  ;;  %v6872_v27 = vcombine.low %v6828_v49, %v6860_v33  ;;  %v14285_v31 = vrot.slane %v7393_v54, %v15552_v12  ;;  %v7974_v14 = vrot.slane %v7966_v47, %v15552_v12  ;;  %v15836_v56 = vld [vmem:[#allocation45_spill] sm:$0xff] }
 0x70e   : > { %v14271_v22 = vrot.slane %v15829_v26, %v15552_v12  ;;  %v7950_v2 = vcombine.low %v14230_v16, %v14261_v13  ;;  %9506 = vrot.lane.b32.xlu1 %v9505_v28, %s9769_s13  ;;  %v7243_v26 = vcombine.high %v14119_v41, %v14095_v45  ;;  %v14292_v43 = vrot.slane %v7441_v6, %v15552_v12 }
 0x70f   : > { %v7982_v21 = vcombine.low %v14259_v55, %v7942_v44  ;;  %v7263_v54 = vcombine.high %v7218_v60, %v14223_v61  ;;  %v7457_v17 = vcombine.high %v15837_v50, %v15836_v56  ;;  %v14309_v47 = vrot.slane %v7425_v46, %v15552_v12  ;;  %v15838_v50 = vld [vmem:[#allocation59_spill] sm:$0xff]  ;;  %v15839_v61 = vld [vmem:[#allocation30_spill] sm:$0xff] }
 0x710   : > { %15830 = vst [vmem:[#allocation18_spill] sm:$0xff] %v14271_v22  ;;  %v7958_v24 = vrot.slane %v7950_v2, %v15552_v12  ;;  %v7472_v45 = vcombine.low %v14285_v31, %v14271_v22  ;;  %v7211_v2 = vcombine.high %v14109_v7, %v14174_v1  ;;  %v6873_v60 = vcombine.high %v6828_v49, %v6860_v33 }
 0x711   : > { %9486 = vrot.lane.b32.xlu0 %v9485_v18, %s9767_s29  ;;  %v14295_v32 = vpop.permute.xlu0 %7734  ;;  %v14297_v28 = vpop.permute.xlu1 %8130  ;;  %v9500_v18 = vpack.i.bf16 %v7262_v20, %v6872_v27  ;;  %v6853_v20 = vcombine.high %v14092_v58, %v14043_v11  ;;  %v7489_v27 = vcombine.high %v15839_v61, %v15838_v50  ;;  %v6821_v56 = vcombine.high %v14168_v15, %v14040_v63 }
 0x712   : > { %v8014_v41 = vcombine.low %v7958_v24, %v7974_v14  ;;  %v14319_v7 = vrot.slane %v7243_v26, %v10276_v30  ;;  %v14325_v46 = vrot.slane %v7982_v21, %v10276_v30  ;;  %v8015_v6 = vcombine.high %v7958_v24, %v7974_v14  ;;  %v15840_v26 = vld [vmem:[#allocation66_spill] sm:$0xff] }
 0x713   : > { %v9510_v33 = vpack.i.bf16 %v7263_v54, %v6873_v60  ;;  %v7127_v49 = vcombine.high %v14213_v19, %v14193_v42  ;;  %v7225_v15 = vrot.slane %v7211_v2, %v10276_v30  ;;  %v14339_v21 = vrot.slane %v7625_v9, %v10276_v30  ;;  %v15842_v60 = vld [vmem:[#allocation36_spill] sm:$0xff] }
 0x714   : > { %v14322_v1 = vrot.slane %v8014_v41, %v10276_v30  ;;  %v6867_v14 = vrot.slane %v6853_v20, %v10276_v30  ;;  %v7983_v24 = vcombine.high %v14259_v55, %v7942_v44  ;;  %v6737_v19 = vcombine.high %v14226_v3, %v14210_v59  ;;  %v15843_v20 = vld [vmem:[#allocation55_spill] sm:$0xff] }
 0x715   : > { %9501 = vrot.lane.b32.xlu0 %v9500_v18, %s9769_s13  ;;  %v14327_v11 = vpop.permute.xlu0 %7742  ;;  %v14329_v58 = vpop.permute.xlu1 %8138  ;;  %v15841_v18 = vld [vmem:[#allocation69_spill] sm:$0xff]  ;;  %v6835_v2 = vrot.slane %v6821_v56, %v10276_v30  ;;  %v7264_v9 = vcombine.low %v7225_v15, %v14319_v7  ;;  %v15844_v50 = vcombine.high %v15842_v60, %v15843_v20  ;;  %v14359_v44 = vrot.slane %v8015_v6, %v10276_v30 }
 0x716   : > { %v7657_v41 = vcombine.high %v15841_v18, %v15840_v26  ;;  %v8047_v42 = vcombine.high %v14325_v46, %v14322_v1  ;;  %v7782_v61 = vcombine.low %v14295_v32, %v14327_v11  ;;  %v9520_v54 = vpack.i.bf16 %v7127_v49, %v6737_v19  ;;  %v15846_v19 = vld [vmem:[#allocation70_spill] sm:$0xff] }
 0x717   : > { %v14356_v55 = vrot.slane %v15844_v50, %v10276_v30  ;;  %v14370_v60 = vrot.slane %v7457_v17, %v10276_v30  ;;  %v14373_v6 = vrot.slane %v7489_v27, %v10276_v30  ;;  %v14376_v20 = vrot.slane %v7983_v24, %v10276_v30  ;;  %v15845_v17 = vld [vmem:[#allocation68_spill] sm:$0xff] }
 0x718   : > { %v7798_v50 = vcombine.low %v14159_v8, %v14197_v37  ;;  %v6874_v49 = vcombine.low %v6835_v2, %v6867_v14  ;;  %v14387_v27 = vrot.slane %v7472_v45, %v10276_v30  ;;  %v7790_v24 = vrot.slane %v7782_v61, %v15552_v12 }
 0x719   : > { %9511 = vrot.lane.b32.xlu0 %v9510_v33, %s9772_s26  ;;  %v7751_v59 = vpop.permute.xlu0 %7750  ;;  %v14363_v3 = vpop.permute.xlu1 %8146  ;;  %v9515_v33 = vpack.i.bf16 %v8047_v42, %v7657_v41  ;;  %v7658_v56 = vcombine.low %v14356_v55, %v14339_v21  ;;  %v7830_v41 = vcombine.low %v14232_v0, %v14263_v29  ;;  %v6875_v42 = vcombine.high %v6835_v2, %v6867_v14 }
 0x71a   : > { %v9525_v34 = vpack.i.bf16 %v7264_v9, %v6874_v49  ;;  %v6717_v14 = vcombine.high %v14124_v38, %v14130_v35  ;;  %v7265_v45 = vcombine.high %v7225_v15, %v14319_v7  ;;  %v7107_v61 = vcombine.high %v14150_v39, %v14146_v40 }
 0x71b   : > { %9516 = vrot.lane.b32.xlu1 %v9515_v33, %s9768_s16  ;;  %v7806_v22 = vrot.slane %v7798_v50, %v15552_v12  ;;  %v7831_v9 = vcombine.high %v14232_v0, %v14263_v29  ;;  %v7783_v49 = vcombine.high %v14295_v32, %v14327_v11  ;;  %v7075_v38 = vcombine.high %v14141_v62, %v14153_v23 }
 0x71c   : > { %v7799_v35 = vcombine.high %v14159_v8, %v14197_v37  ;;  %v7838_v7 = vrot.slane %v7830_v41, %v15552_v12  ;;  %v6685_v39 = vcombine.high %v14135_v4, %v14112_v53  ;;  %v14423_v62 = vrot.slane %v6717_v14, %v10276_v30 }
 0x71d   : > { %9521 = vrot.lane.b32.xlu0 %v9520_v54, %s9772_s26  ;;  %v7759_v26 = vpop.permute.xlu0 %7758  ;;  %v14390_v18 = vpop.permute.xlu1 %8154  ;;  %v8048_v54 = vcombine.low %v14376_v20, %v14359_v44  ;;  %v7846_v15 = vcombine.low %v7790_v24, %v7806_v22  ;;  %v9545_v37 = vpack.i.bf16 %v7265_v45, %v6875_v42  ;;  %v14426_v11 = vrot.slane %v7107_v61, %v10276_v30 }
 0x71e   : > { %v7814_v2 = vcombine.low %v7751_v59, %v7759_v26  ;;  %v7815_v63 = vcombine.high %v7751_v59, %v7759_v26  ;;  %v14429_v53 = vrot.slane %v7831_v9, %v15552_v12  ;;  %v14432_v4 = vrot.slane %v7783_v49, %v15552_v12 }
 0x71f   : > { %9526 = vrot.lane.b32.xlu1 %v9525_v34, %s9771_s20  ;;  %v9535_v32 = vpack.i.bf16 %v8048_v54, %v7658_v56  ;;  %v14436_v26 = vrot.slane %v7075_v38, %v10276_v30  ;;  %v14439_v59 = vrot.slane %v7799_v35, %v15552_v12  ;;  %v7951_v56 = vcombine.high %v14230_v16, %v14261_v13 }
 0x720   : > { %v7822_v40 = vrot.slane %v7814_v2, %v15552_v12  ;;  %v14416_v0 = vrot.slane %v7815_v63, %v15552_v12  ;;  %v7847_v63 = vcombine.high %v7790_v24, %v7806_v22  ;;  %v14447_v41 = vrot.slane %v7846_v15, %v10276_v30 }
 0x721   : > { %v14418_v29 = vpop.permute.xlu0 %8126  ;;  %v14420_v34 = vpop.permute.xlu1 %8128  ;;  %v8049_v14 = vcombine.high %v14376_v20, %v14359_v44  ;;  %v14459_v16 = vrot.slane %v6685_v39, %v10276_v30  ;;  %v7935_v13 = vcombine.high %v14023_v36, %v14051_v10  ;;  %v7967_v2 = vcombine.high %v14089_v25, %v14127_v57 }
 0x722   : > { %v7878_v23 = vcombine.low %v7822_v40, %v7838_v7  ;;  %v7879_v8 = vcombine.high %v7822_v40, %v7838_v7  ;;  %v7894_v22 = vcombine.low %v14416_v0, %v14429_v53  ;;  %v7919_v45 = vcombine.high %v14157_v51, %v14195_v5 }
 0x723   : > { %9536 = vrot.lane.b32.xlu1 %v9535_v32, %s9767_s29  ;;  %v7861_v61 = vrot.slane %v7847_v63, %v10276_v30  ;;  %v7862_v9 = vcombine.low %v14432_v4, %v14439_v59  ;;  %v7128_v20 = vcombine.low %v14436_v26, %v14426_v11  ;;  %v14476_v36 = vrot.slane %v7951_v56, %v15552_v12 }
 0x724   : > { %v14444_v50 = vrot.slane %v7878_v23, %v10276_v30  ;;  %v7893_v42 = vrot.slane %v7879_v8, %v10276_v30  ;;  %v6738_v10 = vcombine.low %v14459_v16, %v14423_v62  ;;  %v15847_v25 = vcombine.low %v14309_v47, %v14292_v43 }
 0x725   : > { %v14452_v24 = vpop.permute.xlu0 %8134  ;;  %v14454_v54 = vpop.permute.xlu1 %8136  ;;  %v15848_v51 = vcombine.high %v14309_v47, %v14292_v43  ;;  %v7902_v49 = vrot.slane %v7894_v22, %v10276_v30  ;;  %v15849_v7 = vcombine.high %v14356_v55, %v14339_v21  ;;  %v15850_v39 = vcombine.high %v15846_v19, %v15845_v17 }
 0x726   : > { %v7911_v44 = vcombine.high %v14447_v41, %v14444_v50  ;;  %v14484_v57 = vrot.slane %v15847_v25, %v10276_v30  ;;  %v7913_v32 = vcombine.high %v7861_v61, %v7893_v42  ;;  %v14504_v23 = vrot.slane %v7935_v13, %v15552_v12 }
 0x727   : > { %9546 = vrot.lane.b32.xlu1 %v9545_v37, %s9773_s18  ;;  %v14490_v5 = vrot.slane %v15848_v51, %v10276_v30  ;;  %v9555_v40 = vpack.i.bf16 %v8049_v14, %v15849_v7  ;;  %v14507_v43 = vrot.slane %v7967_v2, %v15552_v12  ;;  %v14510_v47 = vrot.slane %v7919_v45, %v15552_v12 }
 0x728   : > { %v9530_v15 = vpack.i.bf16 %v7911_v44, %v15850_v39  ;;  %v7523_v8 = vcombine.high %v14370_v60, %v14373_v6  ;;  %v7870_v21 = vrot.slane %v7862_v9, %v10276_v30  ;;  %v8308_v55 = vcombine.low %v14418_v29, %v14452_v24 }
 0x729   : > { %v14493_v38 = vpop.permute.xlu0 %8142  ;;  %v14495_v35 = vpop.permute.xlu1 %8144  ;;  %v9540_v37 = vpack.i.bf16 %v7128_v20, %v6738_v10  ;;  %v8030_v63 = vcombine.low %v14476_v36, %v14507_v43  ;;  %v8324_v56 = vcombine.low %v14297_v28, %v14329_v58  ;;  %v7895_v22 = vcombine.high %v14416_v0, %v14429_v53  ;;  %v15861_v20 = vld [vmem:[#allocation62_spill] sm:$0xff] }
 0x72a   : > { %9531 = vrot.lane.b32.xlu0 %v9530_v15, %s9768_s16  ;;  %v8356_v14 = vcombine.low %v14363_v3, %v14390_v18  ;;  %v9565_v45 = vpack.i.bf16 %v7913_v32, %v7523_v8  ;;  %v7914_v9 = vcombine.low %v7870_v21, %v7902_v49  ;;  %v7912_v44 = vcombine.low %v7861_v61, %v7893_v42 }
 0x72b   : > { %9556 = vrot.lane.b32.xlu1 %v9555_v40, %s9770_s14  ;;  %v7998_v10 = vcombine.low %v14510_v47, %v14504_v23  ;;  %v7524_v0 = vcombine.low %v14387_v27, %v14484_v57  ;;  %v7522_v53 = vcombine.low %v14370_v60, %v14373_v6  ;;  %v7863_v51 = vcombine.high %v14432_v4, %v14439_v59 }
 0x72c   : > { %v14544_v42 = vrot.slane %v8308_v55, %v15552_v12  ;;  %v7129_v61 = vcombine.high %v14436_v26, %v14426_v11  ;;  %v8038_v7 = vrot.slane %v8030_v63, %v10276_v30  ;;  %v14552_v40 = vrot.slane %v8324_v56, %v15552_v12 }
 0x72d   : > { %v14527_v13 = vpop.permute.xlu0 %8150  ;;  %v14529_v2 = vpop.permute.xlu1 %8152  ;;  %v14555_v60 = vrot.slane %v8356_v14, %v15552_v12  ;;  %v14561_v4 = vrot.slane %v7895_v22, %v10276_v30  ;;  %v9575_v15 = vpack.i.bf16 %v7914_v9, %v7524_v0  ;;  %v9550_v11 = vpack.i.bf16 %v7912_v44, %v7522_v53  ;;  %v15855_v9 = vld [vmem:[#allocation27_spill] sm:$0xff] }
 0x72e   : > { %v8340_v25 = vcombine.low %v14493_v38, %v14527_v13  ;;  %9541 = vrot.lane.b32.xlu0 %v9540_v37, %s9771_s20  ;;  %v7915_v26 = vcombine.high %v7870_v21, %v7902_v49  ;;  %v8006_v32 = vrot.slane %v7998_v10, %v10276_v30  ;;  %v7525_v55 = vcombine.high %v14387_v27, %v14484_v57  ;;  %v15852_v57 = vld [vmem:[#allocation18_spill] sm:$0xff] }
 0x72f   : > { %9566 = vrot.lane.b32.xlu1 %v9565_v45, %s9770_s14  ;;  %v15851_v37 = vcombine.low %v14240_v48, %v15833_v52  ;;  %v14577_v56 = vrot.slane %v7863_v51, %v10276_v30  ;;  %v8372_v22 = vcombine.low %v14544_v42, %v14552_v40  ;;  %v6739_v49 = vcombine.high %v14459_v16, %v14423_v62  ;;  %v15854_v45 = vld [vmem:[#allocation51_spill] sm:$0xff] }
 0x730   : > { %v14558_v6 = vrot.slane %v8340_v25, %v15552_v12  ;;  %v8031_v27 = vcombine.high %v14476_v36, %v14507_v43  ;;  %v15853_v21 = vcombine.high %v14285_v31, %v15852_v57  ;;  %v15856_v44 = vcombine.low %v15854_v45, %v15855_v9 }
 0x731   : > { %v14563_v59 = vpop.permute.xlu0 %8124  ;;  %v14565_v39 = vpop.permute.xlu1 %9336  ;;  %v7648_v63 = vrot.slane %v15851_v37, %v10276_v30  ;;  %v8050_v25 = vcombine.low %v8006_v32, %v8038_v7  ;;  %v9585_v16 = vpack.i.bf16 %v7915_v26, %v7525_v55  ;;  %v9560_v36 = vpack.i.bf16 %v7129_v61, %v6739_v49 }
 0x732   : > { %v8404_v8 = vcombine.low %v14558_v6, %v14555_v60  ;;  %9551 = vrot.lane.b32.xlu0 %v9550_v11, %s9767_s29  ;;  %v14591_v14 = vrot.slane %v15853_v21, %v10276_v30  ;;  %v7616_v10 = vrot.slane %v15856_v44, %v10276_v30  ;;  %v7916_v31 = vcombine.low %v14577_v56, %v14561_v4 }
 0x733   : > { %9576 = vrot.lane.b32.xlu1 %v9575_v15, %s9769_s13  ;;  %v7641_v43 = vcombine.high %v14240_v48, %v15833_v52  ;;  %v7999_v15 = vcombine.high %v14510_v47, %v14504_v23  ;;  %v14615_v26 = vrot.slane %v8372_v22, %v10276_v30  ;;  %v7609_v61 = vcombine.high %v15854_v45, %v15855_v9 }
 0x734   : > { %v14598_v0 = vrot.slane %v8404_v8, %v10276_v30  ;;  %v7660_v51 = vcombine.low %v7616_v10, %v7648_v63  ;;  %v7526_v11 = vcombine.low %v14591_v14, %v14490_v5  ;;  %v8045_v8 = vrot.slane %v8031_v27, %v10276_v30 }
 0x735   : > { %v14600_v53 = vpop.permute.xlu0 %8132  ;;  %v14602_v62 = vpop.permute.xlu1 %9346  ;;  %v8051_v37 = vcombine.high %v8006_v32, %v8038_v7  ;;  %v7655_v22 = vrot.slane %v7641_v43, %v10276_v30  ;;  %v8013_v57 = vrot.slane %v7999_v15, %v10276_v30  ;;  %v8188_v21 = vcombine.low %v14420_v34, %v14454_v54 }
 0x736   : > { %9561 = vrot.lane.b32.xlu0 %v9560_v36, %s9773_s18  ;;  %v9570_v48 = vpack.i.bf16 %v8050_v25, %v7660_v51  ;;  %v8172_v52 = vcombine.low %v14563_v59, %v14600_v53  ;;  %v9595_v55 = vpack.i.bf16 %v7916_v31, %v7526_v11  ;;  %v7661_v27 = vcombine.high %v7616_v10, %v7648_v63 }
 0x737   : > { %9586 = vrot.lane.b32.xlu1 %v9585_v16, %s9772_s26  ;;  %v8220_v45 = vcombine.low %v14495_v35, %v14529_v2  ;;  %v7623_v7 = vrot.slane %v7609_v61, %v10276_v30  ;;  %v8437_v16 = vcombine.high %v14615_v26, %v14598_v0  ;;  %v8052_v36 = vcombine.low %v8013_v57, %v8045_v8 }
 0x738   : > { %v8180_v32 = vrot.slane %v8172_v52, %v15552_v12  ;;  %v9580_v25 = vpack.i.bf16 %v8051_v37, %v7661_v27  ;;  %v8196_v43 = vrot.slane %v8188_v21, %v15552_v12  ;;  %v8053_v10 = vcombine.high %v8013_v57, %v8045_v8 }
 0x739   : > { %v8141_v23 = vpop.permute.xlu0 %8140  ;;  %v14622_v47 = vpop.permute.xlu1 %9356  ;;  %v7662_v63 = vcombine.low %v7623_v7, %v7655_v22  ;;  %v8228_v51 = vrot.slane %v8220_v45, %v15552_v12  ;;  %v8309_v37 = vcombine.high %v14418_v29, %v14452_v24  ;;  %v8341_v21 = vcombine.high %v14493_v38, %v14527_v13 }
 0x73a   : > { %9571 = vrot.lane.b32.xlu0 %v9570_v48, %s9769_s13  ;;  %v8236_v11 = vcombine.low %v8180_v32, %v8196_v43  ;;  %v8325_v8 = vcombine.high %v14297_v28, %v14329_v58  ;;  %v7917_v24 = vcombine.high %v14577_v56, %v14561_v4  ;;  %v8405_v28 = vcombine.high %v14558_v6, %v14555_v60 }
 0x73b   : > { %9596 = vrot.lane.b32.xlu1 %v9595_v55, %s9771_s20  ;;  %v9590_v52 = vpack.i.bf16 %v8052_v36, %v7662_v63  ;;  %v7663_v55 = vcombine.high %v7623_v7, %v7655_v22  ;;  %v8221_v22 = vcombine.high %v14495_v35, %v14529_v2  ;;  %v8173_v58 = vcombine.high %v14563_v59, %v14600_v53 }
 0x73c   : > { %v8237_v38 = vcombine.high %v8180_v32, %v8196_v43  ;;  %v14670_v13 = vrot.slane %v8236_v11, %v10276_v30  ;;  %v8323_v35 = vrot.slane %v8309_v37, %v15552_v12  ;;  %v8189_v2 = vcombine.high %v14420_v34, %v14454_v54  ;;  %v14712_v11 = vld [vmem:[%s9977_s19 + $0x8] sm:$0xff]  ;;  %v14720_v37 = vld [vmem:[%s9977_s19] sm:$0xff] }
 0x73d   : > { %v8149_v9 = vpop.permute.xlu0 %8148  ;;  %v14636_v44 = vpop.permute.xlu1 %9366  ;;  %v8355_v4 = vrot.slane %v8341_v21, %v15552_v12  ;;  %v7527_v60 = vcombine.high %v14591_v14, %v14490_v5  ;;  %v8373_v6 = vcombine.high %v14544_v42, %v14552_v40  ;;  %v8339_v34 = vrot.slane %v8325_v8, %v15552_v12  ;;  %v14723_v21 = vld [vmem:[%s9977_s19 + $0x20] sm:$0xff] }
 0x73e   : > { %v8204_v31 = vcombine.low %v8141_v23, %v8149_v9  ;;  %9581 = vrot.lane.b32.xlu0 %v9580_v25, %s9772_s26  ;;  %v8205_v57 = vcombine.high %v8141_v23, %v8149_v9  ;;  %v9600_v25 = vpack.i.bf16 %v8053_v10, %v7663_v55  ;;  %v8419_v5 = vrot.slane %v8405_v28, %v10276_v30  ;;  %v14742_v28 = vld [vmem:[%s9977_s19 + $0x38] sm:$0xff]  ;;  %v15867_v55 = vld [vmem:[#allocation39_spill] sm:$0xff] }
 0x73f   : > { %8473 = vrot.lane.b32.xlu1 %v8437_v16, %s9768_s16  ;;  %v8357_v16 = vcombine.high %v14363_v3, %v14390_v18  ;;  %v9605_v23 = vpack.i.bf16 %v7917_v24, %v7527_v60  ;;  %v14695_v42 = vrot.slane %v8221_v22, %v15552_v12  ;;  %v8187_v40 = vrot.slane %v8173_v58, %v15552_v12  ;;  %v14739_v24 = vld [vmem:[%s9977_s19 + $0x18] sm:$0xff]  ;;  %v15866_v58 = vld [vmem:[#allocation43_spill] sm:$0xff] }
 0x740   : > { %v8212_v15 = vrot.slane %v8204_v31, %v15552_v12  ;;  %v14685_v59 = vrot.slane %v8205_v57, %v15552_v12  ;;  %v8251_v14 = vrot.slane %v8237_v38, %v10276_v30  ;;  %v8388_v9 = vcombine.low %v8323_v35, %v8339_v34 }
 0x741   : > { %v14645_v61 = vpop.permute.xlu0 %9331  ;;  %v8371_v54 = vrot.slane %v8357_v16, %v15552_v12  ;;  %v8203_v36 = vrot.slane %v8189_v2, %v15552_v12  ;;  %v8387_v10 = vrot.slane %v8373_v6, %v10276_v30  ;;  %v14734_v16 = vld [vmem:[%s9977_s19 + $0x30] sm:$0xff] }
 0x742   : > { %v14647_v48 = vpop.permute.xlu1 %9371  ;;  %v8268_v27 = vcombine.low %v8212_v15, %v8228_v51  ;;  %v8269_v45 = vcombine.high %v8212_v15, %v8228_v51  ;;  %9591 = vrot.lane.b32.xlu0 %v9590_v52, %s9771_s20  ;;  %v8284_v43 = vcombine.low %v14685_v59, %v14695_v42  ;;  %v8389_v15 = vcombine.high %v8323_v35, %v8339_v34  ;;  %v14715_v52 = vld [vmem:[%s9977_s19 + $0x28] sm:$0xff] }
 0x743   : > { %v8420_v31 = vcombine.low %v8355_v4, %v8371_v54  ;;  %v8252_v8 = vcombine.low %v8187_v40, %v8203_v36  ;;  %v8421_v38 = vcombine.high %v8355_v4, %v8371_v54  ;;  %v8253_v2 = vcombine.high %v8187_v40, %v8203_v36 }
 0x744   : > { %v14661_v29 = vrot.slane %v8268_v27, %v10276_v30  ;;  %v8283_v56 = vrot.slane %v8269_v45, %v10276_v30  ;;  %v8438_v45 = vcombine.low %v8387_v10, %v8419_v5  ;;  %v8292_v60 = vrot.slane %v8284_v43, %v10276_v30 }
 0x745   : > { %v14672_v18 = vpop.permute.xlu0 %9341  ;;  %v14747_v35 = vrot.slane %v8420_v31, %v10276_v30  ;;  %v8396_v34 = vrot.slane %v8388_v9, %v10276_v30  ;;  %v9369_v51 = vunpack.i.h.bf16 %v14636_v44  ;;  %v14758_v4 = vrot.slane %v8389_v15, %v10276_v30 }
 0x746   : > { %v14674_v3 = vpop.permute.xlu1 %9376  ;;  %9601 = vrot.lane.b32.xlu0 %v9600_v25, %s9773_s18  ;;  %v8301_v53 = vcombine.high %v14670_v13, %v14661_v29  ;;  %v8302_v63 = vcombine.low %v8251_v14, %v8283_v56  ;;  %v14731_v25 = vld [vmem:[%s9977_s19 + $0x10] sm:$0xff]  ;;  %v8260_v54 = vrot.slane %v8252_v8, %v10276_v30  ;;  %v8285_v40 = vcombine.high %v14685_v59, %v14695_v42 }
 0x747   : > { %v9368_v36 = vunpack.i.l.bf16 %v14636_v44  ;;  %v14766_v9 = vrot.slane %v8421_v38, %v10276_v30  ;;  %v9333_v31 = vunpack.i.l.bf16 %v14645_v61  ;;  %v9373_v43 = vunpack.i.l.bf16 %v14647_v48 }
 0x748   : > { %8445 = vrot.lane.b32.xlu1 %v8301_v53, %s9768_s16  ;;  %v8303_v53 = vcombine.high %v8251_v14, %v8283_v56  ;;  %v8439_v14 = vcombine.high %v8387_v10, %v8419_v5  ;;  %v8440_v15 = vcombine.low %v8396_v34, %v14747_v35  ;;  %v14772_v8 = vrot.slane %v8253_v2, %v10276_v30  ;;  %v15857_v5 = vld [vmem:[#allocation28_spill] sm:$0xff]  ;;  %v15858_v10 = vld [vmem:[#allocation26_spill] sm:$0xff] }
 0x749   : > { %v14700_v7 = vpop.permute.xlu0 %9351  ;;  %v9374_v59 = vunpack.i.h.bf16 %v14647_v48  ;;  %v8304_v44 = vcombine.low %v8260_v54, %v8292_v60  ;;  %v8441_v42 = vcombine.high %v8396_v34, %v14747_v35  ;;  %v9379_v49 = vunpack.i.h.bf16 %v14674_v3  ;;  %v15860_v48 = vld [vmem:[#allocation65_spill] sm:$0xff] }
 0x74a   : > { %v14702_v32 = vpop.permute.xlu1 %9381  ;;  %9606 = vrot.lane.b32.xlu0 %v9605_v23, %s9773_s18  ;;  %v9378_v33 = vunpack.i.l.bf16 %v14674_v3  ;;  %v14785_v2 = vrot.slane %v8285_v40, %v10276_v30 }
 0x74b   : > { %v9384_v35 = vunpack.i.h.bf16 %v14702_v32  ;;  %v9383_v34 = vunpack.i.l.bf16 %v14702_v32  ;;  %v8305_v32 = vcombine.high %v8260_v54, %v8292_v60 }
 0x74c   : > { %8449 = vrot.lane.b32.xlu1 %v8302_v63, %s9767_s29  ;;  %v9338_v63 = vunpack.i.l.bf16 %v14565_v39 }
 0x74d   : > { %v14728_v57 = vpop.permute.xlu0 %9361 }
 0x74e   : > { %v14750_v6 = vpop.permute.xlu1 %9401  ;;  %8477 = vrot.lane.b32.xlu0 %v8438_v45, %s9767_s29  ;;  %v15859_v45 = vcombine.low %v15857_v5, %v15858_v10  ;;  %v15864_v10 = vld [vmem:[#allocation15_spill] sm:$0xff] }
 0x750   : > { %8453 = vrot.lane.b32.xlu1 %v8303_v53, %s9770_s14  ;;  %v6542_v38 = vsel %vm1043_vm5, %v15859_v45, %v9369_v51  ;;  %v9334_v53 = vunpack.i.h.bf16 %v14645_v61  ;;  %v15863_v51 = vld [vmem:[#allocation20_spill] sm:$0xff] }
 0x751   : > { %v9387_v56 = vpop.permute.xlu0 %9386  ;;  %v15865_v3 = vcombine.low %v15863_v51, %v15864_v10  ;;  %v9344_v51 = vunpack.i.h.bf16 %v14672_v18 }
 0x752   : > { %8481 = vrot.lane.b32.xlu0 %v8439_v14, %s9770_s14  ;;  %v15862_v14 = vcombine.low %v15860_v48, %v15861_v20  ;;  %v14793_v5 = vpop.permute.xlu1 %9411  ;;  %v9389_v27 = vunpack.i.h.bf16 %v9387_v56  ;;  %v9388_v20 = vunpack.i.l.bf16 %v9387_v56  ;;  %v9343_v56 = vunpack.i.l.bf16 %v14672_v18 }
 0x753   : > { %v5340_v40 = vsel %vm1043_vm5, %v15865_v3, %v9333_v31  ;;  %v9403_v18 = vunpack.i.l.bf16 %v14750_v6 }
 0x754   : > { %v6136_v22 = vsel %vm1043_vm5, %v15862_v14, %v9368_v36  ;;  %8457 = vrot.lane.b32.xlu1 %v8304_v44, %s9769_s13  ;;  %v6543_v36 = vsel %vm1045_vm6, %v6542_v38, %v9374_v59  ;;  %v15868_v44 = vcombine.low %v15866_v58, %v15867_v55  ;;  %v8306_v55 = vcombine.low %v14772_v8, %v14785_v2 }
 0x755   : > { %v9392_v61 = vpop.permute.xlu0 %9391  ;;  %v6137_v45 = vsel %vm1045_vm6, %v6136_v22, %v9373_v43  ;;  %v6544_v22 = vsel %vm1047_vm7, %v6543_v36, %v9379_v49  ;;  %v9404_v49 = vunpack.i.h.bf16 %v14750_v6  ;;  %v15869_v6 = vunpack.i.h.bf16 %v14565_v39  ;;  %v15870_v39 = vld [vmem:[#allocation76_spill] sm:$0xff] }
 0x756   : > { %v9394_v48 = vunpack.i.h.bf16 %v9392_v61  ;;  %v9393_v14 = vunpack.i.l.bf16 %v9392_v61  ;;  %8485 = vrot.lane.b32.xlu0 %v8440_v15, %s9769_s13  ;;  %v5347_v23 = vsel %vm1043_vm5, %v15868_v44, %v9334_v53  ;;  %v6138_v31 = vsel %vm1047_vm7, %v6137_v45, %v9378_v33  ;;  %v15871_v44 = vld [vmem:[#allocation75_spill] sm:$0xff] }
 0x757   : > { %v6139_v43 = vsel %vm1049_vm8, %v6138_v31, %v9383_v34  ;;  %v6545_v59 = vsel %vm1049_vm8, %v6544_v22, %v9384_v35  ;;  %v9422_v35 = vpop.permute.xlu1 %9421  ;;  %v9349_v34 = vunpack.i.h.bf16 %v14602_v62  ;;  %v5341_v61 = vsel %vm1045_vm6, %v5340_v40, %v9338_v63  ;;  %v15873_v22 = vld [vmem:[#allocation67_spill] sm:$0xff] }
 0x758   : > { %8461 = vrot.lane.b32.xlu1 %v8305_v32, %s9772_s26  ;;  %v6140_v58 = vsel %vm1051_vm9, %v6139_v43, %v9388_v20  ;;  %v6546_v54 = vsel %vm1051_vm9, %v6545_v59, %v9389_v27  ;;  %v5342_v3 = vsel %vm1047_vm7, %v5341_v61, %v9343_v56  ;;  %v5348_v45 = vsel %vm1045_vm6, %v5347_v23, %v15869_v6  ;;  %v15874_v56 = vld [vmem:[#allocation64_spill] sm:$0xff] }
 0x759   : > { %v9397_v60 = vpop.permute.xlu0 %9396  ;;  %v6141_v38 = vsel %vm1053_vm10, %v6140_v58, %v9393_v14  ;;  %v6547_v53 = vsel %vm1053_vm10, %v6546_v54, %v9394_v48  ;;  %v5349_v40 = vsel %vm1047_vm7, %v5348_v45, %v9344_v51  ;;  %v9354_v36 = vunpack.i.h.bf16 %v14700_v7 }
 0x75a   : > { %v9399_v15 = vunpack.i.h.bf16 %v9397_v60  ;;  %v9398_v33 = vunpack.i.l.bf16 %v9397_v60  ;;  %8489 = vrot.lane.b32.xlu0 %v8441_v42, %s9772_s26  ;;  %v8442_v42 = vcombine.low %v14758_v4, %v14766_v9  ;;  %v9353_v32 = vunpack.i.l.bf16 %v14700_v7 }
 0x75b   : > { %v15872_v23 = vcombine.low %v15870_v39, %v15871_v44  ;;  %v15875_v43 = vcombine.low %v15873_v22, %v15874_v56  ;;  %v8307_v51 = vcombine.high %v14772_v8, %v14785_v2  ;;  %v9348_v60 = vunpack.i.l.bf16 %v14602_v62 }
 0x75c   : > { %v14826_v10 = vsel %vm1055_vm11, %v6141_v38, %v9398_v33  ;;  %v14829_v27 = vsel %vm1055_vm11, %v6547_v53, %v9399_v15  ;;  %8465 = vrot.lane.b32.xlu1 %v8306_v55, %s9771_s20  ;;  %v8443_v58 = vcombine.high %v14758_v4, %v14766_v9  ;;  %v9359_v54 = vunpack.i.h.bf16 %v14622_v47 }
 0x75d   : > { %v9407_v20 = vpop.permute.xlu0 %9406  ;;  %v8971_v63 = vpack.c.bf16 %v14829_v27, %v14826_v10  ;;  %v5753_v31 = vsel %vm1043_vm5, %v15872_v23, %v9404_v49  ;;  %v5746_v59 = vsel %vm1043_vm5, %v15875_v43, %v9403_v18  ;;  %v9358_v15 = vunpack.i.l.bf16 %v14622_v47  ;;  %v9432_v18 = vpop.permute.xlu1 %9431 }
 0x75e   : > { %v9409_v48 = vunpack.i.h.bf16 %v9407_v20  ;;  %v9408_v14 = vunpack.i.l.bf16 %v9407_v20  ;;  %8493 = vrot.lane.b32.xlu0 %v8442_v42, %s9771_s20  ;;  %v9414_v33 = vunpack.i.h.bf16 %v14793_v5  ;;  %v9413_v49 = vunpack.i.l.bf16 %v14793_v5 }
 0x75f   : > { %v5343_v62 = vsel %vm1049_vm8, %v5342_v3, %v9348_v60  ;;  %v5350_v53 = vsel %vm1049_vm8, %v5349_v40, %v9349_v34  ;;  %v9424_v61 = vunpack.i.h.bf16 %v9422_v35  ;;  %v9423_v6 = vunpack.i.l.bf16 %v9422_v35  ;;  %v4627_v34 = vld [vmem:[%s15189_s5] sm:$0xf] }
 0x760   : > { %v5747_v55 = vsel %vm1045_vm6, %v5746_v59, %v9408_v14  ;;  %v5754_v7 = vsel %vm1045_vm6, %v5753_v31, %v9409_v48  ;;  %8469 = vrot.lane.b32.xlu1 %v8307_v51, %s9773_s18  ;;  %v5344_v4 = vsel %vm1051_vm9, %v5343_v62, %v9353_v32  ;;  %v5351_v5 = vsel %vm1051_vm9, %v5350_v53, %v9354_v36 }
 0x761   : > { %v9417_v8 = vpop.permute.xlu0 %9416  ;;  %v5748_v9 = vsel %vm1047_vm7, %v5747_v55, %v9413_v49  ;;  %v5755_v47 = vsel %vm1047_vm7, %v5754_v7, %v9414_v33  ;;  %v9364_v20 = vunpack.i.h.bf16 %v14728_v57  ;;  %v9363_v42 = vunpack.i.l.bf16 %v14728_v57  ;;  %v14880_v44 = vpop.permute.xlu1 %9461 }
 0x762   : > { %v9419_v2 = vunpack.i.h.bf16 %v9417_v8  ;;  %v9418_v38 = vunpack.i.l.bf16 %v9417_v8  ;;  %8497 = vrot.lane.b32.xlu0 %v8443_v58, %s9773_s18  ;;  %v9434_v40 = vunpack.i.h.bf16 %v9432_v18  ;;  %v9433_v48 = vunpack.i.l.bf16 %v9432_v18 }
 0x763   : > { %v15876_v23 = vcombine.low %v14712_v11, %v14715_v52  ;;  %v15877_v57 = vcombine.low %v14739_v24, %v14742_v28  ;;  %v15878_v56 = vcombine.low %v14720_v37, %v14723_v21  ;;  %v15879_v59 = vcombine.low %v14731_v25, %v14734_v16 }
 0x764   : > { %v5749_v45 = vsel %vm1049_vm8, %v5748_v9, %v9418_v38  ;;  %v5756_v3 = vsel %vm1049_vm8, %v5755_v47, %v9419_v2  ;;  %v5352_v60 = vsel %vm1053_vm10, %v5351_v5, %v9359_v54  ;;  %v5345_v7 = vsel %vm1053_vm10, %v5344_v4, %v9358_v15 }
 0x765   : > { %v9427_v14 = vpop.permute.xlu0 %9426  ;;  %v5757_v36 = vsel %vm1051_vm9, %v5756_v3, %v9424_v61  ;;  %v5750_v35 = vsel %vm1051_vm9, %v5749_v45, %v9423_v6  ;;  %v8681_v31 = vrot.slane %v15876_v23, %v15552_v12  ;;  %v8697_v22 = vrot.slane %v15877_v57, %v15552_v12  ;;  %v14912_v4 = vpop.permute.xlu1 %9466 }
 0x766   : > { %v9429_v32 = vunpack.i.h.bf16 %v9427_v14  ;;  %v9428_v39 = vunpack.i.l.bf16 %v9427_v14  ;;  %8516 = vperm.xlu0 %9329, %v4627_v34   ;;  %v8613_v43 = vrot.slane %v15878_v56, %v15552_v12  ;;  %v8629_v51 = vrot.slane %v15879_v59, %v15552_v12  ;;  %v15881_v59 = vld [vmem:[#allocation12_spill] sm:$0xff] }
 0x767   : > { %v8705_v8 = vcombine.low %v8681_v31, %v8697_v22  ;;  %v5353_v2 = vsel %vm1055_vm11, %v5352_v60, %v9364_v20  ;;  %v5346_v38 = vsel %vm1055_vm11, %v5345_v7, %v9363_v42  ;;  %v15880_v5 = vmov 0.0   ;;  %v15884_v7 = vld [vmem:[#allocation29_spill] sm:$0xff] }
 0x768   : > { %v5758_v55 = vsel %vm1053_vm10, %v5757_v36, %v9429_v32  ;;  %v5751_v58 = vsel %vm1053_vm10, %v5750_v35, %v9428_v39  ;;  %v8637_v62 = vcombine.low %v8613_v43, %v8629_v51  ;;  %v8706_v45 = vcombine.high %v8681_v31, %v8697_v22 }
 0x769   : > { %v5759_v49 = vsel %vm1055_vm11, %v5758_v55, %v9434_v40  ;;  %v5752_v18 = vsel %vm1055_vm11, %v5751_v58, %v9433_v48  ;;  %v14907_v54 = vrot.slane %v8705_v8, %v10276_v30  ;;  %v8638_v3 = vcombine.high %v8613_v43, %v8629_v51  ;;  %v14931_v35 = vpop.permute.xlu1 %9471  ;;  %v15882_v51 = vld [vmem:[#allocation53_spill] sm:$0xff] }
 0x76a   : > { %v8965_v53 = vpack.c.bf16 %v5759_v49, %v5353_v2  ;;  %v8967_v9 = vpack.c.bf16 %v5752_v18, %v5346_v38  ;;  %v14910_v15 = vrot.slane %v8637_v62, %v10276_v30  ;;  %v8720_v34 = vrot.slane %v8706_v45, %v10276_v30  ;;  %v15885_v58 = vld [vmem:[#allocation33_spill] sm:$0xff] }
 0x76b   : > { %v9437_v33 = vpop.permute.xlu0 %9436  ;;  %v8737_v61 = vcombine.high %v14907_v54, %v15880_v5  ;;  %v8652_v20 = vrot.slane %v8638_v3, %v10276_v30  ;;  %v8674_v42 = vcombine.high %v14712_v11, %v14715_v52  ;;  %v8690_v14 = vcombine.high %v14739_v24, %v14742_v28 }
 0x76c   : > { %8966 = vmatprep.subr.bf16.mxu1 %v8965_v53  ;;  %v8669_v6 = vcombine.high %v14910_v15, %v15880_v5  ;;  %v9439_v32 = vunpack.i.h.bf16 %v9437_v33  ;;  %v8606_v39 = vcombine.high %v14720_v37, %v14723_v21  ;;  %v8622_v36 = vcombine.high %v14731_v25, %v14734_v16 }
 0x76d   : > { %8968 = vmatpush1.bf16.msra.mxu1 %v8967_v9  ;;  %8770 = vrot.lane.b32.xlu0 %v8737_v61, %s9768_s16  ;;  %v8688_v48 = vrot.slane %v8674_v42, %v15552_v12  ;;  %v9438_v23 = vunpack.i.l.bf16 %v9437_v33  ;;  %v8738_v11 = vcombine.high %v8720_v34, %v15880_v5  ;;  %v8670_v52 = vcombine.high %v8652_v20, %v15880_v5  ;;  %v9482_v53 = vpop.permute.xlu1 %9481 }
 0x76e   : > { %8742 = vrot.lane.b32.xlu1 %v8669_v6, %s9768_s16  ;;  %v8704_v24 = vrot.slane %v8690_v14, %v15552_v12  ;;  %v8620_v37 = vrot.slane %v8606_v39, %v15552_v12  ;;  %v8636_v21 = vrot.slane %v8622_v36, %v15552_v12  ;;  %v15883_v60 = vcombine.low %v15881_v59, %v15882_v51  ;;  %s8948_s16 = sshll.u32 %s9834_s25, 7  ;;  %s9777_s25 = smov [#allocation7]  }
 0x76f   : > { %v9442_v47 = vpop.permute.xlu0 %9441  ;;  %v15886_v33 = vcombine.low %v15884_v7, %v15885_v58  ;;  %v9464_v38 = vunpack.i.h.bf16 %v14880_v44  ;;  %v9474_v27 = vunpack.i.h.bf16 %v14931_v35  ;;  %v9484_v59 = vunpack.i.h.bf16 %v9482_v53  ;;  %s9690_s11 = sshll.u32 %s9777_s25, 4  ;;  %s9691_s11 = int_to_ptr.vmem [resolvable:$false] %s9690_s11 }
 0x770   : > { %v9444_v28 = vunpack.i.h.bf16 %v9442_v47  ;;  %v9443_v31 = vunpack.i.l.bf16 %v9442_v47  ;;  %v8721_v22 = vcombine.low %v8688_v48, %v8704_v24  ;;  %v8653_v43 = vcombine.low %v8620_v37, %v8636_v21  ;;  %s9692_s28 = scalar_lea.vmem %s9691_s11, 256 }
 0x771   : > { %8774 = vrot.lane.b32.xlu0 %v8720_v34, %s9767_s29  ;;  %v6549_v55 = vsel %vm1043_vm5, %v15883_v60, %v9439_v32  ;;  %v6143_v49 = vsel %vm1043_vm5, %v15886_v33, %v9438_v23  ;;  %v8722_v34 = vcombine.high %v8688_v48, %v8704_v24  ;;  %v8654_v36 = vcombine.high %v8620_v37, %v8636_v21 }
 0x772   : > { %8746 = vrot.lane.b32.xlu1 %v8652_v20, %s9767_s29  ;;  %v8729_v12 = vrot.slane %v8721_v22, %v10276_v30  ;;  %v6144_v8 = vsel %vm1045_vm6, %v6143_v49, %v9443_v31  ;;  %v6550_v62 = vsel %vm1045_vm6, %v6549_v55, %v9444_v28  ;;  %v8661_v2 = vrot.slane %v8653_v43, %v10276_v30  ;;  %v15887_v49 = vld [vmem:[#allocation54_spill] sm:$0xff]  ;;  %s8938_s29 = sshll.u32 %s9973_s17, 3 }
 0x773   : > { %v9447_v40 = vpop.permute.xlu0 %9446  ;;  %v9463_v20 = vunpack.i.l.bf16 %v14880_v44  ;;  %v9469_v23 = vunpack.i.h.bf16 %v14912_v4  ;;  %v9468_v48 = vunpack.i.l.bf16 %v14912_v4  ;;  %v8736_v31 = vrot.slane %v8722_v34, %v10276_v30 }
 0x774   : > { %v9449_v25 = vunpack.i.h.bf16 %v9447_v40  ;;  %v9448_v16 = vunpack.i.l.bf16 %v9447_v40  ;;  %v8739_v40 = vcombine.high %v8729_v12, %v15880_v5  ;;  %v8671_v14 = vcombine.high %v8661_v2, %v15880_v5 }
 0x775   : > { %8778 = vrot.lane.b32.xlu0 %v8738_v11, %s9770_s14  ;;  %v8668_v21 = vrot.slane %v8654_v36, %v10276_v30  ;;  %v9483_v51 = vunpack.i.l.bf16 %v9482_v53 }
 0x776   : > { %8750 = vrot.lane.b32.xlu1 %v8670_v52, %s9770_s14  ;;  %v6145_v9 = vsel %vm1047_vm7, %v6144_v8, %v9448_v16  ;;  %v6551_v47 = vsel %vm1047_vm7, %v6550_v62, %v9449_v25  ;;  %v9492_v52 = vpop.permute.xlu1 %9491  ;;  %v8740_v16 = vcombine.high %v8736_v31, %v15880_v5  ;;  %v15890_v62 = vld [vmem:[#allocation37_spill] sm:$0xff] }
 0x777   : > { %v9452_v57 = vpop.permute.xlu0 %9451  ;;  %v9494_v55 = vunpack.i.h.bf16 %v9492_v52 }
 0x778   : > { %v9453_v56 = vunpack.i.l.bf16 %v9452_v57  ;;  %v9454_v18 = vunpack.i.h.bf16 %v9452_v57  ;;  %v8672_v57 = vcombine.high %v8668_v21, %v15880_v5  ;;  %v9493_v5 = vunpack.i.l.bf16 %v9492_v52 }
 0x779   : > { %8782 = vrot.lane.b32.xlu0 %v8729_v12, %s9769_s13 }
 0x77a   : > { %v6146_v6 = vsel %vm1049_vm8, %v6145_v9, %v9453_v56  ;;  %v6552_v42 = vsel %vm1049_vm8, %v6551_v47, %v9454_v18  ;;  %8754 = vrot.lane.b32.xlu1 %v8661_v2, %s9769_s13  ;;  %v15888_v18 = vld [vmem:[#allocation52_spill] sm:$0xff]  ;;  %v15891_v2 = vld [vmem:[#allocation61_spill] sm:$0xff]  ;;  %s309_s13 = scalar_lea.vmem [#allocation7], %s8938_s29 }
 0x77b   : > { %v9457_v61 = vpop.permute.xlu0 %9456  ;;  %v15889_v12 = vcombine.low %v15887_v49, %v15888_v18  ;;  %s8833_s14 = sshll.u32 %s309_s13, 4  ;;  %s15142_s14 = int_to_ptr.vmem [resolvable:$true] %s8833_s14 }
 0x77c   : > { %v9459_v45 = vunpack.i.h.bf16 %v9457_v61  ;;  %v9458_v3 = vunpack.i.l.bf16 %v9457_v61  ;;  %v14976_v4 = vpop.permute.xlu1 %9496  ;;  %s9686_s0 = scalar_lea.vmem %s15142_s14, 128  ;;  %p9693_p5 = scmp.lt.s32.totalorder %s15142_s14, %s9691_s11 }
 0x77d   : > { %8786 = vrot.lane.b32.xlu0 %v8739_v40, %s9772_s26  ;;  %v7329_v8 = vsel %vm1043_vm5, %v15889_v12, %v9474_v27  ;;  %v15893_v27 = vld [vmem:[#allocation74_spill] sm:$0xff]  ;;  %p9687_p13 = scmp.ne.s32.totalorder %s15142_s14, %s9686_s0  ;;  %p9694_p7 = scmp.lt.s32.totalorder %s9692_s28, %s9686_s0 }
 0x77e   : > { %v6147_v32 = vsel %vm1051_vm9, %v6146_v6, %v9458_v3  ;;  %v6553_v39 = vsel %vm1051_vm9, %v6552_v42, %v9459_v45  ;;  %8758 = vrot.lane.b32.xlu1 %v8671_v14, %s9772_s26  ;;  %v7330_v61 = vsel %vm1045_vm6, %v7329_v8, %v9484_v59 }
 0x77f   : > { %v6148_v44 = vsel %vm1053_vm10, %v6147_v32, %v9463_v20  ;;  %v6554_v11 = vsel %vm1053_vm10, %v6553_v39, %v9464_v38  ;;  %v9477_v25 = vpop.permute.xlu0 %9476  ;;  %v15892_v38 = vcombine.low %v15890_v62, %v15891_v2  ;;  %v7331_v34 = vsel %vm1047_vm7, %v7330_v61, %v9494_v55  ;;  %v15897_v55 = vld [vmem:[#allocation72_spill] sm:$0xff]  ;;  %p9688_p12 = pnand %p9687_p13, %p15907_p1  ;;  %p9695_p9 = por %p9694_p7, %p9693_p5 }
 0x780   : > { %v6149_v24 = vsel %vm1055_vm11, %v6148_v44, %v9468_v48  ;;  %v6555_v28 = vsel %vm1055_vm11, %v6554_v11, %v9469_v23  ;;  %v14987_v30 = vpop.permute.xlu1 %9506 }
 0x781   : > { %v8969_v37 = vpack.c.bf16 %v6555_v28, %v6149_v24  ;;  %8790 = vrot.lane.b32.xlu0 %v8736_v31, %s9771_s20  ;;  %p9689_p10 = pneg %p9688_p12 }
 0x782   : > { %8762 = vrot.lane.b32.xlu1 %v8668_v21, %s9771_s20  ;;  %v9478_v21 = vunpack.i.l.bf16 %v9477_v25 }
 0x783   : > { %8970 = vmatprep.subr.bf16.mxu1 %v8969_v37  ;;  %v9487_v22 = vpop.permute.xlu0 %9486  ;;  %v9479_v37 = vunpack.i.h.bf16 %v9477_v25  ;;  %v9499_v25 = vunpack.i.h.bf16 %v14976_v4  ;;  %p9696_p11 = pnand %p9695_p9, %p9689_p10 }
 0x784   : > { %8972 = vmatpush1.bf16.msra.mxu1 %v8971_v63  ;;  %v9473_v63 = vunpack.i.l.bf16 %v14931_v35 }
 0x785   : > { %8794 = vrot.lane.b32.xlu0 %v8740_v16, %s9773_s18  ;;  %v9489_v16 = vunpack.i.h.bf16 %v9487_v22 }
 0x786   : > { %8766 = vrot.lane.b32.xlu1 %v8672_v57, %s9773_s18  ;;  %v6939_v9 = vsel %vm1043_vm5, %v15892_v38, %v9473_v63  ;;  %v9488_v57 = vunpack.i.l.bf16 %v9487_v22  ;;  %v15894_v63 = vld [vmem:[#allocation71_spill] sm:$0xff]  ;;  %v9498_v22 = vunpack.i.l.bf16 %v14976_v4  ;;  %s15140_s18 = scalar_lea.hbm %s15190_s6, %s8948_s16 }
 0x787   : > { %v9502_v56 = vpop.permute.xlu0 %9501  ;;  %v6940_v53 = vsel %vm1045_vm6, %v6939_v9, %v9483_v51  ;;  %v15895_v59 = vcombine.low %v15893_v27, %v15894_v63  ;;  %v9509_v9 = vunpack.i.h.bf16 %v14987_v30 }
 0x788   : > { %v9504_v7 = vunpack.i.h.bf16 %v9502_v56  ;;  %v9503_v58 = vunpack.i.l.bf16 %v9502_v56  ;;  %v6941_v3 = vsel %vm1047_vm7, %v6940_v53, %v9493_v5 }
 0x789   : > { %v6932_v51 = vsel %vm1043_vm5, %v15895_v59, %v9478_v21 }
 0x78a   : > { %v6942_v20 = vsel %vm1049_vm8, %v6941_v3, %v9503_v58  ;;  %v7332_v42 = vsel %vm1049_vm8, %v7331_v34, %v9504_v7  ;;  %v6933_v58 = vsel %vm1045_vm6, %v6932_v51, %v9488_v57 }
 0x78b   : > { %v9512_v60 = vpop.permute.xlu0 %9511  ;;  %v6934_v8 = vsel %vm1047_vm7, %v6933_v58, %v9498_v22 }
 0x78c   : > { %v9514_v35 = vunpack.i.h.bf16 %v9512_v60  ;;  %v9513_v47 = vunpack.i.l.bf16 %v9512_v60  ;;  %v15896_v60 = vld [vmem:[#allocation49_spill] sm:$0xff] }
 0x78d   : > { %v14989_v43 = vpop.permute.xlu1 %9516  ;;  %v15898_v5 = vcombine.low %v15896_v60, %v15897_v55 }
 0x78e   : > { %v6943_v32 = vsel %vm1051_vm9, %v6942_v20, %v9513_v47  ;;  %v7333_v39 = vsel %vm1051_vm9, %v7332_v42, %v9514_v35  ;;  %v9508_v35 = vunpack.i.l.bf16 %v14987_v30 }
 0x78f   : > { %v9522_v40 = vpop.permute.xlu0 %9521  ;;  %v7322_v7 = vsel %vm1043_vm5, %v15898_v5, %v9479_v37  ;;  %v15899_v37 = vcombine.low %v15846_v19, %v15845_v17  ;;  %v15901_v17 = vcombine.low %v14325_v46, %v14322_v1 }
 0x790   : > { %v7323_v49 = vsel %vm1045_vm6, %v7322_v7, %v9489_v16  ;;  %v9524_v2 = vunpack.i.h.bf16 %v9522_v40  ;;  %v9523_v38 = vunpack.i.l.bf16 %v9522_v40  ;;  %v6935_v61 = vsel %vm1049_vm8, %v6934_v8, %v9508_v35 }
 0x791   : > { %v9527_v10 = vpop.permute.xlu1 %9526  ;;  %v7324_v62 = vsel %vm1047_vm7, %v7323_v49, %v9499_v25  ;;  %v15900_v16 = vcombine.low %v14447_v41, %v14444_v50  ;;  %v15902_v50 = vld [vmem:[#allocation69_spill] sm:$0xff]  ;;  %v15903_v41 = vld [vmem:[#allocation66_spill] sm:$0xff] }
 0x792   : > { %v9529_v6 = vunpack.i.h.bf16 %v9527_v10  ;;  %v9528_v45 = vunpack.i.l.bf16 %v9527_v10  ;;  %v15904_v55 = vcombine.low %v15902_v50, %v15903_v41 }
 0x794   : > { %v6944_v48 = vsel %vm1053_vm10, %v6943_v32, %v9528_v45  ;;  %v7334_v44 = vsel %vm1053_vm10, %v7333_v39, %v9529_v6  ;;  %v7325_v6 = vsel %vm1049_vm8, %v7324_v62, %v9509_v9  ;;  %v6936_v45 = vsel %vm1051_vm9, %v6935_v61, %v9523_v38 }
 0x795   : > { %v14993_v33 = vpop.permute.xlu1 %9536  ;;  %v7326_v3 = vsel %vm1051_vm9, %v7325_v6, %v9524_v2 }
 0x796   : > { %v9539_v59 = vunpack.i.h.bf16 %v14993_v33 }
 0x799   : > { %v9547_v14 = vpop.permute.xlu1 %9546 }
 0x79a   : > { %v9549_v36 = vunpack.i.h.bf16 %v9547_v14  ;;  %v9548_v23 = vunpack.i.l.bf16 %v9547_v14 }
 0x79c   : > { %v6945_v11 = vsel %vm1055_vm11, %v6944_v48, %v9548_v23  ;;  %v7335_v52 = vsel %vm1055_vm11, %v7334_v44, %v9549_v36  ;;  %v9532_v24 = vpop.permute.xlu0 %9531 }
 0x79d   : > { %v15015_v28 = vpop.permute.xlu1 %9556  ;;  %v8973_v31 = vpack.c.bf16 %v7335_v52, %v6945_v11  ;;  %v9534_v39 = vunpack.i.h.bf16 %v9532_v24  ;;  %v9533_v36 = vunpack.i.l.bf16 %v9532_v24  ;;  %v9519_v52 = vunpack.i.h.bf16 %v14989_v43 }
 0x79e   : > { %v9559_v7 = vunpack.i.h.bf16 %v15015_v28  ;;  %v9558_v58 = vunpack.i.l.bf16 %v15015_v28 }
 0x79f   : > { %8974 = vmatprep.subr.bf16.mxu1 %v8973_v31  ;;  %v9518_v31 = vunpack.i.l.bf16 %v14989_v43  ;;  %v7720_v21 = vsel %vm1043_vm5, %v15899_v37, %v9533_v36  ;;  %v8110_v57 = vsel %vm1043_vm5, %v15900_v16, %v9534_v39  ;;  %v9538_v43 = vunpack.i.l.bf16 %v14993_v33 }
 0x7a0   : > { %v9542_v56 = vpop.permute.xlu0 %9541  ;;  %v8117_v19 = vsel %vm1043_vm5, %v15901_v17, %v9519_v52 }
 0x7a1   : > { %v9567_v10 = vpop.permute.xlu1 %9566  ;;  %v9544_v47 = vunpack.i.h.bf16 %v9542_v56  ;;  %v9543_v53 = vunpack.i.l.bf16 %v9542_v56  ;;  %v7727_v5 = vsel %vm1043_vm5, %v15904_v55, %v9518_v31  ;;  %v8118_v2 = vsel %vm1045_vm6, %v8117_v19, %v9539_v59 }
 0x7a2   : > { %v9569_v51 = vunpack.i.h.bf16 %v9567_v10  ;;  %v9568_v60 = vunpack.i.l.bf16 %v9567_v10  ;;  %v7728_v62 = vsel %vm1045_vm6, %v7727_v5, %v9538_v43  ;;  %v15905_v55 = vcombine.low %v14615_v26, %v14598_v0 }
 0x7a3   : > { %v6937_v42 = vsel %vm1053_vm10, %v6936_v45, %v9543_v53  ;;  %v7327_v40 = vsel %vm1053_vm10, %v7326_v3, %v9544_v47  ;;  %v7729_v35 = vsel %vm1047_vm7, %v7728_v62, %v9558_v58  ;;  %v8119_v47 = vsel %vm1047_vm7, %v8118_v2, %v9559_v7  ;;  %v4626_v2 = vld [vmem:[%s15188_s4] sm:$0xf] }
 0x7a4   : > { %v9552_v18 = vpop.permute.xlu0 %9551  ;;  %v15906_v7 = vcombine.low %v14670_v13, %v14661_v29 }
 0x7a5   : > { %v15029_v12 = vpop.permute.xlu1 %9576  ;;  %v9554_v44 = vunpack.i.h.bf16 %v9552_v18  ;;  %v9553_v11 = vunpack.i.l.bf16 %v9552_v18 }
 0x7a6   : > { %v9579_v1 = vunpack.i.h.bf16 %v15029_v12  ;;  %v9578_v46 = vunpack.i.l.bf16 %v15029_v12 }
 0x7a7   : > { %v7721_v27 = vsel %vm1045_vm6, %v7720_v21, %v9553_v11  ;;  %v8111_v63 = vsel %vm1045_vm6, %v8110_v57, %v9554_v44 }
 0x7a8   : > { %v9562_v4 = vpop.permute.xlu0 %9561  ;;  %v7722_v49 = vsel %vm1047_vm7, %v7721_v27, %v9568_v60  ;;  %v8112_v33 = vsel %vm1047_vm7, %v8111_v63, %v9569_v51 }
 0x7a9   : > { %v9564_v34 = vunpack.i.h.bf16 %v9562_v4  ;;  %v9563_v20 = vunpack.i.l.bf16 %v9562_v4  ;;  %v15041_v14 = vpop.permute.xlu1 %9586  ;;  %v7723_v53 = vsel %vm1049_vm8, %v7722_v49, %v9578_v46  ;;  %v8113_v61 = vsel %vm1049_vm8, %v8112_v33, %v9579_v1 }
 0x7aa   : > { %v9589_v6 = vunpack.i.h.bf16 %v15041_v14  ;;  %v9588_v12 = vunpack.i.l.bf16 %v15041_v14 }
 0x7ab   : > { %v6938_v30 = vsel %vm1055_vm11, %v6937_v42, %v9563_v20  ;;  %v7328_v32 = vsel %vm1055_vm11, %v7327_v40, %v9564_v34 }
 0x7ac   : > { %v9572_v23 = vpop.permute.xlu0 %9571  ;;  %v8975_v48 = vpack.c.bf16 %v7328_v32, %v6938_v30  ;;  %v7724_v52 = vsel %vm1051_vm9, %v7723_v53, %v9588_v12  ;;  %v8114_v31 = vsel %vm1051_vm9, %v8113_v61, %v9589_v6 }
 0x7ad   : > { %v9597_v24 = vpop.permute.xlu1 %9596  ;;  %v9574_v25 = vunpack.i.h.bf16 %v9572_v23  ;;  %v9573_v10 = vunpack.i.l.bf16 %v9572_v23 }
 0x7ae   : > { %8976 = vmatpush1.bf16.msra.mxu1 %v8975_v48  ;;  %v9599_v30 = vunpack.i.h.bf16 %v9597_v24  ;;  %v9598_v32 = vunpack.i.l.bf16 %v9597_v24 }
 0x7af   : > { %v7730_v4 = vsel %vm1049_vm8, %v7729_v35, %v9573_v10  ;;  %v8120_v45 = vsel %vm1049_vm8, %v8119_v47, %v9574_v25 }
 0x7b0   : > { %v9582_v56 = vpop.permute.xlu0 %9581  ;;  %v7725_v16 = vsel %vm1053_vm10, %v7724_v52, %v9598_v32  ;;  %v8115_v57 = vsel %vm1053_vm10, %v8114_v31, %v9599_v30 }
 0x7b1   : > { %v9584_v18 = vunpack.i.h.bf16 %v9582_v56  ;;  %v9583_v8 = vunpack.i.l.bf16 %v9582_v56  ;;  %v8474_v38 = vpop.permute.xlu1 %8473 }
 0x7b2   : > { %v8507_v5 = vsel %vm1043_vm5, %v15905_v55, %v8474_v38 }
 0x7b3   : > { %v7731_v34 = vsel %vm1051_vm9, %v7730_v4, %v9583_v8  ;;  %v8121_v20 = vsel %vm1051_vm9, %v8120_v45, %v9584_v18 }
 0x7b4   : > { %v9592_v22 = vpop.permute.xlu0 %9591 }
 0x7b5   : > { %v9594_v9 = vunpack.i.h.bf16 %v9592_v22  ;;  %v9593_v28 = vunpack.i.l.bf16 %v9592_v22 }
 0x7b7   : > { %v7732_v39 = vsel %vm1053_vm10, %v7731_v34, %v9593_v28  ;;  %v8122_v36 = vsel %vm1053_vm10, %v8121_v20, %v9594_v9 }
 0x7b8   : > { %v9602_v3 = vpop.permute.xlu0 %9601 }
 0x7b9   : > { %v9604_v42 = vunpack.i.h.bf16 %v9602_v3  ;;  %v9603_v40 = vunpack.i.l.bf16 %v9602_v3 }
 0x7ba   : > { %v8446_v23 = vpop.permute.xlu1 %8445 }
 0x7bb   : > { %v7733_v14 = vsel %vm1055_vm11, %v7732_v39, %v9603_v40  ;;  %v8123_v48 = vsel %vm1055_vm11, %v8122_v36, %v9604_v42  ;;  %v8500_v58 = vsel %vm1043_vm5, %v15906_v7, %v8446_v23 }
 0x7bc   : > { %v9607_v44 = vpop.permute.xlu0 %9606  ;;  %v8977_v11 = vpack.c.bf16 %v8123_v48, %v7733_v14 }
 0x7bd   : > { %v9609_v37 = vunpack.i.h.bf16 %v9607_v44  ;;  %v9608_v21 = vunpack.i.l.bf16 %v9607_v44 }
 0x7be   : > { %v8450_v24 = vpop.permute.xlu1 %8449  ;;  %8978 = vmatprep.subr.bf16.mxu1 %v8977_v11 }
 0x7bf   : > { %v7726_v56 = vsel %vm1055_vm11, %v7725_v16, %v9608_v21  ;;  %v8116_v27 = vsel %vm1055_vm11, %v8115_v57, %v9609_v37  ;;  %v8501_v25 = vsel %vm1045_vm6, %v8500_v58, %v8450_v24 }
 0x7c0   : > { %v8478_v63 = vpop.permute.xlu0 %8477  ;;  %v8979_v59 = vpack.c.bf16 %v8116_v27, %v7726_v56 }
 0x7c1   : > { %v8508_v49 = vsel %vm1045_vm6, %v8507_v5, %v8478_v63 }
 0x7c2   : > { %v8454_v43 = vpop.permute.xlu1 %8453  ;;  %8980 = vmatpush1.bf16.msra.mxu1 %v8979_v59 }
 0x7c3   : > { %v8502_v22 = vsel %vm1047_vm7, %v8501_v25, %v8454_v43 }
 0x7c4   : > { %v8482_v51 = vpop.permute.xlu0 %8481 }
 0x7c5   : > { %v8509_v10 = vsel %vm1047_vm7, %v8508_v49, %v8482_v51 }
 0x7c6   : > { %v8458_v60 = vpop.permute.xlu1 %8457 }
 0x7c7   : > { %v8503_v0 = vsel %vm1049_vm8, %v8502_v22, %v8458_v60 }
 0x7c8   : > { %v8486_v17 = vpop.permute.xlu0 %8485 }
 0x7c9   : > { %v8510_v1 = vsel %vm1049_vm8, %v8509_v10, %v8486_v17 }
 0x7ca   : > { %v8462_v19 = vpop.permute.xlu1 %8461 }
 0x7cb   : > { %v8504_v29 = vsel %vm1051_vm9, %v8503_v0, %v8462_v19 }
 0x7cc   : > { %v8490_v50 = vpop.permute.xlu0 %8489 }
 0x7cd   : > { %v8511_v26 = vsel %vm1051_vm9, %v8510_v1, %v8490_v50 }
 0x7ce   : > { %v8466_v41 = vpop.permute.xlu1 %8465 }
 0x7cf   : > { %v8505_v8 = vsel %vm1053_vm10, %v8504_v29, %v8466_v41 }
 0x7d0   : > { %v8494_v33 = vpop.permute.xlu0 %8493 }
 0x7d1   : > { %v8512_v13 = vsel %vm1053_vm10, %v8511_v26, %v8494_v33 }
 0x7d2   : > { %v8470_v46 = vpop.permute.xlu1 %8469 }
 0x7d3   : > { %v8506_v38 = vsel %vm1055_vm11, %v8505_v8, %v8470_v46 }
 0x7d4   : > { %v8498_v18 = vpop.permute.xlu0 %8497 }
 0x7d5   : > { %v8513_v62 = vsel %vm1055_vm11, %v8512_v13, %v8498_v18 }
 0x7d6   : > { %8538 = vmatprep.subr.mxu1 %v8513_v62 }
 0x7d7   : > { %8539 = vmatpush1.msra.mxu1 %v8506_v38 }
 0x7d8   : > { %8940 = vmatmul.mubr.msk.f32.vlgmr.msra.gmra.mrb[0].mxu1 %vm4231_vm12, %v4626_v2 }
 0x7e0   : > { %v8743_v28 = vpop.permute.xlu1 %8742 }
 0x7e1   : > { %v8797_v39 = vsel %vm1043_vm5, %v14910_v15, %v8743_v28 }
 0x7e4   : > { %v8747_v47 = vpop.permute.xlu1 %8746 }
 0x7e5   : > { %v8517_v9 = vpop.permute.xlu0 %8516  ;;  %v8798_v23 = vsel %vm1045_vm6, %v8797_v39, %v8747_v47 }
 0x7e8   : > { %v8751_v45 = vpop.permute.xlu1 %8750 }
 0x7e9   : > { %v8771_v35 = vpop.permute.xlu0 %8770  ;;  %v8799_v31 = vsel %vm1047_vm7, %v8798_v23, %v8751_v45 }
 0x7ea   : > { %v8804_v36 = vsel %vm1043_vm5, %v14907_v54, %v8771_v35 }
 0x7ec   : > { %v8755_v30 = vpop.permute.xlu1 %8754 }
 0x7ed   : > { %v8775_v53 = vpop.permute.xlu0 %8774  ;;  %v8800_v15 = vsel %vm1049_vm8, %v8799_v31, %v8755_v30 }
 0x7ee   : > { %v8805_v48 = vsel %vm1045_vm6, %v8804_v36, %v8775_v53 }
 0x7f0   : > { %v8759_v14 = vpop.permute.xlu1 %8758 }
 0x7f1   : > { %v8779_v34 = vpop.permute.xlu0 %8778  ;;  %v8801_v56 = vsel %vm1051_vm9, %v8800_v15, %v8759_v14 }
 0x7f2   : > { %v8806_v21 = vsel %vm1047_vm7, %v8805_v48, %v8779_v34 }
 0x7f4   : > { %v8763_v54 = vpop.permute.xlu1 %8762 }
 0x7f5   : > { %v8783_v32 = vpop.permute.xlu0 %8782  ;;  %v8802_v63 = vsel %vm1053_vm10, %v8801_v56, %v8763_v54 }
 0x7f6   : > { %v8807_v57 = vsel %vm1049_vm8, %v8806_v21, %v8783_v32 }
 0x7f8   : > { %v8767_v59 = vpop.permute.xlu1 %8766 }
 0x7f9   : > { %v8787_v44 = vpop.permute.xlu0 %8786  ;;  %v8803_v17 = vsel %vm1055_vm11, %v8802_v63, %v8767_v59 }
 0x7fa   : > { %v8808_v27 = vsel %vm1051_vm9, %v8807_v57, %v8787_v44 }
 0x7fd   : > { %v8791_v24 = vpop.permute.xlu0 %8790 }
 0x7fe   : > { %v8809_v43 = vsel %vm1053_vm10, %v8808_v27, %v8791_v24 }
 0x801   : > { %v8795_v51 = vpop.permute.xlu0 %8794 }
 0x802   : > { %v8810_v50 = vsel %vm1055_vm11, %v8809_v43, %v8795_v51 }
 0x8ab   : > { %v8588_v61 = vpop.f32.mrb[0].mxu1 }
 0x8ac   : > { %v8589_v6 = vadd.f32 %v8588_v61, %v8517_v9  ;;  %v8590_v12 = vpop.f32.mrb[1].mxu1 }
 0x8ad   : > { %v8591_v4 = vadd.f32 %v8590_v12, %v8517_v9 }
 0x8ae   : > { %v8593_v3 = vsub.f32 0.0, %v8589_v6 }
 0x8af   : > { %v8594_v20 = vsub.f32 0.0, %v8591_v4 }
 0x8b0   : > { %v8595_v42 = vmul.f32 1.442695, %v8593_v3 }
 0x8b1   : > { %v8597_v40 = vmul.f32 1.442695, %v8594_v20 }
 0x8b2   : > { %9610 = vpow2.f32 %v8595_v42 }
 0x8b3   : > { %9612 = vpow2.f32 %v8597_v40 }
 0x8bc   : > { %v9611_v11 = vpop.eup %9610 }
 0x8bd   : > { %v9613_v52 = vpop.eup %9612  ;;  %v8599_v37 = vadd.f32 1.0, %v9611_v11 }
 0x8be   : > { %v8600_v16 = vadd.f32 1.0, %v9613_v52 }
 0x8bf   : > { %9614 = vrcp.f32 %v8599_v37 }
 0x8c0   : > { %9616 = vrcp.f32 %v8600_v16 }
 0x8c9   : > { %v9615_v60 = vpop.eup %9614 }
 0x8ca   : > { %v9617_v19 = vpop.eup %9616  ;;  %v8811_v41 = vmul.f32 %v9615_v60, %v8803_v17 }
 0x8cb   : > { %v8812_v55 = vmul.f32 %v9617_v19, %v8810_v50 }
 0x8cd   : > { %v8815_v5 = vcombine.low %v8811_v41, %v8812_v55 }
 0x8cf   : > { %8817 = vst [vmem:[%s309_s13] sm:$0xff] %v8815_v5 }
 0x8d0   : > { %9699 = shalt.err (!%p9696_p11)
}
 0x8d1   : > { %s9700_s17 = scalar_lea.hbm %s15140_s18, 128  ;;  %s9704_s7 = scalar_lea.hbm %s15190_s6, 256 }
 0x8d2   : > { %p9701_p3 = scmp.ne.s32.totalorder %s15140_s18, %s9700_s17  ;;  %p9705_p2 = scmp.lt.u32.totalorder %s15140_s18, %s15190_s6 }
 0x8d3   : > { %p9706_p4 = scmp.lt.u32.totalorder %s9704_s7, %s9700_s17  ;;  %p9708_p13 = scmp.lt.u32.totalorder %s9700_s17, %s15140_s18 }
 0x8d4   : > { %p9702_p8 = pnand %p9701_p3, %p15907_p1 }
 0x8d5   : > { %p9707_p6 = por %p9706_p4, %p9705_p2 }
 0x8d6   : > { %p9703_p0 = pneg %p9702_p8 }
 0x8d7   : > { %p9709_p12 = por %p9708_p13, %p9707_p6 }
 0x8d9   : > { %p9710_p10 = pnand %p9709_p12, %p9703_p0 }
 0x8db   : > { %9713 = shalt.err (!%p9710_p10)
}
 0x8dc   : > { %8985 = dma.vmem_to_hbm [thread:$0]  (%p15907_p1), %s15142_s14, 128, %s15140_s18, %s8819_s12  }
 0x8dd PF: > { %s8845_s16 = sand.u32 1, %s9744_s21   ;;  %p15908_p5 = scmp.ne.s32.totalorder %s15437_s10, 0 }
 0x8de   : > { %p15909_p7 = scmp.ge.s32.totalorder %s9756_s24, 2  ;;  %s8846_s13 = scalar_lea.sflag [#allocation4], %s8845_s16 }
 0x8e0   : > { %p8995_p9 = pnand %p15909_p7, %p15908_p5 }
 0x8e2   : > { %9739 = dma.done.wait (!%p8995_p9), %s8846_s13, 128  }
 0x8e3   : > { %9741 = vsyncadd (!%p8995_p9), %s8846_s13, 4294967168  ;;  %p22_p11 = scmp.ge.s32.totalorder %s9838_s27, 4   ;;  %s15910_s21 = smov %s9748_s22 }
 0x8e4   : > { %s15911_s22 = smov %s9752_s23  ;;  %s15912_s23 = smov %s9850_s30 }
 0x8e5   : > { %s15913_s24 = smov %s9838_s27  ;;  %24 = sbr.rel (!%p22_p11) target bundleno = 9 (0x9), region = 102 }
 0x8ec   :  { %8851 = vsyncpa [#allocation3], 1 }
 0x8ed   :  { %8853 = vsyncpa [#allocation3 + $0x1], 1 }
 0x8ee   :  { %8854 = vsyncpa [#allocation6], 1 }
 0x8ef   :  { %8856 = vsyncpa [#allocation6 + $0x1], 1 }
 0x8f0   :  { %8857 = vsyncpa [#allocation4], 1 }
 0x8f1   :  { %8859 = vsyncpa [#allocation4 + $0x1], 1 }

</bundles_post_ra>
